<compile_context>
chip_gen: v7x
topology: tpu7x:2x2x1
jax: 0.10.0
libtpu: 0.0.40
codegen_flags: <defaults>
</compile_context>

<pallas_src>
import math

import jax
import jax.numpy as jnp
import numpy as np
from jax.experimental import pallas as pl
from jax.experimental.pallas import tpu as pltpu

TARGET_LENGTH = 8192


# ----------------------------------------------------------------------------
# Host-side construction of the interpolation matrices.
# ----------------------------------------------------------------------------
def make_linear_interp_matrix(l_in, l_out):
    # Matches torch F.interpolate(mode='linear', align_corners=False).
    scale = l_in / l_out
    j = jnp.arange(l_out, dtype=jnp.float32)
    src = jnp.maximum((j + 0.5) * scale - 0.5, 0.0)
    i0 = jnp.minimum(jnp.floor(src).astype(jnp.int32), l_in - 1)
    i1 = jnp.minimum(i0 + 1, l_in - 1)
    lam = src - i0.astype(jnp.float32)
    m = (jax.nn.one_hot(i0, l_in, axis=0) * (1.0 - lam)[None, :]
         + jax.nn.one_hot(i1, l_in, axis=0) * lam[None, :])
    return m.astype(jnp.float32)


def make_phase_interp_matrix(interp_m):
    """(L_in, 8192) -> (L_in, 6*2048) phase-permuted interpolation matrix.

    With L4 = 2048, the six lane-aligned column blocks produce (for m < L4):
      r0[m]=r[4m], r1[m]=r[4m+1], r2[m]=r[4m+2], r3[m]=r[4m+3],
      r3_prev[m]=r[4m-1] (0 at m=0), r0_next[m]=r[4m+4] (0 at the end),
    so the +/-1 shifts needed by conv1 are folded into the matrix for free.
    """
    m0 = interp_m[:, 0::4]
    m1 = interp_m[:, 1::4]
    m2 = interp_m[:, 2::4]
    m3 = interp_m[:, 3::4]
    m3_prev = jnp.pad(m3[:, :-1], ((0, 0), (1, 0)))
    m0_next = jnp.pad(m0[:, 1:], ((0, 0), (0, 1)))
    return jnp.concatenate([m0, m1, m2, m3, m3_prev, m0_next], axis=1)


# ----------------------------------------------------------------------------
# Kernel A: fused linear-resize + conv1+relu+pool + conv2+relu+pool.
# Everything for one batch item stays in VMEM; output is (64, 2048) in
# natural (channel, position) order so the flatten matches PyTorch's view(),
# and is emitted in bf16 to halve the bytes streamed into fc1.
# ----------------------------------------------------------------------------
def interp_conv_kernel(x_ref, m_ref, w1_ref, b1_ref, w2_ref, b2_ref, o_ref):
    l4 = o_ref.shape[2]        # pooled-twice length (2048)

    def dot(a, b):
        return jnp.dot(a, b, preferred_element_type=jnp.float32)

    # --- linear resize, produced directly in stride-4 phase layout ----------
    x0 = x_ref[0]                                   # (3, L_in)
    r = dot(x0, m_ref[...])                         # (3, 6*l4)
    r0 = r[:, 0 * l4:1 * l4]
    r1 = r[:, 1 * l4:2 * l4]
    r2 = r[:, 2 * l4:3 * l4]
    r3 = r[:, 3 * l4:4 * l4]
    r3_prev = r[:, 4 * l4:5 * l4]
    r0_next = r[:, 5 * l4:6 * l4]

    # --- conv1 (k=3, pad=1) at the four phases, then relu + maxpool2 --------
    w10, w11, w12 = w1_ref[0], w1_ref[1], w1_ref[2]          # (32, 3) each
    c0 = dot(w10, r3_prev) + dot(w11, r0) + dot(w12, r1)     # conv1 at 4m
    c1 = dot(w10, r0) + dot(w11, r1) + dot(w12, r2)          # conv1 at 4m+1
    c2 = dot(w10, r1) + dot(w11, r2) + dot(w12, r3)          # conv1 at 4m+2
    c3 = dot(w10, r2) + dot(w11, r3) + dot(w12, r0_next)     # conv1 at 4m+3
    b1 = b1_ref[...]                                         # (32, 1)
    # maxpool(relu(conv + b)) == relu(max(even, odd) + b)  (monotone ops)
    p1e = jnp.maximum(jnp.maximum(c0, c1) + b1, 0.0)         # pooled1 at 2m
    p1o = jnp.maximum(jnp.maximum(c2, c3) + b1, 0.0)         # pooled1 at 2m+1

    # --- +/-1 shifts of pooled1 via XLU roll + edge mask (no VMEM scratch) --
    lane = jax.lax.broadcasted_iota(jnp.int32, p1o.shape, 1)      # (32, l4)
    p1o_prev = jnp.where(lane == 0, 0.0,
                         pltpu.roll(p1o, 1, axis=1))              # p1o[m-1]
    p1e_next = jnp.where(lane == l4 - 1, 0.0,
                         pltpu.roll(p1e, l4 - 1, axis=1))         # p1e[m+1]

    # --- conv2 (k=3, pad=1) + relu + maxpool2 --------------------------------
    w20, w21, w22 = w2_ref[0], w2_ref[1], w2_ref[2]          # (64, 32) each
    y_even = dot(w20, p1o_prev) + dot(w21, p1e) + dot(w22, p1o)   # conv2 at 2m
    y_odd = dot(w20, p1e) + dot(w21, p1o) + dot(w22, p1e_next)    # conv2 at 2m+1
    b2 = b2_ref[...]                                               # (64, 1)
    o_ref[0] = jnp.maximum(jnp.maximum(y_even, y_odd) + b2,
                           0.0).astype(o_ref.dtype)


def interp_conv_fused(x, m_phase, w1k, b1col, w2k, b2col,
                      *, out_dtype=jnp.bfloat16):
    n, c_in, l_in = x.shape
    c_out = w2k.shape[1]
    l4 = TARGET_LENGTH // 4
    # TODO(synk): tile the interp matmul over L_in (reduction grid axis +
    # accumulator) if the phase matrix outgrows VMEM (matters on v7x's
    # 64 MiB/TC for long upstream signals).
    if int(m_phase.size) * 4 > 24 * 1024 * 1024:
        raise NotImplementedError(
            "interp matrix too large for the single-block VMEM path")
    # TODO(synk): block multiple batch items per grid step for large batches
    # (M=3 rows badly under-utilizes the MXU); irrelevant at the test batch.
    return pl.pallas_call(
        interp_conv_kernel,
        out_shape=jax.ShapeDtypeStruct((n, c_out, l4), out_dtype),
        grid_spec=pltpu.PrefetchScalarGridSpec(
            num_scalar_prefetch=0,
            grid=(n,),
            in_specs=[
                pl.BlockSpec((1, c_in, l_in), lambda i: (i, 0, 0)),
                pl.BlockSpec(m_phase.shape, lambda i: (0, 0)),
                pl.BlockSpec(w1k.shape, lambda i: (0, 0, 0)),
                pl.BlockSpec(b1col.shape, lambda i: (0, 0)),
                pl.BlockSpec(w2k.shape, lambda i: (0, 0, 0)),
                pl.BlockSpec(b2col.shape, lambda i: (0, 0)),
            ],
            out_specs=pl.BlockSpec((1, c_out, l4), lambda i: (i, 0, 0)),
        ),
        compiler_params=pltpu.CompilerParams(
            dimension_semantics=("parallel",),
            vmem_limit_bytes=32 * 1024 * 1024),
    )(x, m_phase, w1k, b1col, w2k, b2col)


# ----------------------------------------------------------------------------
# FC head.  fc1 weight is streamed in bf16 (HBM-bandwidth bound stage) with
# f32 accumulation; tiling is chosen per TPU generation.
# ----------------------------------------------------------------------------
def _fc_config():
    kind = ""
    try:
        kind = jax.devices()[0].device_kind.lower()
    except Exception:
        pass
    two_cores = ("v7" in kind) or ("tpu7" in kind) or ("v4" in kind)
    if two_cores:
        # v7x: 64 MiB/TC -> keep weight buffers small, split K across the two
        # TensorCores via a leading "parallel" grid axis.
        return dict(tk=8192, n_splits=2, depth=3, vmem=32 * 1024 * 1024)
    # v5e / v6e: single TC, 128 MiB VMEM -> bigger K tiles, fused epilogue.
    return dict(tk=32768, n_splits=1, depth=3, vmem=80 * 1024 * 1024)


def fc1_fused_kernel(x_ref, w1_ref, b1_ref, w2_ref, b2_ref, o_ref, acc_ref):
    k = pl.program_id(0)

    @pl.when(k == 0)
    def _():
        acc_ref[...] = jnp.zeros_like(acc_ref)

    acc_ref[...] += jnp.dot(x_ref[...], w1_ref[...],
                            preferred_element_type=jnp.float32)

    @pl.when(k == pl.num_programs(0) - 1)
    def _():
        hact = jnp.maximum(acc_ref[...] + b1_ref[...], 0.0)
        o_ref[...] = (jnp.dot(hact, w2_ref[...],
                              preferred_element_type=jnp.float32)
                      + b2_ref[...]).astype(o_ref.dtype)


def fc1_partial_kernel(x_ref, w1_ref, o_ref):
    @pl.when(pl.program_id(1) == 0)
    def _():
        o_ref[...] = jnp.zeros_like(o_ref)

    o_ref[0] += jnp.dot(x_ref[...], w1_ref[...],
                        preferred_element_type=jnp.float32)


def fc_head(xflat, w1, b1row, w2, b2row):
    # xflat: (N, K) bf16, w1: (K, H) bf16, b1row: (1, H), w2: (H, 1), b2: (1, 1)
    n, k_dim = xflat.shape
    h = w1.shape[1]
    cfg = _fc_config()
    tk, n_splits, depth = cfg["tk"], cfg["n_splits"], cfg["depth"]
    while k_dim % (n_splits * tk) != 0 and tk > 128:
        tk //= 2
    assert k_dim % (n_splits * tk) == 0, (k_dim, n_splits, tk)
    nk = k_dim // (n_splits * tk)

    if n_splits == 1:
        # Single-TC path: fold relu(+b1) + fc2 into the last reduction step;
        # no partials HBM round trip, no extra kernel launch.
        return pl.pallas_call(
            fc1_fused_kernel,
            out_shape=jax.ShapeDtypeStruct((n, 1), jnp.float32),
            grid_spec=pltpu.PrefetchScalarGridSpec(
                num_scalar_prefetch=0,
                grid=(nk,),
                in_specs=[
                    pl.BlockSpec((n, tk), lambda k: (0, k)),
                    pl.BlockSpec((tk, h), lambda k: (k, 0),
                                 pipeline_mode=pl.Buffered(depth)),
                    pl.BlockSpec((1, h), lambda k: (0, 0)),
                    pl.BlockSpec((h, 1), lambda k: (0, 0)),
                    pl.BlockSpec((1, 1), lambda k: (0, 0)),
                ],
                out_specs=pl.BlockSpec((n, 1), lambda k: (0, 0)),
                scratch_shapes=[pltpu.VMEM((n, h), jnp.float32)],
            ),
            compiler_params=pltpu.CompilerParams(
                dimension_semantics=("arbitrary",),
                vmem_limit_bytes=cfg["vmem"]),
        )(xflat, w1, b1row, w2, b2row)

    # Two-TensorCore path (v7x): contiguous halves of K streamed concurrently.
    partial = pl.pallas_call(
        fc1_partial_kernel,
        out_shape=jax.ShapeDtypeStruct((n_splits, n, h), jnp.float32),
        grid_spec=pltpu.PrefetchScalarGridSpec(
            num_scalar_prefetch=0,
            grid=(n_splits, nk),
            in_specs=[
                pl.BlockSpec((n, tk), lambda s, k: (0, s * nk + k)),
                pl.BlockSpec((tk, h), lambda s, k: (s * nk + k, 0),
                             pipeline_mode=pl.Buffered(depth)),
            ],
            out_specs=pl.BlockSpec((1, n, h), lambda s, k: (s, 0, 0)),
        ),
        compiler_params=pltpu.CompilerParams(
            dimension_semantics=("parallel", "arbitrary"),
            vmem_limit_bytes=cfg["vmem"]),
    )(xflat, w1)

    def fc_finish_kernel(p_ref, b1_ref, w2_ref, b2_ref, o_ref):
        acc = p_ref[0]
        for s in range(1, n_splits):
            acc = acc + p_ref[s]
        hact = jnp.maximum(acc + b1_ref[...], 0.0)
        o_ref[...] = (jnp.dot(hact, w2_ref[...],
                              preferred_element_type=jnp.float32)
                      + b2_ref[...]).astype(o_ref.dtype)

    return pl.pallas_call(
        fc_finish_kernel,
        out_shape=jax.ShapeDtypeStruct((n, 1), jnp.float32),
        grid_spec=pltpu.PrefetchScalarGridSpec(
            num_scalar_prefetch=0,
            grid=(1,),
            in_specs=[
                pl.BlockSpec((n_splits, n, h), lambda i: (0, 0, 0)),
                pl.BlockSpec((1, h), lambda i: (0, 0)),
                pl.BlockSpec((h, 1), lambda i: (0, 0)),
                pl.BlockSpec((1, 1), lambda i: (0, 0)),
            ],
            out_specs=pl.BlockSpec((n, 1), lambda i: (0, 0)),
        ),
        compiler_params=pltpu.CompilerParams(
            dimension_semantics=("arbitrary",)),
    )(partial, b1row, w2, b2row)


# ----------------------------------------------------------------------------
# Parameters (deterministic, PyTorch-default-style uniform init) and forward.
# ----------------------------------------------------------------------------
def init_params(key):
    ks = jax.random.split(key, 8)

    def u(k, shape, fan_in):
        bound = 1.0 / math.sqrt(fan_in)
        return jax.random.uniform(k, shape, jnp.float32, -bound, bound)

    k_flat = 64 * (TARGET_LENGTH // 4)  # 64 * 2048 = 131072
    return {
        "w_conv1": u(ks[0], (32, 3, 3), 3 * 3),
        "b_conv1": u(ks[1], (32,), 3 * 3),
        "w_conv2": u(ks[2], (64, 32, 3), 32 * 3),
        "b_conv2": u(ks[3], (64,), 32 * 3),
        # fc weights stored transposed relative to PyTorch: (in, out)
        "w_fc1": u(ks[4], (k_flat, 128), k_flat),
        "b_fc1": u(ks[5], (128,), k_flat),
        "w_fc2": u(ks[6], (128, 1), 128),
        "b_fc2": u(ks[7], (1,), 128),
    }


def prepare_params(params, l_in):
    """One-time host-side repack of the weights into kernel-friendly layouts."""
    interp_m = make_linear_interp_matrix(l_in, TARGET_LENGTH)
    prep = dict(params)
    prep["interp_m"] = interp_m                                   # reference path
    prep["interp_m_phase"] = make_phase_interp_matrix(interp_m)   # kernel path
    prep["w1k"] = jnp.transpose(params["w_conv1"], (2, 0, 1))     # (3, 32, 3)
    prep["b1col"] = params["b_conv1"].reshape(32, 1)
    prep["w2k"] = jnp.transpose(params["w_conv2"], (2, 0, 1))     # (3, 64, 32)
    prep["b2col"] = params["b_conv2"].reshape(64, 1)
    # fc1 weight streamed in bf16 (stage is HBM-bandwidth bound); the in-kernel
    # accumulation stays in f32 via preferred_element_type.
    prep["w_fc1_bf16"] = params["w_fc1"].astype(jnp.bfloat16)
    prep["b_fc1_row"] = params["b_fc1"].reshape(1, -1)
    prep["b_fc2_row"] = params["b_fc2"].reshape(1, 1)
    return prep


def uxcnn_forward(x, p):
    # TODO(synk): UNet / preprocess / afterprocess / xfunc branch treated as
    # identity (UNet undefined in source, xfunc raises NotImplementedError).
    conv_out = interp_conv_fused(x, p["interp_m_phase"], p["w1k"], p["b1col"],
                                 p["w2k"], p["b2col"])      # (N, 64, 2048) bf16
    flat = conv_out.reshape(conv_out.shape[0], -1)          # (N, 131072) bf16
    return fc_head(flat, p["w_fc1_bf16"], p["b_fc1_row"],
                   p["w_fc2"], p["b_fc2_row"])              # (N, 1) f32


def reference_forward(x, params):
    hi = jax.lax.Precision.HIGHEST
    resized = jnp.einsum("ncl,lt->nct", x, params["interp_m"], precision=hi)

    def crp(h, w, b):
        y = jax.lax.conv_general_dilated(
            h, w, window_strides=(1,), padding=[(1, 1)],
            dimension_numbers=("NCH", "OIH", "NCH"), precision=hi)
        y = jax.nn.relu(y + b[None, :, None])
        n, c, l = y.shape
        return jnp.max(y.reshape(n, c, l // 2, 2), axis=-1)

    h = crp(resized, params["w_conv1"], params["b_conv1"])
    h = crp(h, params["w_conv2"], params["b_conv2"])
    flat = h.reshape(h.shape[0], -1)
    h1 = jax.nn.relu(jnp.dot(flat, params["w_fc1"], precision=hi)
                     + params["b_fc1"][None, :])
    return jnp.dot(h1, params["w_fc2"], precision=hi) + params["b_fc2"][None, :]


if __name__ == "__main__":
    key = jax.random.PRNGKey(0)
    k_param, k_x = jax.random.split(key)

    batch, chan, l_in = 2, 3, 16
    x = jax.random.normal(k_x, (batch, chan, l_in), dtype=jnp.float32)

    params = prepare_params(init_params(k_param), l_in)

    out = jax.block_until_ready(uxcnn_forward(x, params))
    assert out.shape == (batch, 1), out.shape

    ref = jax.block_until_ready(reference_forward(x, params))
    np.testing.assert_allclose(np.asarray(out, dtype=np.float32),
                               np.asarray(ref, dtype=np.float32),
                               rtol=2e-3, atol=2e-3)

    print("KERNEL_OK")
</pallas_src>

<mosaic_0001>
module attributes {stable_mosaic.version = 11 : i64} {
  func.func @interp_conv_kernel(%arg0: i32, %arg1: memref<1x3x16xf32, #tpu.memory_space<vmem>>, %arg2: memref<16x12288xf32, #tpu.memory_space<vmem>>, %arg3: memref<3x32x3xf32, #tpu.memory_space<vmem>>, %arg4: memref<32x1xf32, #tpu.memory_space<vmem>>, %arg5: memref<3x64x32xf32, #tpu.memory_space<vmem>>, %arg6: memref<64x1xf32, #tpu.memory_space<vmem>>, %arg7: memref<1x64x2048xbf16, #tpu.memory_space<vmem>>) attributes {dimension_semantics = [#tpu.dimension_semantics<parallel>], iteration_bounds = array<i64: 2>, scalar_prefetch = 0 : i64, scratch_operands = 0 : i64, tpu.core_type = #tpu.core_type<tc>, window_params = [{transform_indices = @transform_0, window_bounds = array<i64: 1, 3, 16>}, {pipeline_mode = #tpu.pipeline_mode<synchronous>, transform_indices = @transform_1, window_bounds = array<i64: 16, 12288>}, {pipeline_mode = #tpu.pipeline_mode<synchronous>, transform_indices = @transform_2, window_bounds = array<i64: 3, 32, 3>}, {pipeline_mode = #tpu.pipeline_mode<synchronous>, transform_indices = @transform_3, window_bounds = array<i64: 32, 1>}, {pipeline_mode = #tpu.pipeline_mode<synchronous>, transform_indices = @transform_4, window_bounds = array<i64: 3, 64, 32>}, {pipeline_mode = #tpu.pipeline_mode<synchronous>, transform_indices = @transform_5, window_bounds = array<i64: 64, 1>}, {transform_indices = @transform_6, window_bounds = array<i64: 1, 64, 2048>}]} {
    %c0 = arith.constant 0 : index
    %c0_0 = arith.constant 0 : index
    %c0_1 = arith.constant 0 : index
    %0 = vector.load %arg1[%c0, %c0_0, %c0_1] : memref<1x3x16xf32, #tpu.memory_space<vmem>>, vector<1x3x16xf32>
    %1 = vector.shape_cast %0 : vector<1x3x16xf32> to vector<3x16xf32>
    %c0_2 = arith.constant 0 : index
    %c0_3 = arith.constant 0 : index
    %2 = vector.load %arg2[%c0_2, %c0_3] : memref<16x12288xf32, #tpu.memory_space<vmem>>, vector<16x12288xf32>
    %cst = arith.constant dense<0.000000e+00> : vector<3x12288xf32>
    %3 = tpu.matmul %1, %2, %cst {dimension_numbers = #tpu.dot_dimension_numbers<[1], [0], [0], [1], [0, 0, 1, 1], [], []>} : vector<3x16xf32>, vector<16x12288xf32>, vector<3x12288xf32> -> vector<3x12288xf32>
    %4 = vector.extract_strided_slice %3 {offsets = [0, 0], sizes = [3, 2048], strides = [1, 1]} : vector<3x12288xf32> to vector<3x2048xf32>
    %5 = vector.extract_strided_slice %3 {offsets = [0, 2048], sizes = [3, 2048], strides = [1, 1]} : vector<3x12288xf32> to vector<3x2048xf32>
    %6 = vector.extract_strided_slice %3 {offsets = [0, 4096], sizes = [3, 2048], strides = [1, 1]} : vector<3x12288xf32> to vector<3x2048xf32>
    %7 = vector.extract_strided_slice %3 {offsets = [0, 6144], sizes = [3, 2048], strides = [1, 1]} : vector<3x12288xf32> to vector<3x2048xf32>
    %8 = vector.extract_strided_slice %3 {offsets = [0, 8192], sizes = [3, 2048], strides = [1, 1]} : vector<3x12288xf32> to vector<3x2048xf32>
    %9 = vector.extract_strided_slice %3 {offsets = [0, 10240], sizes = [3, 2048], strides = [1, 1]} : vector<3x12288xf32> to vector<3x2048xf32>
    %c0_4 = arith.constant 0 : index
    %c0_5 = arith.constant 0 : index
    %c0_6 = arith.constant 0 : index
    %10 = vector.load %arg3[%c0_4, %c0_5, %c0_6] : memref<3x32x3xf32, #tpu.memory_space<vmem>>, vector<1x32x3xf32>
    %11 = vector.shape_cast %10 : vector<1x32x3xf32> to vector<32x3xf32>
    %c1 = arith.constant 1 : index
    %c0_7 = arith.constant 0 : index
    %c0_8 = arith.constant 0 : index
    %12 = vector.load %arg3[%c1, %c0_7, %c0_8] : memref<3x32x3xf32, #tpu.memory_space<vmem>>, vector<1x32x3xf32>
    %13 = vector.shape_cast %12 : vector<1x32x3xf32> to vector<32x3xf32>
    %c2 = arith.constant 2 : index
    %c0_9 = arith.constant 0 : index
    %c0_10 = arith.constant 0 : index
    %14 = vector.load %arg3[%c2, %c0_9, %c0_10] : memref<3x32x3xf32, #tpu.memory_space<vmem>>, vector<1x32x3xf32>
    %15 = vector.shape_cast %14 : vector<1x32x3xf32> to vector<32x3xf32>
    %cst_11 = arith.constant dense<0.000000e+00> : vector<32x2048xf32>
    %16 = tpu.matmul %11, %8, %cst_11 {dimension_numbers = #tpu.dot_dimension_numbers<[1], [0], [0], [1], [0, 0, 1, 1], [], []>} : vector<32x3xf32>, vector<3x2048xf32>, vector<32x2048xf32> -> vector<32x2048xf32>
    %cst_12 = arith.constant dense<0.000000e+00> : vector<32x2048xf32>
    %17 = tpu.matmul %13, %4, %cst_12 {dimension_numbers = #tpu.dot_dimension_numbers<[1], [0], [0], [1], [0, 0, 1, 1], [], []>} : vector<32x3xf32>, vector<3x2048xf32>, vector<32x2048xf32> -> vector<32x2048xf32>
    %18 = arith.addf %16, %17 : vector<32x2048xf32>
    %cst_13 = arith.constant dense<0.000000e+00> : vector<32x2048xf32>
    %19 = tpu.matmul %15, %5, %cst_13 {dimension_numbers = #tpu.dot_dimension_numbers<[1], [0], [0], [1], [0, 0, 1, 1], [], []>} : vector<32x3xf32>, vector<3x2048xf32>, vector<32x2048xf32> -> vector<32x2048xf32>
    %20 = arith.addf %18, %19 : vector<32x2048xf32>
    %cst_14 = arith.constant dense<0.000000e+00> : vector<32x2048xf32>
    %21 = tpu.matmul %11, %4, %cst_14 {dimension_numbers = #tpu.dot_dimension_numbers<[1], [0], [0], [1], [0, 0, 1, 1], [], []>} : vector<32x3xf32>, vector<3x2048xf32>, vector<32x2048xf32> -> vector<32x2048xf32>
    %cst_15 = arith.constant dense<0.000000e+00> : vector<32x2048xf32>
    %22 = tpu.matmul %13, %5, %cst_15 {dimension_numbers = #tpu.dot_dimension_numbers<[1], [0], [0], [1], [0, 0, 1, 1], [], []>} : vector<32x3xf32>, vector<3x2048xf32>, vector<32x2048xf32> -> vector<32x2048xf32>
    %23 = arith.addf %21, %22 : vector<32x2048xf32>
    %cst_16 = arith.constant dense<0.000000e+00> : vector<32x2048xf32>
    %24 = tpu.matmul %15, %6, %cst_16 {dimension_numbers = #tpu.dot_dimension_numbers<[1], [0], [0], [1], [0, 0, 1, 1], [], []>} : vector<32x3xf32>, vector<3x2048xf32>, vector<32x2048xf32> -> vector<32x2048xf32>
    %25 = arith.addf %23, %24 : vector<32x2048xf32>
    %cst_17 = arith.constant dense<0.000000e+00> : vector<32x2048xf32>
    %26 = tpu.matmul %11, %5, %cst_17 {dimension_numbers = #tpu.dot_dimension_numbers<[1], [0], [0], [1], [0, 0, 1, 1], [], []>} : vector<32x3xf32>, vector<3x2048xf32>, vector<32x2048xf32> -> vector<32x2048xf32>
    %cst_18 = arith.constant dense<0.000000e+00> : vector<32x2048xf32>
    %27 = tpu.matmul %13, %6, %cst_18 {dimension_numbers = #tpu.dot_dimension_numbers<[1], [0], [0], [1], [0, 0, 1, 1], [], []>} : vector<32x3xf32>, vector<3x2048xf32>, vector<32x2048xf32> -> vector<32x2048xf32>
    %28 = arith.addf %26, %27 : vector<32x2048xf32>
    %cst_19 = arith.constant dense<0.000000e+00> : vector<32x2048xf32>
    %29 = tpu.matmul %15, %7, %cst_19 {dimension_numbers = #tpu.dot_dimension_numbers<[1], [0], [0], [1], [0, 0, 1, 1], [], []>} : vector<32x3xf32>, vector<3x2048xf32>, vector<32x2048xf32> -> vector<32x2048xf32>
    %30 = arith.addf %28, %29 : vector<32x2048xf32>
    %cst_20 = arith.constant dense<0.000000e+00> : vector<32x2048xf32>
    %31 = tpu.matmul %11, %6, %cst_20 {dimension_numbers = #tpu.dot_dimension_numbers<[1], [0], [0], [1], [0, 0, 1, 1], [], []>} : vector<32x3xf32>, vector<3x2048xf32>, vector<32x2048xf32> -> vector<32x2048xf32>
    %cst_21 = arith.constant dense<0.000000e+00> : vector<32x2048xf32>
    %32 = tpu.matmul %13, %7, %cst_21 {dimension_numbers = #tpu.dot_dimension_numbers<[1], [0], [0], [1], [0, 0, 1, 1], [], []>} : vector<32x3xf32>, vector<3x2048xf32>, vector<32x2048xf32> -> vector<32x2048xf32>
    %33 = arith.addf %31, %32 : vector<32x2048xf32>
    %cst_22 = arith.constant dense<0.000000e+00> : vector<32x2048xf32>
    %34 = tpu.matmul %15, %9, %cst_22 {dimension_numbers = #tpu.dot_dimension_numbers<[1], [0], [0], [1], [0, 0, 1, 1], [], []>} : vector<32x3xf32>, vector<3x2048xf32>, vector<32x2048xf32> -> vector<32x2048xf32>
    %35 = arith.addf %33, %34 : vector<32x2048xf32>
    %c0_23 = arith.constant 0 : index
    %c0_24 = arith.constant 0 : index
    %36 = vector.load %arg4[%c0_23, %c0_24] : memref<32x1xf32, #tpu.memory_space<vmem>>, vector<32x1xf32>
    %37 = arith.maximumf %20, %25 : vector<32x2048xf32>
    %38 = vector.broadcast %36 : vector<32x1xf32> to vector<32x2048xf32>
    %39 = arith.addf %37, %38 : vector<32x2048xf32>
    %cst_25 = arith.constant 0.000000e+00 : f32
    %40 = vector.broadcast %cst_25 : f32 to vector<32x2048xf32>
    %41 = arith.maximumf %39, %40 : vector<32x2048xf32>
    %42 = arith.maximumf %30, %35 : vector<32x2048xf32>
    %43 = vector.broadcast %36 : vector<32x1xf32> to vector<32x2048xf32>
    %44 = arith.addf %42, %43 : vector<32x2048xf32>
    %cst_26 = arith.constant 0.000000e+00 : f32
    %45 = vector.broadcast %cst_26 : f32 to vector<32x2048xf32>
    %46 = arith.maximumf %44, %45 : vector<32x2048xf32>
    %47 = tpu.iota {dimensions = array<i32: 1>} : vector<32x2048xi32>
    %c0_i32 = arith.constant 0 : i32
    %48 = vector.broadcast %c0_i32 : i32 to vector<32x2048xi32>
    %49 = arith.cmpi eq, %47, %48 : vector<32x2048xi32>
    %c1_i32 = arith.constant 1 : i32
    %50 = tpu.dynamic_rotate %46 by %c1_i32 dim 1 : vector<32x2048xf32>, i32 -> vector<32x2048xf32>
    %cst_27 = arith.constant 0.000000e+00 : f32
    %51 = vector.broadcast %cst_27 : f32 to vector<32x2048xf32>
    %52 = arith.select %49, %51, %50 : vector<32x2048xi1>, vector<32x2048xf32>
    %c2047_i32 = arith.constant 2047 : i32
    %53 = vector.broadcast %c2047_i32 : i32 to vector<32x2048xi32>
    %54 = arith.cmpi eq, %47, %53 : vector<32x2048xi32>
    %c2047_i32_28 = arith.constant 2047 : i32
    %55 = tpu.dynamic_rotate %41 by %c2047_i32_28 dim 1 : vector<32x2048xf32>, i32 -> vector<32x2048xf32>
    %cst_29 = arith.constant 0.000000e+00 : f32
    %56 = vector.broadcast %cst_29 : f32 to vector<32x2048xf32>
    %57 = arith.select %54, %56, %55 : vector<32x2048xi1>, vector<32x2048xf32>
    %c0_30 = arith.constant 0 : index
    %c0_31 = arith.constant 0 : index
    %c0_32 = arith.constant 0 : index
    %58 = vector.load %arg5[%c0_30, %c0_31, %c0_32] : memref<3x64x32xf32, #tpu.memory_space<vmem>>, vector<1x64x32xf32>
    %59 = vector.shape_cast %58 : vector<1x64x32xf32> to vector<64x32xf32>
    %c1_33 = arith.constant 1 : index
    %c0_34 = arith.constant 0 : index
    %c0_35 = arith.constant 0 : index
    %60 = vector.load %arg5[%c1_33, %c0_34, %c0_35] : memref<3x64x32xf32, #tpu.memory_space<vmem>>, vector<1x64x32xf32>
    %61 = vector.shape_cast %60 : vector<1x64x32xf32> to vector<64x32xf32>
    %c2_36 = arith.constant 2 : index
    %c0_37 = arith.constant 0 : index
    %c0_38 = arith.constant 0 : index
    %62 = vector.load %arg5[%c2_36, %c0_37, %c0_38] : memref<3x64x32xf32, #tpu.memory_space<vmem>>, vector<1x64x32xf32>
    %63 = vector.shape_cast %62 : vector<1x64x32xf32> to vector<64x32xf32>
    %cst_39 = arith.constant dense<0.000000e+00> : vector<64x2048xf32>
    %64 = tpu.matmul %59, %52, %cst_39 {dimension_numbers = #tpu.dot_dimension_numbers<[1], [0], [0], [1], [0, 0, 1, 1], [], []>} : vector<64x32xf32>, vector<32x2048xf32>, vector<64x2048xf32> -> vector<64x2048xf32>
    %cst_40 = arith.constant dense<0.000000e+00> : vector<64x2048xf32>
    %65 = tpu.matmul %61, %41, %cst_40 {dimension_numbers = #tpu.dot_dimension_numbers<[1], [0], [0], [1], [0, 0, 1, 1], [], []>} : vector<64x32xf32>, vector<32x2048xf32>, vector<64x2048xf32> -> vector<64x2048xf32>
    %66 = arith.addf %64, %65 : vector<64x2048xf32>
    %cst_41 = arith.constant dense<0.000000e+00> : vector<64x2048xf32>
    %67 = tpu.matmul %63, %46, %cst_41 {dimension_numbers = #tpu.dot_dimension_numbers<[1], [0], [0], [1], [0, 0, 1, 1], [], []>} : vector<64x32xf32>, vector<32x2048xf32>, vector<64x2048xf32> -> vector<64x2048xf32>
    %68 = arith.addf %66, %67 : vector<64x2048xf32>
    %cst_42 = arith.constant dense<0.000000e+00> : vector<64x2048xf32>
    %69 = tpu.matmul %59, %41, %cst_42 {dimension_numbers = #tpu.dot_dimension_numbers<[1], [0], [0], [1], [0, 0, 1, 1], [], []>} : vector<64x32xf32>, vector<32x2048xf32>, vector<64x2048xf32> -> vector<64x2048xf32>
    %cst_43 = arith.constant dense<0.000000e+00> : vector<64x2048xf32>
    %70 = tpu.matmul %61, %46, %cst_43 {dimension_numbers = #tpu.dot_dimension_numbers<[1], [0], [0], [1], [0, 0, 1, 1], [], []>} : vector<64x32xf32>, vector<32x2048xf32>, vector<64x2048xf32> -> vector<64x2048xf32>
    %71 = arith.addf %69, %70 : vector<64x2048xf32>
    %cst_44 = arith.constant dense<0.000000e+00> : vector<64x2048xf32>
    %72 = tpu.matmul %63, %57, %cst_44 {dimension_numbers = #tpu.dot_dimension_numbers<[1], [0], [0], [1], [0, 0, 1, 1], [], []>} : vector<64x32xf32>, vector<32x2048xf32>, vector<64x2048xf32> -> vector<64x2048xf32>
    %73 = arith.addf %71, %72 : vector<64x2048xf32>
    %c0_45 = arith.constant 0 : index
    %c0_46 = arith.constant 0 : index
    %74 = vector.load %arg6[%c0_45, %c0_46] : memref<64x1xf32, #tpu.memory_space<vmem>>, vector<64x1xf32>
    %75 = arith.maximumf %68, %73 : vector<64x2048xf32>
    %76 = vector.broadcast %74 : vector<64x1xf32> to vector<64x2048xf32>
    %77 = arith.addf %75, %76 : vector<64x2048xf32>
    %cst_47 = arith.constant 0.000000e+00 : f32
    %78 = vector.broadcast %cst_47 : f32 to vector<64x2048xf32>
    %79 = arith.maximumf %77, %78 : vector<64x2048xf32>
    %80 = arith.truncf %79 : vector<64x2048xf32> to vector<64x2048xbf16>
    %c0_48 = arith.constant 0 : index
    %c0_49 = arith.constant 0 : index
    %c0_50 = arith.constant 0 : index
    %81 = vector.load %arg7[%c0_48, %c0_49, %c0_50] : memref<1x64x2048xbf16, #tpu.memory_space<vmem>>, vector<1x64x2048xbf16>
    %82 = vector.shape_cast %81 : vector<1x64x2048xbf16> to vector<64x2048xbf16>
    %83 = vector.shape_cast %80 : vector<64x2048xbf16> to vector<1x64x2048xbf16>
    tpu.vector_store %arg7[%c0_48, %c0_49, %c0_50], %83 {strides = array<i32>} : memref<1x64x2048xbf16, #tpu.memory_space<vmem>>, vector<1x64x2048xbf16>,
    return
  }
  func.func @transform_0(%arg0: i32) -> (i32, i32, i32) {
    %c0_i32 = arith.constant 0 : i32
    %c0_i32_0 = arith.constant 0 : i32
    %c0_i32_1 = arith.constant 0 : i32
    return %arg0, %c0_i32, %c0_i32_0 : i32, i32, i32
  }
  func.func @transform_1(%arg0: i32) -> (i32, i32) {
    %c0_i32 = arith.constant 0 : i32
    %c0_i32_0 = arith.constant 0 : i32
    %c0_i32_1 = arith.constant 0 : i32
    return %c0_i32, %c0_i32_0 : i32, i32
  }
  func.func @transform_2(%arg0: i32) -> (i32, i32, i32) {
    %c0_i32 = arith.constant 0 : i32
    %c0_i32_0 = arith.constant 0 : i32
    %c0_i32_1 = arith.constant 0 : i32
    %c0_i32_2 = arith.constant 0 : i32
    return %c0_i32, %c0_i32_0, %c0_i32_1 : i32, i32, i32
  }
  func.func @transform_3(%arg0: i32) -> (i32, i32) {
    %c0_i32 = arith.constant 0 : i32
    %c0_i32_0 = arith.constant 0 : i32
    %c0_i32_1 = arith.constant 0 : i32
    return %c0_i32, %c0_i32_0 : i32, i32
  }
  func.func @transform_4(%arg0: i32) -> (i32, i32, i32) {
    %c0_i32 = arith.constant 0 : i32
    %c0_i32_0 = arith.constant 0 : i32
    %c0_i32_1 = arith.constant 0 : i32
    %c0_i32_2 = arith.constant 0 : i32
    return %c0_i32, %c0_i32_0, %c0_i32_1 : i32, i32, i32
  }
  func.func @transform_5(%arg0: i32) -> (i32, i32) {
    %c0_i32 = arith.constant 0 : i32
    %c0_i32_0 = arith.constant 0 : i32
    %c0_i32_1 = arith.constant 0 : i32
    return %c0_i32, %c0_i32_0 : i32, i32
  }
  func.func @transform_6(%arg0: i32) -> (i32, i32, i32) {
    %c0_i32 = arith.constant 0 : i32
    %c0_i32_0 = arith.constant 0 : i32
    %c0_i32_1 = arith.constant 0 : i32
    return %arg0, %c0_i32, %c0_i32_0 : i32, i32, i32
  }
}

</mosaic_0001>

<bundles_post_ra>
// kernel: tpu_custom_call.1
= control target key start
LH: loop header
LB: loop body
LE: loop exit
PB: predicated region body
PF: predicated region fallthrough
CT: control target
= control target key end

     0   :  { %11 = vsyncpa [#allocation3], 0  ;;  %s30213_s0 = inlined_call_operand.vmem [shape: f32[2,3,16], index: 0, kind: input, shape index: {}]   ;;  %s30214_s1 = inlined_call_operand.hbm [shape: f32[16,12288], index: 1, kind: input, shape index: {}]   ;;  %s30215_s2 = inlined_call_operand.vmem [shape: f32[3,32,3], index: 2, kind: input, shape index: {}]   ;;  %s30216_s3 = inlined_call_operand.vmem [shape: f32[32,1], index: 3, kind: input, shape index: {}]   ;;  %s30217_s4 = inlined_call_operand.vmem [shape: f32[3,64,32], index: 4, kind: input, shape index: {}]   ;;  %s30218_s5 = inlined_call_operand.vmem [shape: f32[64,1], index: 5, kind: input, shape index: {}]   ;;  %s30219_s6 = inlined_call_operand.hbm [shape: bf16[2,64,2048], index: 6, kind: output, shape index: {}]  }
   0x1   :  { %12 = vsyncpa [#allocation4], 0 }
   0x2   :  { %14 = vsyncpa [#allocation4 + $0x1], 0  ;;  %s24090_s21 = smov 0   ;;  %s24092_s22 = smov 0  }
   0x3   :  { %s24094_s23 = smov 0   ;;  %s24096_s24 = smov 0  }
   0x4 LB: > { %s24111_s25 = sadd.s32 4294967295, %s24043_s24   ;;  %s20725_s26 = sadd.s32 4294967294, %s24043_s24   ;;  %s24043_s24 = sphi %s24096_s24, %s31093_s24   ;;  %s24039_s23 = sphi %s24094_s23, %s31092_s23   ;;  %s24035_s22 = sphi %s24092_s22, %s31091_s22   ;;  %s24031_s21 = sphi %s24090_s21, %s31090_s21  }
   0x5   : > { %s24115_s27 = sadd.s32 1, %s24043_s24   ;;  %s158_s28 = sadd.s32 1, %s24039_s23 }
   0x6   : > { %s155_s29 = ssub.s32 %s24043_s24, %s24115_s27  ;;  %p168_p0 = scmp.ne.s32.totalorder %s24039_s23, %s24035_s22 }
   0x7   : > { %p156_p1 = scmp.eq.s32.totalorder %s155_s29, 0  ;;  %p169_p2 = scmp.eq.s32.totalorder %s24111_s25, 1 }
   0x8   : > { %p174_p3 = scmp.ne.s32.totalorder %s24035_s22, %s24031_s21  ;;  %p175_p4 = scmp.eq.s32.totalorder %s20725_s26, 1 }
   0x9   : > { %s24126_s30 = scalar_select %p156_p1, %s24039_s23, %s158_s28  }
   0xa   : > { %p24128_p5 = por %p169_p2, %p168_p0  ;;  %p24132_p6 = por %p175_p4, %p174_p3 }
   0xb   : > { %p20726_p7 = scmp.ge.s32.totalorder %s24043_s24, 1  ;;  %p182_p8 = scmp.lt.s32.totalorder %s24043_s24, 3 }
   0xc   : > { %s30361_s7 = scalar_select %p24128_p5, 1, 0 }
   0xd   : > { %s30362_s8 = scalar_select %p24132_p6, 1, 0 }
   0xe   : > { %p30220_p9 = scmp.eq.s32.totalorder %s24111_s25, 0  ;;  %p24139_p10 = pnand %p20726_p7, %p182_p8 }
   0xf   : > { %s24045_s10 = smov [#allocation2]   ;;  %s23949_s15 = scalar_lea.hbm %s30214_s1, 24576 }
  0x10   : > { %s30363_s9 = scalar_select %p24139_p10, 1, 0 }
  0x11   : > { %s194_s11 = sshll.u32 %s24045_s10, 4  ;;  %p23527_p11 = pneg %p24139_p10  ;;  %s195_s11 = int_to_ptr.vmem [resolvable:$true] %s194_s11 }
  0x12   : > { %p23950_p13 = scmp.ne.s32.totalorder %s30214_s1, %s23949_s15  ;;  %p23956_p3 = scmp.lt.u32.totalorder %s23949_s15, %s30214_s1 }
  0x13   : > { %p24147_p12 = pnand %p30220_p9, %p23527_p11 }
  0x15   : > { %p23951_p0 = pneg %p24147_p12 }
  0x17   : > { %p23952_p1 = pnand %p23951_p0, %p23950_p13 }
  0x19   : > { %p23953_p2 = pneg %p23952_p1 }
  0x1b   : > { %p23958_p4 = pnand %p23956_p3, %p23953_p2 }
  0x1d   : > { %23961 = shalt.err (!%p23958_p4)
}
  0x1e   : > { %s23962_s20 = scalar_lea.vmem %s195_s11, 24576  ;;  %p23970_p9 = scmp.lt.s32.totalorder %s195_s11, %s195_s11 }
  0x1f   : > { %p23963_p7 = scmp.ne.s32.totalorder %s195_s11, %s23962_s20  ;;  %p23971_p6 = scmp.lt.s32.totalorder %s23962_s20, %s23962_s20 }
  0x21   : > { %p23965_p8 = pnand %p23963_p7, %p23951_p0  ;;  %p23972_p5 = por %p23971_p6, %p23970_p9 }
  0x23   : > { %p23966_p11 = pneg %p23965_p8 }
  0x25   : > { %p23973_p10 = pnand %p23972_p5, %p23966_p11 }
  0x27   : > { %23976 = shalt.err (!%p23973_p10)
}
  0x28   : > { %s24046_s26 = smov 12288   ;;  %s24047_s28 = smov 768  }
  0x29   : > { %23530 = dma.hbm_to_vmem [thread:$0]  (!%p24147_p12), %s30214_s1, 24576, %s195_s11, [#allocation3], %s24046_s26, %s24046_s26, %s24047_s28  }
  0x2a   : > { %p30365_p13 = scmp.ne.s32.totalorder %s30363_s9, 0 }
  0x2c   : > { %229 = sbr.rel (%p30365_p13) target bundleno = 2267 (0x8db), region = 44 }
  0x33   : > { %p30366_p1 = scmp.eq.s32.totalorder %s24111_s25, 0 }
  0x35   : > { %24022 = dma.done.wait (%p30366_p1), [#allocation3], 24576   ;;  %p30367_p0 = pmov %p30366_p1 }
  0x36   : > { %p258_p5 = scmp.lt.s32.totalorder %s24111_s25, 1  ;;  %v30244_v0 = vmov 0.0   ;;  %v264_v1 = vld [vmem:[#allocation2 + $0x8] sm:$0xff]  ;;  %v266_v3 = vld [vmem:[#allocation2 + $0x18] sm:$0xff]  ;;  %v263_v6 = vld [vmem:[#allocation2] sm:$0xff]  ;;  %vm455_vm0 = vcmask 130048  }
  0x37   : > { %24024 = vsyncadd (%p30367_p0), [#allocation3], 4294942720  ;;  %523 = vmatprep.mubr.f32.mxu0 %v30244_v0  ;;  %594 = vmatprep.mubr.f32.mxu1 %v30244_v0  ;;  %v360_v2 = vld [vmem:[#allocation2 + $0x308] sm:$0xff]  ;;  %v362_v5 = vld [vmem:[#allocation2 + $0x318] sm:$0xff]  ;;  %vm3894_vm1 = vcmask 1042432   ;;  %vm3881_vm2 = vcmask 23552  }
  0x38   : > { %s259_s12 = scalar_select %p258_p5, %s24111_s25, 1  ;;  %v21917_v4 = vpack.c.bf16 %v360_v2, %v264_v1  ;;  %v359_v7 = vld [vmem:[#allocation2 + $0x300] sm:$0xff]  ;;  %v21921_v8 = vpack.c.bf16 %v362_v5, %v266_v3  ;;  %v265_v10 = vld [vmem:[#allocation2 + $0x10] sm:$0xff]  ;;  %v268_v14 = vld [vmem:[#allocation2 + $0x28] sm:$0xff]  ;;  %vm14004_vm3 = vcmask 261120  }
  0x39   : > { %v21919_v9 = vpack.c.bf16 %v359_v7, %v263_v6  ;;  %v361_v11 = vld [vmem:[#allocation2 + $0x310] sm:$0xff]  ;;  %v364_v15 = vld [vmem:[#allocation2 + $0x328] sm:$0xff]  ;;  %v270_v16 = vld [vmem:[#allocation2 + $0x38] sm:$0xff]  ;;  %s24050_s26 = smov 1   ;;  %s24051_s28 = smov 127  }
  0x3a   : > { %s20732_s13 = sshll.u32 %s259_s12, 2  ;;  %21918 = vmatprep.subr.bf16.mxu0 %v21917_v4  ;;  %v21923_v13 = vpack.c.bf16 %v361_v11, %v265_v10  ;;  %21922 = vmatprep.subr.bf16.mxu1 %v21921_v8  ;;  %v21925_v17 = vpack.c.bf16 %v364_v15, %v268_v14  ;;  %v366_v18 = vld [vmem:[#allocation2 + $0x338] sm:$0xff]  ;;  %v267_v19 = vld [vmem:[#allocation2 + $0x20] sm:$0xff]  ;;  %v269_v23 = vld [vmem:[#allocation2 + $0x30] sm:$0xff]  ;;  %s21914_s17 = sshll.u32 %s24111_s25, 13 }
  0x3b   : > { %s261_s9 = scalar_lea.vmem %s30213_s0, %s20732_s13  ;;  %21920 = vmatpush1.bf16.msra.mxu0 %v21919_v9  ;;  %v363_v20 = vld [vmem:[#allocation2 + $0x320] sm:$0xff]  ;;  %v21929_v21 = vpack.c.bf16 %v366_v18, %v270_v16  ;;  %v365_v24 = vld [vmem:[#allocation2 + $0x330] sm:$0xff]  ;;  %v272_v25 = vld [vmem:[#allocation2 + $0x48] sm:$0xff]  ;;  %p31088_p9 = scmp.ne.s32.totalorder %s30361_s7, 0 }
  0x3c   : > { %v24180_v12 = vld [vmem:[%s261_s9] sm:$0x7]  ;;  %21924 = vmatpush1.bf16.msra.mxu1 %v21923_v13  ;;  %v21927_v22 = vpack.c.bf16 %v363_v20, %v267_v19  ;;  %21926 = vmatprep.subr.bf16.mxu0 %v21925_v17  ;;  %v21931_v26 = vpack.c.bf16 %v365_v24, %v269_v23  ;;  %v368_v27 = vld [vmem:[#allocation2 + $0x348] sm:$0xff]  ;;  %v274_v28 = vld [vmem:[#allocation2 + $0x58] sm:$0xff]  ;;  %s255_s9 = sand.u32 1, %s24035_s22   ;;  %s24052_s29 = smov [#allocation5]  }
  0x3d   : > { %v370_v29 = vld [vmem:[#allocation2 + $0x358] sm:$0xff]  ;;  %21930 = vmatprep.subr.bf16.mxu1 %v21929_v21  ;;  %v21933_v30 = vpack.c.bf16 %v368_v27, %v272_v25  ;;  %v271_v32 = vld [vmem:[#allocation2 + $0x40] sm:$0xff]  ;;  %v273_v34 = vld [vmem:[#allocation2 + $0x50] sm:$0xff]  ;;  %s20731_s15 = sshll.u32 %s255_s9, 9  ;;  %s30172_s25 = scalar_lea.sflag [#allocation4], %s255_s9 }
  0x3e   : > { %20733 = vmatmul.mubr.msk.f32.vlgmr.msra.gmra.mrb[0].mxu0 %vm455_vm0, %v24180_v12  ;;  %v21937_v31 = vpack.c.bf16 %v370_v29, %v274_v28  ;;  %v367_v33 = vld [vmem:[#allocation2 + $0x340] sm:$0xff]  ;;  %v369_v36 = vld [vmem:[#allocation2 + $0x350] sm:$0xff]  ;;  %v276_v37 = vld [vmem:[#allocation2 + $0x68] sm:$0xff]  ;;  %s29845_s16 = scalar_lea.vmem [#allocation5], %s20731_s15  ;;  %s23981_s10 = sshll.u32 %s24052_s29, 4  ;;  %s23982_s10 = int_to_ptr.vmem [resolvable:$false] %s23981_s10 }
  0x3f   : > { %20734 = vmatmul.mubr.msk.f32.vlgmr.msra.gmra.mrb[0].mxu1 %vm455_vm0, %v24180_v12  ;;  %21928 = vmatpush1.bf16.msra.mxu0 %v21927_v22  ;;  %v21935_v35 = vpack.c.bf16 %v367_v33, %v271_v32  ;;  %v372_v38 = vld [vmem:[#allocation2 + $0x368] sm:$0xff]  ;;  %v21939_v39 = vpack.c.bf16 %v369_v36, %v273_v34  ;;  %v278_v40 = vld [vmem:[#allocation2 + $0x78] sm:$0xff]  ;;  %v275_v42 = vld [vmem:[#allocation2 + $0x60] sm:$0xff]  ;;  %s20651_s18 = sshll.u32 %s29845_s16, 4  ;;  %s23983_s12 = scalar_lea.vmem %s23982_s10, 16384  ;;  %s30166_s18 = int_to_ptr.vmem [resolvable:$true] %s20651_s18 }
  0x40   : > { %21932 = vmatpush1.bf16.msra.mxu1 %v21931_v26  ;;  %665 = vmatprep.mubr.f32.mxu0 %v30244_v0  ;;  %v374_v41 = vld [vmem:[#allocation2 + $0x378] sm:$0xff]  ;;  %v21941_v43 = vpack.c.bf16 %v372_v38, %v276_v37  ;;  %v371_v44 = vld [vmem:[#allocation2 + $0x360] sm:$0xff]  ;;  %v277_v45 = vld [vmem:[#allocation2 + $0x70] sm:$0xff]  ;;  %p23984_p2 = scmp.lt.s32.totalorder %s30166_s18, %s23982_s10 }
  0x41   : > { %736 = vmatprep.mubr.f32.mxu1 %v30244_v0  ;;  %21934 = vmatprep.subr.bf16.mxu0 %v21933_v30  ;;  %v373_v46 = vld [vmem:[#allocation2 + $0x370] sm:$0xff]  ;;  %v21945_v47 = vpack.c.bf16 %v374_v41, %v278_v40  ;;  %v280_v48 = vld [vmem:[#allocation2 + $0x88] sm:$0xff]  ;;  %v21943_v50 = vpack.c.bf16 %v371_v44, %v275_v42  ;;  %v282_v51 = vld [vmem:[#allocation2 + $0x98] sm:$0xff] }
  0x42   : > { %20735 = vmatmul.mubr.msk.f32.vlgmr.msra.gmra.mrb[2].mxu0 %vm455_vm0, %v24180_v12  ;;  %21938 = vmatprep.subr.bf16.mxu1 %v21937_v31  ;;  %v376_v49 = vld [vmem:[#allocation2 + $0x388] sm:$0xff]  ;;  %v378_v52 = vld [vmem:[#allocation2 + $0x398] sm:$0xff]  ;;  %v21947_v53 = vpack.c.bf16 %v373_v46, %v277_v45  ;;  %v279_v54 = vld [vmem:[#allocation2 + $0x80] sm:$0xff] }
  0x43   : > { %20736 = vmatmul.mubr.msk.f32.vlgmr.msra.gmra.mrb[2].mxu1 %vm455_vm0, %v24180_v12  ;;  %21936 = vmatpush1.bf16.msra.mxu0 %v21935_v35  ;;  %v375_v55 = vld [vmem:[#allocation2 + $0x380] sm:$0xff]  ;;  %v21949_v56 = vpack.c.bf16 %v376_v49, %v280_v48  ;;  %v281_v57 = vld [vmem:[#allocation2 + $0x90] sm:$0xff]  ;;  %v21953_v59 = vpack.c.bf16 %v378_v52, %v282_v51  ;;  %v284_v60 = vld [vmem:[#allocation2 + $0xa8] sm:$0xff] }
  0x44   : > { %21940 = vmatpush1.bf16.msra.mxu1 %v21939_v39  ;;  %807 = vmatprep.mubr.f32.mxu0 %v30244_v0  ;;  %v377_v58 = vld [vmem:[#allocation2 + $0x390] sm:$0xff]  ;;  %v380_v61 = vld [vmem:[#allocation2 + $0x3a8] sm:$0xff]  ;;  %v21951_v62 = vpack.c.bf16 %v375_v55, %v279_v54  ;;  %v286_v63 = vld [vmem:[#allocation2 + $0xb8] sm:$0xff] }
  0x45   : > { %878 = vmatprep.mubr.f32.mxu1 %v30244_v0  ;;  %21942 = vmatprep.subr.bf16.mxu0 %v21941_v43  ;;  %v382_v1 = vld [vmem:[#allocation2 + $0x3b8] sm:$0xff]  ;;  %v21955_v2 = vpack.c.bf16 %v377_v58, %v281_v57  ;;  %v283_v3 = vld [vmem:[#allocation2 + $0xa0] sm:$0xff]  ;;  %v21957_v5 = vpack.c.bf16 %v380_v61, %v284_v60  ;;  %v285_v6 = vld [vmem:[#allocation2 + $0xb0] sm:$0xff] }
  0x46   : > { %20737 = vmatmul.mubr.msk.f32.vlgmr.msra.gmra.mrb[4].mxu0 %vm455_vm0, %v24180_v12  ;;  %21946 = vmatprep.subr.bf16.mxu1 %v21945_v47  ;;  %v379_v4 = vld [vmem:[#allocation2 + $0x3a0] sm:$0xff]  ;;  %v381_v7 = vld [vmem:[#allocation2 + $0x3b0] sm:$0xff]  ;;  %v21961_v8 = vpack.c.bf16 %v382_v1, %v286_v63  ;;  %v288_v9 = vld [vmem:[#allocation2 + $0xc8] sm:$0xff] }
  0x47   : > { %20738 = vmatmul.mubr.msk.f32.vlgmr.msra.gmra.mrb[4].mxu1 %vm455_vm0, %v24180_v12  ;;  %21944 = vmatpush1.bf16.msra.mxu0 %v21943_v50  ;;  %v384_v10 = vld [vmem:[#allocation2 + $0x3c8] sm:$0xff]  ;;  %v21959_v11 = vpack.c.bf16 %v379_v4, %v283_v3  ;;  %v290_v13 = vld [vmem:[#allocation2 + $0xd8] sm:$0xff]  ;;  %v21963_v15 = vpack.c.bf16 %v381_v7, %v285_v6  ;;  %v287_v16 = vld [vmem:[#allocation2 + $0xc0] sm:$0xff] }
  0x48   : > { %21948 = vmatpush1.bf16.msra.mxu1 %v21947_v53  ;;  %949 = vmatprep.mubr.f32.mxu0 %v30244_v0  ;;  %v386_v14 = vld [vmem:[#allocation2 + $0x3d8] sm:$0xff]  ;;  %v383_v17 = vld [vmem:[#allocation2 + $0x3c0] sm:$0xff]  ;;  %v21965_v18 = vpack.c.bf16 %v384_v10, %v288_v9  ;;  %v289_v19 = vld [vmem:[#allocation2 + $0xd0] sm:$0xff] }
  0x49   : > { %1020 = vmatprep.mubr.f32.mxu1 %v30244_v0  ;;  %21950 = vmatprep.subr.bf16.mxu0 %v21949_v56  ;;  %v385_v20 = vld [vmem:[#allocation2 + $0x3d0] sm:$0xff]  ;;  %v21969_v21 = vpack.c.bf16 %v386_v14, %v290_v13  ;;  %v292_v22 = vld [vmem:[#allocation2 + $0xe8] sm:$0xff]  ;;  %v21967_v24 = vpack.c.bf16 %v383_v17, %v287_v16  ;;  %v294_v25 = vld [vmem:[#allocation2 + $0xf8] sm:$0xff] }
  0x4a   : > { %20739 = vmatmul.mubr.msk.f32.vlgmr.msra.gmra.mrb[6].mxu0 %vm455_vm0, %v24180_v12  ;;  %21954 = vmatprep.subr.bf16.mxu1 %v21953_v59  ;;  %v388_v23 = vld [vmem:[#allocation2 + $0x3e8] sm:$0xff]  ;;  %v390_v26 = vld [vmem:[#allocation2 + $0x3f8] sm:$0xff]  ;;  %v21971_v27 = vpack.c.bf16 %v385_v20, %v289_v19  ;;  %v291_v28 = vld [vmem:[#allocation2 + $0xe0] sm:$0xff] }
  0x4b   : > { %20740 = vmatmul.mubr.msk.f32.vlgmr.msra.gmra.mrb[6].mxu1 %vm455_vm0, %v24180_v12  ;;  %21952 = vmatpush1.bf16.msra.mxu0 %v21951_v62  ;;  %v387_v29 = vld [vmem:[#allocation2 + $0x3e0] sm:$0xff]  ;;  %v21973_v30 = vpack.c.bf16 %v388_v23, %v292_v22  ;;  %v293_v31 = vld [vmem:[#allocation2 + $0xf0] sm:$0xff]  ;;  %v21977_v33 = vpack.c.bf16 %v390_v26, %v294_v25  ;;  %v296_v34 = vld [vmem:[#allocation2 + $0x108] sm:$0xff] }
  0x4c   : > { %21956 = vmatpush1.bf16.msra.mxu1 %v21955_v2  ;;  %1091 = vmatprep.mubr.f32.mxu0 %v30244_v0  ;;  %v389_v32 = vld [vmem:[#allocation2 + $0x3f0] sm:$0xff]  ;;  %v392_v35 = vld [vmem:[#allocation2 + $0x408] sm:$0xff]  ;;  %v21975_v36 = vpack.c.bf16 %v387_v29, %v291_v28  ;;  %v298_v37 = vld [vmem:[#allocation2 + $0x118] sm:$0xff] }
  0x4d   : > { %1162 = vmatprep.mubr.f32.mxu1 %v30244_v0  ;;  %21958 = vmatprep.subr.bf16.mxu0 %v21957_v5  ;;  %v394_v38 = vld [vmem:[#allocation2 + $0x418] sm:$0xff]  ;;  %v21979_v39 = vpack.c.bf16 %v389_v32, %v293_v31  ;;  %v295_v40 = vld [vmem:[#allocation2 + $0x100] sm:$0xff]  ;;  %v21981_v42 = vpack.c.bf16 %v392_v35, %v296_v34  ;;  %v297_v43 = vld [vmem:[#allocation2 + $0x110] sm:$0xff] }
  0x4e   : > { %20741 = vmatmul.mubr.msk.f32.vlgmr.msra.gmra.mrb[8].mxu0 %vm455_vm0, %v24180_v12  ;;  %21962 = vmatprep.subr.bf16.mxu1 %v21961_v8  ;;  %v391_v41 = vld [vmem:[#allocation2 + $0x400] sm:$0xff]  ;;  %v393_v44 = vld [vmem:[#allocation2 + $0x410] sm:$0xff]  ;;  %v21985_v45 = vpack.c.bf16 %v394_v38, %v298_v37  ;;  %v300_v46 = vld [vmem:[#allocation2 + $0x128] sm:$0xff] }
  0x4f   : > { %20742 = vmatmul.mubr.msk.f32.vlgmr.msra.gmra.mrb[8].mxu1 %vm455_vm0, %v24180_v12  ;;  %21960 = vmatpush1.bf16.msra.mxu0 %v21959_v11  ;;  %v396_v47 = vld [vmem:[#allocation2 + $0x428] sm:$0xff]  ;;  %v21983_v48 = vpack.c.bf16 %v391_v41, %v295_v40  ;;  %v302_v49 = vld [vmem:[#allocation2 + $0x138] sm:$0xff]  ;;  %v21987_v51 = vpack.c.bf16 %v393_v44, %v297_v43  ;;  %v299_v52 = vld [vmem:[#allocation2 + $0x120] sm:$0xff] }
  0x50   : > { %21964 = vmatpush1.bf16.msra.mxu1 %v21963_v15  ;;  %1233 = vmatprep.mubr.f32.mxu0 %v30244_v0  ;;  %v398_v50 = vld [vmem:[#allocation2 + $0x438] sm:$0xff]  ;;  %v395_v53 = vld [vmem:[#allocation2 + $0x420] sm:$0xff]  ;;  %v21989_v54 = vpack.c.bf16 %v396_v47, %v300_v46  ;;  %v301_v55 = vld [vmem:[#allocation2 + $0x130] sm:$0xff] }
  0x51   : > { %1304 = vmatprep.mubr.f32.mxu1 %v30244_v0  ;;  %21966 = vmatprep.subr.bf16.mxu0 %v21965_v18  ;;  %v397_v56 = vld [vmem:[#allocation2 + $0x430] sm:$0xff]  ;;  %v21993_v57 = vpack.c.bf16 %v398_v50, %v302_v49  ;;  %v304_v58 = vld [vmem:[#allocation2 + $0x148] sm:$0xff]  ;;  %v21991_v60 = vpack.c.bf16 %v395_v53, %v299_v52  ;;  %v306_v61 = vld [vmem:[#allocation2 + $0x158] sm:$0xff] }
  0x52   : > { %20743 = vmatmul.mubr.msk.f32.vlgmr.msra.gmra.mrb[10].mxu0 %vm455_vm0, %v24180_v12  ;;  %21970 = vmatprep.subr.bf16.mxu1 %v21969_v21  ;;  %v400_v59 = vld [vmem:[#allocation2 + $0x448] sm:$0xff]  ;;  %v402_v62 = vld [vmem:[#allocation2 + $0x458] sm:$0xff]  ;;  %v21995_v63 = vpack.c.bf16 %v397_v56, %v301_v55  ;;  %v303_v1 = vld [vmem:[#allocation2 + $0x140] sm:$0xff] }
  0x53   : > { %20744 = vmatmul.mubr.msk.f32.vlgmr.msra.gmra.mrb[10].mxu1 %vm455_vm0, %v24180_v12  ;;  %21968 = vmatpush1.bf16.msra.mxu0 %v21967_v24  ;;  %v399_v2 = vld [vmem:[#allocation2 + $0x440] sm:$0xff]  ;;  %v21997_v3 = vpack.c.bf16 %v400_v59, %v304_v58  ;;  %v305_v4 = vld [vmem:[#allocation2 + $0x150] sm:$0xff]  ;;  %v22001_v6 = vpack.c.bf16 %v402_v62, %v306_v61  ;;  %v308_v7 = vld [vmem:[#allocation2 + $0x168] sm:$0xff] }
  0x54   : > { %21972 = vmatpush1.bf16.msra.mxu1 %v21971_v27  ;;  %1375 = vmatprep.mubr.f32.mxu0 %v30244_v0  ;;  %v401_v5 = vld [vmem:[#allocation2 + $0x450] sm:$0xff]  ;;  %v404_v8 = vld [vmem:[#allocation2 + $0x468] sm:$0xff]  ;;  %v21999_v9 = vpack.c.bf16 %v399_v2, %v303_v1  ;;  %v310_v10 = vld [vmem:[#allocation2 + $0x178] sm:$0xff] }
  0x55   : > { %1446 = vmatprep.mubr.f32.mxu1 %v30244_v0  ;;  %21974 = vmatprep.subr.bf16.mxu0 %v21973_v30  ;;  %v406_v11 = vld [vmem:[#allocation2 + $0x478] sm:$0xff]  ;;  %v22003_v13 = vpack.c.bf16 %v401_v5, %v305_v4  ;;  %v307_v14 = vld [vmem:[#allocation2 + $0x160] sm:$0xff]  ;;  %v22005_v16 = vpack.c.bf16 %v404_v8, %v308_v7  ;;  %v309_v17 = vld [vmem:[#allocation2 + $0x170] sm:$0xff] }
  0x56   : > { %20745 = vmatmul.mubr.msk.f32.vlgmr.msra.gmra.mrb[12].mxu0 %vm455_vm0, %v24180_v12  ;;  %21978 = vmatprep.subr.bf16.mxu1 %v21977_v33  ;;  %v403_v15 = vld [vmem:[#allocation2 + $0x460] sm:$0xff]  ;;  %v405_v18 = vld [vmem:[#allocation2 + $0x470] sm:$0xff]  ;;  %v22009_v19 = vpack.c.bf16 %v406_v11, %v310_v10  ;;  %v312_v20 = vld [vmem:[#allocation2 + $0x188] sm:$0xff] }
  0x57   : > { %20746 = vmatmul.mubr.msk.f32.vlgmr.msra.gmra.mrb[12].mxu1 %vm455_vm0, %v24180_v12  ;;  %21976 = vmatpush1.bf16.msra.mxu0 %v21975_v36  ;;  %v408_v21 = vld [vmem:[#allocation2 + $0x488] sm:$0xff]  ;;  %v22007_v22 = vpack.c.bf16 %v403_v15, %v307_v14  ;;  %v314_v23 = vld [vmem:[#allocation2 + $0x198] sm:$0xff]  ;;  %v22011_v25 = vpack.c.bf16 %v405_v18, %v309_v17  ;;  %v311_v26 = vld [vmem:[#allocation2 + $0x180] sm:$0xff] }
  0x58   : > { %21980 = vmatpush1.bf16.msra.mxu1 %v21979_v39  ;;  %1517 = vmatprep.mubr.f32.mxu0 %v30244_v0  ;;  %v410_v24 = vld [vmem:[#allocation2 + $0x498] sm:$0xff]  ;;  %v407_v27 = vld [vmem:[#allocation2 + $0x480] sm:$0xff]  ;;  %v22013_v28 = vpack.c.bf16 %v408_v21, %v312_v20  ;;  %v313_v29 = vld [vmem:[#allocation2 + $0x190] sm:$0xff] }
  0x59   : > { %1588 = vmatprep.mubr.f32.mxu1 %v30244_v0  ;;  %21982 = vmatprep.subr.bf16.mxu0 %v21981_v42  ;;  %v409_v30 = vld [vmem:[#allocation2 + $0x490] sm:$0xff]  ;;  %v22017_v31 = vpack.c.bf16 %v410_v24, %v314_v23  ;;  %v316_v32 = vld [vmem:[#allocation2 + $0x1a8] sm:$0xff]  ;;  %v22015_v34 = vpack.c.bf16 %v407_v27, %v311_v26  ;;  %v318_v35 = vld [vmem:[#allocation2 + $0x1b8] sm:$0xff] }
  0x5a   : > { %20747 = vmatmul.mubr.msk.f32.vlgmr.msra.gmra.mrb[14].mxu0 %vm455_vm0, %v24180_v12  ;;  %21986 = vmatprep.subr.bf16.mxu1 %v21985_v45  ;;  %v412_v33 = vld [vmem:[#allocation2 + $0x4a8] sm:$0xff]  ;;  %v414_v36 = vld [vmem:[#allocation2 + $0x4b8] sm:$0xff]  ;;  %v22019_v37 = vpack.c.bf16 %v409_v30, %v313_v29  ;;  %v315_v38 = vld [vmem:[#allocation2 + $0x1a0] sm:$0xff] }
  0x5b   : > { %20748 = vmatmul.mubr.msk.f32.vlgmr.msra.gmra.mrb[14].mxu1 %vm455_vm0, %v24180_v12  ;;  %21984 = vmatpush1.bf16.msra.mxu0 %v21983_v48  ;;  %v411_v39 = vld [vmem:[#allocation2 + $0x4a0] sm:$0xff]  ;;  %v22021_v40 = vpack.c.bf16 %v412_v33, %v316_v32  ;;  %v317_v41 = vld [vmem:[#allocation2 + $0x1b0] sm:$0xff]  ;;  %v22025_v43 = vpack.c.bf16 %v414_v36, %v318_v35  ;;  %v320_v44 = vld [vmem:[#allocation2 + $0x1c8] sm:$0xff] }
  0x5c   : > { %21988 = vmatpush1.bf16.msra.mxu1 %v21987_v51  ;;  %1659 = vmatprep.mubr.f32.mxu0 %v30244_v0  ;;  %v413_v42 = vld [vmem:[#allocation2 + $0x4b0] sm:$0xff]  ;;  %v416_v45 = vld [vmem:[#allocation2 + $0x4c8] sm:$0xff]  ;;  %v22023_v46 = vpack.c.bf16 %v411_v39, %v315_v38  ;;  %v322_v47 = vld [vmem:[#allocation2 + $0x1d8] sm:$0xff] }
  0x5d   : > { %1730 = vmatprep.mubr.f32.mxu1 %v30244_v0  ;;  %21990 = vmatprep.subr.bf16.mxu0 %v21989_v54  ;;  %v418_v48 = vld [vmem:[#allocation2 + $0x4d8] sm:$0xff]  ;;  %v22027_v49 = vpack.c.bf16 %v413_v42, %v317_v41  ;;  %v319_v50 = vld [vmem:[#allocation2 + $0x1c0] sm:$0xff]  ;;  %v22029_v52 = vpack.c.bf16 %v416_v45, %v320_v44  ;;  %v321_v53 = vld [vmem:[#allocation2 + $0x1d0] sm:$0xff] }
  0x5e   : > { %20749 = vmatmul.mubr.msk.f32.vlgmr.msra.gmra.mrb[16].mxu0 %vm455_vm0, %v24180_v12  ;;  %21994 = vmatprep.subr.bf16.mxu1 %v21993_v57  ;;  %v415_v51 = vld [vmem:[#allocation2 + $0x4c0] sm:$0xff]  ;;  %v417_v54 = vld [vmem:[#allocation2 + $0x4d0] sm:$0xff]  ;;  %v22033_v55 = vpack.c.bf16 %v418_v48, %v322_v47  ;;  %v324_v56 = vld [vmem:[#allocation2 + $0x1e8] sm:$0xff] }
  0x5f   : > { %20750 = vmatmul.mubr.msk.f32.vlgmr.msra.gmra.mrb[16].mxu1 %vm455_vm0, %v24180_v12  ;;  %21992 = vmatpush1.bf16.msra.mxu0 %v21991_v60  ;;  %v420_v57 = vld [vmem:[#allocation2 + $0x4e8] sm:$0xff]  ;;  %v22031_v58 = vpack.c.bf16 %v415_v51, %v319_v50  ;;  %v326_v59 = vld [vmem:[#allocation2 + $0x1f8] sm:$0xff]  ;;  %v22035_v61 = vpack.c.bf16 %v417_v54, %v321_v53  ;;  %v323_v62 = vld [vmem:[#allocation2 + $0x1e0] sm:$0xff] }
  0x60   : > { %21996 = vmatpush1.bf16.msra.mxu1 %v21995_v63  ;;  %1801 = vmatprep.mubr.f32.mxu0 %v30244_v0  ;;  %v422_v60 = vld [vmem:[#allocation2 + $0x4f8] sm:$0xff]  ;;  %v419_v63 = vld [vmem:[#allocation2 + $0x4e0] sm:$0xff]  ;;  %v22037_v1 = vpack.c.bf16 %v420_v57, %v324_v56  ;;  %v325_v2 = vld [vmem:[#allocation2 + $0x1f0] sm:$0xff] }
  0x61   : > { %1872 = vmatprep.mubr.f32.mxu1 %v30244_v0  ;;  %21998 = vmatprep.subr.bf16.mxu0 %v21997_v3  ;;  %v421_v3 = vld [vmem:[#allocation2 + $0x4f0] sm:$0xff]  ;;  %v22041_v4 = vpack.c.bf16 %v422_v60, %v326_v59  ;;  %v328_v5 = vld [vmem:[#allocation2 + $0x208] sm:$0xff]  ;;  %v22039_v7 = vpack.c.bf16 %v419_v63, %v323_v62  ;;  %v330_v8 = vld [vmem:[#allocation2 + $0x218] sm:$0xff] }
  0x62   : > { %20751 = vmatmul.mubr.msk.f32.vlgmr.msra.gmra.mrb[18].mxu0 %vm455_vm0, %v24180_v12  ;;  %22002 = vmatprep.subr.bf16.mxu1 %v22001_v6  ;;  %v424_v6 = vld [vmem:[#allocation2 + $0x508] sm:$0xff]  ;;  %v22043_v10 = vpack.c.bf16 %v421_v3, %v325_v2  ;;  %v327_v11 = vld [vmem:[#allocation2 + $0x200] sm:$0xff]  ;;  %v329_v15 = vld [vmem:[#allocation2 + $0x210] sm:$0xff] }
  0x63   : > { %20752 = vmatmul.mubr.msk.f32.vlgmr.msra.gmra.mrb[18].mxu1 %vm455_vm0, %v24180_v12  ;;  %22000 = vmatpush1.bf16.msra.mxu0 %v21999_v9  ;;  %v426_v9 = vld [vmem:[#allocation2 + $0x518] sm:$0xff]  ;;  %v22045_v14 = vpack.c.bf16 %v424_v6, %v328_v5  ;;  %v332_v21 = vld [vmem:[#allocation2 + $0x228] sm:$0xff]  ;;  %v331_v24 = vld [vmem:[#allocation2 + $0x220] sm:$0xff] }
  0x64   : > { %22004 = vmatpush1.bf16.msra.mxu1 %v22003_v13  ;;  %1943 = vmatprep.mubr.f32.mxu0 %v30244_v0  ;;  %v423_v13 = vld [vmem:[#allocation2 + $0x500] sm:$0xff]  ;;  %v22049_v17 = vpack.c.bf16 %v426_v9, %v330_v8  ;;  %v334_v18 = vld [vmem:[#allocation2 + $0x238] sm:$0xff]  ;;  %v333_v27 = vld [vmem:[#allocation2 + $0x230] sm:$0xff] }
  0x65   : > { %2014 = vmatprep.mubr.f32.mxu1 %v30244_v0  ;;  %22006 = vmatprep.subr.bf16.mxu0 %v22005_v16  ;;  %v425_v16 = vld [vmem:[#allocation2 + $0x510] sm:$0xff]  ;;  %v22047_v20 = vpack.c.bf16 %v423_v13, %v327_v11  ;;  %v336_v30 = vld [vmem:[#allocation2 + $0x248] sm:$0xff]  ;;  %v338_v33 = vld [vmem:[#allocation2 + $0x258] sm:$0xff] }
  0x66   : > { %20753 = vmatmul.mubr.msk.f32.vlgmr.msra.gmra.mrb[20].mxu0 %vm455_vm0, %v24180_v12  ;;  %22010 = vmatprep.subr.bf16.mxu1 %v22009_v19  ;;  %v430_v19 = vld [vmem:[#allocation2 + $0x538] sm:$0xff]  ;;  %v22051_v23 = vpack.c.bf16 %v425_v16, %v329_v15  ;;  %v335_v36 = vld [vmem:[#allocation2 + $0x240] sm:$0xff]  ;;  %v337_v39 = vld [vmem:[#allocation2 + $0x250] sm:$0xff] }
  0x67   : > { %20754 = vmatmul.mubr.msk.f32.vlgmr.msra.gmra.mrb[20].mxu1 %vm455_vm0, %v24180_v12  ;;  %22008 = vmatpush1.bf16.msra.mxu0 %v22007_v22  ;;  %v428_v22 = vld [vmem:[#allocation2 + $0x528] sm:$0xff]  ;;  %v22057_v26 = vpack.c.bf16 %v430_v19, %v334_v18  ;;  %v342_v45 = vld [vmem:[#allocation2 + $0x278] sm:$0xff]  ;;  %v339_v48 = vld [vmem:[#allocation2 + $0x260] sm:$0xff] }
  0x68   : > { %22012 = vmatpush1.bf16.msra.mxu1 %v22011_v25  ;;  %2085 = vmatprep.mubr.f32.mxu0 %v30244_v0  ;;  %v427_v25 = vld [vmem:[#allocation2 + $0x520] sm:$0xff]  ;;  %v22053_v29 = vpack.c.bf16 %v428_v22, %v332_v21  ;;  %v340_v42 = vld [vmem:[#allocation2 + $0x268] sm:$0xff]  ;;  %v341_v51 = vld [vmem:[#allocation2 + $0x270] sm:$0xff] }
  0x69   : > { %2156 = vmatprep.mubr.f32.mxu1 %v30244_v0  ;;  %22014 = vmatprep.subr.bf16.mxu0 %v22013_v28  ;;  %v429_v28 = vld [vmem:[#allocation2 + $0x530] sm:$0xff]  ;;  %v22055_v32 = vpack.c.bf16 %v427_v25, %v331_v24  ;;  %v346_v54 = vld [vmem:[#allocation2 + $0x298] sm:$0xff]  ;;  %v344_v57 = vld [vmem:[#allocation2 + $0x288] sm:$0xff] }
  0x6a   : > { %20755 = vmatmul.mubr.msk.f32.vlgmr.msra.gmra.mrb[22].mxu0 %vm455_vm0, %v24180_v12  ;;  %22018 = vmatprep.subr.bf16.mxu1 %v22017_v31  ;;  %v432_v31 = vld [vmem:[#allocation2 + $0x548] sm:$0xff]  ;;  %v22059_v35 = vpack.c.bf16 %v429_v28, %v333_v27  ;;  %v343_v60 = vld [vmem:[#allocation2 + $0x280] sm:$0xff]  ;;  %v345_v63 = vld [vmem:[#allocation2 + $0x290] sm:$0xff] }
  0x6b   : > { %20756 = vmatmul.mubr.msk.f32.vlgmr.msra.gmra.mrb[22].mxu1 %vm455_vm0, %v24180_v12  ;;  %22016 = vmatpush1.bf16.msra.mxu0 %v22015_v34  ;;  %v434_v34 = vld [vmem:[#allocation2 + $0x558] sm:$0xff]  ;;  %v22061_v38 = vpack.c.bf16 %v432_v31, %v336_v30  ;;  %v348_v6 = vld [vmem:[#allocation2 + $0x2a8] sm:$0xff]  ;;  %v347_v9 = vld [vmem:[#allocation2 + $0x2a0] sm:$0xff] }
  0x6c   : > { %22020 = vmatpush1.bf16.msra.mxu1 %v22019_v37  ;;  %2227 = vmatprep.mubr.f32.mxu0 %v30244_v0  ;;  %v431_v37 = vld [vmem:[#allocation2 + $0x540] sm:$0xff]  ;;  %v22065_v41 = vpack.c.bf16 %v434_v34, %v338_v33  ;;  %v350_v3 = vld [vmem:[#allocation2 + $0x2b8] sm:$0xff]  ;;  %v349_v13 = vld [vmem:[#allocation2 + $0x2b0] sm:$0xff] }
  0x6d   : > { %2298 = vmatprep.mubr.f32.mxu1 %v30244_v0  ;;  %22022 = vmatprep.subr.bf16.mxu0 %v22021_v40  ;;  %v433_v40 = vld [vmem:[#allocation2 + $0x550] sm:$0xff]  ;;  %v22063_v44 = vpack.c.bf16 %v431_v37, %v335_v36  ;;  %v354_v16 = vld [vmem:[#allocation2 + $0x2d8] sm:$0xff]  ;;  %v352_v19 = vld [vmem:[#allocation2 + $0x2c8] sm:$0xff] }
  0x6e   : > { %20757 = vmatmul.mubr.msk.f32.vlgmr.msra.gmra.mrb[24].mxu0 %vm455_vm0, %v24180_v12  ;;  %22026 = vmatprep.subr.bf16.mxu1 %v22025_v43  ;;  %v436_v43 = vld [vmem:[#allocation2 + $0x568] sm:$0xff]  ;;  %v22067_v47 = vpack.c.bf16 %v433_v40, %v337_v39  ;;  %v351_v22 = vld [vmem:[#allocation2 + $0x2c0] sm:$0xff]  ;;  %v353_v25 = vld [vmem:[#allocation2 + $0x2d0] sm:$0xff] }
  0x6f   : > { %20758 = vmatmul.mubr.msk.f32.vlgmr.msra.gmra.mrb[24].mxu1 %vm455_vm0, %v24180_v12  ;;  %22024 = vmatpush1.bf16.msra.mxu0 %v22023_v46  ;;  %v438_v46 = vld [vmem:[#allocation2 + $0x578] sm:$0xff]  ;;  %v22069_v50 = vpack.c.bf16 %v436_v43, %v340_v42  ;;  %v356_v31 = vld [vmem:[#allocation2 + $0x2e8] sm:$0xff]  ;;  %v355_v34 = vld [vmem:[#allocation2 + $0x2e0] sm:$0xff] }
  0x70   : > { %22028 = vmatpush1.bf16.msra.mxu1 %v22027_v49  ;;  %2369 = vmatprep.mubr.f32.mxu0 %v30244_v0  ;;  %v435_v49 = vld [vmem:[#allocation2 + $0x560] sm:$0xff]  ;;  %v22073_v53 = vpack.c.bf16 %v438_v46, %v342_v45  ;;  %v358_v28 = vld [vmem:[#allocation2 + $0x2f8] sm:$0xff]  ;;  %v357_v37 = vld [vmem:[#allocation2 + $0x2f0] sm:$0xff] }
  0x71   : > { %2440 = vmatprep.mubr.f32.mxu1 %v30244_v0  ;;  %22030 = vmatprep.subr.bf16.mxu0 %v22029_v52  ;;  %v437_v52 = vld [vmem:[#allocation2 + $0x570] sm:$0xff]  ;;  %v22071_v56 = vpack.c.bf16 %v435_v49, %v339_v48  ;;  %v24335_v45 = vld [vmem:[%s30215_s2 + $0x20] sm:$0xff]  ;;  %v24359_v48 = vld [vmem:[%s30215_s2 + $0x28] sm:$0xff] }
  0x72   : > { %20759 = vmatmul.mubr.msk.f32.vlgmr.msra.gmra.mrb[26].mxu0 %vm455_vm0, %v24180_v12  ;;  %22034 = vmatprep.subr.bf16.mxu1 %v22033_v55  ;;  %v442_v55 = vld [vmem:[#allocation2 + $0x598] sm:$0xff]  ;;  %v22075_v59 = vpack.c.bf16 %v437_v52, %v341_v51 }
  0x73   : > { %20760 = vmatmul.mubr.msk.f32.vlgmr.msra.gmra.mrb[26].mxu1 %vm455_vm0, %v24180_v12  ;;  %22032 = vmatpush1.bf16.msra.mxu0 %v22031_v58  ;;  %v440_v58 = vld [vmem:[#allocation2 + $0x588] sm:$0xff]  ;;  %v22081_v62 = vpack.c.bf16 %v442_v55, %v346_v54 }
  0x74   : > { %22036 = vmatpush1.bf16.msra.mxu1 %v22035_v61  ;;  %2511 = vmatprep.mubr.f32.mxu0 %v30244_v0  ;;  %v439_v61 = vld [vmem:[#allocation2 + $0x580] sm:$0xff]  ;;  %v22077_v2 = vpack.c.bf16 %v440_v58, %v344_v57  ;;  %v24409_v58 = vld [vmem:[%s30215_s2 + $0x38] sm:$0xff] }
  0x75   : > { %2582 = vmatprep.mubr.f32.mxu1 %v30244_v0  ;;  %22038 = vmatprep.subr.bf16.mxu0 %v22037_v1  ;;  %v441_v1 = vld [vmem:[#allocation2 + $0x590] sm:$0xff]  ;;  %v22079_v5 = vpack.c.bf16 %v439_v61, %v343_v60 }
  0x76   : > { %20761 = vmatmul.mubr.msk.f32.vlgmr.msra.gmra.mrb[28].mxu0 %vm455_vm0, %v24180_v12  ;;  %22042 = vmatprep.subr.bf16.mxu1 %v22041_v4  ;;  %v446_v4 = vld [vmem:[#allocation2 + $0x5b8] sm:$0xff]  ;;  %v22083_v8 = vpack.c.bf16 %v441_v1, %v345_v63 }
  0x77   : > { %20762 = vmatmul.mubr.msk.f32.vlgmr.msra.gmra.mrb[28].mxu1 %vm455_vm0, %v24180_v12  ;;  %22040 = vmatpush1.bf16.msra.mxu0 %v22039_v7  ;;  %v444_v7 = vld [vmem:[#allocation2 + $0x5a8] sm:$0xff]  ;;  %v22089_v11 = vpack.c.bf16 %v446_v4, %v350_v3 }
  0x78   : > { %22044 = vmatpush1.bf16.msra.mxu1 %v22043_v10  ;;  %2653 = vmatprep.mubr.f32.mxu0 %v30244_v0  ;;  %v443_v10 = vld [vmem:[#allocation2 + $0x5a0] sm:$0xff]  ;;  %v22085_v15 = vpack.c.bf16 %v444_v7, %v348_v6 }
  0x79   : > { %2724 = vmatprep.mubr.f32.mxu1 %v30244_v0  ;;  %22046 = vmatprep.subr.bf16.mxu0 %v22045_v14  ;;  %v445_v14 = vld [vmem:[#allocation2 + $0x5b0] sm:$0xff]  ;;  %v22087_v18 = vpack.c.bf16 %v443_v10, %v347_v9 }
  0x7a   : > { %20763 = vmatmul.mubr.msk.f32.vlgmr.msra.gmra.mrb[30].mxu0 %vm455_vm0, %v24180_v12  ;;  %22050 = vmatprep.subr.bf16.mxu1 %v22049_v17  ;;  %v450_v17 = vld [vmem:[#allocation2 + $0x5d8] sm:$0xff]  ;;  %v22091_v21 = vpack.c.bf16 %v445_v14, %v349_v13 }
  0x7b   : > { %20764 = vmatmul.mubr.msk.f32.vlgmr.msra.gmra.mrb[30].mxu1 %vm455_vm0, %v24180_v12  ;;  %22048 = vmatpush1.bf16.msra.mxu0 %v22047_v20  ;;  %v448_v20 = vld [vmem:[#allocation2 + $0x5c8] sm:$0xff]  ;;  %v22097_v24 = vpack.c.bf16 %v450_v17, %v354_v16 }
  0x7c   : > { %22052 = vmatpush1.bf16.msra.mxu1 %v22051_v23  ;;  %2795 = vmatprep.mubr.f32.mxu0 %v30244_v0  ;;  %v447_v23 = vld [vmem:[#allocation2 + $0x5c0] sm:$0xff]  ;;  %v22093_v27 = vpack.c.bf16 %v448_v20, %v352_v19 }
  0x7d   : > { %2866 = vmatprep.mubr.f32.mxu1 %v30244_v0  ;;  %22058 = vmatprep.subr.bf16.mxu1 %v22057_v26  ;;  %v449_v26 = vld [vmem:[#allocation2 + $0x5d0] sm:$0xff]  ;;  %v22095_v30 = vpack.c.bf16 %v447_v23, %v351_v22 }
  0x7e   : > { %20765 = vmatmul.mubr.msk.f32.vlgmr.msra.gmra.mrb[32].mxu0 %vm455_vm0, %v24180_v12  ;;  %22054 = vmatprep.subr.bf16.mxu0 %v22053_v29  ;;  %v454_v29 = vld [vmem:[#allocation2 + $0x5f8] sm:$0xff]  ;;  %v22099_v33 = vpack.c.bf16 %v449_v26, %v353_v25 }
  0x7f   : > { %20766 = vmatmul.mubr.msk.f32.vlgmr.msra.gmra.mrb[32].mxu1 %vm455_vm0, %v24180_v12  ;;  %22056 = vmatpush1.bf16.msra.mxu0 %v22055_v32  ;;  %v452_v32 = vld [vmem:[#allocation2 + $0x5e8] sm:$0xff]  ;;  %v22105_v36 = vpack.c.bf16 %v454_v29, %v358_v28 }
  0x80   : > { %22060 = vmatpush1.bf16.msra.mxu1 %v22059_v35  ;;  %3008 = vmatprep.mubr.f32.mxu1 %v30244_v0  ;;  %v451_v35 = vld [vmem:[#allocation2 + $0x5e0] sm:$0xff]  ;;  %v22101_v39 = vpack.c.bf16 %v452_v32, %v356_v31 }
  0x81   : > { %2937 = vmatprep.mubr.f32.mxu0 %v30244_v0  ;;  %22062 = vmatprep.subr.bf16.mxu0 %v22061_v38  ;;  %v453_v38 = vld [vmem:[#allocation2 + $0x5f0] sm:$0xff]  ;;  %v22103_v40 = vpack.c.bf16 %v451_v35, %v355_v34 }
  0x82   : > { %20767 = vmatmul.mubr.msk.f32.vlgmr.msra.gmra.mrb[34].mxu0 %vm455_vm0, %v24180_v12  ;;  %22066 = vmatprep.subr.bf16.mxu1 %v22065_v41  ;;  %v22107_v41 = vpack.c.bf16 %v453_v38, %v357_v37 }
  0x83   : > { %20768 = vmatmul.mubr.msk.f32.vlgmr.msra.gmra.mrb[34].mxu1 %vm455_vm0, %v24180_v12  ;;  %22064 = vmatpush1.bf16.msra.mxu0 %v22063_v44 }
  0x84   : > { %22068 = vmatpush1.bf16.msra.mxu1 %v22067_v47  ;;  %3079 = vmatprep.mubr.f32.mxu0 %v30244_v0 }
  0x85   : > { %3150 = vmatprep.mubr.f32.mxu1 %v30244_v0  ;;  %22070 = vmatprep.subr.bf16.mxu0 %v22069_v50 }
  0x86   : > { %20769 = vmatmul.mubr.msk.f32.vlgmr.msra.gmra.mrb[36].mxu0 %vm455_vm0, %v24180_v12  ;;  %22074 = vmatprep.subr.bf16.mxu1 %v22073_v53  ;;  %v24386_v53 = vld [vmem:[%s30215_s2 + $0x30] sm:$0xff] }
  0x87   : > { %20770 = vmatmul.mubr.msk.f32.vlgmr.msra.gmra.mrb[36].mxu1 %vm455_vm0, %v24180_v12  ;;  %22072 = vmatpush1.bf16.msra.mxu0 %v22071_v56 }
  0x88   : > { %22076 = vmatpush1.bf16.msra.mxu1 %v22075_v59  ;;  %3221 = vmatprep.mubr.f32.mxu0 %v30244_v0 }
  0x89   : > { %3292 = vmatprep.mubr.f32.mxu1 %v30244_v0  ;;  %22082 = vmatprep.subr.bf16.mxu1 %v22081_v62 }
  0x8a   : > { %20771 = vmatmul.mubr.msk.f32.vlgmr.msra.gmra.mrb[38].mxu0 %vm455_vm0, %v24180_v12  ;;  %22078 = vmatprep.subr.bf16.mxu0 %v22077_v2 }
  0x8b   : > { %20772 = vmatmul.mubr.msk.f32.vlgmr.msra.gmra.mrb[38].mxu1 %vm455_vm0, %v24180_v12  ;;  %22080 = vmatpush1.bf16.msra.mxu0 %v22079_v5 }
  0x8c   : > { %22084 = vmatpush1.bf16.msra.mxu1 %v22083_v8  ;;  %3434 = vmatprep.mubr.f32.mxu1 %v30244_v0 }
  0x8d   : > { %3363 = vmatprep.mubr.f32.mxu0 %v30244_v0  ;;  %22090 = vmatprep.subr.bf16.mxu1 %v22089_v11 }
  0x8e   : > { %20773 = vmatmul.mubr.msk.f32.vlgmr.msra.gmra.mrb[40].mxu0 %vm455_vm0, %v24180_v12  ;;  %22086 = vmatprep.subr.bf16.mxu0 %v22085_v15 }
  0x8f   : > { %20774 = vmatmul.mubr.msk.f32.vlgmr.msra.gmra.mrb[40].mxu1 %vm455_vm0, %v24180_v12  ;;  %22088 = vmatpush1.bf16.msra.mxu0 %v22087_v18 }
  0x90   : > { %22092 = vmatpush1.bf16.msra.mxu1 %v22091_v21  ;;  %3576 = vmatprep.mubr.f32.mxu1 %v30244_v0 }
  0x91   : > { %3505 = vmatprep.mubr.f32.mxu0 %v30244_v0  ;;  %22098 = vmatprep.subr.bf16.mxu1 %v22097_v24 }
  0x92   : > { %20775 = vmatmul.mubr.msk.f32.vlgmr.msra.gmra.mrb[42].mxu0 %vm455_vm0, %v24180_v12  ;;  %22094 = vmatprep.subr.bf16.mxu0 %v22093_v27 }
  0x93   : > { %20776 = vmatmul.mubr.msk.f32.vlgmr.msra.gmra.mrb[42].mxu1 %vm455_vm0, %v24180_v12  ;;  %22096 = vmatpush1.bf16.msra.mxu0 %v22095_v30 }
  0x94   : > { %22100 = vmatpush1.bf16.msra.mxu1 %v22099_v33  ;;  %3718 = vmatprep.mubr.f32.mxu1 %v30244_v0 }
  0x95   : > { %3647 = vmatprep.mubr.f32.mxu0 %v30244_v0  ;;  %22106 = vmatprep.subr.bf16.mxu1 %v22105_v36 }
  0x96   : > { %20777 = vmatmul.mubr.msk.f32.vlgmr.msra.gmra.mrb[44].mxu0 %vm455_vm0, %v24180_v12  ;;  %22102 = vmatprep.subr.bf16.mxu0 %v22101_v39 }
  0x97   : > { %20778 = vmatmul.mubr.msk.f32.vlgmr.msra.gmra.mrb[44].mxu1 %vm455_vm0, %v24180_v12  ;;  %22104 = vmatpush1.bf16.msra.mxu0 %v22103_v40 }
  0x98   : > { %22108 = vmatpush1.bf16.msra.mxu1 %v22107_v41  ;;  %3860 = vmatprep.mubr.f32.mxu1 %v30244_v0 }
  0x99   : > { %3789 = vmatprep.mubr.f32.mxu0 %v30244_v0 }
  0x9a   : > { %20779 = vmatmul.mubr.msk.f32.vlgmr.msra.gmra.mrb[46].mxu0 %vm455_vm0, %v24180_v12 }
  0x9b   : > { %20780 = vmatmul.mubr.msk.f32.vlgmr.msra.gmra.mrb[46].mxu1 %vm455_vm0, %v24180_v12  ;;  %4007 = vmatprep.mubr.f32.mxu0 %v30244_v0 }
  0x9c   : > { %4096 = vmatprep.mubr.f32.mxu1 %v30244_v0 }
 0x111   : > { %v24326_v42 = vpop.f32.mrb[0].mxu0 }
 0x112   : > { %v24328_v43 = vpop.f32.mrb[0].mxu1  ;;  %v24330_v44 = vpop.f32.mrb[1].mxu0 }
 0x113   : > { %v24337_v46 = vpop.f32.mrb[1].mxu1  ;;  %20789 = vmatprep.subr.msk.mxu0 %vm3894_vm1, %v24330_v44 }
 0x114   : > { %20795 = vmatprep.subr.msk.mxu1 %vm3894_vm1, %v24337_v46  ;;  %20790 = vmatpush1.msk.msra.mxu0 %vm3894_vm1, %v24326_v42 }
 0x115   : > { %20796 = vmatpush1.msk.msra.mxu1 %vm3894_vm1, %v24328_v43  ;;  %20791 = vmatmul.mubr.msk.f32.vlgmr.msra.gmra.mrb[48].mxu0 %vm3881_vm2, %v24335_v45  ;;  %v24349_v12 = vpop.f32.mrb[2].mxu0 }
 0x116   : > { %v24351_v47 = vpop.f32.mrb[2].mxu1  ;;  %20797 = vmatmul.mubr.msk.f32.vlgmr.msra.gmra.mrb[48].mxu1 %vm3881_vm2, %v24335_v45  ;;  %4013 = vmatprep.mubr.f32.mxu0 %v30244_v0  ;;  %v24361_v49 = vpop.f32.mrb[3].mxu0 }
 0x117   : > { %v24363_v50 = vpop.f32.mrb[3].mxu1  ;;  %4102 = vmatprep.mubr.f32.mxu1 %v30244_v0  ;;  %20801 = vmatprep.subr.msk.mxu0 %vm3894_vm1, %v24361_v49 }
 0x118   : > { %20807 = vmatprep.subr.msk.mxu1 %vm3894_vm1, %v24363_v50  ;;  %20802 = vmatpush1.msk.msra.mxu0 %vm3894_vm1, %v24349_v12 }
 0x119   : > { %20808 = vmatpush1.msk.msra.mxu1 %vm3894_vm1, %v24351_v47  ;;  %20792 = vmatmul.mubr.msk.f32.gmra.mrb[50].mxu0 %vm3881_vm2, %v24359_v48  ;;  %v24376_v51 = vpop.f32.mrb[4].mxu0 }
 0x11a   : > { %v24378_v52 = vpop.f32.mrb[4].mxu1  ;;  %20798 = vmatmul.mubr.msk.f32.gmra.mrb[50].mxu1 %vm3881_vm2, %v24359_v48  ;;  %4019 = vmatprep.mubr.f32.mxu0 %v30244_v0  ;;  %v24388_v54 = vpop.f32.mrb[5].mxu0 }
 0x11b   : > { %v24390_v55 = vpop.f32.mrb[5].mxu1  ;;  %4108 = vmatprep.mubr.f32.mxu1 %v30244_v0  ;;  %20813 = vmatprep.subr.msk.mxu0 %vm3894_vm1, %v24388_v54 }
 0x11c   : > { %20819 = vmatprep.subr.msk.mxu1 %vm3894_vm1, %v24390_v55 }
 0x11d   : > { %20793 = vmatmul.mubr.msk.f32.gmra.mrb[52].mxu0 %vm3881_vm2, %v24386_v53  ;;  %v24399_v56 = vpop.f32.mrb[6].mxu0 }
 0x11e   : > { %v24401_v57 = vpop.f32.mrb[6].mxu1  ;;  %20799 = vmatmul.mubr.msk.f32.gmra.mrb[52].mxu1 %vm3881_vm2, %v24386_v53  ;;  %4025 = vmatprep.mubr.f32.mxu0 %v30244_v0  ;;  %v24411_v59 = vpop.f32.mrb[7].mxu0 }
 0x11f   : > { %v24413_v60 = vpop.f32.mrb[7].mxu1  ;;  %4114 = vmatprep.mubr.f32.mxu1 %v30244_v0 }
 0x121   : > { %20794 = vmatmul.mubr.msk.f32.gmra.mrb[54].mxu0 %vm3881_vm2, %v24409_v58  ;;  %v24418_v61 = vpop.f32.mrb[8].mxu0 }
 0x122   : > { %v24420_v62 = vpop.f32.mrb[8].mxu1  ;;  %20800 = vmatmul.mubr.msk.f32.gmra.mrb[54].mxu1 %vm3881_vm2, %v24409_v58  ;;  %4185 = vmatprep.mubr.f32.mxu0 %v30244_v0  ;;  %v24425_v63 = vpop.f32.mrb[9].mxu0 }
 0x123   : > { %v24427_v1 = vpop.f32.mrb[9].mxu1  ;;  %4274 = vmatprep.mubr.f32.mxu1 %v30244_v0 }
 0x125   : > { %20803 = vmatmul.mubr.msk.f32.vlgmr.msra.gmra.mrb[56].mxu0 %vm3881_vm2, %v24335_v45  ;;  %v24432_v2 = vpop.f32.mrb[10].mxu0 }
 0x126   : > { %v24434_v3 = vpop.f32.mrb[10].mxu1  ;;  %20809 = vmatmul.mubr.msk.f32.vlgmr.msra.gmra.mrb[56].mxu1 %vm3881_vm2, %v24335_v45  ;;  %4191 = vmatprep.mubr.f32.mxu0 %v30244_v0  ;;  %v24439_v4 = vpop.f32.mrb[11].mxu0 }
 0x127   : > { %20820 = vmatpush1.msk.msra.mxu1 %vm3894_vm1, %v24378_v52  ;;  %v24443_v5 = vpop.f32.mrb[11].mxu1  ;;  %4280 = vmatprep.mubr.f32.mxu1 %v30244_v0 }
 0x128   : > { %20831 = vmatprep.subr.msk.mxu1 %vm3894_vm1, %v24413_v60  ;;  %20814 = vmatpush1.msk.msra.mxu0 %vm3894_vm1, %v24376_v51 }
 0x129   : > { %20804 = vmatmul.mubr.msk.f32.gmra.mrb[58].mxu0 %vm3881_vm2, %v24359_v48  ;;  %v24452_v6 = vpop.f32.mrb[12].mxu0  ;;  %20825 = vmatprep.subr.msk.mxu0 %vm3894_vm1, %v24411_v59 }
 0x12a   : > { %v24456_v7 = vpop.f32.mrb[12].mxu1  ;;  %20810 = vmatmul.mubr.msk.f32.gmra.mrb[58].mxu1 %vm3881_vm2, %v24359_v48  ;;  %4197 = vmatprep.mubr.f32.mxu0 %v30244_v0  ;;  %v24461_v8 = vpop.f32.mrb[13].mxu0 }
 0x12b   : > { %v24463_v9 = vpop.f32.mrb[13].mxu1  ;;  %4286 = vmatprep.mubr.f32.mxu1 %v30244_v0 }
 0x12d   : > { %20805 = vmatmul.mubr.msk.f32.gmra.mrb[60].mxu0 %vm3881_vm2, %v24386_v53  ;;  %v24468_v10 = vpop.f32.mrb[14].mxu0 }
 0x12e   : > { %v24470_v11 = vpop.f32.mrb[14].mxu1  ;;  %20811 = vmatmul.mubr.msk.f32.gmra.mrb[60].mxu1 %vm3881_vm2, %v24386_v53  ;;  %4203 = vmatprep.mubr.f32.mxu0 %v30244_v0  ;;  %v24475_v13 = vpop.f32.mrb[15].mxu0 }
 0x12f   : > { %v24477_v14 = vpop.f32.mrb[15].mxu1  ;;  %4292 = vmatprep.mubr.f32.mxu1 %v30244_v0 }
 0x131   : > { %20806 = vmatmul.mubr.msk.f32.gmra.mrb[62].mxu0 %vm3881_vm2, %v24409_v58  ;;  %v24482_v15 = vpop.f32.mrb[16].mxu0 }
 0x132   : > { %30368 = vst [vmem:[#allocation8_spill] sm:$0xff] %v24482_v15  ;;  %v24484_v16 = vpop.f32.mrb[16].mxu1  ;;  %20812 = vmatmul.mubr.msk.f32.gmra.mrb[62].mxu1 %vm3881_vm2, %v24409_v58  ;;  %4363 = vmatprep.mubr.f32.mxu0 %v30244_v0  ;;  %v24489_v17 = vpop.f32.mrb[17].mxu0 }
 0x133   : > { %30369 = vst [vmem:[#allocation9_spill] sm:$0xff] %v24484_v16  ;;  %30370 = vst [vmem:[#allocation10_spill] sm:$0xff] %v24489_v17  ;;  %v24491_v18 = vpop.f32.mrb[17].mxu1  ;;  %4452 = vmatprep.mubr.f32.mxu1 %v30244_v0 }
 0x134   : > { %30371 = vst [vmem:[#allocation11_spill] sm:$0xff] %v24491_v18 }
 0x135   : > { %20815 = vmatmul.mubr.msk.f32.vlgmr.msra.gmra.mrb[64].mxu0 %vm3881_vm2, %v24335_v45  ;;  %v24496_v19 = vpop.f32.mrb[18].mxu0 }
 0x136   : > { %30372 = vst [vmem:[#allocation12_spill] sm:$0xff] %v24496_v19  ;;  %v24498_v20 = vpop.f32.mrb[18].mxu1  ;;  %20821 = vmatmul.mubr.msk.f32.vlgmr.msra.gmra.mrb[64].mxu1 %vm3881_vm2, %v24335_v45  ;;  %4369 = vmatprep.mubr.f32.mxu0 %v30244_v0  ;;  %v24503_v21 = vpop.f32.mrb[19].mxu0 }
 0x137   : > { %30373 = vst [vmem:[#allocation13_spill] sm:$0xff] %v24498_v20  ;;  %30374 = vst [vmem:[#allocation14_spill] sm:$0xff] %v24503_v21  ;;  %20832 = vmatpush1.msk.msra.mxu1 %vm3894_vm1, %v24401_v57  ;;  %v24507_v22 = vpop.f32.mrb[19].mxu1  ;;  %4458 = vmatprep.mubr.f32.mxu1 %v30244_v0 }
 0x138   : > { %30375 = vst [vmem:[#allocation15_spill] sm:$0xff] %v24507_v22  ;;  %20826 = vmatpush1.msk.msra.mxu0 %vm3894_vm1, %v24399_v56 }
 0x139   : > { %20816 = vmatmul.mubr.msk.f32.gmra.mrb[66].mxu0 %vm3881_vm2, %v24359_v48  ;;  %v24514_v23 = vpop.f32.mrb[20].mxu0 }
 0x13a   : > { %30376 = vst [vmem:[#allocation16_spill] sm:$0xff] %v24514_v23  ;;  %v24516_v24 = vpop.f32.mrb[20].mxu1  ;;  %20822 = vmatmul.mubr.msk.f32.gmra.mrb[66].mxu1 %vm3881_vm2, %v24359_v48  ;;  %4375 = vmatprep.mubr.f32.mxu0 %v30244_v0  ;;  %v24521_v25 = vpop.f32.mrb[21].mxu0 }
 0x13b   : > { %30377 = vst [vmem:[#allocation17_spill] sm:$0xff] %v24516_v24  ;;  %30378 = vst [vmem:[#allocation18_spill] sm:$0xff] %v24521_v25  ;;  %v24523_v26 = vpop.f32.mrb[21].mxu1  ;;  %4464 = vmatprep.mubr.f32.mxu1 %v30244_v0 }
 0x13c   : > { %30379 = vst [vmem:[#allocation19_spill] sm:$0xff] %v24523_v26 }
 0x13d   : > { %20817 = vmatmul.mubr.msk.f32.gmra.mrb[68].mxu0 %vm3881_vm2, %v24386_v53  ;;  %v24528_v27 = vpop.f32.mrb[22].mxu0 }
 0x13e   : > { %30380 = vst [vmem:[#allocation20_spill] sm:$0xff] %v24528_v27  ;;  %v24530_v28 = vpop.f32.mrb[22].mxu1  ;;  %20823 = vmatmul.mubr.msk.f32.gmra.mrb[68].mxu1 %vm3881_vm2, %v24386_v53  ;;  %4381 = vmatprep.mubr.f32.mxu0 %v30244_v0  ;;  %v24535_v29 = vpop.f32.mrb[23].mxu0 }
 0x13f   : > { %30381 = vst [vmem:[#allocation21_spill] sm:$0xff] %v24530_v28  ;;  %30382 = vst [vmem:[#allocation22_spill] sm:$0xff] %v24535_v29  ;;  %v24537_v30 = vpop.f32.mrb[23].mxu1  ;;  %4470 = vmatprep.mubr.f32.mxu1 %v30244_v0 }
 0x140   : > { %30383 = vst [vmem:[#allocation23_spill] sm:$0xff] %v24537_v30 }
 0x141   : > { %20818 = vmatmul.mubr.msk.f32.gmra.mrb[70].mxu0 %vm3881_vm2, %v24409_v58  ;;  %v24542_v31 = vpop.f32.mrb[24].mxu0 }
 0x142   : > { %30384 = vst [vmem:[#allocation24_spill] sm:$0xff] %v24542_v31  ;;  %v24544_v32 = vpop.f32.mrb[24].mxu1  ;;  %20824 = vmatmul.mubr.msk.f32.gmra.mrb[70].mxu1 %vm3881_vm2, %v24409_v58  ;;  %4541 = vmatprep.mubr.f32.mxu0 %v30244_v0  ;;  %v24549_v33 = vpop.f32.mrb[25].mxu0  ;;  %v24647_v31 = vld [vmem:[%s30215_s2 + $0x18] sm:$0xff] }
 0x143   : > { %30385 = vst [vmem:[#allocation25_spill] sm:$0xff] %v24544_v32  ;;  %30386 = vst [vmem:[#allocation26_spill] sm:$0xff] %v24549_v33  ;;  %v24551_v34 = vpop.f32.mrb[25].mxu1  ;;  %4630 = vmatprep.mubr.f32.mxu1 %v30244_v0  ;;  %v24634_v32 = vld [vmem:[%s30215_s2 + $0x10] sm:$0xff] }
 0x144   : > { %30387 = vst [vmem:[#allocation27_spill] sm:$0xff] %v24551_v34 }
 0x145   : > { %20827 = vmatmul.mubr.msk.f32.vlgmr.msra.gmra.mrb[72].mxu0 %vm3881_vm2, %v24335_v45  ;;  %v24556_v35 = vpop.f32.mrb[26].mxu0 }
 0x146   : > { %30388 = vst [vmem:[#allocation28_spill] sm:$0xff] %v24556_v35  ;;  %v24558_v36 = vpop.f32.mrb[26].mxu1  ;;  %20833 = vmatmul.mubr.msk.f32.vlgmr.msra.gmra.mrb[72].mxu1 %vm3881_vm2, %v24335_v45  ;;  %4547 = vmatprep.mubr.f32.mxu0 %v30244_v0  ;;  %v24563_v37 = vpop.f32.mrb[27].mxu0 }
 0x147   : > { %30389 = vst [vmem:[#allocation29_spill] sm:$0xff] %v24558_v36  ;;  %30390 = vst [vmem:[#allocation30_spill] sm:$0xff] %v24563_v37  ;;  %v24565_v38 = vpop.f32.mrb[27].mxu1  ;;  %4636 = vmatprep.mubr.f32.mxu1 %v30244_v0 }
 0x148   : > { %30391 = vst [vmem:[#allocation31_spill] sm:$0xff] %v24565_v38 }
 0x149   : > { %20828 = vmatmul.mubr.msk.f32.gmra.mrb[74].mxu0 %vm3881_vm2, %v24359_v48  ;;  %v24570_v39 = vpop.f32.mrb[28].mxu0 }
 0x14a   : > { %30392 = vst [vmem:[#allocation32_spill] sm:$0xff] %v24570_v39  ;;  %v24572_v40 = vpop.f32.mrb[28].mxu1  ;;  %20834 = vmatmul.mubr.msk.f32.gmra.mrb[74].mxu1 %vm3881_vm2, %v24359_v48  ;;  %4553 = vmatprep.mubr.f32.mxu0 %v30244_v0  ;;  %v24577_v41 = vpop.f32.mrb[29].mxu0 }
 0x14b   : > { %30393 = vst [vmem:[#allocation33_spill] sm:$0xff] %v24572_v40  ;;  %30394 = vst [vmem:[#allocation34_spill] sm:$0xff] %v24577_v41  ;;  %v24579_v36 = vpop.f32.mrb[29].mxu1  ;;  %4642 = vmatprep.mubr.f32.mxu1 %v30244_v0 }
 0x14c   : > { %30395 = vst [vmem:[#allocation35_spill] sm:$0xff] %v24579_v36 }
 0x14d   : > { %20829 = vmatmul.mubr.msk.f32.gmra.mrb[76].mxu0 %vm3881_vm2, %v24386_v53  ;;  %v24584_v35 = vpop.f32.mrb[30].mxu0 }
 0x14e   : > { %30396 = vst [vmem:[#allocation36_spill] sm:$0xff] %v24584_v35  ;;  %v24586_v38 = vpop.f32.mrb[30].mxu1  ;;  %20835 = vmatmul.mubr.msk.f32.gmra.mrb[76].mxu1 %vm3881_vm2, %v24386_v53  ;;  %v24590_v40 = vpop.f32.mrb[31].mxu0  ;;  %4559 = vmatprep.mubr.f32.mxu0 %v30244_v0  ;;  %v24604_v35 = vld [vmem:[%s30215_s2] sm:$0xff] }
 0x14f   : > { %30397 = vst [vmem:[#allocation37_spill] sm:$0xff] %v24586_v38  ;;  %30398 = vst [vmem:[#allocation38_spill] sm:$0xff] %v24590_v40  ;;  %v24593_v39 = vpop.f32.mrb[31].mxu1  ;;  %4648 = vmatprep.mubr.f32.mxu1 %v30244_v0 }
 0x150   : > { %30399 = vst [vmem:[#allocation39_spill] sm:$0xff] %v24593_v39 }
 0x151   : > { %v2797_v36 = vpop.f32.mrb[32].mxu0  ;;  %20830 = vmatmul.mubr.msk.f32.gmra.mrb[78].mxu0 %vm3881_vm2, %v24409_v58 }
 0x152   : > { %v2868_v41 = vpop.f32.mrb[32].mxu1  ;;  %20836 = vmatmul.mubr.msk.f32.gmra.mrb[78].mxu1 %vm3881_vm2, %v24409_v58  ;;  %v2799_v38 = vpop.f32.mrb[33].mxu0  ;;  %4779 = vmatprep.mubr.f32.mxu0 %v30244_v0 }
 0x153   : > { %v2870_v40 = vpop.f32.mrb[33].mxu1  ;;  %20837 = vmatprep.subr.msk.mxu0 %vm3894_vm1, %v2799_v38  ;;  %4868 = vmatprep.mubr.f32.mxu1 %v30244_v0  ;;  %v24619_v38 = vld [vmem:[%s30215_s2 + $0x8] sm:$0xff] }
 0x154   : > { %20843 = vmatprep.subr.msk.mxu1 %vm3894_vm1, %v2870_v40  ;;  %20838 = vmatpush1.msk.msra.mxu0 %vm3894_vm1, %v2797_v36 }
 0x155   : > { %20844 = vmatpush1.msk.msra.mxu1 %vm3894_vm1, %v2868_v41  ;;  %20839 = vmatmul.mubr.msk.f32.vlgmr.msra.gmra.mrb[48].mxu0 %vm3881_vm2, %v24604_v35  ;;  %v2939_v39 = vpop.f32.mrb[34].mxu0 }
 0x156   : > { %20845 = vmatmul.mubr.msk.f32.vlgmr.msra.gmra.mrb[48].mxu1 %vm3881_vm2, %v24604_v35  ;;  %4785 = vmatprep.mubr.f32.mxu0 %v30244_v0  ;;  %v3010_v37 = vpop.f32.mrb[34].mxu1  ;;  %v2941_v40 = vpop.f32.mrb[35].mxu0 }
 0x157   : > { %4874 = vmatprep.mubr.f32.mxu1 %v30244_v0  ;;  %v3012_v36 = vpop.f32.mrb[35].mxu1  ;;  %20849 = vmatprep.subr.msk.mxu0 %vm3894_vm1, %v2941_v40 }
 0x158   : > { %20855 = vmatprep.subr.msk.mxu1 %vm3894_vm1, %v3012_v36  ;;  %20850 = vmatpush1.msk.msra.mxu0 %vm3894_vm1, %v2939_v39 }
 0x159   : > { %20840 = vmatmul.mubr.msk.f32.gmra.mrb[50].mxu0 %vm3881_vm2, %v24619_v38  ;;  %20856 = vmatpush1.msk.msra.mxu1 %vm3894_vm1, %v3010_v37  ;;  %v3081_v41 = vpop.f32.mrb[36].mxu0 }
 0x15a   : > { %20846 = vmatmul.mubr.msk.f32.gmra.mrb[50].mxu1 %vm3881_vm2, %v24619_v38  ;;  %4791 = vmatprep.mubr.f32.mxu0 %v30244_v0  ;;  %v3152_v40 = vpop.f32.mrb[36].mxu1  ;;  %v3083_v36 = vpop.f32.mrb[37].mxu0 }
 0x15b   : > { %4880 = vmatprep.mubr.f32.mxu1 %v30244_v0  ;;  %v3154_v39 = vpop.f32.mrb[37].mxu1  ;;  %20861 = vmatprep.subr.msk.mxu0 %vm3894_vm1, %v3083_v36 }
 0x15c   : > { %20867 = vmatprep.subr.msk.mxu1 %vm3894_vm1, %v3154_v39 }
 0x15d   : > { %20841 = vmatmul.mubr.msk.f32.gmra.mrb[52].mxu0 %vm3881_vm2, %v24634_v32  ;;  %v3223_v37 = vpop.f32.mrb[38].mxu0 }
 0x15e   : > { %20847 = vmatmul.mubr.msk.f32.gmra.mrb[52].mxu1 %vm3881_vm2, %v24634_v32  ;;  %4797 = vmatprep.mubr.f32.mxu0 %v30244_v0  ;;  %v3294_v34 = vpop.f32.mrb[38].mxu1  ;;  %v3225_v33 = vpop.f32.mrb[39].mxu0 }
 0x15f   : > { %4886 = vmatprep.mubr.f32.mxu1 %v30244_v0  ;;  %v3296_v36 = vpop.f32.mrb[39].mxu1 }
 0x161   : > { %20842 = vmatmul.mubr.msk.f32.gmra.mrb[54].mxu0 %vm3881_vm2, %v24647_v31 }
 0x162   : > { %20848 = vmatmul.mubr.msk.f32.gmra.mrb[54].mxu1 %vm3881_vm2, %v24647_v31  ;;  %4957 = vmatprep.mubr.f32.mxu0 %v30244_v0  ;;  %v24655_v39 = vpop.f32.mrb[40].mxu1 }
 0x163   : > { %30400 = vst [vmem:[#allocation40_spill] sm:$0xff] %v24655_v39  ;;  %5046 = vmatprep.mubr.f32.mxu1 %v30244_v0  ;;  %v24658_v28 = vpop.f32.mrb[41].mxu1 }
 0x164   : > { %30401 = vst [vmem:[#allocation41_spill] sm:$0xff] %v24658_v28 }
 0x165   : > { %20851 = vmatmul.mubr.msk.f32.vlgmr.msra.gmra.mrb[56].mxu0 %vm3881_vm2, %v24604_v35 }
 0x166   : > { %20857 = vmatmul.mubr.msk.f32.vlgmr.msra.gmra.mrb[56].mxu1 %vm3881_vm2, %v24604_v35  ;;  %4963 = vmatprep.mubr.f32.mxu0 %v30244_v0  ;;  %v24665_v27 = vpop.f32.mrb[42].mxu1 }
 0x167   : > { %30402 = vst [vmem:[#allocation42_spill] sm:$0xff] %v24665_v27  ;;  %5052 = vmatprep.mubr.f32.mxu1 %v30244_v0  ;;  %20868 = vmatpush1.msk.msra.mxu1 %vm3894_vm1, %v3152_v40  ;;  %v24669_v30 = vpop.f32.mrb[43].mxu1 }
 0x168   : > { %30403 = vst [vmem:[#allocation43_spill] sm:$0xff] %v24669_v30  ;;  %20862 = vmatpush1.msk.msra.mxu0 %vm3894_vm1, %v3081_v41  ;;  %20879 = vmatprep.subr.msk.mxu1 %vm3894_vm1, %v3296_v36 }
 0x169   : > { %20852 = vmatmul.mubr.msk.f32.gmra.mrb[58].mxu0 %vm3881_vm2, %v24619_v38  ;;  %20873 = vmatprep.subr.msk.mxu0 %vm3894_vm1, %v3225_v33 }
 0x16a   : > { %20858 = vmatmul.mubr.msk.f32.gmra.mrb[58].mxu1 %vm3881_vm2, %v24619_v38  ;;  %4969 = vmatprep.mubr.f32.mxu0 %v30244_v0  ;;  %v24679_v27 = vpop.f32.mrb[44].mxu1 }
 0x16b   : > { %30404 = vst [vmem:[#allocation44_spill] sm:$0xff] %v24679_v27  ;;  %5058 = vmatprep.mubr.f32.mxu1 %v30244_v0  ;;  %v24682_v40 = vpop.f32.mrb[45].mxu1 }
 0x16c   : > { %30405 = vst [vmem:[#allocation45_spill] sm:$0xff] %v24682_v40 }
 0x16d   : > { %20853 = vmatmul.mubr.msk.f32.gmra.mrb[60].mxu0 %vm3881_vm2, %v24634_v32 }
 0x16e   : > { %20859 = vmatmul.mubr.msk.f32.gmra.mrb[60].mxu1 %vm3881_vm2, %v24634_v32  ;;  %4975 = vmatprep.mubr.f32.mxu0 %v30244_v0  ;;  %v24689_v33 = vpop.f32.mrb[46].mxu1 }
 0x16f   : > { %30406 = vst [vmem:[#allocation46_spill] sm:$0xff] %v24689_v33  ;;  %5064 = vmatprep.mubr.f32.mxu1 %v30244_v0  ;;  %v24692_v41 = vpop.f32.mrb[47].mxu1 }
 0x170   : > { %30407 = vst [vmem:[#allocation47_spill] sm:$0xff] %v24692_v41 }
 0x171   : > { %20854 = vmatmul.mubr.msk.f32.gmra.mrb[62].mxu0 %vm3881_vm2, %v24647_v31 }
 0x172   : > { %20860 = vmatmul.mubr.msk.f32.gmra.mrb[62].mxu1 %vm3881_vm2, %v24647_v31  ;;  %5135 = vmatprep.mubr.f32.mxu0 %v30244_v0 }
 0x173   : > { %5224 = vmatprep.mubr.f32.mxu1 %v30244_v0 }
 0x175   : > { %20863 = vmatmul.mubr.msk.f32.vlgmr.msra.gmra.mrb[64].mxu0 %vm3881_vm2, %v24604_v35 }
 0x176   : > { %20869 = vmatmul.mubr.msk.f32.vlgmr.msra.gmra.mrb[64].mxu1 %vm3881_vm2, %v24604_v35  ;;  %20874 = vmatpush1.msk.msra.mxu0 %vm3894_vm1, %v3223_v37  ;;  %v24717_v37 = vpop.f32.mrb[40].mxu0 }
 0x177   : > { %20880 = vmatpush1.msk.msra.mxu1 %vm3894_vm1, %v3294_v34  ;;  %20885 = vmatprep.subr.msk.mxu0 %vm3894_vm1, %v24425_v63  ;;  %30408 = vst [vmem:[#allocation48_spill] sm:$0xff] %v24717_v37  ;;  %v24720_v34 = vpop.f32.mrb[41].mxu0 }
 0x178   : > { %20891 = vmatprep.subr.msk.mxu1 %vm3894_vm1, %v24427_v1  ;;  %5141 = vmatprep.mubr.f32.mxu0 %v30244_v0  ;;  %30409 = vst [vmem:[#allocation49_spill] sm:$0xff] %v24720_v34  ;;  %v24727_v36 = vpop.f32.mrb[42].mxu0 }
 0x179   : > { %5230 = vmatprep.mubr.f32.mxu1 %v30244_v0  ;;  %20864 = vmatmul.mubr.msk.f32.gmra.mrb[66].mxu0 %vm3881_vm2, %v24619_v38  ;;  %30410 = vst [vmem:[#allocation50_spill] sm:$0xff] %v24727_v36  ;;  %v24730_v33 = vpop.f32.mrb[43].mxu0  ;;  %v24821_v36 = vld [vmem:[%s30215_s2 + $0x58] sm:$0xff] }
 0x17a   : > { %20870 = vmatmul.mubr.msk.f32.gmra.mrb[66].mxu1 %vm3881_vm2, %v24619_v38  ;;  %5147 = vmatprep.mubr.f32.mxu0 %v30244_v0  ;;  %30411 = vst [vmem:[#allocation51_spill] sm:$0xff] %v24730_v33  ;;  %v24737_v41 = vpop.f32.mrb[44].mxu0 }
 0x17b   : > { %5236 = vmatprep.mubr.f32.mxu1 %v30244_v0  ;;  %30412 = vst [vmem:[#allocation52_spill] sm:$0xff] %v24737_v41  ;;  %v24740_v27 = vpop.f32.mrb[45].mxu0 }
 0x17c   : > { %30413 = vst [vmem:[#allocation53_spill] sm:$0xff] %v24740_v27  ;;  %v24755_v41 = vpop.f32.mrb[46].mxu0  ;;  %v24810_v27 = vld [vmem:[%s30215_s2 + $0x50] sm:$0xff] }
 0x17d   : > { %20865 = vmatmul.mubr.msk.f32.gmra.mrb[68].mxu0 %vm3881_vm2, %v24634_v32  ;;  %30414 = vst [vmem:[#allocation54_spill] sm:$0xff] %v24755_v41  ;;  %v24760_v40 = vpop.f32.mrb[47].mxu0  ;;  %v24780_v41 = vld [vmem:[%s30215_s2 + $0x40] sm:$0xff] }
 0x17e   : > { %20871 = vmatmul.mubr.msk.f32.gmra.mrb[68].mxu1 %vm3881_vm2, %v24634_v32  ;;  %5153 = vmatprep.mubr.f32.mxu0 %v30244_v0  ;;  %30415 = vst [vmem:[#allocation55_spill] sm:$0xff] %v24760_v40  ;;  %v24792_v40 = vld [vmem:[%s30215_s2 + $0x48] sm:$0xff] }
 0x17f   : > { %5242 = vmatprep.mubr.f32.mxu1 %v30244_v0 }
 0x181   : > { %20866 = vmatmul.mubr.msk.f32.gmra.mrb[70].mxu0 %vm3881_vm2, %v24647_v31 }
 0x182   : > { %20872 = vmatmul.mubr.msk.f32.gmra.mrb[70].mxu1 %vm3881_vm2, %v24647_v31  ;;  %5313 = vmatprep.mubr.f32.mxu0 %v30244_v0 }
 0x183   : > { %5402 = vmatprep.mubr.f32.mxu1 %v30244_v0 }
 0x185   : > { %20875 = vmatmul.mubr.msk.f32.vlgmr.msra.gmra.mrb[72].mxu0 %vm3881_vm2, %v24604_v35 }
 0x186   : > { %20881 = vmatmul.mubr.msk.f32.vlgmr.msra.gmra.mrb[72].mxu1 %vm3881_vm2, %v24604_v35  ;;  %20886 = vmatpush1.msk.msra.mxu0 %vm3894_vm1, %v24418_v61 }
 0x187   : > { %20892 = vmatpush1.msk.msra.mxu1 %vm3894_vm1, %v24420_v62  ;;  %20897 = vmatprep.subr.msk.mxu0 %vm3894_vm1, %v24439_v4 }
 0x188   : > { %20903 = vmatprep.subr.msk.mxu1 %vm3894_vm1, %v24443_v5  ;;  %5319 = vmatprep.mubr.f32.mxu0 %v30244_v0 }
 0x189   : > { %5408 = vmatprep.mubr.f32.mxu1 %v30244_v0  ;;  %20876 = vmatmul.mubr.msk.f32.gmra.mrb[74].mxu0 %vm3881_vm2, %v24619_v38 }
 0x18a   : > { %20882 = vmatmul.mubr.msk.f32.gmra.mrb[74].mxu1 %vm3881_vm2, %v24619_v38  ;;  %5325 = vmatprep.mubr.f32.mxu0 %v30244_v0 }
 0x18b   : > { %5414 = vmatprep.mubr.f32.mxu1 %v30244_v0 }
 0x18d   : > { %20877 = vmatmul.mubr.msk.f32.gmra.mrb[76].mxu0 %vm3881_vm2, %v24634_v32 }
 0x18e   : > { %20883 = vmatmul.mubr.msk.f32.gmra.mrb[76].mxu1 %vm3881_vm2, %v24634_v32  ;;  %5331 = vmatprep.mubr.f32.mxu0 %v30244_v0 }
 0x18f   : > { %5420 = vmatprep.mubr.f32.mxu1 %v30244_v0 }
 0x191   : > { %20878 = vmatmul.mubr.msk.f32.gmra.mrb[78].mxu0 %vm3881_vm2, %v24647_v31 }
 0x192   : > { %20884 = vmatmul.mubr.msk.f32.gmra.mrb[78].mxu1 %vm3881_vm2, %v24647_v31  ;;  %5551 = vmatprep.mubr.f32.mxu0 %v30244_v0 }
 0x193   : > { %5640 = vmatprep.mubr.f32.mxu1 %v30244_v0 }
 0x195   : > { %20887 = vmatmul.mubr.msk.f32.vlgmr.msra.gmra.mrb[48].mxu0 %vm3881_vm2, %v24780_v41 }
 0x196   : > { %20893 = vmatmul.mubr.msk.f32.vlgmr.msra.gmra.mrb[48].mxu1 %vm3881_vm2, %v24780_v41  ;;  %20898 = vmatpush1.msk.msra.mxu0 %vm3894_vm1, %v24432_v2 }
 0x197   : > { %20904 = vmatpush1.msk.msra.mxu1 %vm3894_vm1, %v24434_v3  ;;  %20909 = vmatprep.subr.msk.mxu0 %vm3894_vm1, %v24461_v8 }
 0x198   : > { %20915 = vmatprep.subr.msk.mxu1 %vm3894_vm1, %v24463_v9  ;;  %5557 = vmatprep.mubr.f32.mxu0 %v30244_v0 }
 0x199   : > { %5646 = vmatprep.mubr.f32.mxu1 %v30244_v0  ;;  %20888 = vmatmul.mubr.msk.f32.gmra.mrb[50].mxu0 %vm3881_vm2, %v24792_v40 }
 0x19a   : > { %20894 = vmatmul.mubr.msk.f32.gmra.mrb[50].mxu1 %vm3881_vm2, %v24792_v40  ;;  %5563 = vmatprep.mubr.f32.mxu0 %v30244_v0 }
 0x19b   : > { %5652 = vmatprep.mubr.f32.mxu1 %v30244_v0 }
 0x19d   : > { %20889 = vmatmul.mubr.msk.f32.gmra.mrb[52].mxu0 %vm3881_vm2, %v24810_v27 }
 0x19e   : > { %20895 = vmatmul.mubr.msk.f32.gmra.mrb[52].mxu1 %vm3881_vm2, %v24810_v27  ;;  %5569 = vmatprep.mubr.f32.mxu0 %v30244_v0 }
 0x19f   : > { %5658 = vmatprep.mubr.f32.mxu1 %v30244_v0 }
 0x1a1   : > { %20890 = vmatmul.mubr.msk.f32.gmra.mrb[54].mxu0 %vm3881_vm2, %v24821_v36 }
 0x1a2   : > { %20896 = vmatmul.mubr.msk.f32.gmra.mrb[54].mxu1 %vm3881_vm2, %v24821_v36  ;;  %5729 = vmatprep.mubr.f32.mxu0 %v30244_v0 }
 0x1a3   : > { %5818 = vmatprep.mubr.f32.mxu1 %v30244_v0 }
 0x1a5   : > { %20899 = vmatmul.mubr.msk.f32.vlgmr.msra.gmra.mrb[56].mxu0 %vm3881_vm2, %v24780_v41 }
 0x1a6   : > { %20905 = vmatmul.mubr.msk.f32.vlgmr.msra.gmra.mrb[56].mxu1 %vm3881_vm2, %v24780_v41  ;;  %20910 = vmatpush1.msk.msra.mxu0 %vm3894_vm1, %v24452_v6 }
 0x1a7   : > { %20916 = vmatpush1.msk.msra.mxu1 %vm3894_vm1, %v24456_v7  ;;  %20921 = vmatprep.subr.msk.mxu0 %vm3894_vm1, %v24475_v13 }
 0x1a8   : > { %20927 = vmatprep.subr.msk.mxu1 %vm3894_vm1, %v24477_v14  ;;  %5735 = vmatprep.mubr.f32.mxu0 %v30244_v0 }
 0x1a9   : > { %5824 = vmatprep.mubr.f32.mxu1 %v30244_v0  ;;  %20900 = vmatmul.mubr.msk.f32.gmra.mrb[58].mxu0 %vm3881_vm2, %v24792_v40 }
 0x1aa   : > { %20906 = vmatmul.mubr.msk.f32.gmra.mrb[58].mxu1 %vm3881_vm2, %v24792_v40  ;;  %5741 = vmatprep.mubr.f32.mxu0 %v30244_v0 }
 0x1ab   : > { %5830 = vmatprep.mubr.f32.mxu1 %v30244_v0 }
 0x1ad   : > { %20901 = vmatmul.mubr.msk.f32.gmra.mrb[60].mxu0 %vm3881_vm2, %v24810_v27 }
 0x1ae   : > { %20907 = vmatmul.mubr.msk.f32.gmra.mrb[60].mxu1 %vm3881_vm2, %v24810_v27  ;;  %5747 = vmatprep.mubr.f32.mxu0 %v30244_v0 }
 0x1af   : > { %5836 = vmatprep.mubr.f32.mxu1 %v30244_v0 }
 0x1b1   : > { %20902 = vmatmul.mubr.msk.f32.gmra.mrb[62].mxu0 %vm3881_vm2, %v24821_v36 }
 0x1b2   : > { %20908 = vmatmul.mubr.msk.f32.gmra.mrb[62].mxu1 %vm3881_vm2, %v24821_v36  ;;  %5907 = vmatprep.mubr.f32.mxu0 %v30244_v0 }
 0x1b3   : > { %5996 = vmatprep.mubr.f32.mxu1 %v30244_v0 }
 0x1b5   : > { %20911 = vmatmul.mubr.msk.f32.vlgmr.msra.gmra.mrb[64].mxu0 %vm3881_vm2, %v24780_v41 }
 0x1b6   : > { %20917 = vmatmul.mubr.msk.f32.vlgmr.msra.gmra.mrb[64].mxu1 %vm3881_vm2, %v24780_v41  ;;  %20922 = vmatpush1.msk.msra.mxu0 %vm3894_vm1, %v24468_v10 }
 0x1b7   : > { %20928 = vmatpush1.msk.msra.mxu1 %vm3894_vm1, %v24470_v11  ;;  %20933 = vmatprep.subr.msk.mxu0 %vm3894_vm1, %v24425_v63 }
 0x1b8   : > { %20939 = vmatprep.subr.msk.mxu1 %vm3894_vm1, %v24427_v1  ;;  %5913 = vmatprep.mubr.f32.mxu0 %v30244_v0 }
 0x1b9   : > { %6002 = vmatprep.mubr.f32.mxu1 %v30244_v0  ;;  %20912 = vmatmul.mubr.msk.f32.gmra.mrb[66].mxu0 %vm3881_vm2, %v24792_v40 }
 0x1ba   : > { %20918 = vmatmul.mubr.msk.f32.gmra.mrb[66].mxu1 %vm3881_vm2, %v24792_v40  ;;  %5919 = vmatprep.mubr.f32.mxu0 %v30244_v0 }
 0x1bb   : > { %6008 = vmatprep.mubr.f32.mxu1 %v30244_v0 }
 0x1bd   : > { %20913 = vmatmul.mubr.msk.f32.gmra.mrb[68].mxu0 %vm3881_vm2, %v24810_v27 }
 0x1be   : > { %20919 = vmatmul.mubr.msk.f32.gmra.mrb[68].mxu1 %vm3881_vm2, %v24810_v27  ;;  %5925 = vmatprep.mubr.f32.mxu0 %v30244_v0 }
 0x1bf   : > { %6014 = vmatprep.mubr.f32.mxu1 %v30244_v0 }
 0x1c1   : > { %20914 = vmatmul.mubr.msk.f32.gmra.mrb[70].mxu0 %vm3881_vm2, %v24821_v36 }
 0x1c2   : > { %20920 = vmatmul.mubr.msk.f32.gmra.mrb[70].mxu1 %vm3881_vm2, %v24821_v36  ;;  %6085 = vmatprep.mubr.f32.mxu0 %v30244_v0 }
 0x1c3   : > { %6174 = vmatprep.mubr.f32.mxu1 %v30244_v0 }
 0x1c5   : > { %20923 = vmatmul.mubr.msk.f32.vlgmr.msra.gmra.mrb[72].mxu0 %vm3881_vm2, %v24780_v41 }
 0x1c6   : > { %20929 = vmatmul.mubr.msk.f32.vlgmr.msra.gmra.mrb[72].mxu1 %vm3881_vm2, %v24780_v41  ;;  %20934 = vmatpush1.msk.msra.mxu0 %vm3894_vm1, %v24418_v61 }
 0x1c7   : > { %20940 = vmatpush1.msk.msra.mxu1 %vm3894_vm1, %v24420_v62  ;;  %20945 = vmatprep.subr.msk.mxu0 %vm3894_vm1, %v24439_v4 }
 0x1c8   : > { %20951 = vmatprep.subr.msk.mxu1 %vm3894_vm1, %v24443_v5  ;;  %6091 = vmatprep.mubr.f32.mxu0 %v30244_v0 }
 0x1c9   : > { %6180 = vmatprep.mubr.f32.mxu1 %v30244_v0  ;;  %20924 = vmatmul.mubr.msk.f32.gmra.mrb[74].mxu0 %vm3881_vm2, %v24792_v40 }
 0x1ca   : > { %20930 = vmatmul.mubr.msk.f32.gmra.mrb[74].mxu1 %vm3881_vm2, %v24792_v40  ;;  %6097 = vmatprep.mubr.f32.mxu0 %v30244_v0 }
 0x1cb   : > { %6186 = vmatprep.mubr.f32.mxu1 %v30244_v0 }
 0x1cd   : > { %20925 = vmatmul.mubr.msk.f32.gmra.mrb[76].mxu0 %vm3881_vm2, %v24810_v27 }
 0x1ce   : > { %20931 = vmatmul.mubr.msk.f32.gmra.mrb[76].mxu1 %vm3881_vm2, %v24810_v27  ;;  %6103 = vmatprep.mubr.f32.mxu0 %v30244_v0 }
 0x1cf   : > { %6192 = vmatprep.mubr.f32.mxu1 %v30244_v0 }
 0x1d1   : > { %20926 = vmatmul.mubr.msk.f32.gmra.mrb[78].mxu0 %vm3881_vm2, %v24821_v36 }
 0x1d2   : > { %20932 = vmatmul.mubr.msk.f32.gmra.mrb[78].mxu1 %vm3881_vm2, %v24821_v36  ;;  %6327 = vmatprep.mubr.f32.mxu0 %v30244_v0 }
 0x1d3   : > { %6416 = vmatprep.mubr.f32.mxu1 %v30244_v0 }
 0x1d5   : > { %20935 = vmatmul.mubr.msk.f32.vlgmr.msra.gmra.mrb[80].mxu0 %vm3881_vm2, %v24335_v45 }
 0x1d6   : > { %20941 = vmatmul.mubr.msk.f32.vlgmr.msra.gmra.mrb[80].mxu1 %vm3881_vm2, %v24335_v45  ;;  %20946 = vmatpush1.msk.msra.mxu0 %vm3894_vm1, %v24432_v2 }
 0x1d7   : > { %20952 = vmatpush1.msk.msra.mxu1 %vm3894_vm1, %v24434_v3  ;;  %20957 = vmatprep.subr.msk.mxu0 %vm3894_vm1, %v24461_v8 }
 0x1d8   : > { %20963 = vmatprep.subr.msk.mxu1 %vm3894_vm1, %v24463_v9  ;;  %6333 = vmatprep.mubr.f32.mxu0 %v30244_v0 }
 0x1d9   : > { %6422 = vmatprep.mubr.f32.mxu1 %v30244_v0  ;;  %20936 = vmatmul.mubr.msk.f32.gmra.mrb[82].mxu0 %vm3881_vm2, %v24359_v48 }
 0x1da   : > { %20942 = vmatmul.mubr.msk.f32.gmra.mrb[82].mxu1 %vm3881_vm2, %v24359_v48  ;;  %6339 = vmatprep.mubr.f32.mxu0 %v30244_v0 }
 0x1db   : > { %6428 = vmatprep.mubr.f32.mxu1 %v30244_v0 }
 0x1dd   : > { %20937 = vmatmul.mubr.msk.f32.gmra.mrb[84].mxu0 %vm3881_vm2, %v24386_v53 }
 0x1de   : > { %20943 = vmatmul.mubr.msk.f32.gmra.mrb[84].mxu1 %vm3881_vm2, %v24386_v53  ;;  %6345 = vmatprep.mubr.f32.mxu0 %v30244_v0 }
 0x1df   : > { %6434 = vmatprep.mubr.f32.mxu1 %v30244_v0 }
 0x1e1   : > { %20938 = vmatmul.mubr.msk.f32.gmra.mrb[86].mxu0 %vm3881_vm2, %v24409_v58 }
 0x1e2   : > { %20944 = vmatmul.mubr.msk.f32.gmra.mrb[86].mxu1 %vm3881_vm2, %v24409_v58  ;;  %6505 = vmatprep.mubr.f32.mxu0 %v30244_v0 }
 0x1e3   : > { %6594 = vmatprep.mubr.f32.mxu1 %v30244_v0 }
 0x1e5   : > { %20947 = vmatmul.mubr.msk.f32.vlgmr.msra.gmra.mrb[88].mxu0 %vm3881_vm2, %v24335_v45 }
 0x1e6   : > { %20953 = vmatmul.mubr.msk.f32.vlgmr.msra.gmra.mrb[88].mxu1 %vm3881_vm2, %v24335_v45  ;;  %20958 = vmatpush1.msk.msra.mxu0 %vm3894_vm1, %v24452_v6 }
 0x1e7   : > { %20964 = vmatpush1.msk.msra.mxu1 %vm3894_vm1, %v24456_v7  ;;  %20969 = vmatprep.subr.msk.mxu0 %vm3894_vm1, %v24475_v13 }
 0x1e8   : > { %20975 = vmatprep.subr.msk.mxu1 %vm3894_vm1, %v24477_v14  ;;  %6511 = vmatprep.mubr.f32.mxu0 %v30244_v0 }
 0x1e9   : > { %6600 = vmatprep.mubr.f32.mxu1 %v30244_v0  ;;  %20948 = vmatmul.mubr.msk.f32.gmra.mrb[90].mxu0 %vm3881_vm2, %v24359_v48 }
 0x1ea   : > { %20954 = vmatmul.mubr.msk.f32.gmra.mrb[90].mxu1 %vm3881_vm2, %v24359_v48  ;;  %6517 = vmatprep.mubr.f32.mxu0 %v30244_v0 }
 0x1eb   : > { %6606 = vmatprep.mubr.f32.mxu1 %v30244_v0 }
 0x1ed   : > { %20949 = vmatmul.mubr.msk.f32.gmra.mrb[92].mxu0 %vm3881_vm2, %v24386_v53 }
 0x1ee   : > { %20955 = vmatmul.mubr.msk.f32.gmra.mrb[92].mxu1 %vm3881_vm2, %v24386_v53  ;;  %6523 = vmatprep.mubr.f32.mxu0 %v30244_v0 }
 0x1ef   : > { %6612 = vmatprep.mubr.f32.mxu1 %v30244_v0 }
 0x1f1   : > { %20950 = vmatmul.mubr.msk.f32.gmra.mrb[94].mxu0 %vm3881_vm2, %v24409_v58 }
 0x1f2   : > { %20956 = vmatmul.mubr.msk.f32.gmra.mrb[94].mxu1 %vm3881_vm2, %v24409_v58  ;;  %6683 = vmatprep.mubr.f32.mxu0 %v30244_v0 }
 0x1f3   : > { %6772 = vmatprep.mubr.f32.mxu1 %v30244_v0 }
 0x1f5   : > { %20959 = vmatmul.mubr.msk.f32.vlgmr.msra.gmra.mrb[96].mxu0 %vm3881_vm2, %v24335_v45 }
 0x1f6   : > { %20965 = vmatmul.mubr.msk.f32.vlgmr.msra.gmra.mrb[96].mxu1 %vm3881_vm2, %v24335_v45  ;;  %20970 = vmatpush1.msk.msra.mxu0 %vm3894_vm1, %v24468_v10 }
 0x1f7   : > { %20976 = vmatpush1.msk.msra.mxu1 %vm3894_vm1, %v24470_v11  ;;  %20981 = vmatprep.subr.msk.mxu0 %vm3894_vm1, %v24330_v44  ;;  %v13008_v44 = vld [vmem:[%s30216_s3 + $0x8] sm:$0xff] }
 0x1f8   : > { %20987 = vmatprep.subr.msk.mxu1 %vm3894_vm1, %v24337_v46  ;;  %6689 = vmatprep.mubr.f32.mxu0 %v30244_v0  ;;  %v13010_v46 = vld [vmem:[%s30216_s3 + $0x18] sm:$0xff] }
 0x1f9   : > { %6778 = vmatprep.mubr.f32.mxu1 %v30244_v0  ;;  %20960 = vmatmul.mubr.msk.f32.gmra.mrb[98].mxu0 %vm3881_vm2, %v24359_v48 }
 0x1fa   : > { %20966 = vmatmul.mubr.msk.f32.gmra.mrb[98].mxu1 %vm3881_vm2, %v24359_v48  ;;  %6695 = vmatprep.mubr.f32.mxu0 %v30244_v0 }
 0x1fb   : > { %6784 = vmatprep.mubr.f32.mxu1 %v30244_v0 }
 0x1fd   : > { %20961 = vmatmul.mubr.msk.f32.gmra.mrb[100].mxu0 %vm3881_vm2, %v24386_v53 }
 0x1fe   : > { %20967 = vmatmul.mubr.msk.f32.gmra.mrb[100].mxu1 %vm3881_vm2, %v24386_v53  ;;  %6701 = vmatprep.mubr.f32.mxu0 %v30244_v0 }
 0x1ff   : > { %6790 = vmatprep.mubr.f32.mxu1 %v30244_v0 }
 0x201   : > { %20962 = vmatmul.mubr.msk.f32.gmra.mrb[102].mxu0 %vm3881_vm2, %v24409_v58 }
 0x202   : > { %20968 = vmatmul.mubr.msk.f32.gmra.mrb[102].mxu1 %vm3881_vm2, %v24409_v58  ;;  %6861 = vmatprep.mubr.f32.mxu0 %v30244_v0 }
 0x203   : > { %6950 = vmatprep.mubr.f32.mxu1 %v30244_v0 }
 0x205   : > { %20971 = vmatmul.mubr.msk.f32.vlgmr.msra.gmra.mrb[104].mxu0 %vm3881_vm2, %v24335_v45 }
 0x206   : > { %20977 = vmatmul.mubr.msk.f32.vlgmr.msra.gmra.mrb[104].mxu1 %vm3881_vm2, %v24335_v45  ;;  %20982 = vmatpush1.msk.msra.mxu0 %vm3894_vm1, %v24326_v42  ;;  %v13007_v42 = vld [vmem:[%s30216_s3] sm:$0xff]  ;;  %v13009_v45 = vld [vmem:[%s30216_s3 + $0x10] sm:$0xff] }
 0x207   : > { %20988 = vmatpush1.msk.msra.mxu1 %vm3894_vm1, %v24328_v43  ;;  %20993 = vmatprep.subr.msk.mxu0 %vm3894_vm1, %v24361_v49  ;;  %v24049_v43 = vmov 0  }
 0x208   : > { %20999 = vmatprep.subr.msk.mxu1 %vm3894_vm1, %v24363_v50  ;;  %6867 = vmatprep.mubr.f32.mxu0 %v30244_v0 }
 0x209   : > { %6956 = vmatprep.mubr.f32.mxu1 %v30244_v0  ;;  %20972 = vmatmul.mubr.msk.f32.gmra.mrb[106].mxu0 %vm3881_vm2, %v24359_v48 }
 0x20a   : > { %20978 = vmatmul.mubr.msk.f32.gmra.mrb[106].mxu1 %vm3881_vm2, %v24359_v48  ;;  %6873 = vmatprep.mubr.f32.mxu0 %v30244_v0 }
 0x20b   : > { %6962 = vmatprep.mubr.f32.mxu1 %v30244_v0  ;;  %23579 = vset.pattern.permute.xlu0 %v24049_v43 }
 0x20c   : > { %13077 = vperm.xlu0 %23579, %v13007_v42   ;;  %23580 = vset.pattern.permute.xlu1 %v24049_v43 }
 0x20d   : > { %20973 = vmatmul.mubr.msk.f32.gmra.mrb[108].mxu0 %vm3881_vm2, %v24386_v53  ;;  %13087 = vperm.xlu1 %23580, %v13009_v45  }
 0x20e   : > { %20979 = vmatmul.mubr.msk.f32.gmra.mrb[108].mxu1 %vm3881_vm2, %v24386_v53  ;;  %6879 = vmatprep.mubr.f32.mxu0 %v30244_v0 }
 0x20f   : > { %6968 = vmatprep.mubr.f32.mxu1 %v30244_v0 }
 0x210   : > { %13082 = vperm.xlu0 %23579, %v13008_v44  }
 0x211   : > { %20974 = vmatmul.mubr.msk.f32.gmra.mrb[110].mxu0 %vm3881_vm2, %v24409_v58  ;;  %13092 = vperm.xlu1 %23580, %v13010_v46  }
 0x212   : > { %20980 = vmatmul.mubr.msk.f32.gmra.mrb[110].mxu1 %vm3881_vm2, %v24409_v58  ;;  %7039 = vmatprep.mubr.f32.mxu0 %v30244_v0 }
 0x213   : > { %7128 = vmatprep.mubr.f32.mxu1 %v30244_v0 }
 0x215   : > { %20983 = vmatmul.mubr.msk.f32.vlgmr.msra.gmra.mrb[80].mxu0 %vm3881_vm2, %v24604_v35 }
 0x216   : > { %20989 = vmatmul.mubr.msk.f32.vlgmr.msra.gmra.mrb[80].mxu1 %vm3881_vm2, %v24604_v35  ;;  %20994 = vmatpush1.msk.msra.mxu0 %vm3894_vm1, %v24349_v12  ;;  %v30416_v12 = vld [vmem:[#allocation23_spill] sm:$0xff] }
 0x217   : > { %21000 = vmatpush1.msk.msra.mxu1 %vm3894_vm1, %v24351_v47  ;;  %21005 = vmatprep.subr.msk.mxu0 %vm3894_vm1, %v24388_v54 }
 0x218   : > { %21011 = vmatprep.subr.msk.mxu1 %vm3894_vm1, %v24390_v55  ;;  %7045 = vmatprep.mubr.f32.mxu0 %v30244_v0 }
 0x219   : > { %7134 = vmatprep.mubr.f32.mxu1 %v30244_v0  ;;  %20984 = vmatmul.mubr.msk.f32.gmra.mrb[82].mxu0 %vm3881_vm2, %v24619_v38 }
 0x21a   : > { %20990 = vmatmul.mubr.msk.f32.gmra.mrb[82].mxu1 %vm3881_vm2, %v24619_v38  ;;  %7051 = vmatprep.mubr.f32.mxu0 %v30244_v0 }
 0x21b   : > { %7140 = vmatprep.mubr.f32.mxu1 %v30244_v0 }
 0x21d   : > { %20985 = vmatmul.mubr.msk.f32.gmra.mrb[84].mxu0 %vm3881_vm2, %v24634_v32 }
 0x21e   : > { %20991 = vmatmul.mubr.msk.f32.gmra.mrb[84].mxu1 %vm3881_vm2, %v24634_v32  ;;  %7057 = vmatprep.mubr.f32.mxu0 %v30244_v0 }
 0x21f   : > { %7146 = vmatprep.mubr.f32.mxu1 %v30244_v0 }
 0x221   : > { %20986 = vmatmul.mubr.msk.f32.gmra.mrb[86].mxu0 %vm3881_vm2, %v24647_v31 }
 0x222   : > { %20992 = vmatmul.mubr.msk.f32.gmra.mrb[86].mxu1 %vm3881_vm2, %v24647_v31  ;;  %7217 = vmatprep.mubr.f32.mxu0 %v30244_v0 }
 0x223   : > { %7306 = vmatprep.mubr.f32.mxu1 %v30244_v0 }
 0x225   : > { %20995 = vmatmul.mubr.msk.f32.vlgmr.msra.gmra.mrb[88].mxu0 %vm3881_vm2, %v24604_v35 }
 0x226   : > { %21001 = vmatmul.mubr.msk.f32.vlgmr.msra.gmra.mrb[88].mxu1 %vm3881_vm2, %v24604_v35  ;;  %21006 = vmatpush1.msk.msra.mxu0 %vm3894_vm1, %v24376_v51 }
 0x227   : > { %21012 = vmatpush1.msk.msra.mxu1 %vm3894_vm1, %v24378_v52  ;;  %21017 = vmatprep.subr.msk.mxu0 %vm3894_vm1, %v24411_v59 }
 0x228   : > { %21023 = vmatprep.subr.msk.mxu1 %vm3894_vm1, %v24413_v60  ;;  %7223 = vmatprep.mubr.f32.mxu0 %v30244_v0 }
 0x229   : > { %7312 = vmatprep.mubr.f32.mxu1 %v30244_v0  ;;  %20996 = vmatmul.mubr.msk.f32.gmra.mrb[90].mxu0 %vm3881_vm2, %v24619_v38 }
 0x22a   : > { %21002 = vmatmul.mubr.msk.f32.gmra.mrb[90].mxu1 %vm3881_vm2, %v24619_v38  ;;  %7229 = vmatprep.mubr.f32.mxu0 %v30244_v0 }
 0x22b   : > { %7318 = vmatprep.mubr.f32.mxu1 %v30244_v0 }
 0x22d   : > { %20997 = vmatmul.mubr.msk.f32.gmra.mrb[92].mxu0 %vm3881_vm2, %v24634_v32 }
 0x22e   : > { %21003 = vmatmul.mubr.msk.f32.gmra.mrb[92].mxu1 %vm3881_vm2, %v24634_v32  ;;  %7235 = vmatprep.mubr.f32.mxu0 %v30244_v0 }
 0x22f   : > { %7324 = vmatprep.mubr.f32.mxu1 %v30244_v0 }
 0x231   : > { %20998 = vmatmul.mubr.msk.f32.gmra.mrb[94].mxu0 %vm3881_vm2, %v24647_v31 }
 0x232   : > { %21004 = vmatmul.mubr.msk.f32.gmra.mrb[94].mxu1 %vm3881_vm2, %v24647_v31  ;;  %7395 = vmatprep.mubr.f32.mxu0 %v30244_v0 }
 0x233   : > { %7484 = vmatprep.mubr.f32.mxu1 %v30244_v0 }
 0x235   : > { %21007 = vmatmul.mubr.msk.f32.vlgmr.msra.gmra.mrb[96].mxu0 %vm3881_vm2, %v24604_v35 }
 0x236   : > { %21013 = vmatmul.mubr.msk.f32.vlgmr.msra.gmra.mrb[96].mxu1 %vm3881_vm2, %v24604_v35  ;;  %21018 = vmatpush1.msk.msra.mxu0 %vm3894_vm1, %v24399_v56 }
 0x237   : > { %21024 = vmatpush1.msk.msra.mxu1 %vm3894_vm1, %v24401_v57  ;;  %21029 = vmatprep.subr.msk.mxu0 %vm3894_vm1, %v24489_v17 }
 0x238   : > { %21035 = vmatprep.subr.msk.mxu1 %vm3894_vm1, %v24491_v18  ;;  %7401 = vmatprep.mubr.f32.mxu0 %v30244_v0 }
 0x239   : > { %7490 = vmatprep.mubr.f32.mxu1 %v30244_v0  ;;  %21008 = vmatmul.mubr.msk.f32.gmra.mrb[98].mxu0 %vm3881_vm2, %v24619_v38 }
 0x23a   : > { %21014 = vmatmul.mubr.msk.f32.gmra.mrb[98].mxu1 %vm3881_vm2, %v24619_v38  ;;  %7407 = vmatprep.mubr.f32.mxu0 %v30244_v0 }
 0x23b   : > { %7496 = vmatprep.mubr.f32.mxu1 %v30244_v0 }
 0x23d   : > { %21009 = vmatmul.mubr.msk.f32.gmra.mrb[100].mxu0 %vm3881_vm2, %v24634_v32 }
 0x23e   : > { %21015 = vmatmul.mubr.msk.f32.gmra.mrb[100].mxu1 %vm3881_vm2, %v24634_v32  ;;  %7413 = vmatprep.mubr.f32.mxu0 %v30244_v0 }
 0x23f   : > { %7502 = vmatprep.mubr.f32.mxu1 %v30244_v0 }
 0x241   : > { %21010 = vmatmul.mubr.msk.f32.gmra.mrb[102].mxu0 %vm3881_vm2, %v24647_v31 }
 0x242   : > { %21016 = vmatmul.mubr.msk.f32.gmra.mrb[102].mxu1 %vm3881_vm2, %v24647_v31  ;;  %7573 = vmatprep.mubr.f32.mxu0 %v30244_v0 }
 0x243   : > { %7662 = vmatprep.mubr.f32.mxu1 %v30244_v0 }
 0x245   : > { %21019 = vmatmul.mubr.msk.f32.vlgmr.msra.gmra.mrb[104].mxu0 %vm3881_vm2, %v24604_v35 }
 0x246   : > { %21025 = vmatmul.mubr.msk.f32.vlgmr.msra.gmra.mrb[104].mxu1 %vm3881_vm2, %v24604_v35  ;;  %21030 = vmatpush1.msk.msra.mxu0 %vm3894_vm1, %v24482_v15  ;;  %v30417_v35 = vld [vmem:[#allocation20_spill] sm:$0xff] }
 0x247   : > { %21036 = vmatpush1.msk.msra.mxu1 %vm3894_vm1, %v24484_v16  ;;  %21041 = vmatprep.subr.msk.mxu0 %vm3894_vm1, %v24503_v21 }
 0x248   : > { %21047 = vmatprep.subr.msk.mxu1 %vm3894_vm1, %v24507_v22  ;;  %7579 = vmatprep.mubr.f32.mxu0 %v30244_v0 }
 0x249   : > { %7668 = vmatprep.mubr.f32.mxu1 %v30244_v0  ;;  %21020 = vmatmul.mubr.msk.f32.gmra.mrb[106].mxu0 %vm3881_vm2, %v24619_v38 }
 0x24a   : > { %21026 = vmatmul.mubr.msk.f32.gmra.mrb[106].mxu1 %vm3881_vm2, %v24619_v38  ;;  %7585 = vmatprep.mubr.f32.mxu0 %v30244_v0  ;;  %v30418_v38 = vld [vmem:[#allocation21_spill] sm:$0xff] }
 0x24b   : > { %7674 = vmatprep.mubr.f32.mxu1 %v30244_v0 }
 0x24d   : > { %21021 = vmatmul.mubr.msk.f32.gmra.mrb[108].mxu0 %vm3881_vm2, %v24634_v32 }
 0x24e   : > { %21027 = vmatmul.mubr.msk.f32.gmra.mrb[108].mxu1 %vm3881_vm2, %v24634_v32  ;;  %7591 = vmatprep.mubr.f32.mxu0 %v30244_v0 }
 0x24f   : > { %7680 = vmatprep.mubr.f32.mxu1 %v30244_v0 }
 0x251   : > { %21022 = vmatmul.mubr.msk.f32.gmra.mrb[110].mxu0 %vm3881_vm2, %v24647_v31 }
 0x252   : > { %21028 = vmatmul.mubr.msk.f32.gmra.mrb[110].mxu1 %vm3881_vm2, %v24647_v31  ;;  %7799 = vmatprep.mubr.f32.mxu0 %v30244_v0 }
 0x253   : > { %7888 = vmatprep.mubr.f32.mxu1 %v30244_v0 }
 0x255   : > { %21031 = vmatmul.mubr.msk.f32.vlgmr.msra.gmra.mrb[80].mxu0 %vm3881_vm2, %v24780_v41 }
 0x256   : > { %21037 = vmatmul.mubr.msk.f32.vlgmr.msra.gmra.mrb[80].mxu1 %vm3881_vm2, %v24780_v41  ;;  %21042 = vmatpush1.msk.msra.mxu0 %vm3894_vm1, %v24496_v19 }
 0x257   : > { %21048 = vmatpush1.msk.msra.mxu1 %vm3894_vm1, %v24498_v20  ;;  %21053 = vmatprep.subr.msk.mxu0 %vm3894_vm1, %v24521_v25 }
 0x258   : > { %21059 = vmatprep.subr.msk.mxu1 %vm3894_vm1, %v24523_v26  ;;  %7805 = vmatprep.mubr.f32.mxu0 %v30244_v0 }
 0x259   : > { %7894 = vmatprep.mubr.f32.mxu1 %v30244_v0  ;;  %21032 = vmatmul.mubr.msk.f32.gmra.mrb[82].mxu0 %vm3881_vm2, %v24792_v40 }
 0x25a   : > { %21038 = vmatmul.mubr.msk.f32.gmra.mrb[82].mxu1 %vm3881_vm2, %v24792_v40  ;;  %7811 = vmatprep.mubr.f32.mxu0 %v30244_v0 }
 0x25b   : > { %7900 = vmatprep.mubr.f32.mxu1 %v30244_v0 }
 0x25d   : > { %21033 = vmatmul.mubr.msk.f32.gmra.mrb[84].mxu0 %vm3881_vm2, %v24810_v27 }
 0x25e   : > { %21039 = vmatmul.mubr.msk.f32.gmra.mrb[84].mxu1 %vm3881_vm2, %v24810_v27  ;;  %7817 = vmatprep.mubr.f32.mxu0 %v30244_v0 }
 0x25f   : > { %7906 = vmatprep.mubr.f32.mxu1 %v30244_v0 }
 0x261   : > { %21034 = vmatmul.mubr.msk.f32.gmra.mrb[86].mxu0 %vm3881_vm2, %v24821_v36 }
 0x262   : > { %21040 = vmatmul.mubr.msk.f32.gmra.mrb[86].mxu1 %vm3881_vm2, %v24821_v36  ;;  %7977 = vmatprep.mubr.f32.mxu0 %v30244_v0 }
 0x263   : > { %8066 = vmatprep.mubr.f32.mxu1 %v30244_v0 }
 0x265   : > { %21043 = vmatmul.mubr.msk.f32.vlgmr.msra.gmra.mrb[88].mxu0 %vm3881_vm2, %v24780_v41 }
 0x266   : > { %21049 = vmatmul.mubr.msk.f32.vlgmr.msra.gmra.mrb[88].mxu1 %vm3881_vm2, %v24780_v41  ;;  %21054 = vmatpush1.msk.msra.mxu0 %vm3894_vm1, %v24514_v23 }
 0x267   : > { %21060 = vmatpush1.msk.msra.mxu1 %vm3894_vm1, %v24516_v24  ;;  %21065 = vmatprep.subr.msk.mxu0 %vm3894_vm1, %v24535_v29 }
 0x268   : > { %21071 = vmatprep.subr.msk.mxu1 %vm3894_vm1, %v30416_v12  ;;  %v25238_v47 = vpop.f32.mrb[48].mxu0  ;;  %7983 = vmatprep.mubr.f32.mxu0 %v30244_v0 }
 0x269   : > { %v25241_v48 = vpop.f32.mrb[48].mxu1  ;;  %8072 = vmatprep.mubr.f32.mxu1 %v30244_v0  ;;  %v25244_v49 = vpop.f32.mrb[49].mxu0  ;;  %21044 = vmatmul.mubr.msk.f32.gmra.mrb[90].mxu0 %vm3881_vm2, %v24792_v40 }
 0x26a   : > { %v25248_v50 = vpop.f32.mrb[49].mxu1  ;;  %21050 = vmatmul.mubr.msk.f32.gmra.mrb[90].mxu1 %vm3881_vm2, %v24792_v40  ;;  %7989 = vmatprep.mubr.f32.mxu0 %v30244_v0 }
 0x26b   : > { %8078 = vmatprep.mubr.f32.mxu1 %v30244_v0 }
 0x26c   : > { %v25254_v51 = vpop.f32.mrb[50].mxu0 }
 0x26d   : > { %v25256_v52 = vpop.f32.mrb[50].mxu1  ;;  %v25258_v53 = vpop.f32.mrb[51].mxu0  ;;  %21045 = vmatmul.mubr.msk.f32.gmra.mrb[92].mxu0 %vm3881_vm2, %v24810_v27 }
 0x26e   : > { %v25262_v54 = vpop.f32.mrb[51].mxu1  ;;  %21051 = vmatmul.mubr.msk.f32.gmra.mrb[92].mxu1 %vm3881_vm2, %v24810_v27  ;;  %7995 = vmatprep.mubr.f32.mxu0 %v30244_v0 }
 0x26f   : > { %8084 = vmatprep.mubr.f32.mxu1 %v30244_v0 }
 0x270   : > { %v25268_v55 = vpop.f32.mrb[52].mxu0 }
 0x271   : > { %v25270_v56 = vpop.f32.mrb[52].mxu1  ;;  %v25272_v57 = vpop.f32.mrb[53].mxu0  ;;  %21046 = vmatmul.mubr.msk.f32.gmra.mrb[94].mxu0 %vm3881_vm2, %v24821_v36 }
 0x272   : > { %v25276_v58 = vpop.f32.mrb[53].mxu1  ;;  %21052 = vmatmul.mubr.msk.f32.gmra.mrb[94].mxu1 %vm3881_vm2, %v24821_v36  ;;  %8155 = vmatprep.mubr.f32.mxu0 %v30244_v0 }
 0x273   : > { %8244 = vmatprep.mubr.f32.mxu1 %v30244_v0 }
 0x274   : > { %v25282_v59 = vpop.f32.mrb[54].mxu0 }
 0x275   : > { %v25284_v60 = vpop.f32.mrb[54].mxu1  ;;  %v25286_v31 = vpop.f32.mrb[55].mxu0  ;;  %21055 = vmatmul.mubr.msk.f32.vlgmr.msra.gmra.mrb[96].mxu0 %vm3881_vm2, %v24780_v41 }
 0x276   : > { %v25290_v32 = vpop.f32.mrb[55].mxu1  ;;  %21061 = vmatmul.mubr.msk.f32.vlgmr.msra.gmra.mrb[96].mxu1 %vm3881_vm2, %v24780_v41  ;;  %21066 = vmatpush1.msk.msra.mxu0 %vm3894_vm1, %v30417_v35 }
 0x277   : > { %21072 = vmatpush1.msk.msra.mxu1 %vm3894_vm1, %v30418_v38  ;;  %21077 = vmatprep.subr.msk.mxu0 %vm3894_vm1, %v24489_v17 }
 0x278   : > { %21083 = vmatprep.subr.msk.mxu1 %vm3894_vm1, %v24491_v18  ;;  %v25302_v42 = vpop.f32.mrb[56].mxu0  ;;  %8161 = vmatprep.mubr.f32.mxu0 %v30244_v0 }
 0x279   : > { %v25305_v43 = vpop.f32.mrb[56].mxu1  ;;  %8250 = vmatprep.mubr.f32.mxu1 %v30244_v0  ;;  %v25308_v44 = vpop.f32.mrb[57].mxu0  ;;  %21056 = vmatmul.mubr.msk.f32.gmra.mrb[98].mxu0 %vm3881_vm2, %v24792_v40 }
 0x27a   : > { %v25312_v45 = vpop.f32.mrb[57].mxu1  ;;  %21062 = vmatmul.mubr.msk.f32.gmra.mrb[98].mxu1 %vm3881_vm2, %v24792_v40  ;;  %8167 = vmatprep.mubr.f32.mxu0 %v30244_v0 }
 0x27b   : > { %8256 = vmatprep.mubr.f32.mxu1 %v30244_v0 }
 0x27c   : > { %v25318_v46 = vpop.f32.mrb[58].mxu0 }
 0x27d   : > { %v25320_v30 = vpop.f32.mrb[58].mxu1  ;;  %v25322_v33 = vpop.f32.mrb[59].mxu0  ;;  %21057 = vmatmul.mubr.msk.f32.gmra.mrb[100].mxu0 %vm3881_vm2, %v24810_v27 }
 0x27e   : > { %v25326_v39 = vpop.f32.mrb[59].mxu1  ;;  %21063 = vmatmul.mubr.msk.f32.gmra.mrb[100].mxu1 %vm3881_vm2, %v24810_v27  ;;  %8173 = vmatprep.mubr.f32.mxu0 %v30244_v0 }
 0x27f   : > { %30419 = vst [vmem:[#allocation56_spill] sm:$0xff] %v25326_v39  ;;  %8262 = vmatprep.mubr.f32.mxu1 %v30244_v0 }
 0x280   : > { %v25332_v37 = vpop.f32.mrb[60].mxu0 }
 0x281   : > { %30420 = vst [vmem:[#allocation57_spill] sm:$0xff] %v25332_v37  ;;  %v25334_v28 = vpop.f32.mrb[60].mxu1  ;;  %v25336_v34 = vpop.f32.mrb[61].mxu0  ;;  %21058 = vmatmul.mubr.msk.f32.gmra.mrb[102].mxu0 %vm3881_vm2, %v24821_v36 }
 0x282   : > { %30421 = vst [vmem:[#allocation58_spill] sm:$0xff] %v25336_v34  ;;  %v25340_v18 = vpop.f32.mrb[61].mxu1  ;;  %21064 = vmatmul.mubr.msk.f32.gmra.mrb[102].mxu1 %vm3881_vm2, %v24821_v36  ;;  %8333 = vmatprep.mubr.f32.mxu0 %v30244_v0 }
 0x283   : > { %8422 = vmatprep.mubr.f32.mxu1 %v30244_v0 }
 0x284   : > { %v25346_v17 = vpop.f32.mrb[62].mxu0 }
 0x285   : > { %v25348_v39 = vpop.f32.mrb[62].mxu1  ;;  %v25350_v37 = vpop.f32.mrb[63].mxu0  ;;  %21067 = vmatmul.mubr.msk.f32.vlgmr.msra.gmra.mrb[104].mxu0 %vm3881_vm2, %v24780_v41 }
 0x286   : > { %30422 = vst [vmem:[#allocation59_spill] sm:$0xff] %v25350_v37  ;;  %v25354_v34 = vpop.f32.mrb[63].mxu1  ;;  %21073 = vmatmul.mubr.msk.f32.vlgmr.msra.gmra.mrb[104].mxu1 %vm3881_vm2, %v24780_v41  ;;  %21078 = vmatpush1.msk.msra.mxu0 %vm3894_vm1, %v24482_v15  ;;  %v30424_v37 = vmov 0.0  }
 0x287   : > { %30423 = vst [vmem:[#allocation60_spill] sm:$0xff] %v25354_v34  ;;  %21084 = vmatpush1.msk.msra.mxu1 %vm3894_vm1, %v24484_v16  ;;  %21089 = vmatprep.subr.msk.mxu0 %vm3894_vm1, %v24503_v21 }
 0x288   : > { %21095 = vmatprep.subr.msk.mxu1 %vm3894_vm1, %v24507_v22  ;;  %v25366_v0 = vpop.f32.mrb[64].mxu0  ;;  %8339 = vmatprep.mubr.f32.mxu0 %v30424_v37 }
 0x289   : > { %v25369_v34 = vpop.f32.mrb[64].mxu1  ;;  %8428 = vmatprep.mubr.f32.mxu1 %v30424_v37  ;;  %v25372_v41 = vpop.f32.mrb[65].mxu0  ;;  %21068 = vmatmul.mubr.msk.f32.gmra.mrb[106].mxu0 %vm3881_vm2, %v24792_v40 }
 0x28a   : > { %30425 = vst [vmem:[#allocation61_spill] sm:$0xff] %v25372_v41  ;;  %v25376_v16 = vpop.f32.mrb[65].mxu1  ;;  %21074 = vmatmul.mubr.msk.f32.gmra.mrb[106].mxu1 %vm3881_vm2, %v24792_v40  ;;  %8345 = vmatprep.mubr.f32.mxu0 %v30424_v37 }
 0x28b   : > { %30426 = vst [vmem:[#allocation62_spill] sm:$0xff] %v25376_v16  ;;  %8434 = vmatprep.mubr.f32.mxu1 %v30424_v37 }
 0x28c   : > { %v25382_v22 = vpop.f32.mrb[66].mxu0 }
 0x28d   : > { %30427 = vst [vmem:[#allocation63_spill] sm:$0xff] %v25382_v22  ;;  %v25384_v21 = vpop.f32.mrb[66].mxu1  ;;  %v25386_v15 = vpop.f32.mrb[67].mxu0  ;;  %21069 = vmatmul.mubr.msk.f32.gmra.mrb[108].mxu0 %vm3881_vm2, %v24810_v27 }
 0x28e   : > { %30428 = vst [vmem:[#allocation64_spill] sm:$0xff] %v25386_v15  ;;  %v25390_v41 = vpop.f32.mrb[67].mxu1  ;;  %21075 = vmatmul.mubr.msk.f32.gmra.mrb[108].mxu1 %vm3881_vm2, %v24810_v27  ;;  %8351 = vmatprep.mubr.f32.mxu0 %v30424_v37 }
 0x28f   : > { %30429 = vst [vmem:[#allocation65_spill] sm:$0xff] %v25390_v41  ;;  %8440 = vmatprep.mubr.f32.mxu1 %v30424_v37 }
 0x290   : > { %v25396_v40 = vpop.f32.mrb[68].mxu0 }
 0x291   : > { %30430 = vst [vmem:[#allocation66_spill] sm:$0xff] %v25396_v40  ;;  %v25398_v16 = vpop.f32.mrb[68].mxu1  ;;  %v25400_v22 = vpop.f32.mrb[69].mxu0  ;;  %21070 = vmatmul.mubr.msk.f32.gmra.mrb[110].mxu0 %vm3881_vm2, %v24821_v36 }
 0x292   : > { %30431 = vst [vmem:[#allocation67_spill] sm:$0xff] %v25400_v22  ;;  %v25404_v15 = vpop.f32.mrb[69].mxu1  ;;  %21076 = vmatmul.mubr.msk.f32.gmra.mrb[110].mxu1 %vm3881_vm2, %v24821_v36  ;;  %8575 = vmatprep.mubr.f32.mxu0 %v30424_v37  ;;  %v25419_v22 = vld [vmem:[%s30215_s2 + $0x20] sm:$0xff] }
 0x293   : > { %30432 = vst [vmem:[#allocation68_spill] sm:$0xff] %v25404_v15  ;;  %8664 = vmatprep.mubr.f32.mxu1 %v30424_v37 }
 0x294   : > { %v25410_v27 = vpop.f32.mrb[70].mxu0 }
 0x295   : > { %v25412_v41 = vpop.f32.mrb[70].mxu1  ;;  %v25414_v40 = vpop.f32.mrb[71].mxu0  ;;  %21079 = vmatmul.mubr.msk.f32.vlgmr.msra.gmra.mrb[112].mxu0 %vm3881_vm2, %v25419_v22 }
 0x296   : > { %30433 = vst [vmem:[#allocation69_spill] sm:$0xff] %v25412_v41  ;;  %30434 = vst [vmem:[#allocation70_spill] sm:$0xff] %v25414_v40  ;;  %v25423_v15 = vpop.f32.mrb[71].mxu1  ;;  %21085 = vmatmul.mubr.msk.f32.vlgmr.msra.gmra.mrb[112].mxu1 %vm3881_vm2, %v25419_v22  ;;  %21090 = vmatpush1.msk.msra.mxu0 %vm3894_vm1, %v24496_v19 }
 0x297   : > { %30435 = vst [vmem:[#allocation71_spill] sm:$0xff] %v25423_v15  ;;  %21096 = vmatpush1.msk.msra.mxu1 %vm3894_vm1, %v24498_v20  ;;  %21101 = vmatprep.subr.msk.mxu0 %vm3894_vm1, %v24521_v25  ;;  %v25446_v20 = vld [vmem:[%s30215_s2 + $0x28] sm:$0xff] }
 0x298   : > { %21107 = vmatprep.subr.msk.mxu1 %vm3894_vm1, %v24523_v26  ;;  %v25435_v36 = vpop.f32.mrb[72].mxu0  ;;  %8581 = vmatprep.mubr.f32.mxu0 %v30424_v37 }
 0x299   : > { %30436 = vst [vmem:[#allocation72_spill] sm:$0xff] %v25435_v36  ;;  %v25438_v15 = vpop.f32.mrb[72].mxu1  ;;  %8670 = vmatprep.mubr.f32.mxu1 %v30424_v37  ;;  %v25441_v40 = vpop.f32.mrb[73].mxu0  ;;  %21080 = vmatmul.mubr.msk.f32.gmra.mrb[114].mxu0 %vm3881_vm2, %v25446_v20  ;;  %v25484_v36 = vld [vmem:[%s30215_s2 + $0x38] sm:$0xff] }
 0x29a   : > { %30437 = vst [vmem:[#allocation73_spill] sm:$0xff] %v25438_v15  ;;  %30438 = vst [vmem:[#allocation74_spill] sm:$0xff] %v25441_v40  ;;  %v25450_v25 = vpop.f32.mrb[73].mxu1  ;;  %21086 = vmatmul.mubr.msk.f32.gmra.mrb[114].mxu1 %vm3881_vm2, %v25446_v20  ;;  %8587 = vmatprep.mubr.f32.mxu0 %v30424_v37  ;;  %v25465_v15 = vld [vmem:[%s30215_s2 + $0x30] sm:$0xff] }
 0x29b   : > { %30439 = vst [vmem:[#allocation75_spill] sm:$0xff] %v25450_v25  ;;  %8676 = vmatprep.mubr.f32.mxu1 %v30424_v37  ;;  %30443 = vst [vmem:[#allocation79_spill] sm:$0xff] %v25465_v15 }
 0x29c   : > { %v25456_v26 = vpop.f32.mrb[74].mxu0 }
 0x29d   : > { %30440 = vst [vmem:[#allocation76_spill] sm:$0xff] %v25456_v26  ;;  %v25458_v19 = vpop.f32.mrb[74].mxu1  ;;  %v25460_v40 = vpop.f32.mrb[75].mxu0  ;;  %21081 = vmatmul.mubr.msk.f32.gmra.mrb[116].mxu0 %vm3881_vm2, %v25465_v15 }
 0x29e   : > { %30441 = vst [vmem:[#allocation77_spill] sm:$0xff] %v25458_v19  ;;  %30442 = vst [vmem:[#allocation78_spill] sm:$0xff] %v25460_v40  ;;  %v25469_v25 = vpop.f32.mrb[75].mxu1  ;;  %21087 = vmatmul.mubr.msk.f32.gmra.mrb[116].mxu1 %vm3881_vm2, %v25465_v15  ;;  %8593 = vmatprep.mubr.f32.mxu0 %v30424_v37 }
 0x29f   : > { %30444 = vst [vmem:[#allocation80_spill] sm:$0xff] %v25469_v25  ;;  %8682 = vmatprep.mubr.f32.mxu1 %v30424_v37 }
 0x2a0   : > { %v25475_v19 = vpop.f32.mrb[76].mxu0 }
 0x2a1   : > { %30445 = vst [vmem:[#allocation81_spill] sm:$0xff] %v25475_v19  ;;  %v25477_v40 = vpop.f32.mrb[76].mxu1  ;;  %v25479_v26 = vpop.f32.mrb[77].mxu0  ;;  %21082 = vmatmul.mubr.msk.f32.gmra.mrb[118].mxu0 %vm3881_vm2, %v25484_v36 }
 0x2a2   : > { %30446 = vst [vmem:[#allocation82_spill] sm:$0xff] %v25477_v40  ;;  %30447 = vst [vmem:[#allocation83_spill] sm:$0xff] %v25479_v26  ;;  %v25488_v25 = vpop.f32.mrb[77].mxu1  ;;  %21088 = vmatmul.mubr.msk.f32.gmra.mrb[118].mxu1 %vm3881_vm2, %v25484_v36  ;;  %8753 = vmatprep.mubr.f32.mxu0 %v30424_v37 }
 0x2a3   : > { %30448 = vst [vmem:[#allocation84_spill] sm:$0xff] %v25488_v25  ;;  %8842 = vmatprep.mubr.f32.mxu1 %v30424_v37 }
 0x2a4   : > { %v25494_v40 = vpop.f32.mrb[78].mxu0 }
 0x2a5   : > { %30449 = vst [vmem:[#allocation85_spill] sm:$0xff] %v25494_v40  ;;  %v25496_v26 = vpop.f32.mrb[78].mxu1  ;;  %v25498_v19 = vpop.f32.mrb[79].mxu0  ;;  %21091 = vmatmul.mubr.msk.f32.vlgmr.msra.gmra.mrb[120].mxu0 %vm3881_vm2, %v25419_v22 }
 0x2a6   : > { %30450 = vst [vmem:[#allocation86_spill] sm:$0xff] %v25496_v26  ;;  %30451 = vst [vmem:[#allocation87_spill] sm:$0xff] %v25498_v19  ;;  %v25502_v41 = vpop.f32.mrb[79].mxu1  ;;  %21097 = vmatmul.mubr.msk.f32.vlgmr.msra.gmra.mrb[120].mxu1 %vm3881_vm2, %v25419_v22  ;;  %21102 = vmatpush1.msk.msra.mxu0 %vm3894_vm1, %v24514_v23 }
 0x2a7   : > { %30452 = vst [vmem:[#allocation88_spill] sm:$0xff] %v25502_v41  ;;  %21108 = vmatpush1.msk.msra.mxu1 %vm3894_vm1, %v24516_v24  ;;  %21113 = vmatprep.subr.msk.mxu0 %vm3894_vm1, %v24535_v29 }
 0x2a8   : > { %21119 = vmatprep.subr.msk.mxu1 %vm3894_vm1, %v30416_v12  ;;  %8759 = vmatprep.mubr.f32.mxu0 %v30424_v37 }
 0x2a9   : > { %8848 = vmatprep.mubr.f32.mxu1 %v30424_v37  ;;  %21092 = vmatmul.mubr.msk.f32.gmra.mrb[122].mxu0 %vm3881_vm2, %v25446_v20 }
 0x2aa   : > { %21098 = vmatmul.mubr.msk.f32.gmra.mrb[122].mxu1 %vm3881_vm2, %v25446_v20  ;;  %8765 = vmatprep.mubr.f32.mxu0 %v30424_v37 }
 0x2ab   : > { %8854 = vmatprep.mubr.f32.mxu1 %v30424_v37 }
 0x2ad   : > { %21093 = vmatmul.mubr.msk.f32.gmra.mrb[124].mxu0 %vm3881_vm2, %v25465_v15 }
 0x2ae   : > { %21099 = vmatmul.mubr.msk.f32.gmra.mrb[124].mxu1 %vm3881_vm2, %v25465_v15  ;;  %8771 = vmatprep.mubr.f32.mxu0 %v30424_v37 }
 0x2af   : > { %8860 = vmatprep.mubr.f32.mxu1 %v30424_v37 }
 0x2b1   : > { %21094 = vmatmul.mubr.msk.f32.gmra.mrb[126].mxu0 %vm3881_vm2, %v25484_v36 }
 0x2b2   : > { %21100 = vmatmul.mubr.msk.f32.gmra.mrb[126].mxu1 %vm3881_vm2, %v25484_v36  ;;  %8931 = vmatprep.mubr.f32.mxu0 %v30424_v37 }
 0x2b3   : > { %9020 = vmatprep.mubr.f32.mxu1 %v30424_v37 }
 0x2b5   : > { %21103 = vmatmul.mubr.msk.f32.vlgmr.msra.gmra.mrb[128].mxu0 %vm3881_vm2, %v25419_v22 }
 0x2b6   : > { %21109 = vmatmul.mubr.msk.f32.vlgmr.msra.gmra.mrb[128].mxu1 %vm3881_vm2, %v25419_v22  ;;  %21114 = vmatpush1.msk.msra.mxu0 %vm3894_vm1, %v30417_v35  ;;  %v30467_v35 = vld [vmem:[#allocation39_spill] sm:$0xff] }
 0x2b7   : > { %21120 = vmatpush1.msk.msra.mxu1 %vm3894_vm1, %v30418_v38  ;;  %21125 = vmatprep.subr.msk.mxu0 %vm3894_vm1, %v24425_v63  ;;  %v25631_v63 = vld [vmem:[%s30215_s2 + $0x10] sm:$0xff] }
 0x2b8   : > { %21131 = vmatprep.subr.msk.mxu1 %vm3894_vm1, %v24427_v1  ;;  %8937 = vmatprep.mubr.f32.mxu0 %v30424_v37  ;;  %v23908_v1 = vld [vmem:[%s30215_s2 + $0x18] sm:$0xff]  ;;  %v30466_v38 = vld [vmem:[#allocation38_spill] sm:$0xff] }
 0x2b9   : > { %9026 = vmatprep.mubr.f32.mxu1 %v30424_v37  ;;  %21104 = vmatmul.mubr.msk.f32.gmra.mrb[130].mxu0 %vm3881_vm2, %v25446_v20 }
 0x2ba   : > { %21110 = vmatmul.mubr.msk.f32.gmra.mrb[130].mxu1 %vm3881_vm2, %v25446_v20  ;;  %8943 = vmatprep.mubr.f32.mxu0 %v30424_v37 }
 0x2bb   : > { %9032 = vmatprep.mubr.f32.mxu1 %v30424_v37 }
 0x2bd   : > { %21105 = vmatmul.mubr.msk.f32.gmra.mrb[132].mxu0 %vm3881_vm2, %v25465_v15 }
 0x2be   : > { %21111 = vmatmul.mubr.msk.f32.gmra.mrb[132].mxu1 %vm3881_vm2, %v25465_v15  ;;  %8949 = vmatprep.mubr.f32.mxu0 %v30424_v37 }
 0x2bf   : > { %9038 = vmatprep.mubr.f32.mxu1 %v30424_v37 }
 0x2c1   : > { %21106 = vmatmul.mubr.msk.f32.gmra.mrb[134].mxu0 %vm3881_vm2, %v25484_v36 }
 0x2c2   : > { %21112 = vmatmul.mubr.msk.f32.gmra.mrb[134].mxu1 %vm3881_vm2, %v25484_v36  ;;  %9109 = vmatprep.mubr.f32.mxu0 %v30424_v37 }
 0x2c3   : > { %9198 = vmatprep.mubr.f32.mxu1 %v30424_v37 }
 0x2c5   : > { %21115 = vmatmul.mubr.msk.f32.vlgmr.msra.gmra.mrb[136].mxu0 %vm3881_vm2, %v25419_v22 }
 0x2c6   : > { %21121 = vmatmul.mubr.msk.f32.vlgmr.msra.gmra.mrb[136].mxu1 %vm3881_vm2, %v25419_v22  ;;  %21126 = vmatpush1.msk.msra.mxu0 %vm3894_vm1, %v24418_v61  ;;  %v25601_v61 = vld [vmem:[%s30215_s2] sm:$0xff] }
 0x2c7   : > { %21132 = vmatpush1.msk.msra.mxu1 %vm3894_vm1, %v24420_v62  ;;  %21137 = vmatprep.subr.msk.mxu0 %vm3894_vm1, %v24439_v4  ;;  %v25620_v62 = vld [vmem:[%s30215_s2 + $0x8] sm:$0xff]  ;;  %v30455_v4 = vld [vmem:[#allocation24_spill] sm:$0xff] }
 0x2c8   : > { %21143 = vmatprep.subr.msk.mxu1 %vm3894_vm1, %v24443_v5  ;;  %9115 = vmatprep.mubr.f32.mxu0 %v30424_v37  ;;  %v30456_v5 = vld [vmem:[#allocation25_spill] sm:$0xff] }
 0x2c9   : > { %9204 = vmatprep.mubr.f32.mxu1 %v30424_v37  ;;  %21116 = vmatmul.mubr.msk.f32.gmra.mrb[138].mxu0 %vm3881_vm2, %v25446_v20 }
 0x2ca   : > { %21122 = vmatmul.mubr.msk.f32.gmra.mrb[138].mxu1 %vm3881_vm2, %v25446_v20  ;;  %9121 = vmatprep.mubr.f32.mxu0 %v30424_v37 }
 0x2cb   : > { %9210 = vmatprep.mubr.f32.mxu1 %v30424_v37 }
 0x2cd   : > { %21117 = vmatmul.mubr.msk.f32.gmra.mrb[140].mxu0 %vm3881_vm2, %v25465_v15 }
 0x2ce   : > { %21123 = vmatmul.mubr.msk.f32.gmra.mrb[140].mxu1 %vm3881_vm2, %v25465_v15  ;;  %9127 = vmatprep.mubr.f32.mxu0 %v30424_v37 }
 0x2cf   : > { %9216 = vmatprep.mubr.f32.mxu1 %v30424_v37 }
 0x2d1   : > { %21118 = vmatmul.mubr.msk.f32.gmra.mrb[142].mxu0 %vm3881_vm2, %v25484_v36 }
 0x2d2   : > { %21124 = vmatmul.mubr.msk.f32.gmra.mrb[142].mxu1 %vm3881_vm2, %v25484_v36  ;;  %9287 = vmatprep.mubr.f32.mxu0 %v30424_v37  ;;  %v25769_v36 = vld [vmem:[%s30215_s2 + $0x50] sm:$0xff] }
 0x2d3   : > { %9376 = vmatprep.mubr.f32.mxu1 %v30424_v37 }
 0x2d5   : > { %21127 = vmatmul.mubr.msk.f32.vlgmr.msra.gmra.mrb[112].mxu0 %vm3881_vm2, %v25601_v61 }
 0x2d6   : > { %21133 = vmatmul.mubr.msk.f32.vlgmr.msra.gmra.mrb[112].mxu1 %vm3881_vm2, %v25601_v61  ;;  %21138 = vmatpush1.msk.msra.mxu0 %vm3894_vm1, %v24432_v2  ;;  %v30453_v2 = vld [vmem:[#allocation26_spill] sm:$0xff] }
 0x2d7   : > { %21144 = vmatpush1.msk.msra.mxu1 %vm3894_vm1, %v24434_v3  ;;  %21149 = vmatprep.subr.msk.mxu0 %vm3894_vm1, %v24461_v8  ;;  %v30454_v3 = vld [vmem:[#allocation27_spill] sm:$0xff]  ;;  %v25739_v8 = vld [vmem:[%s30215_s2 + $0x40] sm:$0xff] }
 0x2d8   : > { %21155 = vmatprep.subr.msk.mxu1 %vm3894_vm1, %v24463_v9  ;;  %9293 = vmatprep.mubr.f32.mxu0 %v30424_v37  ;;  %v30459_v9 = vld [vmem:[#allocation28_spill] sm:$0xff] }
 0x2d9   : > { %9382 = vmatprep.mubr.f32.mxu1 %v30424_v37  ;;  %21128 = vmatmul.mubr.msk.f32.gmra.mrb[114].mxu0 %vm3881_vm2, %v25620_v62 }
 0x2da   : > { %21134 = vmatmul.mubr.msk.f32.gmra.mrb[114].mxu1 %vm3881_vm2, %v25620_v62  ;;  %9299 = vmatprep.mubr.f32.mxu0 %v30424_v37 }
 0x2db   : > { %9388 = vmatprep.mubr.f32.mxu1 %v30424_v37 }
 0x2dd   : > { %21129 = vmatmul.mubr.msk.f32.gmra.mrb[116].mxu0 %vm3881_vm2, %v25631_v63 }
 0x2de   : > { %21135 = vmatmul.mubr.msk.f32.gmra.mrb[116].mxu1 %vm3881_vm2, %v25631_v63  ;;  %9305 = vmatprep.mubr.f32.mxu0 %v30424_v37 }
 0x2df   : > { %9394 = vmatprep.mubr.f32.mxu1 %v30424_v37 }
 0x2e1   : > { %21130 = vmatmul.mubr.msk.f32.gmra.mrb[118].mxu0 %vm3881_vm2, %v23908_v1 }
 0x2e2   : > { %21136 = vmatmul.mubr.msk.f32.gmra.mrb[118].mxu1 %vm3881_vm2, %v23908_v1  ;;  %9465 = vmatprep.mubr.f32.mxu0 %v30424_v37 }
 0x2e3   : > { %9554 = vmatprep.mubr.f32.mxu1 %v30424_v37 }
 0x2e5   : > { %21139 = vmatmul.mubr.msk.f32.vlgmr.msra.gmra.mrb[120].mxu0 %vm3881_vm2, %v25601_v61 }
 0x2e6   : > { %21145 = vmatmul.mubr.msk.f32.vlgmr.msra.gmra.mrb[120].mxu1 %vm3881_vm2, %v25601_v61  ;;  %21150 = vmatpush1.msk.msra.mxu0 %vm3894_vm1, %v24452_v6  ;;  %v30457_v6 = vld [vmem:[#allocation30_spill] sm:$0xff] }
 0x2e7   : > { %21156 = vmatpush1.msk.msra.mxu1 %vm3894_vm1, %v24456_v7  ;;  %21161 = vmatprep.subr.msk.mxu0 %vm3894_vm1, %v24475_v13  ;;  %v30458_v7 = vld [vmem:[#allocation31_spill] sm:$0xff] }
 0x2e8   : > { %21167 = vmatprep.subr.msk.mxu1 %vm3894_vm1, %v24477_v14  ;;  %9471 = vmatprep.mubr.f32.mxu0 %v30424_v37  ;;  %v30462_v13 = vld [vmem:[#allocation35_spill] sm:$0xff]  ;;  %v25758_v14 = vld [vmem:[%s30215_s2 + $0x48] sm:$0xff] }
 0x2e9   : > { %9560 = vmatprep.mubr.f32.mxu1 %v30424_v37  ;;  %21140 = vmatmul.mubr.msk.f32.gmra.mrb[122].mxu0 %vm3881_vm2, %v25620_v62 }
 0x2ea   : > { %21146 = vmatmul.mubr.msk.f32.gmra.mrb[122].mxu1 %vm3881_vm2, %v25620_v62  ;;  %9477 = vmatprep.mubr.f32.mxu0 %v30424_v37 }
 0x2eb   : > { %9566 = vmatprep.mubr.f32.mxu1 %v30424_v37 }
 0x2ed   : > { %21141 = vmatmul.mubr.msk.f32.gmra.mrb[124].mxu0 %vm3881_vm2, %v25631_v63 }
 0x2ee   : > { %21147 = vmatmul.mubr.msk.f32.gmra.mrb[124].mxu1 %vm3881_vm2, %v25631_v63  ;;  %9483 = vmatprep.mubr.f32.mxu0 %v30424_v37 }
 0x2ef   : > { %9572 = vmatprep.mubr.f32.mxu1 %v30424_v37 }
 0x2f1   : > { %21142 = vmatmul.mubr.msk.f32.gmra.mrb[126].mxu0 %vm3881_vm2, %v23908_v1 }
 0x2f2   : > { %21148 = vmatmul.mubr.msk.f32.gmra.mrb[126].mxu1 %vm3881_vm2, %v23908_v1  ;;  %9643 = vmatprep.mubr.f32.mxu0 %v30424_v37 }
 0x2f3   : > { %9732 = vmatprep.mubr.f32.mxu1 %v30424_v37 }
 0x2f5   : > { %21151 = vmatmul.mubr.msk.f32.vlgmr.msra.gmra.mrb[128].mxu0 %vm3881_vm2, %v25601_v61 }
 0x2f6   : > { %21157 = vmatmul.mubr.msk.f32.vlgmr.msra.gmra.mrb[128].mxu1 %vm3881_vm2, %v25601_v61  ;;  %21162 = vmatpush1.msk.msra.mxu0 %vm3894_vm1, %v24468_v10  ;;  %v30460_v10 = vld [vmem:[#allocation29_spill] sm:$0xff] }
 0x2f7   : > { %21168 = vmatpush1.msk.msra.mxu1 %vm3894_vm1, %v24470_v11  ;;  %21173 = vmatprep.subr.msk.mxu0 %vm3894_vm1, %v30453_v2  ;;  %v30461_v11 = vld [vmem:[#allocation34_spill] sm:$0xff] }
 0x2f8   : > { %21179 = vmatprep.subr.msk.mxu1 %vm3894_vm1, %v30454_v3  ;;  %9649 = vmatprep.mubr.f32.mxu0 %v30424_v37 }
 0x2f9   : > { %9738 = vmatprep.mubr.f32.mxu1 %v30424_v37  ;;  %21152 = vmatmul.mubr.msk.f32.gmra.mrb[130].mxu0 %vm3881_vm2, %v25620_v62 }
 0x2fa   : > { %21158 = vmatmul.mubr.msk.f32.gmra.mrb[130].mxu1 %vm3881_vm2, %v25620_v62  ;;  %9655 = vmatprep.mubr.f32.mxu0 %v30424_v37 }
 0x2fb   : > { %9744 = vmatprep.mubr.f32.mxu1 %v30424_v37 }
 0x2fd   : > { %21153 = vmatmul.mubr.msk.f32.gmra.mrb[132].mxu0 %vm3881_vm2, %v25631_v63 }
 0x2fe   : > { %21159 = vmatmul.mubr.msk.f32.gmra.mrb[132].mxu1 %vm3881_vm2, %v25631_v63  ;;  %9661 = vmatprep.mubr.f32.mxu0 %v30424_v37 }
 0x2ff   : > { %9750 = vmatprep.mubr.f32.mxu1 %v30424_v37 }
 0x301   : > { %21154 = vmatmul.mubr.msk.f32.gmra.mrb[134].mxu0 %vm3881_vm2, %v23908_v1 }
 0x302   : > { %21160 = vmatmul.mubr.msk.f32.gmra.mrb[134].mxu1 %vm3881_vm2, %v23908_v1  ;;  %9821 = vmatprep.mubr.f32.mxu0 %v30424_v37 }
 0x303   : > { %9910 = vmatprep.mubr.f32.mxu1 %v30424_v37 }
 0x305   : > { %21163 = vmatmul.mubr.msk.f32.vlgmr.msra.gmra.mrb[136].mxu0 %vm3881_vm2, %v25601_v61 }
 0x306   : > { %21169 = vmatmul.mubr.msk.f32.vlgmr.msra.gmra.mrb[136].mxu1 %vm3881_vm2, %v25601_v61  ;;  %21174 = vmatpush1.msk.msra.mxu0 %vm3894_vm1, %v30455_v4  ;;  %v25780_v61 = vld [vmem:[%s30215_s2 + $0x58] sm:$0xff] }
 0x307   : > { %21180 = vmatpush1.msk.msra.mxu1 %vm3894_vm1, %v30456_v5  ;;  %21185 = vmatprep.subr.msk.mxu0 %vm3894_vm1, %v30457_v6 }
 0x308   : > { %21191 = vmatprep.subr.msk.mxu1 %vm3894_vm1, %v30458_v7  ;;  %9827 = vmatprep.mubr.f32.mxu0 %v30424_v37 }
 0x309   : > { %9916 = vmatprep.mubr.f32.mxu1 %v30424_v37  ;;  %21164 = vmatmul.mubr.msk.f32.gmra.mrb[138].mxu0 %vm3881_vm2, %v25620_v62 }
 0x30a   : > { %21170 = vmatmul.mubr.msk.f32.gmra.mrb[138].mxu1 %vm3881_vm2, %v25620_v62  ;;  %9833 = vmatprep.mubr.f32.mxu0 %v30424_v37  ;;  %v30463_v62 = vld [vmem:[#allocation32_spill] sm:$0xff] }
 0x30b   : > { %9922 = vmatprep.mubr.f32.mxu1 %v30424_v37 }
 0x30d   : > { %21165 = vmatmul.mubr.msk.f32.gmra.mrb[140].mxu0 %vm3881_vm2, %v25631_v63 }
 0x30e   : > { %21171 = vmatmul.mubr.msk.f32.gmra.mrb[140].mxu1 %vm3881_vm2, %v25631_v63  ;;  %9839 = vmatprep.mubr.f32.mxu0 %v30424_v37  ;;  %v25794_v63 = vpop.permute.xlu0 %13077 }
 0x30f   : > { %9928 = vmatprep.mubr.f32.mxu1 %v30424_v37  ;;  %30464 = vst [vmem:[#allocation26_spill] sm:$0xff] %v25794_v63 }
 0x311   : > { %21166 = vmatmul.mubr.msk.f32.gmra.mrb[142].mxu0 %vm3881_vm2, %v23908_v1 }
 0x312   : > { %21172 = vmatmul.mubr.msk.f32.gmra.mrb[142].mxu1 %vm3881_vm2, %v23908_v1  ;;  %10047 = vmatprep.mubr.f32.mxu0 %v30424_v37  ;;  %v30465_v1 = vld [vmem:[#allocation33_spill] sm:$0xff] }
 0x313   : > { %10136 = vmatprep.mubr.f32.mxu1 %v30424_v37 }
 0x315   : > { %21175 = vmatmul.mubr.msk.f32.vlgmr.msra.gmra.mrb[112].mxu0 %vm3881_vm2, %v25739_v8 }
 0x316   : > { %21181 = vmatmul.mubr.msk.f32.vlgmr.msra.gmra.mrb[112].mxu1 %vm3881_vm2, %v25739_v8  ;;  %21186 = vmatpush1.msk.msra.mxu0 %vm3894_vm1, %v30459_v9 }
 0x317   : > { %21192 = vmatpush1.msk.msra.mxu1 %vm3894_vm1, %v30460_v10  ;;  %21197 = vmatprep.subr.msk.mxu0 %vm3894_vm1, %v30461_v11 }
 0x318   : > { %21203 = vmatprep.subr.msk.mxu1 %vm3894_vm1, %v30462_v13  ;;  %10053 = vmatprep.mubr.f32.mxu0 %v30424_v37 }
 0x319   : > { %10142 = vmatprep.mubr.f32.mxu1 %v30424_v37  ;;  %21176 = vmatmul.mubr.msk.f32.gmra.mrb[114].mxu0 %vm3881_vm2, %v25758_v14 }
 0x31a   : > { %21182 = vmatmul.mubr.msk.f32.gmra.mrb[114].mxu1 %vm3881_vm2, %v25758_v14  ;;  %10059 = vmatprep.mubr.f32.mxu0 %v30424_v37 }
 0x31b   : > { %10148 = vmatprep.mubr.f32.mxu1 %v30424_v37 }
 0x31d   : > { %21177 = vmatmul.mubr.msk.f32.gmra.mrb[116].mxu0 %vm3881_vm2, %v25769_v36 }
 0x31e   : > { %21183 = vmatmul.mubr.msk.f32.gmra.mrb[116].mxu1 %vm3881_vm2, %v25769_v36  ;;  %10065 = vmatprep.mubr.f32.mxu0 %v30424_v37 }
 0x31f   : > { %10154 = vmatprep.mubr.f32.mxu1 %v30424_v37 }
 0x321   : > { %21178 = vmatmul.mubr.msk.f32.gmra.mrb[118].mxu0 %vm3881_vm2, %v25780_v61 }
 0x322   : > { %21184 = vmatmul.mubr.msk.f32.gmra.mrb[118].mxu1 %vm3881_vm2, %v25780_v61  ;;  %10225 = vmatprep.mubr.f32.mxu0 %v30424_v37 }
 0x323   : > { %10314 = vmatprep.mubr.f32.mxu1 %v30424_v37 }
 0x325   : > { %21187 = vmatmul.mubr.msk.f32.vlgmr.msra.gmra.mrb[120].mxu0 %vm3881_vm2, %v25739_v8 }
 0x326   : > { %21193 = vmatmul.mubr.msk.f32.vlgmr.msra.gmra.mrb[120].mxu1 %vm3881_vm2, %v25739_v8  ;;  %21198 = vmatpush1.msk.msra.mxu0 %vm3894_vm1, %v30463_v62  ;;  %v25817_v62 = vpop.permute.xlu0 %13082 }
 0x327   : > { %21204 = vmatpush1.msk.msra.mxu1 %vm3894_vm1, %v30465_v1  ;;  %21209 = vmatprep.subr.msk.mxu0 %vm3894_vm1, %v30466_v38  ;;  %30468 = vst [vmem:[#allocation27_spill] sm:$0xff] %v25817_v62 }
 0x328   : > { %21215 = vmatprep.subr.msk.mxu1 %vm3894_vm1, %v30467_v35  ;;  %v7801_v12 = vpop.f32.mrb[80].mxu0  ;;  %10231 = vmatprep.mubr.f32.mxu0 %v30424_v37 }
 0x329   : > { %v13011_v29 = vmax.f32 %v25238_v47, %v7801_v12  ;;  %v7890_v24 = vpop.f32.mrb[80].mxu1  ;;  %10320 = vmatprep.mubr.f32.mxu1 %v30424_v37  ;;  %v7803_v23 = vpop.f32.mrb[81].mxu0  ;;  %21188 = vmatmul.mubr.msk.f32.gmra.mrb[122].mxu0 %vm3881_vm2, %v25758_v14 }
 0x32a   : > { %v13013_v1 = vmax.f32 %v25241_v48, %v7890_v24  ;;  %v13012_v41 = vmax.f32 %v25244_v49, %v7803_v23  ;;  %v7892_v38 = vpop.f32.mrb[81].mxu1  ;;  %21194 = vmatmul.mubr.msk.f32.gmra.mrb[122].mxu1 %vm3881_vm2, %v25758_v14  ;;  %10237 = vmatprep.mubr.f32.mxu0 %v30424_v37 }
 0x32b   : > { %v13014_v35 = vmax.f32 %v25248_v50, %v7892_v38  ;;  %10326 = vmatprep.mubr.f32.mxu1 %v30424_v37  ;;  %v25815_v12 = vadd.f32 %v25794_v63, %v13011_v29 }
 0x32c   : > { %v7807_v47 = vpop.f32.mrb[82].mxu0  ;;  %v25820_v24 = vadd.f32 %v25794_v63, %v13012_v41  ;;  %v25823_v23 = vadd.f32 %v25794_v63, %v13013_v1  ;;  %v25836_v41 = vpop.permute.xlu1 %13087 }
 0x32d   : > { %v13027_v48 = vmax.f32 %v25254_v51, %v7807_v47  ;;  %v7896_v49 = vpop.f32.mrb[82].mxu1  ;;  %v7809_v19 = vpop.f32.mrb[83].mxu0  ;;  %21189 = vmatmul.mubr.msk.f32.gmra.mrb[124].mxu0 %vm3881_vm2, %v25769_v36  ;;  %v25829_v50 = vadd.f32 %v25794_v63, %v13014_v35  ;;  %30469 = vst [vmem:[#allocation24_spill] sm:$0xff] %v25836_v41 }
 0x32e   : > { %v13029_v29 = vmax.f32 %v25256_v52, %v7896_v49  ;;  %v13028_v38 = vmax.f32 %v25258_v53, %v7809_v19  ;;  %v7898_v26 = vpop.f32.mrb[83].mxu1  ;;  %21195 = vmatmul.mubr.msk.f32.gmra.mrb[124].mxu1 %vm3881_vm2, %v25769_v36  ;;  %10243 = vmatprep.mubr.f32.mxu0 %v30424_v37  ;;  %v13160_v53 = vmax.f32 %v25820_v24, 0.0  ;;  %v13161_v49 = vmax.f32 %v25823_v23, 0.0 }
 0x32f   : > { %v13030_v51 = vmax.f32 %v25262_v54, %v7898_v26  ;;  %10332 = vmatprep.mubr.f32.mxu1 %v30424_v37  ;;  %v25841_v1 = vadd.f32 %v25817_v62, %v13027_v48  ;;  %v13162_v48 = vmax.f32 %v25829_v50, 0.0  ;;  %v30470_v50 = vmax.f32 %v25815_v12, 0.0 }
 0x330   : > { %v7813_v52 = vpop.f32.mrb[84].mxu0  ;;  %v13112_v19 = vadd.f32 %v25817_v62, %v13028_v38  ;;  %v13113_v47 = vadd.f32 %v25817_v62, %v13029_v29 }
 0x331   : > { %v13043_v40 = vmax.f32 %v25268_v55, %v7813_v52  ;;  %v7902_v25 = vpop.f32.mrb[84].mxu1  ;;  %v7815_v26 = vpop.f32.mrb[85].mxu0  ;;  %21190 = vmatmul.mubr.msk.f32.gmra.mrb[126].mxu0 %vm3881_vm2, %v25780_v61  ;;  %v13114_v54 = vadd.f32 %v25817_v62, %v13030_v51  ;;  %v30262_v35 = vmax.f32 %v25841_v1, 0.0 }
 0x332   : > { %v13045_v38 = vmax.f32 %v25270_v56, %v7902_v25  ;;  %v13044_v24 = vmax.f32 %v25272_v57, %v7815_v26  ;;  %v7904_v29 = vpop.f32.mrb[85].mxu1  ;;  %21196 = vmatmul.mubr.msk.f32.gmra.mrb[126].mxu1 %vm3881_vm2, %v25780_v61  ;;  %10403 = vmatprep.mubr.f32.mxu0 %v30424_v37  ;;  %v13176_v55 = vmax.f32 %v13112_v19, 0.0  ;;  %v13177_v23 = vmax.f32 %v13113_v47, 0.0  ;;  %v25870_v26 = vpop.permute.xlu1 %13092 }
 0x333   : > { %v13046_v52 = vmax.f32 %v25276_v58, %v7904_v29  ;;  %10492 = vmatprep.mubr.f32.mxu1 %v30424_v37  ;;  %v13178_v51 = vmax.f32 %v13114_v54, 0.0  ;;  %v25865_v25 = vpack.c.bf16 %v30262_v35, %v30470_v50  ;;  %v25868_v56 = vadd.f32 %v25836_v41, %v13043_v40 }
 0x334   : > { %v7819_v57 = vpop.f32.mrb[86].mxu0  ;;  %v25872_v15 = vpack.c.bf16 %v13176_v55, %v13160_v53  ;;  %v25874_v19 = vpack.c.bf16 %v13177_v23, %v13161_v49  ;;  %v25877_v58 = vadd.f32 %v25836_v41, %v13044_v24  ;;  %v25880_v47 = vadd.f32 %v25836_v41, %v13045_v38  ;;  %v30475_v38 = vld [vmem:[#allocation36_spill] sm:$0xff] }
 0x335   : > { %30471 = vst [vmem:[#allocation25_spill] sm:$0xff] %v25865_v25  ;;  %v13059_v54 = vmax.f32 %v25282_v59, %v7819_v57  ;;  %v7908_v29 = vpop.f32.mrb[86].mxu1  ;;  %v7821_v50 = vpop.f32.mrb[87].mxu0  ;;  %21199 = vmatmul.mubr.msk.f32.vlgmr.msra.gmra.mrb[128].mxu0 %vm3881_vm2, %v25739_v8  ;;  %v25885_v40 = vpack.c.bf16 %v13178_v51, %v13162_v48  ;;  %v25888_v35 = vadd.f32 %v25836_v41, %v13046_v52  ;;  %v30268_v57 = vmax.f32 %v25868_v56, 0.0 }
 0x336   : > { %30472 = vst [vmem:[#allocation30_spill] sm:$0xff] %v25872_v15  ;;  %30473 = vst [vmem:[#allocation31_spill] sm:$0xff] %v25874_v19  ;;  %v13061_v19 = vmax.f32 %v25284_v60, %v7908_v29  ;;  %v13060_v24 = vmax.f32 %v25286_v31, %v7821_v50  ;;  %v7910_v25 = vpop.f32.mrb[87].mxu1  ;;  %21205 = vmatmul.mubr.msk.f32.vlgmr.msra.gmra.mrb[128].mxu1 %vm3881_vm2, %v25739_v8  ;;  %21210 = vmatpush1.msk.msra.mxu0 %vm3894_vm1, %v30475_v38  ;;  %v13192_v59 = vmax.f32 %v25877_v58, 0.0  ;;  %v30476_v15 = vld [vmem:[#allocation37_spill] sm:$0xff] }
 0x337   : > { %30474 = vst [vmem:[#allocation28_spill] sm:$0xff] %v25885_v40  ;;  %v13062_v40 = vmax.f32 %v25290_v32, %v7910_v25  ;;  %21216 = vmatpush1.msk.msra.mxu1 %vm3894_vm1, %v30476_v15  ;;  %21221 = vmatprep.subr.msk.mxu0 %vm3894_vm1, %v30453_v2  ;;  %v25904_v60 = vadd.f32 %v25870_v26, %v13059_v54  ;;  %v13193_v31 = vmax.f32 %v25880_v47, 0.0  ;;  %v13194_v25 = vmax.f32 %v25888_v35, 0.0 }
 0x338   : > { %v25907_v52 = vpack.i.bf16 %v13176_v55, %v13160_v53  ;;  %21227 = vmatprep.subr.msk.mxu1 %vm3894_vm1, %v30454_v3  ;;  %v7979_v58 = vpop.f32.mrb[88].mxu0  ;;  %10409 = vmatprep.mubr.f32.mxu0 %v30424_v37  ;;  %v13144_v32 = vadd.f32 %v25870_v26, %v13060_v24  ;;  %v13145_v29 = vadd.f32 %v25870_v26, %v13061_v19 }
 0x339   : > { %v25915_v2 = vpack.i.bf16 %v13177_v23, %v13161_v49  ;;  %v13015_v54 = vmax.f32 %v25302_v42, %v7979_v58  ;;  %v8068_v50 = vpop.f32.mrb[88].mxu1  ;;  %10498 = vmatprep.mubr.f32.mxu1 %v30424_v37  ;;  %v7981_v53 = vpop.f32.mrb[89].mxu0  ;;  %21200 = vmatmul.mubr.msk.f32.gmra.mrb[130].mxu0 %vm3881_vm2, %v25758_v14  ;;  %v13146_v3 = vadd.f32 %v25870_v26, %v13062_v40  ;;  %v30267_v55 = vmax.f32 %v25904_v60, 0.0 }
 0x33a   : > { %30477 = vst [vmem:[#allocation29_spill] sm:$0xff] %v25907_v52  ;;  %v25923_v47 = vpack.i.bf16 %v13178_v51, %v13162_v48  ;;  %v13017_v35 = vmax.f32 %v25305_v43, %v8068_v50  ;;  %v13016_v49 = vmax.f32 %v25308_v44, %v7981_v53  ;;  %v8070_v23 = vpop.f32.mrb[89].mxu1  ;;  %21206 = vmatmul.mubr.msk.f32.gmra.mrb[130].mxu1 %vm3881_vm2, %v25758_v14  ;;  %v13208_v42 = vmax.f32 %v13144_v32, 0.0 }
 0x33b   : > { %30478 = vst [vmem:[#allocation34_spill] sm:$0xff] %v25915_v2  ;;  %10415 = vmatprep.mubr.f32.mxu0 %v30424_v37  ;;  %v13209_v19 = vmax.f32 %v13145_v29, 0.0  ;;  %v25931_v24 = vadd.f32 %v25794_v63, %v13015_v54  ;;  %v13018_v40 = vmax.f32 %v25312_v45, %v8070_v23  ;;  %10504 = vmatprep.mubr.f32.mxu1 %v30424_v37  ;;  %v13210_v48 = vmax.f32 %v13146_v3, 0.0 }
 0x33c   : > { %30479 = vst [vmem:[#allocation35_spill] sm:$0xff] %v25923_v47  ;;  %v25939_v43 = vpack.c.bf16 %v30267_v55, %v30268_v57  ;;  %v25942_v44 = vadd.f32 %v25794_v63, %v13017_v35  ;;  %v25945_v51 = vadd.f32 %v25794_v63, %v13016_v49  ;;  %v7985_v58 = vpop.f32.mrb[90].mxu0  ;;  %v25947_v32 = vpack.c.bf16 %v13208_v42, %v13192_v59 }
 0x33d   : > { %v25949_v29 = vpack.c.bf16 %v13209_v19, %v13193_v31  ;;  %v25953_v54 = vadd.f32 %v25794_v63, %v13018_v40  ;;  %v13031_v50 = vmax.f32 %v25318_v46, %v7985_v58  ;;  %v8074_v53 = vpop.f32.mrb[90].mxu1  ;;  %v7987_v3 = vpop.f32.mrb[91].mxu0  ;;  %21201 = vmatmul.mubr.msk.f32.gmra.mrb[132].mxu0 %vm3881_vm2, %v25769_v36  ;;  %v25958_v35 = vpack.c.bf16 %v13210_v48, %v13194_v25  ;;  %v30484_v58 = vld [vmem:[#allocation56_spill] sm:$0xff] }
 0x33e   : > { %30480 = vst [vmem:[#allocation36_spill] sm:$0xff] %v25939_v43  ;;  %30481 = vst [vmem:[#allocation37_spill] sm:$0xff] %v25947_v32  ;;  %v13033_v55 = vmax.f32 %v25320_v30, %v8074_v53  ;;  %v13032_v57 = vmax.f32 %v25322_v33, %v7987_v3  ;;  %v8076_v45 = vpop.f32.mrb[91].mxu1  ;;  %21207 = vmatmul.mubr.msk.f32.gmra.mrb[132].mxu1 %vm3881_vm2, %v25769_v36  ;;  %10421 = vmatprep.mubr.f32.mxu0 %v30424_v37  ;;  %v30485_v23 = vmax.f32 %v25815_v12, 0.0 }
 0x33f   : > { %30482 = vst [vmem:[#allocation89_spill] sm:$0xff] %v25949_v29  ;;  %30483 = vst [vmem:[#allocation90_spill] sm:$0xff] %v25958_v35  ;;  %v13115_v40 = vadd.f32 %v25817_v62, %v13031_v50  ;;  %v13034_v47 = vmax.f32 %v30484_v58, %v8076_v45  ;;  %10510 = vmatprep.mubr.f32.mxu1 %v30424_v37  ;;  %v30486_v30 = vmax.f32 %v25841_v1, 0.0  ;;  %v30490_v58 = vld [vmem:[#allocation57_spill] sm:$0xff] }
 0x340   : > { %v25978_v33 = vadd.f32 %v25817_v62, %v13033_v55  ;;  %v13116_v3 = vadd.f32 %v25817_v62, %v13032_v57  ;;  %v7991_v49 = vpop.f32.mrb[92].mxu0  ;;  %v25981_v2 = vpack.i.bf16 %v13208_v42, %v13192_v59  ;;  %v25983_v46 = vpack.i.bf16 %v13209_v19, %v13193_v31  ;;  %v30492_v31 = vld [vmem:[#allocation58_spill] sm:$0xff] }
 0x341   : > { %v25975_v53 = vpack.i.bf16 %v30486_v30, %v30485_v23  ;;  %v13179_v50 = vmax.f32 %v13115_v40, 0.0  ;;  %v25986_v45 = vadd.f32 %v25817_v62, %v13034_v47  ;;  %v13047_v12 = vmax.f32 %v30490_v58, %v7991_v49  ;;  %v8080_v52 = vpop.f32.mrb[92].mxu1  ;;  %v7993_v1 = vpop.f32.mrb[93].mxu0  ;;  %21202 = vmatmul.mubr.msk.f32.gmra.mrb[134].mxu0 %vm3881_vm2, %v25780_v61 }
 0x342   : > { %30488 = vst [vmem:[#allocation91_spill] sm:$0xff] %v25981_v2  ;;  %30489 = vst [vmem:[#allocation92_spill] sm:$0xff] %v25983_v46  ;;  %v25991_v55 = vpack.i.bf16 %v13210_v48, %v13194_v25  ;;  %v30269_v57 = vmax.f32 %v25978_v33, 0.0  ;;  %v13180_v23 = vmax.f32 %v13116_v3, 0.0  ;;  %v13049_v59 = vmax.f32 %v25334_v28, %v8080_v52  ;;  %v8082_v19 = vpop.f32.mrb[93].mxu1  ;;  %21208 = vmatmul.mubr.msk.f32.gmra.mrb[134].mxu1 %vm3881_vm2, %v25780_v61  ;;  %v30590_v2 = vld [vmem:[#allocation87_spill] sm:$0xff] }
 0x343   : > { %30487 = vst [vmem:[#allocation56_spill] sm:$0xff] %v25975_v53  ;;  %v13048_v42 = vmax.f32 %v30492_v31, %v7993_v1  ;;  %10581 = vmatprep.mubr.f32.mxu0 %v30424_v37  ;;  %v30493_v47 = vmax.f32 %v25931_v24, 0.0  ;;  %v30270_v25 = vmax.f32 %v25986_v45, 0.0  ;;  %v26005_v48 = vadd.f32 %v25836_v41, %v13047_v12  ;;  %10670 = vmatprep.mubr.f32.mxu1 %v30424_v37  ;;  %v30591_v53 = vld [vmem:[#allocation32_spill] sm:$0xff] }
 0x344   : > { %30491 = vst [vmem:[#allocation57_spill] sm:$0xff] %v25991_v55  ;;  %v13050_v40 = vmax.f32 %v25340_v18, %v8082_v19  ;;  %v30495_v28 = vmax.f32 %v25942_v44, 0.0  ;;  %v26016_v30 = vadd.f32 %v25836_v41, %v13049_v59  ;;  %v7997_v58 = vpop.f32.mrb[94].mxu0  ;;  %v30497_v12 = vmax.f32 %v25945_v51, 0.0 }
 0x345   : > { %v26001_v49 = vpack.c.bf16 %v13179_v50, %v30493_v47  ;;  %v26019_v3 = vadd.f32 %v25836_v41, %v13048_v42  ;;  %v13063_v31 = vmax.f32 %v25346_v17, %v7997_v58  ;;  %v8086_v19 = vpop.f32.mrb[94].mxu1  ;;  %v7999_v47 = vpop.f32.mrb[95].mxu0  ;;  %21211 = vmatmul.mubr.msk.f32.vlgmr.msra.gmra.mrb[136].mxu0 %vm3881_vm2, %v25739_v8  ;;  %v30499_v59 = vmax.f32 %v25953_v54, 0.0 }
 0x346   : > { %v26013_v52 = vpack.c.bf16 %v30269_v57, %v30495_v28  ;;  %v26023_v1 = vpack.c.bf16 %v13180_v23, %v30497_v12  ;;  %v26026_v18 = vadd.f32 %v25836_v41, %v13050_v40  ;;  %v30274_v28 = vmax.f32 %v26005_v48, 0.0  ;;  %v30501_v57 = vld [vmem:[#allocation59_spill] sm:$0xff]  ;;  %v8088_v17 = vpop.f32.mrb[95].mxu1  ;;  %21217 = vmatmul.mubr.msk.f32.vlgmr.msra.gmra.mrb[136].mxu1 %vm3881_vm2, %v25739_v8  ;;  %21222 = vmatpush1.msk.msra.mxu0 %vm3894_vm1, %v30455_v4 }
 0x347   : > { %30494 = vst [vmem:[#allocation58_spill] sm:$0xff] %v26001_v49  ;;  %v26035_v42 = vpack.c.bf16 %v30270_v25, %v30499_v59  ;;  %v30272_v12 = vmax.f32 %v26016_v30, 0.0  ;;  %v13065_v40 = vmax.f32 %v25348_v39, %v8086_v19  ;;  %v13064_v55 = vmax.f32 %v30501_v57, %v7999_v47  ;;  %v30502_v25 = vld [vmem:[#allocation60_spill] sm:$0xff]  ;;  %21228 = vmatpush1.msk.msra.mxu1 %vm3894_vm1, %v30456_v5 }
 0x348   : > { %30496 = vst [vmem:[#allocation93_spill] sm:$0xff] %v26013_v52  ;;  %30498 = vst [vmem:[#allocation94_spill] sm:$0xff] %v26023_v1  ;;  %v30273_v58 = vmax.f32 %v26019_v3, 0.0  ;;  %v13147_v59 = vadd.f32 %v25870_v26, %v13063_v31  ;;  %v13066_v46 = vmax.f32 %v30502_v25, %v8088_v17  ;;  %21233 = vmatprep.subr.msk.mxu0 %vm3894_vm1, %v30457_v6  ;;  %v30503_v39 = vmax.f32 %v25931_v24, 0.0  ;;  %v8157_v25 = vpop.f32.mrb[96].mxu0 }
 0x349   : > { %30500 = vst [vmem:[#allocation95_spill] sm:$0xff] %v26035_v42  ;;  %v30276_v8 = vmax.f32 %v26026_v18, 0.0  ;;  %v26058_v4 = vadd.f32 %v25870_v26, %v13065_v40  ;;  %v13148_v19 = vadd.f32 %v25870_v26, %v13064_v55  ;;  %21239 = vmatprep.subr.msk.mxu1 %vm3894_vm1, %v30458_v7  ;;  %10587 = vmatprep.mubr.f32.mxu0 %v30424_v37  ;;  %v30505_v5 = vmax.f32 %v25868_v56, 0.0  ;;  %v8246_v40 = vpop.f32.mrb[96].mxu1  ;;  %v8159_v55 = vpop.f32.mrb[97].mxu0 }
 0x34a   : > { %v26054_v57 = vpack.i.bf16 %v13179_v50, %v30503_v39  ;;  %v30506_v6 = vmax.f32 %v25904_v60, 0.0  ;;  %v13211_v50 = vmax.f32 %v13147_v59, 0.0  ;;  %v26071_v31 = vadd.f32 %v25870_v26, %v13066_v46  ;;  %10676 = vmatprep.mubr.f32.mxu1 %v30424_v37  ;;  %21212 = vmatmul.mubr.msk.f32.gmra.mrb[138].mxu0 %vm3881_vm2, %v25758_v14  ;;  %v30510_v46 = vld [vmem:[#allocation61_spill] sm:$0xff] }
 0x34b   : > { %v13019_v47 = vmax.f32 %v25366_v0, %v8157_v25  ;;  %v30508_v7 = vmax.f32 %v25945_v51, 0.0  ;;  %v30271_v60 = vmax.f32 %v26058_v4, 0.0  ;;  %v13212_v17 = vmax.f32 %v13148_v19, 0.0  ;;  %21218 = vmatmul.mubr.msk.f32.gmra.mrb[138].mxu1 %vm3881_vm2, %v25758_v14  ;;  %10593 = vmatprep.mubr.f32.mxu0 %v30424_v37  ;;  %v30512_v19 = vld [vmem:[#allocation62_spill] sm:$0xff] }
 0x34c   : > { %30504 = vst [vmem:[#allocation59_spill] sm:$0xff] %v26054_v57  ;;  %v26068_v24 = vpack.i.bf16 %v30506_v6, %v30505_v5  ;;  %v13021_v59 = vmax.f32 %v25369_v34, %v8246_v40  ;;  %v13020_v39 = vmax.f32 %v30510_v46, %v8159_v55  ;;  %v8248_v5 = vpop.f32.mrb[97].mxu1  ;;  %v26089_v0 = vpack.c.bf16 %v13211_v50, %v30274_v28  ;;  %v8163_v40 = vpop.f32.mrb[98].mxu0  ;;  %v30515_v46 = vld [vmem:[#allocation63_spill] sm:$0xff]  ;;  %v30517_v55 = vld [vmem:[#allocation64_spill] sm:$0xff] }
 0x34d   : > { %v26079_v56 = vpack.i.bf16 %v13180_v23, %v30508_v7  ;;  %v30275_v51 = vmax.f32 %v26071_v31, 0.0  ;;  %v26093_v23 = vadd.f32 %v25794_v63, %v13019_v47  ;;  %v13022_v25 = vmax.f32 %v30512_v19, %v8248_v5  ;;  %10682 = vmatprep.mubr.f32.mxu1 %v30424_v37  ;;  %v8252_v19 = vpop.f32.mrb[98].mxu1 }
 0x34e   : > { %30507 = vst [vmem:[#allocation60_spill] sm:$0xff] %v26068_v24  ;;  %30511 = vst [vmem:[#allocation61_spill] sm:$0xff] %v26089_v0  ;;  %v26101_v34 = vpack.c.bf16 %v30271_v60, %v30272_v12  ;;  %v26104_v14 = vadd.f32 %v25794_v63, %v13021_v59  ;;  %v26107_v6 = vadd.f32 %v25794_v63, %v13020_v39  ;;  %v8165_v60 = vpop.f32.mrb[99].mxu0  ;;  %21213 = vmatmul.mubr.msk.f32.gmra.mrb[140].mxu0 %vm3881_vm2, %v25769_v36 }
 0x34f   : > { %30509 = vst [vmem:[#allocation96_spill] sm:$0xff] %v26079_v56  ;;  %v26111_v47 = vpack.c.bf16 %v13212_v17, %v30273_v58  ;;  %v26115_v7 = vadd.f32 %v25794_v63, %v13022_v25  ;;  %v13035_v5 = vmax.f32 %v30515_v46, %v8163_v40  ;;  %v26124_v59 = vpack.c.bf16 %v30275_v51, %v30276_v8  ;;  %v8254_v40 = vpop.f32.mrb[99].mxu1  ;;  %v30518_v51 = vld [vmem:[#allocation65_spill] sm:$0xff] }
 0x350   : > { %30513 = vst [vmem:[#allocation62_spill] sm:$0xff] %v26101_v34  ;;  %v13037_v25 = vmax.f32 %v25384_v21, %v8252_v19  ;;  %v13036_v58 = vmax.f32 %v30517_v55, %v8165_v60  ;;  %21219 = vmatmul.mubr.msk.f32.gmra.mrb[140].mxu1 %vm3881_vm2, %v25769_v36  ;;  %10599 = vmatprep.mubr.f32.mxu0 %v30424_v37  ;;  %v30519_v12 = vmax.f32 %v26005_v48, 0.0  ;;  %v8169_v36 = vpop.f32.mrb[100].mxu0  ;;  %v30521_v55 = vmax.f32 %v25942_v44, 0.0 }
 0x351   : > { %30514 = vst [vmem:[#allocation97_spill] sm:$0xff] %v26111_v47  ;;  %30516 = vst [vmem:[#allocation63_spill] sm:$0xff] %v26124_v59  ;;  %v13119_v28 = vadd.f32 %v25817_v62, %v13035_v5  ;;  %v13038_v8 = vmax.f32 %v30518_v51, %v8254_v40  ;;  %10688 = vmatprep.mubr.f32.mxu1 %v30424_v37  ;;  %v30522_v19 = vmax.f32 %v25978_v33, 0.0  ;;  %v30524_v51 = vmax.f32 %v25953_v54, 0.0  ;;  %v8258_v46 = vpop.f32.mrb[100].mxu1  ;;  %v8171_v56 = vpop.f32.mrb[101].mxu0 }
 0x352   : > { %v26139_v39 = vpack.i.bf16 %v13211_v50, %v30519_v12  ;;  %v26142_v21 = vadd.f32 %v25817_v62, %v13037_v25  ;;  %v26145_v60 = vadd.f32 %v25817_v62, %v13036_v58  ;;  %v30525_v40 = vmax.f32 %v25986_v45, 0.0  ;;  %v30527_v25 = vld [vmem:[#allocation66_spill] sm:$0xff]  ;;  %21214 = vmatmul.mubr.msk.f32.gmra.mrb[142].mxu0 %vm3881_vm2, %v25780_v61 }
 0x353   : > { %v26151_v5 = vpack.i.bf16 %v30522_v19, %v30521_v55  ;;  %v13183_v12 = vmax.f32 %v13119_v28, 0.0  ;;  %v26160_v50 = vadd.f32 %v25817_v62, %v13038_v8  ;;  %v13051_v58 = vmax.f32 %v30527_v25, %v8169_v36  ;;  %v30530_v55 = vld [vmem:[#allocation67_spill] sm:$0xff]  ;;  %v8260_v19 = vpop.f32.mrb[101].mxu1  ;;  %10823 = vmatprep.mubr.f32.mxu0 %v30424_v37 }
 0x354   : > { %30520 = vst [vmem:[#allocation64_spill] sm:$0xff] %v26139_v39  ;;  %v26157_v48 = vpack.i.bf16 %v30525_v40, %v30524_v51  ;;  %v30528_v44 = vmax.f32 %v26019_v3, 0.0  ;;  %v30277_v54 = vmax.f32 %v26142_v21, 0.0  ;;  %v30278_v45 = vmax.f32 %v26145_v60, 0.0  ;;  %21220 = vmatmul.mubr.msk.f32.gmra.mrb[142].mxu1 %vm3881_vm2, %v25780_v61  ;;  %v30533_v40 = vld [vmem:[#allocation68_spill] sm:$0xff]  ;;  %v30589_v39 = vld [vmem:[#allocation86_spill] sm:$0xff] }
 0x355   : > { %30523 = vst [vmem:[#allocation65_spill] sm:$0xff] %v26151_v5  ;;  %v13053_v28 = vmax.f32 %v25398_v16, %v8258_v46  ;;  %v13052_v8 = vmax.f32 %v30530_v55, %v8171_v56  ;;  %v30531_v36 = vmax.f32 %v26093_v23, 0.0  ;;  %v30279_v3 = vmax.f32 %v26160_v50, 0.0  ;;  %10912 = vmatprep.mubr.f32.mxu1 %v30424_v37 }
 0x356   : > { %30526 = vst [vmem:[#allocation98_spill] sm:$0xff] %v26157_v48  ;;  %v26167_v33 = vpack.i.bf16 %v13212_v17, %v30528_v44  ;;  %v26182_v17 = vadd.f32 %v25836_v41, %v13051_v58  ;;  %v13054_v25 = vmax.f32 %v30533_v40, %v8260_v19  ;;  %v30534_v16 = vmax.f32 %v26104_v14, 0.0  ;;  %v8175_v44 = vpop.f32.mrb[102].mxu0  ;;  %v8264_v40 = vpop.f32.mrb[102].mxu1  ;;  %21223 = vmatmul.mubr.msk.f32.vlgmr.msra.gmra.mrb[144].mxu0 %vm3881_vm2, %v25419_v22 }
 0x357   : > { %v26178_v51 = vpack.c.bf16 %v13183_v12, %v30531_v36  ;;  %v26193_v56 = vadd.f32 %v25836_v41, %v13053_v28  ;;  %v26196_v46 = vadd.f32 %v25836_v41, %v13052_v8  ;;  %v30536_v58 = vmax.f32 %v26107_v6, 0.0  ;;  %21234 = vmatpush1.msk.msra.mxu0 %vm3894_vm1, %v30459_v9  ;;  %10829 = vmatprep.mubr.f32.mxu0 %v30424_v37 }
 0x358   : > { %30529 = vst [vmem:[#allocation66_spill] sm:$0xff] %v26167_v33  ;;  %v26190_v61 = vpack.c.bf16 %v30277_v54, %v30534_v16  ;;  %v26205_v19 = vadd.f32 %v25836_v41, %v13054_v25  ;;  %v13067_v36 = vmax.f32 %v25410_v27, %v8175_v44  ;;  %v8177_v16 = vpop.f32.mrb[103].mxu0  ;;  %v30538_v28 = vmax.f32 %v26115_v7, 0.0  ;;  %v30541_v33 = vld [vmem:[#allocation70_spill] sm:$0xff]  ;;  %v8266_v27 = vpop.f32.mrb[103].mxu1  ;;  %21229 = vmatmul.mubr.msk.f32.vlgmr.msra.gmra.mrb[144].mxu1 %vm3881_vm2, %v25419_v22 }
 0x359   : > { %30532 = vst [vmem:[#allocation67_spill] sm:$0xff] %v26178_v51  ;;  %v26202_v55 = vpack.c.bf16 %v30278_v45, %v30536_v58  ;;  %v30282_v54 = vmax.f32 %v26182_v17, 0.0  ;;  %v30281_v58 = vmax.f32 %v26193_v56, 0.0  ;;  %v30540_v45 = vld [vmem:[#allocation69_spill] sm:$0xff]  ;;  %v13068_v48 = vmax.f32 %v30541_v33, %v8177_v16  ;;  %21240 = vmatpush1.msk.msra.mxu1 %vm3894_vm1, %v30460_v10  ;;  %21245 = vmatprep.subr.msk.mxu0 %vm3894_vm1, %v30461_v11  ;;  %v30548_v16 = vld [vmem:[#allocation72_spill] sm:$0xff] }
 0x35a   : > { %30535 = vst [vmem:[#allocation68_spill] sm:$0xff] %v26190_v61  ;;  %v26214_v8 = vpack.c.bf16 %v30279_v3, %v30538_v28  ;;  %v13069_v25 = vmax.f32 %v30540_v45, %v8264_v40  ;;  %v30284_v44 = vmax.f32 %v26196_v46, 0.0  ;;  %v13151_v28 = vadd.f32 %v25870_v26, %v13067_v36  ;;  %v30542_v3 = vld [vmem:[#allocation71_spill] sm:$0xff]  ;;  %21251 = vmatprep.subr.msk.mxu1 %vm3894_vm1, %v30462_v13 }
 0x35b   : > { %30537 = vst [vmem:[#allocation99_spill] sm:$0xff] %v26202_v55  ;;  %v13070_v5 = vmax.f32 %v30542_v3, %v8266_v27  ;;  %v30543_v33 = vmax.f32 %v26093_v23, 0.0  ;;  %v26240_v40 = vadd.f32 %v25870_v26, %v13068_v48  ;;  %v8335_v3 = vpop.f32.mrb[104].mxu0  ;;  %v30545_v10 = vmax.f32 %v26016_v30, 0.0  ;;  %v8424_v48 = vpop.f32.mrb[104].mxu1  ;;  %10918 = vmatprep.mubr.f32.mxu1 %v30424_v37  ;;  %21224 = vmatmul.mubr.msk.f32.gmra.mrb[146].mxu0 %vm3881_vm2, %v25446_v20 }
 0x35c   : > { %30539 = vst [vmem:[#allocation100_spill] sm:$0xff] %v26214_v8  ;;  %v26237_v9 = vadd.f32 %v25870_v26, %v13069_v25  ;;  %v30546_v11 = vmax.f32 %v26058_v4, 0.0  ;;  %v13023_v25 = vmax.f32 %v30548_v16, %v8335_v3  ;;  %v8337_v27 = vpop.f32.mrb[105].mxu0  ;;  %v30549_v13 = vmax.f32 %v26026_v18, 0.0  ;;  %v30553_v3 = vld [vmem:[#allocation74_spill] sm:$0xff]  ;;  %v8426_v16 = vpop.f32.mrb[105].mxu1  ;;  %21230 = vmatmul.mubr.msk.f32.gmra.mrb[146].mxu1 %vm3881_vm2, %v25446_v20  ;;  %10835 = vmatprep.mubr.f32.mxu0 %v30424_v37 }
 0x35d   : > { %v26233_v45 = vpack.i.bf16 %v13183_v12, %v30543_v33  ;;  %v13215_v12 = vmax.f32 %v13151_v28, 0.0  ;;  %v26252_v36 = vadd.f32 %v25870_v26, %v13070_v5  ;;  %v30550_v30 = vmax.f32 %v26071_v31, 0.0  ;;  %v30552_v33 = vld [vmem:[#allocation73_spill] sm:$0xff]  ;;  %10924 = vmatprep.mubr.f32.mxu1 %v30424_v37 }
 0x35e   : > { %v26249_v23 = vpack.i.bf16 %v30546_v11, %v30545_v10  ;;  %v30280_v28 = vmax.f32 %v26237_v9, 0.0  ;;  %v30283_v5 = vmax.f32 %v26240_v40, 0.0  ;;  %v13025_v10 = vmax.f32 %v30552_v33, %v8424_v48  ;;  %v8341_v33 = vpop.f32.mrb[106].mxu0 }
 0x35f   : > { %30544 = vst [vmem:[#allocation69_spill] sm:$0xff] %v26233_v45  ;;  %v26262_v4 = vpack.i.bf16 %v30550_v30, %v30549_v13  ;;  %v13024_v11 = vmax.f32 %v30553_v3, %v8337_v27  ;;  %v26273_v18 = vpack.c.bf16 %v13215_v12, %v30282_v54  ;;  %v30285_v31 = vmax.f32 %v26252_v36, 0.0  ;;  %v30555_v30 = vld [vmem:[#allocation75_spill] sm:$0xff]  ;;  %v30562_v3 = vld [vmem:[#allocation77_spill] sm:$0xff] }
 0x360   : > { %30547 = vst [vmem:[#allocation70_spill] sm:$0xff] %v26249_v23  ;;  %v26277_v13 = vadd.f32 %v25794_v63, %v13023_v25  ;;  %v13026_v22 = vmax.f32 %v30555_v30, %v8426_v16  ;;  %v26285_v20 = vpack.c.bf16 %v30280_v28, %v30281_v58  ;;  %v26288_v48 = vadd.f32 %v25794_v63, %v13025_v10  ;;  %v30558_v30 = vld [vmem:[#allocation76_spill] sm:$0xff]  ;;  %v8430_v58 = vpop.f32.mrb[106].mxu1  ;;  %v8343_v10 = vpop.f32.mrb[107].mxu0  ;;  %v30559_v54 = vld [vmem:[#allocation79_spill] sm:$0xff]  ;;  %v30563_v23 = vld [vmem:[#allocation78_spill] sm:$0xff] }
 0x361   : > { %30551 = vst [vmem:[#allocation71_spill] sm:$0xff] %v26262_v4  ;;  %30554 = vst [vmem:[#allocation72_spill] sm:$0xff] %v26273_v18  ;;  %v26291_v27 = vadd.f32 %v25794_v63, %v13024_v11  ;;  %v26297_v25 = vpack.c.bf16 %v30283_v5, %v30284_v44  ;;  %v13039_v28 = vmax.f32 %v30558_v30, %v8341_v33  ;;  %21225 = vmatmul.mubr.msk.f32.gmra.mrb[148].mxu0 %vm3881_vm2, %v30559_v54  ;;  %v8432_v33 = vpop.f32.mrb[107].mxu1 }
 0x362   : > { %30556 = vst [vmem:[#allocation73_spill] sm:$0xff] %v26285_v20  ;;  %v26301_v16 = vadd.f32 %v25794_v63, %v13026_v22  ;;  %v30560_v11 = vmax.f32 %v26205_v19, 0.0  ;;  %v13041_v22 = vmax.f32 %v30562_v3, %v8430_v58  ;;  %v13040_v45 = vmax.f32 %v30563_v23, %v8343_v10  ;;  %21231 = vmatmul.mubr.msk.f32.gmra.mrb[148].mxu1 %vm3881_vm2, %v30559_v54  ;;  %v8347_v54 = vpop.f32.mrb[108].mxu0  ;;  %v8436_v30 = vpop.f32.mrb[108].mxu1 }
 0x363   : > { %30557 = vst [vmem:[#allocation74_spill] sm:$0xff] %v26297_v25  ;;  %10841 = vmatprep.mubr.f32.mxu0 %v30424_v37  ;;  %v13123_v24 = vadd.f32 %v25817_v62, %v13039_v28  ;;  %10930 = vmatprep.mubr.f32.mxu1 %v30424_v37  ;;  %v30565_v44 = vmax.f32 %v26182_v17, 0.0  ;;  %v30567_v3 = vmax.f32 %v26107_v6, 0.0  ;;  %v30568_v10 = vmax.f32 %v26145_v60, 0.0  ;;  %v26352_v6 = vld [vmem:[%s30215_s2 + $0x38] sm:$0xff] }
 0x364   : > { %v26310_v4 = vpack.c.bf16 %v30285_v31, %v30560_v11  ;;  %v30564_v11 = vld [vmem:[#allocation80_spill] sm:$0xff]  ;;  %v26328_v58 = vadd.f32 %v25817_v62, %v13041_v22  ;;  %v26331_v23 = vadd.f32 %v25817_v62, %v13040_v45  ;;  %v30573_v22 = vld [vmem:[#allocation81_spill] sm:$0xff] }
 0x365   : > { %v13042_v31 = vmax.f32 %v30564_v11, %v8432_v33  ;;  %v26325_v5 = vpack.i.bf16 %v13215_v12, %v30565_v44  ;;  %v26337_v28 = vpack.i.bf16 %v30568_v10, %v30567_v3  ;;  %v30570_v33 = vmax.f32 %v26104_v14, 0.0  ;;  %21226 = vmatmul.mubr.msk.f32.gmra.mrb[150].mxu0 %vm3881_vm2, %v26352_v6  ;;  %v30578_v10 = vld [vmem:[#allocation83_spill] sm:$0xff] }
 0x366   : > { %30561 = vst [vmem:[#allocation75_spill] sm:$0xff] %v26310_v4  ;;  %v30571_v11 = vmax.f32 %v26142_v21, 0.0  ;;  %v13187_v44 = vmax.f32 %v13123_v24, 0.0  ;;  %v13055_v45 = vmax.f32 %v30573_v22, %v8347_v54  ;;  %v30574_v14 = vmax.f32 %v26115_v7, 0.0  ;;  %v30577_v54 = vld [vmem:[#allocation82_spill] sm:$0xff]  ;;  %21232 = vmatmul.mubr.msk.f32.gmra.mrb[150].mxu1 %vm3881_vm2, %v26352_v6  ;;  %11001 = vmatprep.mubr.f32.mxu0 %v30424_v37 }
 0x367   : > { %30566 = vst [vmem:[#allocation76_spill] sm:$0xff] %v26325_v5  ;;  %30569 = vst [vmem:[#allocation79_spill] sm:$0xff] %v26337_v28  ;;  %v26346_v12 = vadd.f32 %v25817_v62, %v13042_v31  ;;  %v8349_v5 = vpop.f32.mrb[109].mxu0  ;;  %v30575_v21 = vmax.f32 %v26160_v50, 0.0  ;;  %v13189_v60 = vmax.f32 %v26328_v58, 0.0  ;;  %v13188_v31 = vmax.f32 %v26331_v23, 0.0  ;;  %11090 = vmatprep.mubr.f32.mxu1 %v30424_v37 }
 0x368   : > { %v26343_v17 = vpack.i.bf16 %v30571_v11, %v30570_v33  ;;  %v13057_v3 = vmax.f32 %v30577_v54, %v8436_v30  ;;  %v13056_v33 = vmax.f32 %v30578_v10, %v8349_v5  ;;  %v8438_v11 = vpop.f32.mrb[109].mxu1  ;;  %v30579_v7 = vmax.f32 %v26277_v13, 0.0  ;;  %v8353_v10 = vpop.f32.mrb[110].mxu0  ;;  %v30592_v62 = vld [vmem:[#allocation88_spill] sm:$0xff] }
 0x369   : > { %v26360_v24 = vpack.i.bf16 %v30575_v21, %v30574_v14  ;;  %v13190_v50 = vmax.f32 %v26346_v12, 0.0  ;;  %v13139_v58 = vadd.f32 %v25836_v41, %v13055_v45  ;;  %v30581_v14 = vld [vmem:[#allocation84_spill] sm:$0xff]  ;;  %v30582_v5 = vmax.f32 %v26288_v48, 0.0  ;;  %v30586_v45 = vld [vmem:[#allocation85_spill] sm:$0xff] }
 0x36a   : > { %30572 = vst [vmem:[#allocation77_spill] sm:$0xff] %v26343_v17  ;;  %v26371_v22 = vpack.c.bf16 %v13187_v44, %v30579_v7  ;;  %v13058_v23 = vmax.f32 %v30581_v14, %v8438_v11  ;;  %v13141_v21 = vadd.f32 %v25836_v41, %v13057_v3  ;;  %v13140_v54 = vadd.f32 %v25836_v41, %v13056_v33  ;;  %v8442_v11 = vpop.f32.mrb[110].mxu1  ;;  %v8355_v14 = vpop.f32.mrb[111].mxu0 }
 0x36b   : > { %30576 = vst [vmem:[#allocation78_spill] sm:$0xff] %v26360_v24  ;;  %v26379_v30 = vpack.c.bf16 %v13189_v60, %v30582_v5  ;;  %v30584_v7 = vmax.f32 %v26291_v27, 0.0  ;;  %v13071_v17 = vmax.f32 %v30586_v45, %v8353_v10  ;;  %v26392_v5 = vld [vmem:[%s30215_s2 + $0x20] sm:$0xff]  ;;  %v30587_v3 = vmax.f32 %v26301_v16, 0.0  ;;  %v8444_v45 = vpop.f32.mrb[111].mxu1 }
 0x36c   : > { %30580 = vst [vmem:[#allocation80_spill] sm:$0xff] %v26371_v22  ;;  %v13142_v12 = vadd.f32 %v25836_v41, %v13058_v23  ;;  %21235 = vmatmul.mubr.msk.f32.vlgmr.msra.gmra.mrb[152].mxu0 %vm3881_vm2, %v26392_v5  ;;  %v13205_v28 = vmax.f32 %v13141_v21, 0.0  ;;  %v13073_v23 = vmax.f32 %v30589_v39, %v8442_v11  ;;  %v13072_v10 = vmax.f32 %v30590_v2, %v8355_v14 }
 0x36d   : > { %30583 = vst [vmem:[#allocation81_spill] sm:$0xff] %v26379_v30  ;;  %v26385_v24 = vpack.c.bf16 %v13188_v31, %v30584_v7  ;;  %v26398_v33 = vpack.c.bf16 %v13190_v50, %v30587_v3  ;;  %v13203_v7 = vmax.f32 %v13139_v58, 0.0  ;;  %21241 = vmatmul.mubr.msk.f32.vlgmr.msra.gmra.mrb[152].mxu1 %vm3881_vm2, %v26392_v5  ;;  %21246 = vmatpush1.msk.msra.mxu0 %vm3894_vm1, %v30591_v53  ;;  %v13204_v57 = vmax.f32 %v13140_v54, 0.0  ;;  %v30593_v3 = vld [vmem:[#allocation33_spill] sm:$0xff]  ;;  %v30594_v58 = vld [vmem:[#allocation38_spill] sm:$0xff]  ;;  %v30597_v54 = vld [vmem:[#allocation39_spill] sm:$0xff] }
 0x36e   : > { %v13155_v41 = vadd.f32 %v25870_v26, %v13071_v17  ;;  %v13074_v63 = vmax.f32 %v30592_v62, %v8444_v45  ;;  %21252 = vmatpush1.msk.msra.mxu1 %vm3894_vm1, %v30593_v3  ;;  %21257 = vmatprep.subr.msk.mxu0 %vm3894_vm1, %v30594_v58  ;;  %v30595_v2 = vmax.f32 %v26277_v13, 0.0  ;;  %v13206_v21 = vmax.f32 %v13142_v12, 0.0 }
 0x36f   : > { %30585 = vst [vmem:[#allocation82_spill] sm:$0xff] %v26385_v24  ;;  %30588 = vst [vmem:[#allocation83_spill] sm:$0xff] %v26398_v33  ;;  %v13157_v11 = vadd.f32 %v25870_v26, %v13073_v23  ;;  %v13156_v53 = vadd.f32 %v25870_v26, %v13072_v10  ;;  %21263 = vmatprep.subr.msk.mxu1 %vm3894_vm1, %v30597_v54  ;;  %11007 = vmatprep.mubr.f32.mxu0 %v30424_v37  ;;  %v30598_v62 = vmax.f32 %v26196_v46, 0.0 }
 0x370   : > { %v26414_v39 = vpack.i.bf16 %v13187_v44, %v30595_v2  ;;  %v30599_v17 = vmax.f32 %v26240_v40, 0.0  ;;  %v13219_v45 = vmax.f32 %v13155_v41, 0.0  ;;  %v13158_v13 = vadd.f32 %v25870_v26, %v13074_v63  ;;  %11096 = vmatprep.mubr.f32.mxu1 %v30424_v37  ;;  %v23915_v44 = vld [vmem:[%s30215_s2 + $0x28] sm:$0xff] }
 0x371   : > { %21236 = vmatmul.mubr.msk.f32.gmra.mrb[154].mxu0 %vm3881_vm2, %v23915_v44  ;;  %v30601_v12 = vmax.f32 %v26193_v56, 0.0  ;;  %v30602_v23 = vmax.f32 %v26237_v9, 0.0  ;;  %v30604_v40 = vmax.f32 %v26205_v19, 0.0  ;;  %v30605_v41 = vmax.f32 %v26252_v36, 0.0  ;;  %21242 = vmatmul.mubr.msk.f32.gmra.mrb[154].mxu1 %vm3881_vm2, %v23915_v44 }
 0x372   : > { %30596 = vst [vmem:[#allocation84_spill] sm:$0xff] %v26414_v39  ;;  %v26425_v14 = vpack.i.bf16 %v30599_v17, %v30598_v62  ;;  %v13221_v63 = vmax.f32 %v13157_v11, 0.0  ;;  %v13220_v3 = vmax.f32 %v13156_v53, 0.0  ;;  %11013 = vmatprep.mubr.f32.mxu0 %v30424_v37  ;;  %v30607_v58 = vmax.f32 %v26291_v27, 0.0  ;;  %11102 = vmatprep.mubr.f32.mxu1 %v30424_v37 }
 0x373   : > { %v26437_v46 = vpack.i.bf16 %v30602_v23, %v30601_v12  ;;  %v26443_v10 = vpack.i.bf16 %v30605_v41, %v30604_v40  ;;  %v30609_v56 = vmax.f32 %v26288_v48, 0.0  ;;  %v26455_v54 = vpack.c.bf16 %v13219_v45, %v13203_v7  ;;  %v26578_v12 = vld [vmem:[%s30215_s2 + $0x10] sm:$0xff]  ;;  %v23920_v23 = vld [vmem:[%s30215_s2 + $0x18] sm:$0xff]  ;;  %v30631_v40 = vld [vmem:[#allocation16_spill] sm:$0xff] }
 0x374   : > { %30600 = vst [vmem:[#allocation85_spill] sm:$0xff] %v26425_v14  ;;  %v26449_v2 = vpack.i.bf16 %v13188_v31, %v30607_v58  ;;  %v13222_v19 = vmax.f32 %v13158_v13, 0.0  ;;  %v26458_v36 = vpack.i.bf16 %v13219_v45, %v13203_v7  ;;  %v30613_v11 = vmax.f32 %v26301_v16, 0.0  ;;  %v30622_v16 = vld [vmem:[#allocation11_spill] sm:$0xff]  ;;  %v30628_v45 = vld [vmem:[#allocation13_spill] sm:$0xff]  ;;  %v30635_v58 = vld [vmem:[#allocation20_spill] sm:$0xff] }
 0x375   : > { %30603 = vst [vmem:[#allocation86_spill] sm:$0xff] %v26437_v46  ;;  %30606 = vst [vmem:[#allocation87_spill] sm:$0xff] %v26443_v10  ;;  %v26453_v9 = vpack.i.bf16 %v13189_v60, %v30609_v56  ;;  %v26464_v62 = vpack.c.bf16 %v13221_v63, %v13205_v28  ;;  %v26466_v27 = vpack.c.bf16 %v13220_v3, %v13204_v57  ;;  %v23916_v60 = vld [vmem:[%s30215_s2 + $0x30] sm:$0xff]  ;;  %v30630_v13 = vld [vmem:[#allocation19_spill] sm:$0xff] }
 0x376   : > { %30608 = vst [vmem:[#allocation32_spill] sm:$0xff] %v26449_v2  ;;  %30611 = vst [vmem:[#allocation33_spill] sm:$0xff] %v26455_v54  ;;  %v26462_v53 = vpack.i.bf16 %v13190_v50, %v30613_v11  ;;  %v26468_v31 = vpack.i.bf16 %v13220_v3, %v13204_v57  ;;  %v26470_v48 = vpack.i.bf16 %v13221_v63, %v13205_v28  ;;  %21237 = vmatmul.mubr.msk.f32.gmra.mrb[156].mxu0 %vm3881_vm2, %v23916_v60  ;;  %v30621_v57 = vld [vmem:[#allocation10_spill] sm:$0xff]  ;;  %v30626_v50 = vld [vmem:[#allocation15_spill] sm:$0xff] }
 0x377   : > { %30610 = vst [vmem:[#allocation88_spill] sm:$0xff] %v26453_v9  ;;  %30612 = vst [vmem:[#allocation38_spill] sm:$0xff] %v26458_v36  ;;  %v26476_v7 = vpack.c.bf16 %v13222_v19, %v13206_v21  ;;  %v26478_v17 = vpack.i.bf16 %v13222_v19, %v13206_v21  ;;  %21243 = vmatmul.mubr.msk.f32.gmra.mrb[156].mxu1 %vm3881_vm2, %v23916_v60  ;;  %11019 = vmatprep.mubr.f32.mxu0 %v30424_v37  ;;  %v30625_v28 = vld [vmem:[#allocation14_spill] sm:$0xff]  ;;  %v30627_v21 = vld [vmem:[#allocation12_spill] sm:$0xff] }
 0x378   : > { %30614 = vst [vmem:[#allocation39_spill] sm:$0xff] %v26462_v53  ;;  %30615 = vst [vmem:[#allocation101_spill] sm:$0xff] %v26464_v62  ;;  %11108 = vmatprep.mubr.f32.mxu1 %v30424_v37  ;;  %v30632_v41 = vld [vmem:[#allocation17_spill] sm:$0xff]  ;;  %v30633_v63 = vld [vmem:[#allocation22_spill] sm:$0xff] }
 0x379   : > { %30616 = vst [vmem:[#allocation102_spill] sm:$0xff] %v26466_v27  ;;  %30617 = vst [vmem:[#allocation103_spill] sm:$0xff] %v26468_v31  ;;  %v30634_v3 = vld [vmem:[#allocation23_spill] sm:$0xff]  ;;  %v30636_v56 = vld [vmem:[#allocation21_spill] sm:$0xff] }
 0x37a   : > { %30618 = vst [vmem:[#allocation104_spill] sm:$0xff] %v26470_v48  ;;  %30619 = vst [vmem:[#allocation105_spill] sm:$0xff] %v26476_v7  ;;  %21238 = vmatmul.mubr.msk.f32.gmra.mrb[158].mxu0 %vm3881_vm2, %v26352_v6  ;;  %v30637_v19 = vld [vmem:[#allocation49_spill] sm:$0xff] }
 0x37b   : > { %30620 = vst [vmem:[#allocation106_spill] sm:$0xff] %v26478_v17  ;;  %21244 = vmatmul.mubr.msk.f32.gmra.mrb[158].mxu1 %vm3881_vm2, %v26352_v6  ;;  %11179 = vmatprep.mubr.f32.mxu0 %v30424_v37  ;;  %v30638_v11 = vld [vmem:[#allocation41_spill] sm:$0xff]  ;;  %v30654_v17 = vld [vmem:[#allocation28_spill] sm:$0xff] }
 0x37c   : > { %11268 = vmatprep.mubr.f32.mxu1 %v30424_v37 }
 0x37e   : > { %21247 = vmatmul.mubr.msk.f32.vlgmr.msra.gmra.mrb[160].mxu0 %vm3881_vm2, %v26392_v5 }
 0x37f   : > { %21253 = vmatmul.mubr.msk.f32.vlgmr.msra.gmra.mrb[160].mxu1 %vm3881_vm2, %v26392_v5  ;;  %21258 = vmatpush1.msk.msra.mxu0 %vm3894_vm1, %v30475_v38  ;;  %v30624_v38 = vld [vmem:[#allocation9_spill] sm:$0xff] }
 0x380   : > { %21264 = vmatpush1.msk.msra.mxu1 %vm3894_vm1, %v30476_v15  ;;  %21269 = vmatprep.subr.msk.mxu0 %vm3894_vm1, %v30621_v57  ;;  %v30623_v15 = vld [vmem:[#allocation8_spill] sm:$0xff] }
 0x381   : > { %21275 = vmatprep.subr.msk.mxu1 %vm3894_vm1, %v30622_v16  ;;  %11185 = vmatprep.mubr.f32.mxu0 %v30424_v37  ;;  %v30640_v57 = vld [vmem:[#allocation40_spill] sm:$0xff]  ;;  %v30641_v16 = vld [vmem:[#allocation51_spill] sm:$0xff] }
 0x382   : > { %11274 = vmatprep.mubr.f32.mxu1 %v30424_v37  ;;  %21248 = vmatmul.mubr.msk.f32.gmra.mrb[162].mxu0 %vm3881_vm2, %v23915_v44 }
 0x383   : > { %21254 = vmatmul.mubr.msk.f32.gmra.mrb[162].mxu1 %vm3881_vm2, %v23915_v44  ;;  %11191 = vmatprep.mubr.f32.mxu0 %v30424_v37 }
 0x384   : > { %11280 = vmatprep.mubr.f32.mxu1 %v30424_v37 }
 0x386   : > { %21249 = vmatmul.mubr.msk.f32.gmra.mrb[164].mxu0 %vm3881_vm2, %v23916_v60 }
 0x387   : > { %21255 = vmatmul.mubr.msk.f32.gmra.mrb[164].mxu1 %vm3881_vm2, %v23916_v60  ;;  %11197 = vmatprep.mubr.f32.mxu0 %v30424_v37 }
 0x388   : > { %11286 = vmatprep.mubr.f32.mxu1 %v30424_v37 }
 0x38a   : > { %21250 = vmatmul.mubr.msk.f32.gmra.mrb[166].mxu0 %vm3881_vm2, %v26352_v6 }
 0x38b   : > { %21256 = vmatmul.mubr.msk.f32.gmra.mrb[166].mxu1 %vm3881_vm2, %v26352_v6  ;;  %11357 = vmatprep.mubr.f32.mxu0 %v30424_v37 }
 0x38c   : > { %11446 = vmatprep.mubr.f32.mxu1 %v30424_v37 }
 0x38e   : > { %21259 = vmatmul.mubr.msk.f32.vlgmr.msra.gmra.mrb[168].mxu0 %vm3881_vm2, %v26392_v5 }
 0x38f   : > { %21265 = vmatmul.mubr.msk.f32.vlgmr.msra.gmra.mrb[168].mxu1 %vm3881_vm2, %v26392_v5  ;;  %21270 = vmatpush1.msk.msra.mxu0 %vm3894_vm1, %v30623_v15  ;;  %v26548_v5 = vld [vmem:[%s30215_s2] sm:$0xff]  ;;  %v30642_v15 = vld [vmem:[#allocation43_spill] sm:$0xff] }
 0x390   : > { %21276 = vmatpush1.msk.msra.mxu1 %vm3894_vm1, %v30624_v38  ;;  %21281 = vmatprep.subr.msk.mxu0 %vm3894_vm1, %v30625_v28  ;;  %v26686_v38 = vld [vmem:[%s30215_s2 + $0x40] sm:$0xff]  ;;  %v30643_v28 = vld [vmem:[#allocation50_spill] sm:$0xff] }
 0x391   : > { %21287 = vmatprep.subr.msk.mxu1 %vm3894_vm1, %v30626_v50  ;;  %11363 = vmatprep.mubr.f32.mxu0 %v30424_v37  ;;  %v30644_v50 = vld [vmem:[#allocation42_spill] sm:$0xff] }
 0x392   : > { %11452 = vmatprep.mubr.f32.mxu1 %v30424_v37  ;;  %21260 = vmatmul.mubr.msk.f32.gmra.mrb[170].mxu0 %vm3881_vm2, %v23915_v44 }
 0x393   : > { %21266 = vmatmul.mubr.msk.f32.gmra.mrb[170].mxu1 %vm3881_vm2, %v23915_v44  ;;  %11369 = vmatprep.mubr.f32.mxu0 %v30424_v37  ;;  %v26567_v44 = vld [vmem:[%s30215_s2 + $0x8] sm:$0xff] }
 0x394   : > { %11458 = vmatprep.mubr.f32.mxu1 %v30424_v37 }
 0x396   : > { %21261 = vmatmul.mubr.msk.f32.gmra.mrb[172].mxu0 %vm3881_vm2, %v23916_v60 }
 0x397   : > { %21267 = vmatmul.mubr.msk.f32.gmra.mrb[172].mxu1 %vm3881_vm2, %v23916_v60  ;;  %11375 = vmatprep.mubr.f32.mxu0 %v30424_v37  ;;  %v30639_v60 = vld [vmem:[#allocation48_spill] sm:$0xff] }
 0x398   : > { %11464 = vmatprep.mubr.f32.mxu1 %v30424_v37 }
 0x39a   : > { %21262 = vmatmul.mubr.msk.f32.gmra.mrb[174].mxu0 %vm3881_vm2, %v26352_v6 }
 0x39b   : > { %21268 = vmatmul.mubr.msk.f32.gmra.mrb[174].mxu1 %vm3881_vm2, %v26352_v6  ;;  %11535 = vmatprep.mubr.f32.mxu0 %v30424_v37  ;;  %v30629_v6 = vld [vmem:[#allocation18_spill] sm:$0xff] }
 0x39c   : > { %11624 = vmatprep.mubr.f32.mxu1 %v30424_v37 }
 0x39e   : > { %21271 = vmatmul.mubr.msk.f32.vlgmr.msra.gmra.mrb[144].mxu0 %vm3881_vm2, %v26548_v5 }
 0x39f   : > { %21277 = vmatmul.mubr.msk.f32.vlgmr.msra.gmra.mrb[144].mxu1 %vm3881_vm2, %v26548_v5  ;;  %21282 = vmatpush1.msk.msra.mxu0 %vm3894_vm1, %v30627_v21  ;;  %v30646_v21 = vld [vmem:[#allocation45_spill] sm:$0xff] }
 0x3a0   : > { %21288 = vmatpush1.msk.msra.mxu1 %vm3894_vm1, %v30628_v45  ;;  %21293 = vmatprep.subr.msk.mxu0 %vm3894_vm1, %v30629_v6  ;;  %v26705_v45 = vld [vmem:[%s30215_s2 + $0x48] sm:$0xff]  ;;  %v26716_v6 = vld [vmem:[%s30215_s2 + $0x50] sm:$0xff] }
 0x3a1   : > { %21299 = vmatprep.subr.msk.mxu1 %vm3894_vm1, %v30630_v13  ;;  %11541 = vmatprep.mubr.f32.mxu0 %v30424_v37  ;;  %v26727_v13 = vld [vmem:[%s30215_s2 + $0x58] sm:$0xff] }
 0x3a2   : > { %11630 = vmatprep.mubr.f32.mxu1 %v30424_v37  ;;  %21272 = vmatmul.mubr.msk.f32.gmra.mrb[146].mxu0 %vm3881_vm2, %v26567_v44 }
 0x3a3   : > { %21278 = vmatmul.mubr.msk.f32.gmra.mrb[146].mxu1 %vm3881_vm2, %v26567_v44  ;;  %11547 = vmatprep.mubr.f32.mxu0 %v30424_v37 }
 0x3a4   : > { %11636 = vmatprep.mubr.f32.mxu1 %v30424_v37 }
 0x3a6   : > { %21273 = vmatmul.mubr.msk.f32.gmra.mrb[148].mxu0 %vm3881_vm2, %v26578_v12 }
 0x3a7   : > { %21279 = vmatmul.mubr.msk.f32.gmra.mrb[148].mxu1 %vm3881_vm2, %v26578_v12  ;;  %11553 = vmatprep.mubr.f32.mxu0 %v30424_v37 }
 0x3a8   : > { %11642 = vmatprep.mubr.f32.mxu1 %v30424_v37 }
 0x3aa   : > { %21274 = vmatmul.mubr.msk.f32.gmra.mrb[150].mxu0 %vm3881_vm2, %v23920_v23 }
 0x3ab   : > { %21280 = vmatmul.mubr.msk.f32.gmra.mrb[150].mxu1 %vm3881_vm2, %v23920_v23  ;;  %11713 = vmatprep.mubr.f32.mxu0 %v30424_v37 }
 0x3ac   : > { %11802 = vmatprep.mubr.f32.mxu1 %v30424_v37 }
 0x3ae   : > { %21283 = vmatmul.mubr.msk.f32.vlgmr.msra.gmra.mrb[152].mxu0 %vm3881_vm2, %v26548_v5 }
 0x3af   : > { %21289 = vmatmul.mubr.msk.f32.vlgmr.msra.gmra.mrb[152].mxu1 %vm3881_vm2, %v26548_v5  ;;  %21294 = vmatpush1.msk.msra.mxu0 %vm3894_vm1, %v30631_v40  ;;  %v30650_v40 = vld [vmem:[#allocation47_spill] sm:$0xff] }
 0x3b0   : > { %21300 = vmatpush1.msk.msra.mxu1 %vm3894_vm1, %v30632_v41  ;;  %21305 = vmatprep.subr.msk.mxu0 %vm3894_vm1, %v30633_v63 }
 0x3b1   : > { %21311 = vmatprep.subr.msk.mxu1 %vm3894_vm1, %v30634_v3  ;;  %11719 = vmatprep.mubr.f32.mxu0 %v30424_v37 }
 0x3b2   : > { %11808 = vmatprep.mubr.f32.mxu1 %v30424_v37  ;;  %21284 = vmatmul.mubr.msk.f32.gmra.mrb[154].mxu0 %vm3881_vm2, %v26567_v44 }
 0x3b3   : > { %21290 = vmatmul.mubr.msk.f32.gmra.mrb[154].mxu1 %vm3881_vm2, %v26567_v44  ;;  %11725 = vmatprep.mubr.f32.mxu0 %v30424_v37 }
 0x3b4   : > { %11814 = vmatprep.mubr.f32.mxu1 %v30424_v37 }
 0x3b6   : > { %21285 = vmatmul.mubr.msk.f32.gmra.mrb[156].mxu0 %vm3881_vm2, %v26578_v12 }
 0x3b7   : > { %21291 = vmatmul.mubr.msk.f32.gmra.mrb[156].mxu1 %vm3881_vm2, %v26578_v12  ;;  %11731 = vmatprep.mubr.f32.mxu0 %v30424_v37 }
 0x3b8   : > { %11820 = vmatprep.mubr.f32.mxu1 %v30424_v37 }
 0x3ba   : > { %21286 = vmatmul.mubr.msk.f32.gmra.mrb[158].mxu0 %vm3881_vm2, %v23920_v23 }
 0x3bb   : > { %21292 = vmatmul.mubr.msk.f32.gmra.mrb[158].mxu1 %vm3881_vm2, %v23920_v23  ;;  %11891 = vmatprep.mubr.f32.mxu0 %v30424_v37 }
 0x3bc   : > { %11980 = vmatprep.mubr.f32.mxu1 %v30424_v37 }
 0x3be   : > { %21295 = vmatmul.mubr.msk.f32.vlgmr.msra.gmra.mrb[160].mxu0 %vm3881_vm2, %v26548_v5 }
 0x3bf   : > { %21301 = vmatmul.mubr.msk.f32.vlgmr.msra.gmra.mrb[160].mxu1 %vm3881_vm2, %v26548_v5  ;;  %21306 = vmatpush1.msk.msra.mxu0 %vm3894_vm1, %v30635_v58 }
 0x3c0   : > { %21312 = vmatpush1.msk.msra.mxu1 %vm3894_vm1, %v30636_v56  ;;  %21317 = vmatprep.subr.msk.mxu0 %vm3894_vm1, %v30637_v19 }
 0x3c1   : > { %21323 = vmatprep.subr.msk.mxu1 %vm3894_vm1, %v30638_v11  ;;  %11897 = vmatprep.mubr.f32.mxu0 %v30424_v37 }
 0x3c2   : > { %11986 = vmatprep.mubr.f32.mxu1 %v30424_v37  ;;  %21296 = vmatmul.mubr.msk.f32.gmra.mrb[162].mxu0 %vm3881_vm2, %v26567_v44 }
 0x3c3   : > { %21302 = vmatmul.mubr.msk.f32.gmra.mrb[162].mxu1 %vm3881_vm2, %v26567_v44  ;;  %11903 = vmatprep.mubr.f32.mxu0 %v30424_v37 }
 0x3c4   : > { %11992 = vmatprep.mubr.f32.mxu1 %v30424_v37 }
 0x3c6   : > { %21297 = vmatmul.mubr.msk.f32.gmra.mrb[164].mxu0 %vm3881_vm2, %v26578_v12 }
 0x3c7   : > { %21303 = vmatmul.mubr.msk.f32.gmra.mrb[164].mxu1 %vm3881_vm2, %v26578_v12  ;;  %11909 = vmatprep.mubr.f32.mxu0 %v30424_v37 }
 0x3c8   : > { %11998 = vmatprep.mubr.f32.mxu1 %v30424_v37 }
 0x3ca   : > { %21298 = vmatmul.mubr.msk.f32.gmra.mrb[166].mxu0 %vm3881_vm2, %v23920_v23 }
 0x3cb   : > { %21304 = vmatmul.mubr.msk.f32.gmra.mrb[166].mxu1 %vm3881_vm2, %v23920_v23  ;;  %12069 = vmatprep.mubr.f32.mxu0 %v30424_v37 }
 0x3cc   : > { %12158 = vmatprep.mubr.f32.mxu1 %v30424_v37 }
 0x3ce   : > { %21307 = vmatmul.mubr.msk.f32.vlgmr.msra.gmra.mrb[168].mxu0 %vm3881_vm2, %v26548_v5 }
 0x3cf   : > { %21313 = vmatmul.mubr.msk.f32.vlgmr.msra.gmra.mrb[168].mxu1 %vm3881_vm2, %v26548_v5  ;;  %21318 = vmatpush1.msk.msra.mxu0 %vm3894_vm1, %v30639_v60  ;;  %v30645_v5 = vld [vmem:[#allocation53_spill] sm:$0xff] }
 0x3d0   : > { %21324 = vmatpush1.msk.msra.mxu1 %vm3894_vm1, %v30640_v57  ;;  %21329 = vmatprep.subr.msk.mxu0 %vm3894_vm1, %v30641_v16 }
 0x3d1   : > { %21335 = vmatprep.subr.msk.mxu1 %vm3894_vm1, %v30642_v15  ;;  %12075 = vmatprep.mubr.f32.mxu0 %v30424_v37 }
 0x3d2   : > { %12164 = vmatprep.mubr.f32.mxu1 %v30424_v37  ;;  %21308 = vmatmul.mubr.msk.f32.gmra.mrb[170].mxu0 %vm3881_vm2, %v26567_v44 }
 0x3d3   : > { %21314 = vmatmul.mubr.msk.f32.gmra.mrb[170].mxu1 %vm3881_vm2, %v26567_v44  ;;  %12081 = vmatprep.mubr.f32.mxu0 %v30424_v37  ;;  %v30647_v44 = vld [vmem:[#allocation52_spill] sm:$0xff] }
 0x3d4   : > { %12170 = vmatprep.mubr.f32.mxu1 %v30424_v37 }
 0x3d6   : > { %21309 = vmatmul.mubr.msk.f32.gmra.mrb[172].mxu0 %vm3881_vm2, %v26578_v12 }
 0x3d7   : > { %21315 = vmatmul.mubr.msk.f32.gmra.mrb[172].mxu1 %vm3881_vm2, %v26578_v12  ;;  %12087 = vmatprep.mubr.f32.mxu0 %v30424_v37  ;;  %v30648_v12 = vld [vmem:[#allocation44_spill] sm:$0xff] }
 0x3d8   : > { %12176 = vmatprep.mubr.f32.mxu1 %v30424_v37 }
 0x3da   : > { %21310 = vmatmul.mubr.msk.f32.gmra.mrb[174].mxu0 %vm3881_vm2, %v23920_v23 }
 0x3db   : > { %21316 = vmatmul.mubr.msk.f32.gmra.mrb[174].mxu1 %vm3881_vm2, %v23920_v23  ;;  %12295 = vmatprep.mubr.f32.mxu0 %v30424_v37  ;;  %v30649_v23 = vld [vmem:[#allocation55_spill] sm:$0xff] }
 0x3dc   : > { %12384 = vmatprep.mubr.f32.mxu1 %v30424_v37 }
 0x3de   : > { %21319 = vmatmul.mubr.msk.f32.vlgmr.msra.gmra.mrb[144].mxu0 %vm3881_vm2, %v26686_v38 }
 0x3df   : > { %21325 = vmatmul.mubr.msk.f32.vlgmr.msra.gmra.mrb[144].mxu1 %vm3881_vm2, %v26686_v38  ;;  %21330 = vmatpush1.msk.msra.mxu0 %vm3894_vm1, %v30643_v28 }
 0x3e0   : > { %21336 = vmatpush1.msk.msra.mxu1 %vm3894_vm1, %v30644_v50  ;;  %21341 = vmatprep.subr.msk.mxu0 %vm3894_vm1, %v30645_v5 }
 0x3e1   : > { %21347 = vmatprep.subr.msk.mxu1 %vm3894_vm1, %v30646_v21  ;;  %12301 = vmatprep.mubr.f32.mxu0 %v30424_v37 }
 0x3e2   : > { %12390 = vmatprep.mubr.f32.mxu1 %v30424_v37  ;;  %21320 = vmatmul.mubr.msk.f32.gmra.mrb[146].mxu0 %vm3881_vm2, %v26705_v45 }
 0x3e3   : > { %21326 = vmatmul.mubr.msk.f32.gmra.mrb[146].mxu1 %vm3881_vm2, %v26705_v45  ;;  %12307 = vmatprep.mubr.f32.mxu0 %v30424_v37 }
 0x3e4   : > { %12396 = vmatprep.mubr.f32.mxu1 %v30424_v37 }
 0x3e6   : > { %21321 = vmatmul.mubr.msk.f32.gmra.mrb[148].mxu0 %vm3881_vm2, %v26716_v6 }
 0x3e7   : > { %21327 = vmatmul.mubr.msk.f32.gmra.mrb[148].mxu1 %vm3881_vm2, %v26716_v6  ;;  %12313 = vmatprep.mubr.f32.mxu0 %v30424_v37 }
 0x3e8   : > { %12402 = vmatprep.mubr.f32.mxu1 %v30424_v37  ;;  %v26747_v41 = vpop.f32.mrb[112].mxu0 }
 0x3e9   : > { %v26750_v63 = vpop.f32.mrb[112].mxu1  ;;  %v26753_v3 = vpop.f32.mrb[113].mxu0 }
 0x3ea   : > { %21322 = vmatmul.mubr.msk.f32.gmra.mrb[150].mxu0 %vm3881_vm2, %v26727_v13  ;;  %v26757_v58 = vpop.f32.mrb[113].mxu1 }
 0x3eb   : > { %21328 = vmatmul.mubr.msk.f32.gmra.mrb[150].mxu1 %vm3881_vm2, %v26727_v13  ;;  %12473 = vmatprep.mubr.f32.mxu0 %v30424_v37 }
 0x3ec   : > { %12562 = vmatprep.mubr.f32.mxu1 %v30424_v37  ;;  %v26763_v56 = vpop.f32.mrb[114].mxu0 }
 0x3ed   : > { %v26765_v19 = vpop.f32.mrb[114].mxu1  ;;  %v26767_v11 = vpop.f32.mrb[115].mxu0 }
 0x3ee   : > { %21331 = vmatmul.mubr.msk.f32.vlgmr.msra.gmra.mrb[152].mxu0 %vm3881_vm2, %v26686_v38  ;;  %v26771_v60 = vpop.f32.mrb[115].mxu1 }
 0x3ef   : > { %21337 = vmatmul.mubr.msk.f32.vlgmr.msra.gmra.mrb[152].mxu1 %vm3881_vm2, %v26686_v38  ;;  %21342 = vmatpush1.msk.msra.mxu0 %vm3894_vm1, %v30647_v44 }
 0x3f0   : > { %21348 = vmatpush1.msk.msra.mxu1 %vm3894_vm1, %v30648_v12  ;;  %21353 = vmatprep.subr.msk.mxu0 %vm3894_vm1, %v30649_v23  ;;  %v26777_v57 = vpop.f32.mrb[116].mxu0  ;;  %v30651_v12 = vld [vmem:[#allocation54_spill] sm:$0xff] }
 0x3f1   : > { %21359 = vmatprep.subr.msk.mxu1 %vm3894_vm1, %v30650_v40  ;;  %12479 = vmatprep.mubr.f32.mxu0 %v30424_v37  ;;  %v26779_v16 = vpop.f32.mrb[116].mxu1  ;;  %v26781_v15 = vpop.f32.mrb[117].mxu0  ;;  %v30652_v23 = vld [vmem:[#allocation46_spill] sm:$0xff] }
 0x3f2   : > { %12568 = vmatprep.mubr.f32.mxu1 %v30424_v37  ;;  %21332 = vmatmul.mubr.msk.f32.gmra.mrb[154].mxu0 %vm3881_vm2, %v26705_v45  ;;  %v26785_v28 = vpop.f32.mrb[117].mxu1  ;;  %v30653_v40 = vld [vmem:[#allocation30_spill] sm:$0xff] }
 0x3f3   : > { %21338 = vmatmul.mubr.msk.f32.gmra.mrb[154].mxu1 %vm3881_vm2, %v26705_v45  ;;  %12485 = vmatprep.mubr.f32.mxu0 %v30424_v37 }
 0x3f4   : > { %12574 = vmatprep.mubr.f32.mxu1 %v30424_v37  ;;  %v26791_v50 = vpop.f32.mrb[118].mxu0 }
 0x3f5   : > { %v26793_v5 = vpop.f32.mrb[118].mxu1  ;;  %v26795_v21 = vpop.f32.mrb[119].mxu0 }
 0x3f6   : > { %21333 = vmatmul.mubr.msk.f32.gmra.mrb[156].mxu0 %vm3881_vm2, %v26716_v6  ;;  %v26799_v44 = vpop.f32.mrb[119].mxu1 }
 0x3f7   : > { %21339 = vmatmul.mubr.msk.f32.gmra.mrb[156].mxu1 %vm3881_vm2, %v26716_v6  ;;  %12491 = vmatprep.mubr.f32.mxu0 %v30424_v37 }
 0x3f8   : > { %12580 = vmatprep.mubr.f32.mxu1 %v30424_v37  ;;  %v26809_v48 = vpop.f32.mrb[120].mxu0 }
 0x3f9   : > { %v26812_v31 = vpop.f32.mrb[120].mxu1  ;;  %v26815_v53 = vpop.f32.mrb[121].mxu0 }
 0x3fa   : > { %21334 = vmatmul.mubr.msk.f32.gmra.mrb[158].mxu0 %vm3881_vm2, %v26727_v13 }
 0x3fb   : > { %21340 = vmatmul.mubr.msk.f32.gmra.mrb[158].mxu1 %vm3881_vm2, %v26727_v13  ;;  %12651 = vmatprep.mubr.f32.mxu0 %v30424_v37 }
 0x3fc   : > { %12740 = vmatprep.mubr.f32.mxu1 %v30424_v37 }
 0x3fe   : > { %21343 = vmatmul.mubr.msk.f32.vlgmr.msra.gmra.mrb[160].mxu0 %vm3881_vm2, %v26686_v38 }
 0x3ff   : > { %21349 = vmatmul.mubr.msk.f32.vlgmr.msra.gmra.mrb[160].mxu1 %vm3881_vm2, %v26686_v38  ;;  %21354 = vmatpush1.msk.msra.mxu0 %vm3894_vm1, %v30651_v12  ;;  %v26819_v12 = vpop.f32.mrb[121].mxu1 }
 0x400   : > { %21360 = vmatpush1.msk.msra.mxu1 %vm3894_vm1, %v30652_v23  ;;  %22110 = vmatprep.subr.bf16.mxu0 %v30653_v40  ;;  %v26825_v23 = vpop.f32.mrb[122].mxu0  ;;  %v26827_v40 = vpop.f32.mrb[122].mxu1 }
 0x401   : > { %22118 = vmatprep.subr.bf16.mxu1 %v30654_v17  ;;  %12657 = vmatprep.mubr.f32.mxu0 %v30424_v37  ;;  %v26829_v17 = vpop.f32.mrb[123].mxu0  ;;  %v26833_v9 = vpop.f32.mrb[123].mxu1 }
 0x402   : > { %12746 = vmatprep.mubr.f32.mxu1 %v30424_v37  ;;  %21344 = vmatmul.mubr.msk.f32.gmra.mrb[162].mxu0 %vm3881_vm2, %v26705_v45  ;;  %v26839_v2 = vpop.f32.mrb[124].mxu0  ;;  %v26841_v36 = vpop.f32.mrb[124].mxu1 }
 0x403   : > { %21350 = vmatmul.mubr.msk.f32.gmra.mrb[162].mxu1 %vm3881_vm2, %v26705_v45  ;;  %12663 = vmatprep.mubr.f32.mxu0 %v30424_v37  ;;  %30655 = vst [vmem:[#allocation10_spill] sm:$0xff] %v26839_v2  ;;  %30656 = vst [vmem:[#allocation11_spill] sm:$0xff] %v26841_v36  ;;  %v26843_v10 = vpop.f32.mrb[125].mxu0  ;;  %v26847_v46 = vpop.f32.mrb[125].mxu1  ;;  %v30663_v36 = vld [vmem:[#allocation31_spill] sm:$0xff] }
 0x404   : > { %12752 = vmatprep.mubr.f32.mxu1 %v30424_v37  ;;  %30657 = vst [vmem:[#allocation8_spill] sm:$0xff] %v26843_v10  ;;  %30658 = vst [vmem:[#allocation9_spill] sm:$0xff] %v26847_v46  ;;  %v26853_v14 = vpop.f32.mrb[126].mxu0  ;;  %v30662_v46 = vld [vmem:[#allocation25_spill] sm:$0xff] }
 0x405   : > { %30659 = vst [vmem:[#allocation14_spill] sm:$0xff] %v26853_v14  ;;  %v26855_v39 = vpop.f32.mrb[126].mxu1  ;;  %v26857_v2 = vpop.f32.mrb[127].mxu0 }
 0x406   : > { %21345 = vmatmul.mubr.msk.f32.gmra.mrb[164].mxu0 %vm3881_vm2, %v26716_v6  ;;  %30660 = vst [vmem:[#allocation15_spill] sm:$0xff] %v26857_v2  ;;  %v26861_v10 = vpop.f32.mrb[127].mxu1 }
 0x407   : > { %21351 = vmatmul.mubr.msk.f32.gmra.mrb[164].mxu1 %vm3881_vm2, %v26716_v6  ;;  %12669 = vmatprep.mubr.f32.mxu0 %v30424_v37  ;;  %30661 = vst [vmem:[#allocation12_spill] sm:$0xff] %v26861_v10 }
 0x408   : > { %12758 = vmatprep.mubr.f32.mxu1 %v30424_v37  ;;  %v26869_v14 = vpop.f32.mrb[128].mxu0 }
 0x409   : > { %v26872_v2 = vpop.f32.mrb[128].mxu1  ;;  %v26875_v10 = vpop.f32.mrb[129].mxu0 }
 0x40a   : > { %21346 = vmatmul.mubr.msk.f32.gmra.mrb[166].mxu0 %vm3881_vm2, %v26727_v13 }
 0x40b   : > { %21352 = vmatmul.mubr.msk.f32.gmra.mrb[166].mxu1 %vm3881_vm2, %v26727_v13  ;;  %12829 = vmatprep.mubr.f32.mxu0 %v30424_v37 }
 0x40c   : > { %12918 = vmatprep.mubr.f32.mxu1 %v30424_v37 }
 0x40e   : > { %21355 = vmatmul.mubr.msk.f32.vlgmr.msra.gmra.mrb[168].mxu0 %vm3881_vm2, %v26686_v38 }
 0x40f   : > { %21361 = vmatmul.mubr.msk.f32.vlgmr.msra.gmra.mrb[168].mxu1 %vm3881_vm2, %v26686_v38  ;;  %22112 = vmatpush1.bf16.msra.mxu0 %v30662_v46  ;;  %v26879_v38 = vpop.f32.mrb[129].mxu1 }
 0x410   : > { %22120 = vmatpush1.bf16.msra.mxu1 %v30663_v36  ;;  %22114 = vmatprep.subr.bf16.mxu0 %v25947_v32  ;;  %v26887_v32 = vpop.f32.mrb[130].mxu0  ;;  %v26890_v46 = vpop.f32.mrb[130].mxu1 }
 0x411   : > { %22122 = vmatprep.subr.bf16.mxu1 %v25958_v35  ;;  %12835 = vmatprep.mubr.f32.mxu0 %v30424_v37  ;;  %v26893_v35 = vpop.f32.mrb[131].mxu0 }
 0x412   : > { %12924 = vmatprep.mubr.f32.mxu1 %v30424_v37  ;;  %21356 = vmatmul.mubr.msk.f32.gmra.mrb[170].mxu0 %vm3881_vm2, %v26705_v45 }
 0x413   : > { %21362 = vmatmul.mubr.msk.f32.gmra.mrb[170].mxu1 %vm3881_vm2, %v26705_v45  ;;  %22116 = vmatpush1.bf16.msra.mxu0 %v25939_v43  ;;  %v26897_v45 = vpop.f32.mrb[131].mxu1 }
 0x414   : > { %22124 = vmatpush1.bf16.msra.mxu1 %v25949_v29  ;;  %22126 = vmatprep.subr.bf16.mxu0 %v26023_v1  ;;  %v26903_v1 = vpop.f32.mrb[132].mxu0  ;;  %v26905_v43 = vpop.f32.mrb[132].mxu1 }
 0x415   : > { %22134 = vmatprep.subr.bf16.mxu1 %v26035_v42  ;;  %12841 = vmatprep.mubr.f32.mxu0 %v30424_v37  ;;  %30664 = vst [vmem:[#allocation13_spill] sm:$0xff] %v26905_v43  ;;  %v26907_v42 = vpop.f32.mrb[133].mxu0  ;;  %v26911_v29 = vpop.f32.mrb[133].mxu1 }
 0x416   : > { %12930 = vmatprep.mubr.f32.mxu1 %v30424_v37  ;;  %21357 = vmatmul.mubr.msk.f32.gmra.mrb[172].mxu0 %vm3881_vm2, %v26716_v6  ;;  %30665 = vst [vmem:[#allocation18_spill] sm:$0xff] %v26907_v42  ;;  %30666 = vst [vmem:[#allocation19_spill] sm:$0xff] %v26911_v29  ;;  %v26922_v36 = vpop.f32.mrb[134].mxu0  ;;  %v26924_v42 = vpop.f32.mrb[134].mxu1  ;;  %v26938_v29 = vld [vmem:[%s30217_s4 + $0x48] sm:$0xff] }
 0x417   : > { %21363 = vmatmul.mubr.msk.f32.gmra.mrb[172].mxu1 %vm3881_vm2, %v26716_v6  ;;  %12847 = vmatprep.mubr.f32.mxu0 %v30424_v37  ;;  %v26919_v6 = vld [vmem:[%s30217_s4 + $0x40] sm:$0xff]  ;;  %30667 = vst [vmem:[#allocation16_spill] sm:$0xff] %v26924_v42  ;;  %v26926_v43 = vpop.f32.mrb[135].mxu0 }
 0x418   : > { %12936 = vmatprep.mubr.f32.mxu1 %v30424_v37  ;;  %30668 = vst [vmem:[#allocation17_spill] sm:$0xff] %v26926_v43  ;;  %v26943_v43 = vpop.f32.mrb[136].mxu0 }
 0x41a   : > { %21358 = vmatmul.mubr.msk.f32.gmra.mrb[174].mxu0 %vm3881_vm2, %v26727_v13 }
 0x41b   : > { %21364 = vmatmul.mubr.msk.f32.gmra.mrb[174].mxu1 %vm3881_vm2, %v26727_v13  ;;  %14093 = vmatprep.mubr.f32.mxu0 %v30424_v37  ;;  %v26930_v13 = vpop.f32.mrb[135].mxu1 }
 0x41c   : > { %14206 = vmatprep.mubr.f32.mxu1 %v30424_v37  ;;  %30669 = vst [vmem:[#allocation22_spill] sm:$0xff] %v26930_v13  ;;  %v26946_v13 = vpop.f32.mrb[136].mxu1 }
 0x41d   : > { %v26953_v42 = vpop.f32.mrb[137].mxu1 }
 0x41e   : > { %21381 = vmatmul.mubr.msk.f32.vlgmr.msra.gmra.mrb[176].mxu0 %vm14004_vm3, %v26919_v6  ;;  %30670 = vst [vmem:[#allocation23_spill] sm:$0xff] %v26953_v42 }
 0x41f   : > { %21389 = vmatmul.mubr.msk.f32.vlgmr.msra.gmra.mrb[176].mxu1 %vm14004_vm3, %v26919_v6  ;;  %22128 = vmatpush1.bf16.msra.mxu0 %v26001_v49  ;;  %v26949_v49 = vpop.f32.mrb[137].mxu0 }
 0x420   : > { %22136 = vmatpush1.bf16.msra.mxu1 %v26013_v52  ;;  %22130 = vmatprep.subr.bf16.mxu0 %v26111_v47  ;;  %v26961_v47 = vld [vmem:[%s30217_s4 + $0x50] sm:$0xff]  ;;  %v26969_v52 = vpop.f32.mrb[138].mxu1 }
 0x421   : > { %22138 = vmatprep.subr.bf16.mxu1 %v26124_v59  ;;  %14099 = vmatprep.mubr.f32.mxu0 %v30424_v37  ;;  %v26966_v59 = vpop.f32.mrb[138].mxu0  ;;  %30672 = vst [vmem:[#allocation21_spill] sm:$0xff] %v26969_v52  ;;  %v26976_v42 = vpop.f32.mrb[139].mxu1  ;;  %v27003_v52 = vld [vmem:[%s30217_s4 + $0x60] sm:$0xff] }
 0x422   : > { %14212 = vmatprep.mubr.f32.mxu1 %v30424_v37  ;;  %21382 = vmatmul.mubr.msk.f32.gmra.mrb[178].mxu0 %vm14004_vm3, %v26938_v29  ;;  %30671 = vst [vmem:[#allocation20_spill] sm:$0xff] %v26966_v59  ;;  %30674 = vst [vmem:[#allocation41_spill] sm:$0xff] %v26976_v42  ;;  %v27022_v59 = vld [vmem:[%s30217_s4 + $0x68] sm:$0xff] }
 0x423   : > { %21390 = vmatmul.mubr.msk.f32.gmra.mrb[178].mxu1 %vm14004_vm3, %v26938_v29  ;;  %22132 = vmatpush1.bf16.msra.mxu0 %v26089_v0  ;;  %v26972_v0 = vpop.f32.mrb[139].mxu0 }
 0x424   : > { %22140 = vmatpush1.bf16.msra.mxu1 %v26101_v34  ;;  %22142 = vmatprep.subr.bf16.mxu0 %v26202_v55  ;;  %30673 = vst [vmem:[#allocation49_spill] sm:$0xff] %v26972_v0  ;;  %v26984_v55 = vld [vmem:[%s30217_s4 + $0x58] sm:$0xff]  ;;  %v26989_v34 = vpop.f32.mrb[140].mxu1 }
 0x425   : > { %22150 = vmatprep.subr.bf16.mxu1 %v26214_v8  ;;  %14105 = vmatprep.mubr.f32.mxu0 %v30424_v37  ;;  %v26987_v8 = vpop.f32.mrb[140].mxu0  ;;  %30676 = vst [vmem:[#allocation40_spill] sm:$0xff] %v26989_v34  ;;  %v26995_v42 = vpop.f32.mrb[141].mxu1 }
 0x426   : > { %14218 = vmatprep.mubr.f32.mxu1 %v30424_v37  ;;  %21383 = vmatmul.mubr.msk.f32.gmra.mrb[180].mxu0 %vm14004_vm3, %v26961_v47  ;;  %30675 = vst [vmem:[#allocation48_spill] sm:$0xff] %v26987_v8  ;;  %v26991_v0 = vpop.f32.mrb[141].mxu0  ;;  %30678 = vst [vmem:[#allocation43_spill] sm:$0xff] %v26995_v42 }
 0x427   : > { %21391 = vmatmul.mubr.msk.f32.gmra.mrb[180].mxu1 %vm14004_vm3, %v26961_v47  ;;  %14111 = vmatprep.mubr.f32.mxu0 %v30424_v37  ;;  %30677 = vst [vmem:[#allocation51_spill] sm:$0xff] %v26991_v0  ;;  %v27006_v34 = vpop.f32.mrb[142].mxu0  ;;  %v27008_v0 = vpop.f32.mrb[142].mxu1 }
 0x428   : > { %14224 = vmatprep.mubr.f32.mxu1 %v30424_v37  ;;  %v27010_v8 = vpop.f32.mrb[143].mxu0  ;;  %v27014_v42 = vpop.f32.mrb[143].mxu1 }
 0x429   : > { %30679 = vst [vmem:[#allocation50_spill] sm:$0xff] %v27010_v8  ;;  %30680 = vst [vmem:[#allocation42_spill] sm:$0xff] %v27014_v42  ;;  %v27033_v42 = vld [vmem:[%s30217_s4 + $0x70] sm:$0xff]  ;;  %v27044_v8 = vld [vmem:[%s30217_s4 + $0x78] sm:$0xff] }
 0x42a   : > { %21384 = vmatmul.mubr.msk.f32.gmra.mrb[182].mxu0 %vm14004_vm3, %v26984_v55 }
 0x42b   : > { %21392 = vmatmul.mubr.msk.f32.gmra.mrb[182].mxu1 %vm14004_vm3, %v26984_v55  ;;  %14117 = vmatprep.mubr.f32.mxu0 %v30424_v37 }
 0x42c   : > { %14230 = vmatprep.mubr.f32.mxu1 %v30424_v37 }
 0x42e   : > { %21385 = vmatmul.mubr.msk.f32.gmra.mrb[184].mxu0 %vm14004_vm3, %v27003_v52 }
 0x42f   : > { %21393 = vmatmul.mubr.msk.f32.gmra.mrb[184].mxu1 %vm14004_vm3, %v27003_v52  ;;  %14123 = vmatprep.mubr.f32.mxu0 %v30424_v37 }
 0x430   : > { %14236 = vmatprep.mubr.f32.mxu1 %v30424_v37 }
 0x432   : > { %21386 = vmatmul.mubr.msk.f32.gmra.mrb[186].mxu0 %vm14004_vm3, %v27022_v59 }
 0x433   : > { %21394 = vmatmul.mubr.msk.f32.gmra.mrb[186].mxu1 %vm14004_vm3, %v27022_v59  ;;  %14129 = vmatprep.mubr.f32.mxu0 %v30424_v37 }
 0x434   : > { %14242 = vmatprep.mubr.f32.mxu1 %v30424_v37 }
 0x436   : > { %21387 = vmatmul.mubr.msk.f32.gmra.mrb[188].mxu0 %vm14004_vm3, %v27033_v42 }
 0x437   : > { %21395 = vmatmul.mubr.msk.f32.gmra.mrb[188].mxu1 %vm14004_vm3, %v27033_v42  ;;  %14135 = vmatprep.mubr.f32.mxu0 %v30424_v37 }
 0x438   : > { %14248 = vmatprep.mubr.f32.mxu1 %v30424_v37 }
 0x43a   : > { %21388 = vmatmul.mubr.msk.f32.gmra.mrb[190].mxu0 %vm14004_vm3, %v27044_v8 }
 0x43b   : > { %21396 = vmatmul.mubr.msk.f32.gmra.mrb[190].mxu1 %vm14004_vm3, %v27044_v8  ;;  %14319 = vmatprep.mubr.f32.mxu0 %v30424_v37 }
 0x43c   : > { %14432 = vmatprep.mubr.f32.mxu1 %v30424_v37 }
 0x43e   : > { %21397 = vmatmul.mubr.msk.f32.vlgmr.msra.gmra.mrb[192].mxu0 %vm14004_vm3, %v26919_v6 }
 0x43f   : > { %21405 = vmatmul.mubr.msk.f32.vlgmr.msra.gmra.mrb[192].mxu1 %vm14004_vm3, %v26919_v6  ;;  %22144 = vmatpush1.bf16.msra.mxu0 %v26178_v51 }
 0x440   : > { %22152 = vmatpush1.bf16.msra.mxu1 %v26190_v61  ;;  %22146 = vmatprep.subr.bf16.mxu0 %v26297_v25 }
 0x441   : > { %22154 = vmatprep.subr.bf16.mxu1 %v26310_v4  ;;  %14325 = vmatprep.mubr.f32.mxu0 %v30424_v37 }
 0x442   : > { %14438 = vmatprep.mubr.f32.mxu1 %v30424_v37  ;;  %21398 = vmatmul.mubr.msk.f32.gmra.mrb[194].mxu0 %vm14004_vm3, %v26938_v29 }
 0x443   : > { %21406 = vmatmul.mubr.msk.f32.gmra.mrb[194].mxu1 %vm14004_vm3, %v26938_v29  ;;  %22148 = vmatpush1.bf16.msra.mxu0 %v26273_v18 }
 0x444   : > { %22156 = vmatpush1.bf16.msra.mxu1 %v26285_v20  ;;  %22158 = vmatprep.subr.bf16.mxu0 %v26385_v24 }
 0x445   : > { %22166 = vmatprep.subr.bf16.mxu1 %v26398_v33  ;;  %14331 = vmatprep.mubr.f32.mxu0 %v30424_v37 }
 0x446   : > { %14444 = vmatprep.mubr.f32.mxu1 %v30424_v37  ;;  %21399 = vmatmul.mubr.msk.f32.gmra.mrb[196].mxu0 %vm14004_vm3, %v26961_v47 }
 0x447   : > { %21407 = vmatmul.mubr.msk.f32.gmra.mrb[196].mxu1 %vm14004_vm3, %v26961_v47  ;;  %14337 = vmatprep.mubr.f32.mxu0 %v30424_v37 }
 0x448   : > { %14450 = vmatprep.mubr.f32.mxu1 %v30424_v37 }
 0x44a   : > { %21400 = vmatmul.mubr.msk.f32.gmra.mrb[198].mxu0 %vm14004_vm3, %v26984_v55 }
 0x44b   : > { %21408 = vmatmul.mubr.msk.f32.gmra.mrb[198].mxu1 %vm14004_vm3, %v26984_v55  ;;  %14343 = vmatprep.mubr.f32.mxu0 %v30424_v37 }
 0x44c   : > { %14456 = vmatprep.mubr.f32.mxu1 %v30424_v37 }
 0x44e   : > { %21401 = vmatmul.mubr.msk.f32.gmra.mrb[200].mxu0 %vm14004_vm3, %v27003_v52 }
 0x44f   : > { %21409 = vmatmul.mubr.msk.f32.gmra.mrb[200].mxu1 %vm14004_vm3, %v27003_v52  ;;  %14349 = vmatprep.mubr.f32.mxu0 %v30424_v37 }
 0x450   : > { %14462 = vmatprep.mubr.f32.mxu1 %v30424_v37 }
 0x452   : > { %21402 = vmatmul.mubr.msk.f32.gmra.mrb[202].mxu0 %vm14004_vm3, %v27022_v59 }
 0x453   : > { %21410 = vmatmul.mubr.msk.f32.gmra.mrb[202].mxu1 %vm14004_vm3, %v27022_v59  ;;  %14355 = vmatprep.mubr.f32.mxu0 %v30424_v37 }
 0x454   : > { %14468 = vmatprep.mubr.f32.mxu1 %v30424_v37 }
 0x456   : > { %21403 = vmatmul.mubr.msk.f32.gmra.mrb[204].mxu0 %vm14004_vm3, %v27033_v42 }
 0x457   : > { %21411 = vmatmul.mubr.msk.f32.gmra.mrb[204].mxu1 %vm14004_vm3, %v27033_v42  ;;  %14361 = vmatprep.mubr.f32.mxu0 %v30424_v37 }
 0x458   : > { %14474 = vmatprep.mubr.f32.mxu1 %v30424_v37 }
 0x45a   : > { %21404 = vmatmul.mubr.msk.f32.gmra.mrb[206].mxu0 %vm14004_vm3, %v27044_v8 }
 0x45b   : > { %21412 = vmatmul.mubr.msk.f32.gmra.mrb[206].mxu1 %vm14004_vm3, %v27044_v8  ;;  %14545 = vmatprep.mubr.f32.mxu0 %v30424_v37 }
 0x45c   : > { %14658 = vmatprep.mubr.f32.mxu1 %v30424_v37 }
 0x45e   : > { %21413 = vmatmul.mubr.msk.f32.vlgmr.msra.gmra.mrb[208].mxu0 %vm14004_vm3, %v26919_v6 }
 0x45f   : > { %21421 = vmatmul.mubr.msk.f32.vlgmr.msra.gmra.mrb[208].mxu1 %vm14004_vm3, %v26919_v6  ;;  %22160 = vmatpush1.bf16.msra.mxu0 %v26371_v22 }
 0x460   : > { %22168 = vmatpush1.bf16.msra.mxu1 %v26379_v30  ;;  %22162 = vmatprep.subr.bf16.mxu0 %v26466_v27 }
 0x461   : > { %22170 = vmatprep.subr.bf16.mxu1 %v26476_v7  ;;  %14664 = vmatprep.mubr.f32.mxu1 %v30424_v37 }
 0x462   : > { %14551 = vmatprep.mubr.f32.mxu0 %v30424_v37 }
 0x463   : > { %22164 = vmatpush1.bf16.msra.mxu0 %v26455_v54  ;;  %21422 = vmatmul.mubr.msk.f32.gmra.mrb[210].mxu1 %vm14004_vm3, %v26938_v29 }
 0x464   : > { %22172 = vmatpush1.bf16.msra.mxu1 %v26464_v62  ;;  %14670 = vmatprep.mubr.f32.mxu1 %v30424_v37  ;;  %v30681_v62 = vld [vmem:[#allocation26_spill] sm:$0xff] }
 0x465   : > { %21414 = vmatmul.mubr.msk.f32.gmra.mrb[210].mxu0 %vm14004_vm3, %v26938_v29 }
 0x466   : > { %14557 = vmatprep.mubr.f32.mxu0 %v30424_v37 }
 0x467   : > { %21423 = vmatmul.mubr.msk.f32.gmra.mrb[212].mxu1 %vm14004_vm3, %v26961_v47 }
 0x468   : > { %14676 = vmatprep.mubr.f32.mxu1 %v30424_v37 }
 0x469   : > { %21415 = vmatmul.mubr.msk.f32.gmra.mrb[212].mxu0 %vm14004_vm3, %v26961_v47 }
 0x46a   : > { %14563 = vmatprep.mubr.f32.mxu0 %v30424_v37 }
 0x46b   : > { %21424 = vmatmul.mubr.msk.f32.gmra.mrb[214].mxu1 %vm14004_vm3, %v26984_v55 }
 0x46c   : > { %14682 = vmatprep.mubr.f32.mxu1 %v30424_v37 }
 0x46d   : > { %21416 = vmatmul.mubr.msk.f32.gmra.mrb[214].mxu0 %vm14004_vm3, %v26984_v55 }
 0x46e   : > { %14569 = vmatprep.mubr.f32.mxu0 %v30424_v37 }
 0x46f   : > { %21425 = vmatmul.mubr.msk.f32.gmra.mrb[216].mxu1 %vm14004_vm3, %v27003_v52 }
 0x470   : > { %14688 = vmatprep.mubr.f32.mxu1 %v30424_v37 }
 0x471   : > { %21417 = vmatmul.mubr.msk.f32.gmra.mrb[216].mxu0 %vm14004_vm3, %v27003_v52 }
 0x472   : > { %14575 = vmatprep.mubr.f32.mxu0 %v30424_v37 }
 0x473   : > { %21426 = vmatmul.mubr.msk.f32.gmra.mrb[218].mxu1 %vm14004_vm3, %v27022_v59 }
 0x474   : > { %14694 = vmatprep.mubr.f32.mxu1 %v30424_v37 }
 0x475   : > { %21418 = vmatmul.mubr.msk.f32.gmra.mrb[218].mxu0 %vm14004_vm3, %v27022_v59 }
 0x476   : > { %14581 = vmatprep.mubr.f32.mxu0 %v30424_v37 }
 0x477   : > { %21427 = vmatmul.mubr.msk.f32.gmra.mrb[220].mxu1 %vm14004_vm3, %v27033_v42 }
 0x478   : > { %14700 = vmatprep.mubr.f32.mxu1 %v30424_v37 }
 0x479   : > { %21419 = vmatmul.mubr.msk.f32.gmra.mrb[220].mxu0 %vm14004_vm3, %v27033_v42 }
 0x47a   : > { %14587 = vmatprep.mubr.f32.mxu0 %v30424_v37 }
 0x47b   : > { %21428 = vmatmul.mubr.msk.f32.gmra.mrb[222].mxu1 %vm14004_vm3, %v27044_v8 }
 0x47c   : > { %14884 = vmatprep.mubr.f32.mxu1 %v30424_v37 }
 0x47d   : > { %21420 = vmatmul.mubr.msk.f32.gmra.mrb[222].mxu0 %vm14004_vm3, %v27044_v8 }
 0x47e   : > { %14771 = vmatprep.mubr.f32.mxu0 %v30424_v37 }
 0x47f   : > { %21437 = vmatmul.mubr.msk.f32.vlgmr.msra.gmra.mrb[224].mxu1 %vm14004_vm3, %v26919_v6 }
 0x480   : > { %14890 = vmatprep.mubr.f32.mxu1 %v30424_v37 }
 0x481   : > { %21429 = vmatmul.mubr.msk.f32.vlgmr.msra.gmra.mrb[224].mxu0 %vm14004_vm3, %v26919_v6 }
 0x482   : > { %14777 = vmatprep.mubr.f32.mxu0 %v30424_v37 }
 0x483   : > { %21438 = vmatmul.mubr.msk.f32.gmra.mrb[226].mxu1 %vm14004_vm3, %v26938_v29 }
 0x484   : > { %14896 = vmatprep.mubr.f32.mxu1 %v30424_v37 }
 0x485   : > { %21430 = vmatmul.mubr.msk.f32.gmra.mrb[226].mxu0 %vm14004_vm3, %v26938_v29 }
 0x486   : > { %14783 = vmatprep.mubr.f32.mxu0 %v30424_v37 }
 0x487   : > { %21439 = vmatmul.mubr.msk.f32.gmra.mrb[228].mxu1 %vm14004_vm3, %v26961_v47 }
 0x488   : > { %14902 = vmatprep.mubr.f32.mxu1 %v30424_v37 }
 0x489   : > { %21431 = vmatmul.mubr.msk.f32.gmra.mrb[228].mxu0 %vm14004_vm3, %v26961_v47 }
 0x48a   : > { %14789 = vmatprep.mubr.f32.mxu0 %v30424_v37 }
 0x48b   : > { %21440 = vmatmul.mubr.msk.f32.gmra.mrb[230].mxu1 %vm14004_vm3, %v26984_v55 }
 0x48c   : > { %14908 = vmatprep.mubr.f32.mxu1 %v30424_v37 }
 0x48d   : > { %21432 = vmatmul.mubr.msk.f32.gmra.mrb[230].mxu0 %vm14004_vm3, %v26984_v55 }
 0x48e   : > { %14795 = vmatprep.mubr.f32.mxu0 %v30424_v37 }
 0x48f   : > { %21441 = vmatmul.mubr.msk.f32.gmra.mrb[232].mxu1 %vm14004_vm3, %v27003_v52 }
 0x490   : > { %14914 = vmatprep.mubr.f32.mxu1 %v30424_v37 }
 0x491   : > { %21433 = vmatmul.mubr.msk.f32.gmra.mrb[232].mxu0 %vm14004_vm3, %v27003_v52 }
 0x492   : > { %14801 = vmatprep.mubr.f32.mxu0 %v30424_v37 }
 0x493   : > { %21442 = vmatmul.mubr.msk.f32.gmra.mrb[234].mxu1 %vm14004_vm3, %v27022_v59 }
 0x494   : > { %14920 = vmatprep.mubr.f32.mxu1 %v30424_v37 }
 0x495   : > { %21434 = vmatmul.mubr.msk.f32.gmra.mrb[234].mxu0 %vm14004_vm3, %v27022_v59 }
 0x496   : > { %14807 = vmatprep.mubr.f32.mxu0 %v30424_v37 }
 0x497   : > { %21443 = vmatmul.mubr.msk.f32.gmra.mrb[236].mxu1 %vm14004_vm3, %v27033_v42 }
 0x498   : > { %14926 = vmatprep.mubr.f32.mxu1 %v30424_v37 }
 0x499   : > { %21435 = vmatmul.mubr.msk.f32.gmra.mrb[236].mxu0 %vm14004_vm3, %v27033_v42 }
 0x49a   : > { %14813 = vmatprep.mubr.f32.mxu0 %v30424_v37 }
 0x49b   : > { %21444 = vmatmul.mubr.msk.f32.gmra.mrb[238].mxu1 %vm14004_vm3, %v27044_v8 }
 0x49c   : > { %15134 = vmatprep.mubr.f32.mxu1 %v30424_v37 }
 0x49d   : > { %21436 = vmatmul.mubr.msk.f32.gmra.mrb[238].mxu0 %vm14004_vm3, %v27044_v8 }
 0x49e   : > { %15021 = vmatprep.mubr.f32.mxu0 %v30424_v37 }
 0x4b1   : > { %v12297_v29 = vpop.f32.mrb[144].mxu0 }
 0x4b2   : > { %v13223_v52 = vmax.f32 %v26747_v41, %v12297_v29  ;;  %v12386_v47 = vpop.f32.mrb[144].mxu1  ;;  %v12299_v59 = vpop.f32.mrb[145].mxu0 }
 0x4b3   : > { %v13225_v55 = vmax.f32 %v26750_v63, %v12386_v47  ;;  %v13224_v42 = vmax.f32 %v26753_v3, %v12299_v59  ;;  %v12388_v6 = vpop.f32.mrb[145].mxu1  ;;  %v30682_v3 = vld [vmem:[#allocation27_spill] sm:$0xff] }
 0x4b4   : > { %v13226_v54 = vmax.f32 %v26757_v58, %v12388_v6  ;;  %v13287_v27 = vadd.f32 %v13223_v52, %v30681_v62 }
 0x4b5   : > { %v12303_v22 = vpop.f32.mrb[146].mxu0  ;;  %v13289_v7 = vadd.f32 %v13225_v55, %v30681_v62  ;;  %v13288_v63 = vadd.f32 %v13224_v42, %v30681_v62 }
 0x4b6   : > { %v13239_v8 = vmax.f32 %v26763_v56, %v12303_v22  ;;  %v12392_v30 = vpop.f32.mrb[146].mxu1  ;;  %v12305_v24 = vpop.f32.mrb[147].mxu0  ;;  %v13351_v59 = vmax.f32 %v13287_v27, 0.0  ;;  %v13290_v52 = vadd.f32 %v13226_v54, %v30681_v62 }
 0x4b7   : > { %v13241_v41 = vmax.f32 %v26765_v19, %v12392_v30  ;;  %v13240_v29 = vmax.f32 %v26767_v11, %v12305_v24  ;;  %v12394_v18 = vpop.f32.mrb[147].mxu1  ;;  %v13353_v6 = vmax.f32 %v13289_v7, 0.0 }
 0x4b8   : > { %v13303_v47 = vadd.f32 %v13239_v8, %v30682_v3  ;;  %v13242_v58 = vmax.f32 %v26771_v60, %v12394_v18  ;;  %v13352_v60 = vmax.f32 %v13288_v63, 0.0 }
 0x4b9   : > { %v13305_v55 = vadd.f32 %v13241_v41, %v30682_v3  ;;  %v13304_v22 = vadd.f32 %v13240_v29, %v30682_v3  ;;  %v12309_v56 = vpop.f32.mrb[148].mxu0  ;;  %v30683_v29 = vld [vmem:[#allocation24_spill] sm:$0xff] }
 0x4ba   : > { %v13367_v33 = vmax.f32 %v13303_v47, 0.0  ;;  %v13306_v30 = vadd.f32 %v13242_v58, %v30682_v3  ;;  %v13255_v24 = vmax.f32 %v26777_v57, %v12309_v56  ;;  %v12398_v19 = vpop.f32.mrb[148].mxu1  ;;  %v12311_v11 = vpop.f32.mrb[149].mxu0  ;;  %v13354_v56 = vmax.f32 %v13290_v52, 0.0 }
 0x4bb   : > { %v13369_v42 = vmax.f32 %v13305_v55, 0.0  ;;  %v13368_v8 = vmax.f32 %v13304_v22, 0.0  ;;  %v13257_v18 = vmax.f32 %v26779_v16, %v12398_v19  ;;  %v13256_v27 = vmax.f32 %v26781_v15, %v12311_v11  ;;  %v12400_v54 = vpop.f32.mrb[149].mxu1 }
 0x4bc   : > { %v27230_v41 = vpack.c.bf16 %v13367_v33, %v13351_v59  ;;  %v13319_v20 = vadd.f32 %v13255_v24, %v30683_v29  ;;  %v13258_v7 = vmax.f32 %v26785_v28, %v12400_v54  ;;  %v13370_v58 = vmax.f32 %v13306_v30, 0.0 }
 0x4bd   : > { %v27234_v47 = vpack.c.bf16 %v13369_v42, %v13353_v6  ;;  %v27237_v57 = vadd.f32 %v13257_v18, %v30683_v29  ;;  %v12315_v55 = vpop.f32.mrb[150].mxu0  ;;  %v23581_v22 = vpack.i.bf16 %v13367_v33, %v13351_v59  ;;  %v27240_v16 = vadd.f32 %v13256_v27, %v30683_v29 }
 0x4be   : > { %v13271_v15 = vmax.f32 %v26791_v50, %v12315_v55  ;;  %v12404_v63 = vpop.f32.mrb[150].mxu1  ;;  %v12317_v19 = vpop.f32.mrb[151].mxu0  ;;  %v23591_v11 = vpack.i.bf16 %v13368_v8, %v13352_v60  ;;  %v13383_v24 = vmax.f32 %v13319_v20, 0.0  ;;  %v13322_v28 = vadd.f32 %v13258_v7, %v30683_v29 }
 0x4bf   : > { %v13273_v54 = vmax.f32 %v26793_v5, %v12404_v63  ;;  %v12406_v30 = vpop.f32.mrb[151].mxu1  ;;  %23582 = vrot.lane.b32.xlu0 %v23581_v22, %s24050_s26  ;;  %v13272_v33 = vmax.f32 %v26795_v21, %v12317_v19  ;;  %v13385_v59 = vmax.f32 %v27237_v57, 0.0  ;;  %v23586_v18 = vpack.i.bf16 %v13369_v42, %v13353_v6 }
 0x4c0   : > { %v13335_v52 = vadd.f32 %v13271_v15, %v25870_v26  ;;  %v13274_v50 = vmax.f32 %v26799_v44, %v12406_v30  ;;  %23592 = vrot.lane.b32.xlu1 %v23591_v11, %s24050_s26  ;;  %v23596_v7 = vpack.i.bf16 %v13370_v58, %v13354_v56  ;;  %v27253_v55 = vpack.c.bf16 %v13370_v58, %v13354_v56 }
 0x4c1   : > { %v13337_v20 = vadd.f32 %v13273_v54, %v25870_v26  ;;  %v13336_v27 = vadd.f32 %v13272_v33, %v25870_v26  ;;  %v12475_v5 = vpop.f32.mrb[152].mxu0  ;;  %v27257_v19 = vpack.c.bf16 %v13368_v8, %v13352_v60  ;;  %v13384_v58 = vmax.f32 %v27240_v16, 0.0 }
 0x4c2   : > { %v13399_v22 = vmax.f32 %v13335_v52, 0.0  ;;  %v13338_v21 = vadd.f32 %v13274_v50, %v25870_v26  ;;  %v13227_v57 = vmax.f32 %v26809_v48, %v12475_v5  ;;  %v12564_v63 = vpop.f32.mrb[152].mxu1  ;;  %v12477_v15 = vpop.f32.mrb[153].mxu0  ;;  %v13386_v52 = vmax.f32 %v13322_v28, 0.0 }
 0x4c3   : > { %v13401_v44 = vmax.f32 %v13337_v20, 0.0  ;;  %v13400_v11 = vmax.f32 %v13336_v27, 0.0  ;;  %v13229_v6 = vmax.f32 %v26812_v31, %v12564_v63  ;;  %v12566_v42 = vpop.f32.mrb[153].mxu1  ;;  %23587 = vrot.lane.b32.xlu0 %v23586_v18, %s24050_s26  ;;  %v13228_v54 = vmax.f32 %v26815_v53, %v12477_v15 }
 0x4c4   : > { %v27263_v56 = vpack.c.bf16 %v13399_v22, %v13383_v24  ;;  %v13291_v30 = vadd.f32 %v13227_v57, %v30681_v62  ;;  %v13230_v48 = vmax.f32 %v26819_v12, %v12566_v42  ;;  %23597 = vrot.lane.b32.xlu1 %v23596_v7, %s24050_s26  ;;  %v13402_v60 = vmax.f32 %v13338_v21, 0.0 }
 0x4c5   : > { %v27268_v8 = vpack.c.bf16 %v13401_v44, %v13385_v59  ;;  %v12481_v33 = vpop.f32.mrb[154].mxu0  ;;  %v23601_v31 = vpack.i.bf16 %v13399_v22, %v13383_v24  ;;  %v13293_v50 = vadd.f32 %v13229_v6, %v30681_v62  ;;  %v23611_v20 = vpack.i.bf16 %v13400_v11, %v13384_v58 }
 0x4c6   : > { %v13243_v53 = vmax.f32 %v26825_v23, %v12481_v33  ;;  %v12570_v18 = vpop.f32.mrb[154].mxu1  ;;  %v12483_v16 = vpop.f32.mrb[155].mxu0  ;;  %v13294_v27 = vadd.f32 %v13230_v48, %v30681_v62  ;;  %v13292_v5 = vadd.f32 %v13228_v54, %v30681_v62  ;;  %v13355_v21 = vmax.f32 %v13291_v30, 0.0  ;;  %v30684_v54 = vld [vmem:[#allocation10_spill] sm:$0xff] }
 0x4c7   : > { %v13245_v12 = vmax.f32 %v26827_v40, %v12570_v18  ;;  %v13244_v7 = vmax.f32 %v26829_v17, %v12483_v16  ;;  %v12572_v57 = vpop.f32.mrb[155].mxu1  ;;  %23612 = vrot.lane.b32.xlu0 %v23611_v20, %s24050_s26  ;;  %v23606_v23 = vpack.i.bf16 %v13401_v44, %v13385_v59  ;;  %v27282_v6 = vpack.i.bf16 %v13402_v60, %v13386_v52  ;;  %v30685_v44 = vld [vmem:[#allocation11_spill] sm:$0xff]  ;;  %v30686_v18 = vld [vmem:[#allocation8_spill] sm:$0xff] }
 0x4c8   : > { %v13307_v24 = vadd.f32 %v13243_v53, %v30682_v3  ;;  %v13246_v28 = vmax.f32 %v26833_v9, %v12572_v57  ;;  %23602 = vrot.lane.b32.xlu1 %v23601_v31, %s24050_s26  ;;  %v27284_v40 = vpack.c.bf16 %v13402_v60, %v13386_v52  ;;  %v27288_v33 = vpack.c.bf16 %v13400_v11, %v13384_v58 }
 0x4c9   : > { %v13309_v22 = vadd.f32 %v13245_v12, %v30682_v3  ;;  %v13308_v63 = vadd.f32 %v13244_v7, %v30682_v3  ;;  %v12487_v15 = vpop.f32.mrb[156].mxu0  ;;  %v13357_v31 = vmax.f32 %v13293_v50, 0.0  ;;  %v30688_v7 = vld [vmem:[#allocation9_spill] sm:$0xff] }
 0x4ca   : > { %v13371_v17 = vmax.f32 %v13307_v24, 0.0  ;;  %v13310_v42 = vadd.f32 %v13246_v28, %v30682_v3  ;;  %v13259_v30 = vmax.f32 %v30684_v54, %v12487_v15  ;;  %v12576_v9 = vpop.f32.mrb[156].mxu1  ;;  %v12489_v48 = vpop.f32.mrb[157].mxu0  ;;  %v13356_v24 = vmax.f32 %v13292_v5, 0.0  ;;  %v30689_v54 = vld [vmem:[#allocation14_spill] sm:$0xff] }
 0x4cb   : > { %v13373_v59 = vmax.f32 %v13309_v22, 0.0  ;;  %v13261_v53 = vmax.f32 %v30685_v44, %v12576_v9  ;;  %v13260_v16 = vmax.f32 %v30686_v18, %v12489_v48  ;;  %v12578_v20 = vpop.f32.mrb[157].mxu1  ;;  %v13372_v60 = vmax.f32 %v13308_v63, 0.0 }
 0x4cc   : > { %v27292_v12 = vpack.c.bf16 %v13371_v17, %v13355_v21  ;;  %v13323_v52 = vadd.f32 %v13259_v30, %v30683_v29  ;;  %v13262_v57 = vmax.f32 %v30688_v7, %v12578_v20  ;;  %23607 = vrot.lane.b32.xlu1 %v23606_v23, %s24050_s26  ;;  %v13374_v11 = vmax.f32 %v13310_v42, 0.0  ;;  %v30690_v23 = vld [vmem:[#allocation15_spill] sm:$0xff] }
 0x4cd   : > { %v27297_v28 = vpack.c.bf16 %v13373_v59, %v13357_v31  ;;  %v12493_v58 = vpop.f32.mrb[158].mxu0  ;;  %v27299_v50 = vpack.i.bf16 %v13371_v17, %v13355_v21  ;;  %v13358_v22 = vmax.f32 %v13294_v27, 0.0  ;;  %v13325_v15 = vadd.f32 %v13261_v53, %v30683_v29  ;;  %v30691_v17 = vld [vmem:[#allocation12_spill] sm:$0xff] }
 0x4ce   : > { %30687 = vst [vmem:[#allocation53_spill] sm:$0xff] %v27292_v12  ;;  %v13275_v9 = vmax.f32 %v30689_v54, %v12493_v58  ;;  %v12582_v48 = vpop.f32.mrb[158].mxu1  ;;  %v12495_v63 = vpop.f32.mrb[159].mxu0  ;;  %v27303_v44 = vpack.i.bf16 %v13373_v59, %v13357_v31  ;;  %v13387_v30 = vmax.f32 %v13323_v52, 0.0  ;;  %v13324_v18 = vadd.f32 %v13260_v16, %v30683_v29 }
 0x4cf   : > { %v13277_v5 = vmax.f32 %v26855_v39, %v12582_v48  ;;  %v13276_v20 = vmax.f32 %v30690_v23, %v12495_v63  ;;  %v12584_v42 = vpop.f32.mrb[159].mxu1  ;;  %v13326_v21 = vadd.f32 %v13262_v57, %v30683_v29  ;;  %v27311_v7 = vpack.i.bf16 %v13372_v60, %v13356_v24 }
 0x4d0   : > { %v13339_v27 = vadd.f32 %v13275_v9, %v25870_v26  ;;  %v13278_v53 = vmax.f32 %v30691_v17, %v12584_v42  ;;  %v27315_v52 = vpack.i.bf16 %v13374_v11, %v13358_v22  ;;  %v27317_v16 = vpack.c.bf16 %v13374_v11, %v13358_v22 }
 0x4d1   : > { %v13341_v58 = vadd.f32 %v13277_v5, %v25870_v26  ;;  %v13340_v31 = vadd.f32 %v13276_v20, %v25870_v26  ;;  %v12653_v59 = vpop.f32.mrb[160].mxu0  ;;  %v27321_v63 = vpack.c.bf16 %v13372_v60, %v13356_v24  ;;  %v13389_v23 = vmax.f32 %v13325_v15, 0.0 }
 0x4d2   : > { %v13403_v39 = vmax.f32 %v13339_v27, 0.0  ;;  %v13342_v54 = vadd.f32 %v13278_v53, %v25870_v26  ;;  %v13231_v57 = vmax.f32 %v26869_v14, %v12653_v59  ;;  %v12742_v48 = vpop.f32.mrb[160].mxu1  ;;  %v12655_v9 = vpop.f32.mrb[161].mxu0  ;;  %v13388_v53 = vmax.f32 %v13324_v18, 0.0 }
 0x4d3   : > { %v13405_v42 = vmax.f32 %v13341_v58, 0.0  ;;  %v13233_v5 = vmax.f32 %v26872_v2, %v12742_v48  ;;  %v13232_v20 = vmax.f32 %v26875_v10, %v12655_v9  ;;  %v12744_v17 = vpop.f32.mrb[161].mxu1  ;;  %v13404_v11 = vmax.f32 %v13340_v31, 0.0 }
 0x4d4   : > { %v27325_v25 = vpack.c.bf16 %v13403_v39, %v13387_v30  ;;  %v13295_v22 = vadd.f32 %v13231_v57, %v30681_v62  ;;  %v13234_v27 = vmax.f32 %v26879_v38, %v12744_v17  ;;  %v13406_v59 = vmax.f32 %v13342_v54, 0.0 }
 0x4d5   : > { %v27329_v14 = vpack.c.bf16 %v13405_v42, %v13389_v23  ;;  %v12659_v60 = vpop.f32.mrb[162].mxu0  ;;  %v27331_v24 = vpack.i.bf16 %v13403_v39, %v13387_v30  ;;  %v13390_v15 = vmax.f32 %v13326_v21, 0.0  ;;  %v13297_v2 = vadd.f32 %v13233_v5, %v30681_v62 }
 0x4d6   : > { %30692 = vst [vmem:[#allocation45_spill] sm:$0xff] %v27325_v25  ;;  %v13247_v10 = vmax.f32 %v26887_v32, %v12659_v60  ;;  %v12748_v58 = vpop.f32.mrb[162].mxu1  ;;  %v12661_v48 = vpop.f32.mrb[163].mxu0  ;;  %v27335_v9 = vpack.i.bf16 %v13405_v42, %v13389_v23  ;;  %v13359_v31 = vmax.f32 %v13295_v22, 0.0  ;;  %v13296_v57 = vadd.f32 %v13232_v20, %v30681_v62 }
 0x4d7   : > { %30693 = vst [vmem:[#allocation52_spill] sm:$0xff] %v27329_v14  ;;  %v13249_v38 = vmax.f32 %v26890_v46, %v12748_v58  ;;  %v13248_v18 = vmax.f32 %v26893_v35, %v12661_v48  ;;  %v12750_v54 = vpop.f32.mrb[163].mxu1  ;;  %v13298_v30 = vadd.f32 %v13234_v27, %v30681_v62  ;;  %v27343_v5 = vpack.i.bf16 %v13404_v11, %v13388_v53  ;;  %v30696_v48 = vld [vmem:[#allocation13_spill] sm:$0xff]  ;;  %v30716_v14 = vld [vmem:[#allocation51_spill] sm:$0xff] }
 0x4d8   : > { %v13311_v21 = vadd.f32 %v13247_v10, %v30682_v3  ;;  %v13250_v39 = vmax.f32 %v26897_v45, %v12750_v54  ;;  %v27347_v17 = vpack.i.bf16 %v13406_v59, %v13390_v15  ;;  %v27349_v20 = vpack.c.bf16 %v13406_v59, %v13390_v15  ;;  %v30697_v54 = vld [vmem:[#allocation18_spill] sm:$0xff] }
 0x4d9   : > { %v13313_v32 = vadd.f32 %v13249_v38, %v30682_v3  ;;  %v13312_v23 = vadd.f32 %v13248_v18, %v30682_v3  ;;  %v12665_v42 = vpop.f32.mrb[164].mxu0  ;;  %v27353_v10 = vpack.c.bf16 %v13404_v11, %v13388_v53  ;;  %v13361_v45 = vmax.f32 %v13297_v2, 0.0 }
 0x4da   : > { %30694 = vst [vmem:[#allocation44_spill] sm:$0xff] %v27349_v20  ;;  %v13375_v46 = vmax.f32 %v13311_v21, 0.0  ;;  %v13314_v35 = vadd.f32 %v13250_v39, %v30682_v3  ;;  %v13263_v22 = vmax.f32 %v26903_v1, %v12665_v42  ;;  %v12754_v27 = vpop.f32.mrb[164].mxu1  ;;  %v12667_v60 = vpop.f32.mrb[165].mxu0  ;;  %v30699_v21 = vld [vmem:[#allocation19_spill] sm:$0xff]  ;;  %v13360_v61 = vmax.f32 %v13296_v57, 0.0 }
 0x4db   : > { %30695 = vst [vmem:[#allocation55_spill] sm:$0xff] %v27353_v10  ;;  %v13377_v58 = vmax.f32 %v13313_v32, 0.0  ;;  %v13265_v38 = vmax.f32 %v30696_v48, %v12754_v27  ;;  %v13264_v18 = vmax.f32 %v30697_v54, %v12667_v60  ;;  %v12756_v51 = vpop.f32.mrb[165].mxu1  ;;  %v13376_v59 = vmax.f32 %v13312_v23, 0.0  ;;  %v30718_v20 = vld [vmem:[#allocation43_spill] sm:$0xff] }
 0x4dc   : > { %v27357_v4 = vpack.c.bf16 %v13375_v46, %v13359_v31  ;;  %v13327_v15 = vadd.f32 %v13263_v22, %v30683_v29  ;;  %v13266_v39 = vmax.f32 %v30699_v21, %v12756_v51  ;;  %v13378_v42 = vmax.f32 %v13314_v35, 0.0  ;;  %v30701_v51 = vld [vmem:[#allocation16_spill] sm:$0xff]  ;;  %v30702_v21 = vld [vmem:[#allocation17_spill] sm:$0xff] }
 0x4dd   : > { %v27361_v1 = vpack.c.bf16 %v13377_v58, %v13361_v45  ;;  %v12671_v11 = vpop.f32.mrb[166].mxu0  ;;  %v27363_v53 = vpack.i.bf16 %v13375_v46, %v13359_v31  ;;  %v13362_v2 = vmax.f32 %v13298_v30, 0.0  ;;  %v13329_v32 = vadd.f32 %v13265_v38, %v30683_v29  ;;  %v30703_v46 = vld [vmem:[#allocation22_spill] sm:$0xff] }
 0x4de   : > { %30698 = vst [vmem:[#allocation47_spill] sm:$0xff] %v27357_v4  ;;  %v13279_v27 = vmax.f32 %v26922_v36, %v12671_v11  ;;  %v12760_v60 = vpop.f32.mrb[166].mxu1  ;;  %v12673_v48 = vpop.f32.mrb[167].mxu0  ;;  %v27367_v54 = vpack.i.bf16 %v13377_v58, %v13361_v45  ;;  %v13391_v23 = vmax.f32 %v13327_v15, 0.0  ;;  %v27370_v22 = vadd.f32 %v13264_v18, %v30683_v29 }
 0x4df   : > { %30700 = vst [vmem:[#allocation54_spill] sm:$0xff] %v27361_v1  ;;  %v13281_v57 = vmax.f32 %v30701_v51, %v12760_v60  ;;  %v13280_v35 = vmax.f32 %v30702_v21, %v12673_v48  ;;  %v12762_v4 = vpop.f32.mrb[167].mxu1  ;;  %v13330_v31 = vadd.f32 %v13266_v39, %v30683_v29  ;;  %v27377_v36 = vpack.i.bf16 %v13376_v59, %v13360_v61 }
 0x4e0   : > { %v13343_v30 = vadd.f32 %v13279_v27, %v25870_v26  ;;  %v13282_v38 = vmax.f32 %v30703_v46, %v12762_v4  ;;  %v27383_v15 = vpack.i.bf16 %v13378_v42, %v13362_v2  ;;  %v27385_v11 = vpack.c.bf16 %v13378_v42, %v13362_v2 }
 0x4e1   : > { %v13345_v45 = vadd.f32 %v13281_v57, %v25870_v26  ;;  %v27381_v58 = vadd.f32 %v13280_v35, %v25870_v26  ;;  %v12831_v18 = vpop.f32.mrb[168].mxu0  ;;  %v27389_v4 = vpack.c.bf16 %v13376_v59, %v13360_v61  ;;  %v13393_v21 = vmax.f32 %v13329_v32, 0.0 }
 0x4e2   : > { %30704 = vst [vmem:[#allocation46_spill] sm:$0xff] %v27385_v11  ;;  %v13407_v60 = vmax.f32 %v13343_v30, 0.0  ;;  %v13346_v48 = vadd.f32 %v13282_v38, %v25870_v26  ;;  %v13235_v39 = vmax.f32 %v26943_v43, %v12831_v18  ;;  %v12920_v27 = vpop.f32.mrb[168].mxu1  ;;  %v12833_v51 = vpop.f32.mrb[169].mxu0  ;;  %v30707_v30 = vld [vmem:[#allocation23_spill] sm:$0xff]  ;;  %v30715_v11 = vld [vmem:[#allocation40_spill] sm:$0xff] }
 0x4e3   : > { %30705 = vst [vmem:[#allocation26_spill] sm:$0xff] %v27389_v4  ;;  %v13409_v46 = vmax.f32 %v13345_v45, 0.0  ;;  %v13237_v57 = vmax.f32 %v26946_v13, %v12920_v27  ;;  %v13236_v35 = vmax.f32 %v26949_v49, %v12833_v51  ;;  %v12922_v1 = vpop.f32.mrb[169].mxu1  ;;  %v13392_v13 = vmax.f32 %v27370_v22, 0.0  ;;  %v30709_v45 = vld [vmem:[#allocation20_spill] sm:$0xff]  ;;  %v30712_v22 = vld [vmem:[#allocation41_spill] sm:$0xff] }
 0x4e4   : > { %v27393_v25 = vpack.c.bf16 %v13407_v60, %v13391_v23  ;;  %v13299_v2 = vadd.f32 %v13235_v39, %v30681_v62  ;;  %v13238_v38 = vmax.f32 %v30707_v30, %v12922_v1  ;;  %v13410_v18 = vmax.f32 %v13346_v48, 0.0  ;;  %v30710_v30 = vld [vmem:[#allocation21_spill] sm:$0xff] }
 0x4e5   : > { %v27398_v43 = vpack.c.bf16 %v13409_v46, %v13393_v21  ;;  %v13301_v61 = vadd.f32 %v13237_v57, %v30681_v62  ;;  %v12837_v59 = vpop.f32.mrb[170].mxu0  ;;  %v27401_v32 = vpack.i.bf16 %v13407_v60, %v13391_v23  ;;  %v13394_v49 = vmax.f32 %v13330_v31, 0.0 }
 0x4e6   : > { %30706 = vst [vmem:[#allocation27_spill] sm:$0xff] %v27393_v25  ;;  %v13251_v27 = vmax.f32 %v30709_v45, %v12837_v59  ;;  %v12926_v51 = vpop.f32.mrb[170].mxu1  ;;  %v12839_v25 = vpop.f32.mrb[171].mxu0  ;;  %v27405_v42 = vpack.i.bf16 %v13409_v46, %v13393_v21  ;;  %v13300_v39 = vadd.f32 %v13236_v35, %v30681_v62  ;;  %v13302_v1 = vadd.f32 %v13238_v38, %v30681_v62 }
 0x4e7   : > { %30708 = vst [vmem:[#allocation24_spill] sm:$0xff] %v27398_v43  ;;  %v13253_v48 = vmax.f32 %v30710_v30, %v12926_v51  ;;  %v30711_v43 = vld [vmem:[#allocation49_spill] sm:$0xff]  ;;  %v12928_v4 = vpop.f32.mrb[171].mxu1  ;;  %v13363_v23 = vmax.f32 %v13299_v2, 0.0  ;;  %v30713_v59 = vmax.f32 %v27381_v58, 0.0  ;;  %v13365_v21 = vmax.f32 %v13301_v61, 0.0 }
 0x4e8   : > { %v13252_v57 = vmax.f32 %v30711_v43, %v12839_v25  ;;  %v13315_v60 = vadd.f32 %v13251_v27, %v30682_v3  ;;  %v13254_v31 = vmax.f32 %v30712_v22, %v12928_v4  ;;  %v27419_v38 = vpack.i.bf16 %v13410_v18, %v13394_v49  ;;  %v30714_v2 = vld [vmem:[#allocation48_spill] sm:$0xff] }
 0x4e9   : > { %v27415_v45 = vpack.i.bf16 %v30713_v59, %v13392_v13  ;;  %v13317_v46 = vadd.f32 %v13253_v48, %v30682_v3  ;;  %v12843_v62 = vpop.f32.mrb[172].mxu0  ;;  %v27423_v4 = vpack.c.bf16 %v13410_v18, %v13394_v49  ;;  %v13366_v22 = vmax.f32 %v13302_v1, 0.0 }
 0x4ea   : > { %v13316_v35 = vadd.f32 %v13252_v57, %v30682_v3  ;;  %v13379_v51 = vmax.f32 %v13315_v60, 0.0  ;;  %v13318_v25 = vadd.f32 %v13254_v31, %v30682_v3  ;;  %v13267_v43 = vmax.f32 %v30714_v2, %v12843_v62  ;;  %v12932_v27 = vpop.f32.mrb[172].mxu1  ;;  %v12845_v30 = vpop.f32.mrb[173].mxu0 }
 0x4eb   : > { %v13381_v59 = vmax.f32 %v13317_v46, 0.0  ;;  %v13269_v61 = vmax.f32 %v30715_v11, %v12932_v27  ;;  %v13268_v48 = vmax.f32 %v30716_v14, %v12845_v30  ;;  %v12934_v10 = vpop.f32.mrb[173].mxu1  ;;  %v13364_v49 = vmax.f32 %v13300_v39, 0.0  ;;  %v30720_v39 = vld [vmem:[#allocation42_spill] sm:$0xff] }
 0x4ec   : > { %v27427_v57 = vpack.c.bf16 %v13379_v51, %v13363_v23  ;;  %v13382_v12 = vmax.f32 %v13318_v25, 0.0  ;;  %v13331_v60 = vadd.f32 %v13267_v43, %v30683_v29  ;;  %v13270_v3 = vmax.f32 %v30718_v20, %v12934_v10 }
 0x4ed   : > { %v27431_v31 = vpack.c.bf16 %v13381_v59, %v13365_v21  ;;  %v13380_v62 = vmax.f32 %v13316_v35, 0.0  ;;  %v12849_v2 = vpop.f32.mrb[174].mxu0  ;;  %v23711_v18 = vpack.i.bf16 %v13379_v51, %v13363_v23  ;;  %v13333_v1 = vadd.f32 %v13269_v61, %v30683_v29 }
 0x4ee   : > { %30717 = vst [vmem:[#allocation10_spill] sm:$0xff] %v27427_v57  ;;  %v13283_v11 = vmax.f32 %v27006_v34, %v12849_v2  ;;  %v12938_v46 = vpop.f32.mrb[174].mxu1  ;;  %v12851_v14 = vpop.f32.mrb[175].mxu0  ;;  %v23616_v27 = vpack.i.bf16 %v13382_v12, %v13366_v22  ;;  %v13395_v30 = vmax.f32 %v13331_v60, 0.0  ;;  %v13332_v25 = vadd.f32 %v13268_v48, %v30683_v29  ;;  %v30719_v57 = vld [vmem:[#allocation50_spill] sm:$0xff] }
 0x4ef   : > { %v13285_v43 = vmax.f32 %v27008_v0, %v12938_v46  ;;  %v13284_v20 = vmax.f32 %v30719_v57, %v12851_v14  ;;  %v12940_v10 = vpop.f32.mrb[175].mxu1  ;;  %v13334_v35 = vadd.f32 %v13270_v3, %v30683_v29  ;;  %v23721_v34 = vpack.i.bf16 %v13381_v59, %v13365_v21 }
 0x4f0   : > { %v13347_v23 = vadd.f32 %v13283_v11, %v25870_v26  ;;  %v13286_v51 = vmax.f32 %v30720_v39, %v12940_v10  ;;  %23617 = vrot.lane.b32.xlu0 %v23616_v27, %s24050_s26  ;;  %v23716_v2 = vpack.i.bf16 %v13380_v62, %v13364_v49  ;;  %v30721_v48 = vmax.f32 %v27381_v58, 0.0 }
 0x4f1   : > { %v13349_v61 = vadd.f32 %v13285_v43, %v25870_v26  ;;  %v13348_v60 = vadd.f32 %v13284_v20, %v25870_v26  ;;  %v27449_v29 = vpack.c.bf16 %v13382_v12, %v13366_v22  ;;  %v27451_v3 = vpack.c.bf16 %v13380_v62, %v13364_v49 }
 0x4f2   : > { %v27446_v0 = vpack.c.bf16 %v30721_v48, %v13392_v13  ;;  %v13411_v57 = vmax.f32 %v13347_v23, 0.0  ;;  %v13350_v46 = vadd.f32 %v13286_v51, %v25870_v26  ;;  %v13397_v11 = vmax.f32 %v13333_v1, 0.0 }
 0x4f3   : > { %v13396_v14 = vmax.f32 %v13332_v25, 0.0  ;;  %v13413_v27 = vmax.f32 %v13349_v61, 0.0  ;;  %v13412_v21 = vmax.f32 %v13348_v60, 0.0  ;;  %v13398_v59 = vmax.f32 %v13334_v35, 0.0  ;;  %v30731_v60 = vld [vmem:[#allocation60_spill] sm:$0xff] }
 0x4f4   : > { %v27453_v43 = vpack.c.bf16 %v13411_v57, %v13395_v30  ;;  %v13414_v20 = vmax.f32 %v13350_v46, 0.0  ;;  %23622 = vrot.lane.b32.xlu0 %v27282_v6, %s24050_s26  ;;  %v23726_v58 = vpack.i.bf16 %v13411_v57, %v13395_v30  ;;  %v30722_v6 = vld [vmem:[#allocation29_spill] sm:$0xff] }
 0x4f5   : > { %v27457_v13 = vpack.c.bf16 %v13413_v27, %v13397_v11  ;;  %v23731_v10 = vpack.i.bf16 %v13412_v21, %v13396_v14  ;;  %v23736_v26 = vpack.i.bf16 %v13413_v27, %v13397_v11  ;;  %v27459_v12 = vpack.c.bf16 %v13412_v21, %v13396_v14  ;;  %v30733_v14 = vld [vmem:[#allocation65_spill] sm:$0xff]  ;;  %v30734_v27 = vld [vmem:[#allocation98_spill] sm:$0xff] }
 0x4f6   : > { %v23626_v22 = vpack.i.bf16 %v13414_v20, %v13398_v59  ;;  %v27461_v62 = vpack.c.bf16 %v13414_v20, %v13398_v59  ;;  %v30735_v21 = vld [vmem:[#allocation69_spill] sm:$0xff]  ;;  %v30736_v59 = vld [vmem:[#allocation66_spill] sm:$0xff] }
 0x4f7   : > { %v30737_v20 = vld [vmem:[#allocation70_spill] sm:$0xff] }
 0x4f8   : > { %23627 = vrot.lane.b32.xlu1 %v23626_v22, %s24050_s26  ;;  %23632 = vrot.lane.b32.xlu0 %v27299_v50, %s24050_s26  ;;  %v30723_v50 = vld [vmem:[#allocation34_spill] sm:$0xff]  ;;  %v30741_v22 = vld [vmem:[#allocation77_spill] sm:$0xff] }
 0x4fc   : > { %23642 = vrot.lane.b32.xlu0 %v27303_v44, %s24050_s26  ;;  %23637 = vrot.lane.b32.xlu1 %v27311_v7, %s24050_s26  ;;  %v30724_v44 = vld [vmem:[#allocation35_spill] sm:$0xff]  ;;  %v13415_v7 = vlaneseq }
 0x500   : > { %23647 = vrot.lane.b32.xlu1 %v27315_v52, %s24050_s26  ;;  %23652 = vrot.lane.b32.xlu0 %v27331_v24, %s24050_s26  ;;  %v30725_v52 = vld [vmem:[#allocation59_spill] sm:$0xff]  ;;  %v30726_v24 = vld [vmem:[#allocation56_spill] sm:$0xff] }
 0x504   : > { %23662 = vrot.lane.b32.xlu0 %v27335_v9, %s24050_s26  ;;  %23657 = vrot.lane.b32.xlu1 %v27343_v5, %s24050_s26  ;;  %v27512_v9 = vand.u32 127, %v13415_v7  ;;  %v30727_v5 = vld [vmem:[#allocation91_spill] sm:$0xff]  ;;  %v30745_v7 = vld [vmem:[#allocation86_spill] sm:$0xff] }
 0x506   : > { %vm13576_vm4 = vcmp.lt.s32.totalorder %v27512_v9, 1  ;;  %vm21915_vm5 = vcmp.ne.s32.totalorder %v27512_v9, 0  ;;  %vm13849_vm7 = vcmp.lt.s32.totalorder %v27512_v9, 127 }
 0x507   : > { %vm27621_vm6 = vmpackc.low %vm21915_vm5, %vm21915_vm5 }
 0x508   : > { %23667 = vrot.lane.b32.xlu1 %v27347_v17, %s24050_s26  ;;  %23672 = vrot.lane.b32.xlu0 %v27363_v53, %s24050_s26  ;;  %v30728_v17 = vld [vmem:[#allocation92_spill] sm:$0xff] }
 0x50c   : > { %23682 = vrot.lane.b32.xlu0 %v27367_v54, %s24050_s26  ;;  %23677 = vrot.lane.b32.xlu1 %v27377_v36, %s24050_s26 }
 0x510   : > { %23687 = vrot.lane.b32.xlu1 %v27383_v15, %s24050_s26  ;;  %23692 = vrot.lane.b32.xlu0 %v27401_v32, %s24050_s26 }
 0x514   : > { %23702 = vrot.lane.b32.xlu0 %v27405_v42, %s24050_s26  ;;  %23697 = vrot.lane.b32.xlu1 %v27415_v45, %s24050_s26  ;;  %v30729_v45 = vld [vmem:[#allocation57_spill] sm:$0xff] }
 0x518   : > { %23707 = vrot.lane.b32.xlu1 %v27419_v38, %s24050_s26  ;;  %23712 = vrot.lane.b32.xlu0 %v23711_v18, %s24050_s26  ;;  %v30730_v38 = vld [vmem:[#allocation64_spill] sm:$0xff] }
 0x51c   : > { %23722 = vrot.lane.b32.xlu0 %v23721_v34, %s24050_s26  ;;  %23717 = vrot.lane.b32.xlu1 %v23716_v2, %s24050_s26  ;;  %v30732_v2 = vld [vmem:[#allocation96_spill] sm:$0xff] }
 0x520   : > { %23727 = vrot.lane.b32.xlu1 %v23726_v58, %s24050_s26  ;;  %23732 = vrot.lane.b32.xlu0 %v23731_v10, %s24050_s26  ;;  %v30738_v58 = vld [vmem:[#allocation71_spill] sm:$0xff]  ;;  %v30739_v10 = vld [vmem:[#allocation76_spill] sm:$0xff] }
 0x524   : > { %23737 = vrot.lane.b32.xlu1 %v23736_v26, %s24050_s26  ;;  %23742 = vrot.lane.b32.xlu0 %v30722_v6, %s24051_s28  ;;  %v30740_v26 = vld [vmem:[#allocation79_spill] sm:$0xff]  ;;  %v30742_v6 = vld [vmem:[#allocation78_spill] sm:$0xff]  ;;  %s30164_s26 = scalar_lea.hbm %s30219_s6, %s21914_s17 }
 0x528   : > { %23747 = vrot.lane.b32.xlu1 %v30723_v50, %s24051_s28  ;;  %23752 = vrot.lane.b32.xlu0 %v30724_v44, %s24051_s28  ;;  %v30743_v50 = vld [vmem:[#allocation84_spill] sm:$0xff]  ;;  %v30744_v44 = vld [vmem:[#allocation85_spill] sm:$0xff] }
 0x52c   : > { %23757 = vrot.lane.b32.xlu1 %v30725_v52, %s24051_s28  ;;  %23762 = vrot.lane.b32.xlu0 %v30726_v24, %s24051_s28  ;;  %v30746_v52 = vld [vmem:[#allocation87_spill] sm:$0xff]  ;;  %v30747_v24 = vld [vmem:[#allocation38_spill] sm:$0xff] }
 0x530   : > { %23767 = vrot.lane.b32.xlu1 %v30727_v5, %s24051_s28  ;;  %23772 = vrot.lane.b32.xlu0 %v30728_v17, %s24051_s28  ;;  %v30748_v5 = vld [vmem:[#allocation32_spill] sm:$0xff] }
 0x531   : > { %v27518_v53 = vpop.permute.xlu0 %23582 }
 0x532   : > { %v23585_v54 = vunpack.i.h.bf16 %v27518_v53  ;;  %v23584_v36 = vunpack.i.l.bf16 %v27518_v53  ;;  %v23593_v15 = vpop.permute.xlu1 %23592  ;;  %v19759_v53 = vld [vmem:[%s30218_s5 + $0x10] sm:$0xff] }
 0x533   : > { %v23595_v42 = vunpack.i.h.bf16 %v23593_v15  ;;  %v23594_v32 = vunpack.i.l.bf16 %v23593_v15  ;;  %v30749_v15 = vld [vmem:[#allocation88_spill] sm:$0xff] }
 0x534   : > { %23777 = vrot.lane.b32.xlu1 %v30729_v45, %s24051_s28  ;;  %23782 = vrot.lane.b32.xlu0 %v30730_v38, %s24051_s28 }
 0x535   : > { %v23588_v18 = vpop.permute.xlu0 %23587  ;;  %v13633_v49 = vsel %vm13576_vm4, %v23584_v36, %v23594_v32  ;;  %v13634_v1 = vsel %vm13576_vm4, %v23585_v54, %v23595_v42 }
 0x536   : > { %v23590_v30 = vunpack.i.h.bf16 %v23588_v18  ;;  %v23589_v25 = vunpack.i.l.bf16 %v23588_v18  ;;  %v27535_v35 = vpop.permute.xlu1 %23597  ;;  %v22173_v23 = vpack.c.bf16 %v13634_v1, %v13633_v49  ;;  %v30751_v1 = vld [vmem:[#allocation103_spill] sm:$0xff] }
 0x537   : > { %v23600_v39 = vunpack.i.h.bf16 %v27535_v35  ;;  %v23599_v51 = vunpack.i.l.bf16 %v27535_v35  ;;  %v27701_v35 = vld [vmem:[%s30217_s4 + $0x8] sm:$0xff] }
 0x538   : > { %v13629_v34 = vsel %vm13576_vm4, %v23594_v32, %v23589_v25  ;;  %v13630_v61 = vsel %vm13576_vm4, %v23595_v42, %v23590_v30  ;;  %22174 = vmatprep.subr.bf16.mxu0 %v22173_v23  ;;  %23787 = vrot.lane.b32.xlu1 %v30731_v60, %s24051_s28  ;;  %v30750_v32 = vld [vmem:[#allocation39_spill] sm:$0xff] }
 0x539   : > { %23792 = vrot.lane.b32.xlu0 %v30732_v2, %s24051_s28  ;;  %v13625_v48 = vsel %vm13576_vm4, %v23589_v25, %v23599_v51  ;;  %v13626_v57 = vsel %vm13576_vm4, %v23590_v30, %v23600_v39  ;;  %v22185_v11 = vpack.c.bf16 %v13630_v61, %v13629_v34  ;;  %v23613_v42 = vpop.permute.xlu0 %23612  ;;  %v30752_v25 = vld [vmem:[#allocation104_spill] sm:$0xff] }
 0x53a   : > { %v22183_v46 = vpack.c.bf16 %v13626_v57, %v13625_v48  ;;  %v23603_v17 = vpop.permute.xlu1 %23602  ;;  %v23615_v18 = vunpack.i.h.bf16 %v23613_v42  ;;  %v23614_v49 = vunpack.i.l.bf16 %v23613_v42  ;;  %v19757_v34 = vld [vmem:[%s30218_s5] sm:$0xff]  ;;  %v30753_v48 = vld [vmem:[#allocation106_spill] sm:$0xff] }
 0x53b   : > { %v23605_v45 = vunpack.i.h.bf16 %v23603_v17  ;;  %v23604_v38 = vunpack.i.l.bf16 %v23603_v17 }
 0x53c   : > { %22184 = vmatprep.subr.bf16.mxu1 %v22183_v46  ;;  %23797 = vrot.lane.b32.xlu1 %v30733_v14, %s24051_s28 }
 0x53d   : > { %23802 = vrot.lane.b32.xlu0 %v30734_v27, %s24051_s28  ;;  %22186 = vmatpush1.bf16.msra.mxu1 %v22185_v11  ;;  %v13635_v57 = vsel %vm13576_vm4, %v23604_v38, %v23614_v49  ;;  %v13636_v46 = vsel %vm13576_vm4, %v23605_v45, %v23615_v18 }
 0x53e   : > { %v23608_v30 = vpop.permute.xlu1 %23607 }
 0x53f   : > { %v23609_v2 = vunpack.i.l.bf16 %v23608_v30  ;;  %v23610_v11 = vunpack.i.h.bf16 %v23608_v30  ;;  %v19762_v30 = vld [vmem:[%s30218_s5 + $0x28] sm:$0xff] }
 0x540   : > { %23807 = vrot.lane.b32.xlu1 %v30735_v21, %s24051_s28 }
 0x541   : > { %23812 = vrot.lane.b32.xlu0 %v30736_v59, %s24051_s28  ;;  %v19758_v59 = vld [vmem:[%s30218_s5 + $0x8] sm:$0xff] }
 0x544   : > { %23817 = vrot.lane.b32.xlu1 %v30737_v20, %s24051_s28 }
 0x545   : > { %23822 = vrot.lane.b32.xlu0 %v30738_v58, %s24051_s28 }
 0x548   : > { %23827 = vrot.lane.b32.xlu1 %v30739_v10, %s24051_s28  ;;  %v22178_v10 = vpack.c.bf16 %v13636_v46, %v13635_v57 }
 0x549   : > { %23832 = vrot.lane.b32.xlu0 %v30740_v26, %s24051_s28  ;;  %v13631_v26 = vsel %vm13576_vm4, %v23614_v49, %v23609_v2 }
 0x54c   : > { %23837 = vrot.lane.b32.xlu1 %v30741_v22, %s24051_s28  ;;  %v13632_v22 = vsel %vm13576_vm4, %v23615_v18, %v23610_v11 }
 0x54d   : > { %23842 = vrot.lane.b32.xlu0 %v30742_v6, %s24051_s28  ;;  %v22189_v42 = vpack.c.bf16 %v13632_v22, %v13631_v26 }
 0x550   : > { %23847 = vrot.lane.b32.xlu1 %v30743_v50, %s24051_s28 }
 0x551   : > { %23852 = vrot.lane.b32.xlu0 %v30744_v44, %s24051_s28  ;;  %v19760_v44 = vld [vmem:[%s30218_s5 + $0x18] sm:$0xff] }
 0x554   : > { %23857 = vrot.lane.b32.xlu1 %v30745_v7, %s24051_s28 }
 0x555   : > { %23862 = vrot.lane.b32.xlu0 %v30746_v52, %s24051_s28 }
 0x558   : > { %23867 = vrot.lane.b32.xlu1 %v30747_v24, %s24051_s28 }
 0x559   : > { %23872 = vrot.lane.b32.xlu0 %v30748_v5, %s24051_s28  ;;  %v19761_v5 = vld [vmem:[%s30218_s5 + $0x20] sm:$0xff] }
 0x55c   : > { %23877 = vrot.lane.b32.xlu1 %v30749_v15, %s24051_s28 }
 0x55d   : > { %23882 = vrot.lane.b32.xlu0 %v30750_v32, %s24051_s28 }
 0x560   : > { %23887 = vrot.lane.b32.xlu1 %v30751_v1, %s24051_s28 }
 0x561   : > { %23892 = vrot.lane.b32.xlu0 %v30752_v25, %s24051_s28 }
 0x562   : > { %v27595_v23 = vpop.permute.xlu0 %23617 }
 0x563   : > { %v23620_v61 = vunpack.i.h.bf16 %v27595_v23  ;;  %v23619_v60 = vunpack.i.l.bf16 %v27595_v23 }
 0x564   : > { %23897 = vrot.lane.b32.xlu1 %v30753_v48, %s24051_s28  ;;  %s23977_s28 = scalar_lea.vmem %s30166_s18, 8192 }
 0x565   : > { %v13638_v14 = vsel %vm13576_vm4, %v23620_v61, %v23585_v54  ;;  %v13637_v27 = vsel %vm13576_vm4, %v23619_v60, %v23584_v36  ;;  %19895 = vperm.xlu0 %23579, %v19757_v34   ;;  %p23978_p6 = scmp.ne.s32.totalorder %s30166_s18, %s23977_s28  ;;  %p23985_p3 = scmp.lt.s32.totalorder %s23983_s12, %s23977_s28 }
 0x566   : > { %v22175_v20 = vpack.c.bf16 %v13638_v14, %v13637_v27  ;;  %v27628_v58 = vpop.permute.xlu0 %23622 }
 0x567   : > { %v23625_v54 = vunpack.i.h.bf16 %v27628_v58  ;;  %v23624_v36 = vunpack.i.l.bf16 %v27628_v58  ;;  %p23979_p10 = pnand %p23978_p6, %p31088_p9  ;;  %p23986_p4 = por %p23985_p3, %p23984_p2 }
 0x568   : > { %22177 = vmatpush1.bf16.msk.msra.mxu0 %vm27621_vm6, %v22175_v20  ;;  %19900 = vperm.xlu1 %23580, %v19758_v59   ;;  %v19764_v59 = vld [vmem:[%s30218_s5 + $0x38] sm:$0xff] }
 0x569   : > { %19905 = vperm.xlu0 %23579, %v19759_v53   ;;  %22179 = vmatprep.subr.bf16.mxu0 %v22178_v10  ;;  %v13627_v6 = vsel %vm13576_vm4, %v23609_v2, %v23624_v36  ;;  %v13628_v50 = vsel %vm13576_vm4, %v23610_v11, %v23625_v54  ;;  %p23980_p12 = pneg %p23979_p10 }
 0x56a   : > { %v27652_v7 = vpop.permute.xlu1 %23627  ;;  %v23633_v52 = vpop.permute.xlu0 %23632  ;;  %v22187_v24 = vpack.c.bf16 %v13628_v50, %v13627_v6 }
 0x56b   : > { %v23630_v17 = vunpack.i.h.bf16 %v27652_v7  ;;  %v23629_v15 = vunpack.i.l.bf16 %v27652_v7  ;;  %v23635_v49 = vunpack.i.h.bf16 %v23633_v52  ;;  %v23634_v1 = vunpack.i.l.bf16 %v23633_v52  ;;  %p23987_p7 = pnand %p23986_p4, %p23980_p12 }
 0x56c   : > { %22188 = vmatprep.subr.bf16.mxu1 %v22187_v24  ;;  %19910 = vperm.xlu1 %23580, %v19760_v44  }
 0x56d   : > { %v13639_v32 = vsel %vm13576_vm4, %v23629_v15, %v23604_v38  ;;  %v13640_v18 = vsel %vm13576_vm4, %v23630_v17, %v23605_v45  ;;  %19915 = vperm.xlu0 %23579, %v19761_v5   ;;  %22190 = vmatpush1.bf16.msra.mxu1 %v22189_v42  ;;  %v27673_v38 = vld [vmem:[%s30217_s4] sm:$0xff]  ;;  %v19763_v45 = vld [vmem:[%s30218_s5 + $0x30] sm:$0xff]  ;;  %v13622_v11 = vsel %vm13576_vm4, %v23600_v39, %v23635_v49 }
 0x56e   : > { %v22180_v25 = vpack.c.bf16 %v13640_v18, %v13639_v32  ;;  %v23643_v34 = vpop.permute.xlu0 %23642  ;;  %v23638_v2 = vpop.permute.xlu1 %23637  ;;  %v13621_v14 = vsel %vm13576_vm4, %v23599_v51, %v23634_v1  ;;  %v27728_v18 = vld [vmem:[%s30217_s4 + $0x10] sm:$0xff] }
 0x56f   : > { %v23640_v48 = vunpack.i.h.bf16 %v23638_v2  ;;  %v23639_v57 = vunpack.i.l.bf16 %v23638_v2  ;;  %v23645_v46 = vunpack.i.h.bf16 %v23643_v34  ;;  %v23644_v27 = vunpack.i.l.bf16 %v23643_v34 }
 0x570   : > { %22182 = vmatpush1.bf16.msk.msra.mxu0 %vm27621_vm6, %v22180_v25  ;;  %19920 = vperm.xlu1 %23580, %v19762_v30   ;;  %v22193_v26 = vpack.c.bf16 %v13622_v11, %v13621_v14 }
 0x571   : > { %21461 = vmatmul.mubr.msk.f32.vlgmr.msra.gmra.mrb[176].mxu1 %vm14004_vm3, %v27673_v38  ;;  %19925 = vperm.xlu0 %23579, %v19763_v45   ;;  %v13617_v21 = vsel %vm13576_vm4, %v23634_v1, %v23639_v57  ;;  %v13618_v51 = vsel %vm13576_vm4, %v23635_v49, %v23640_v48  ;;  %v13614_v22 = vsel %vm13576_vm4, %v23640_v48, %v23645_v46 }
 0x572   : > { %v27695_v20 = vpop.permute.xlu1 %23647  ;;  %v23653_v39 = vpop.permute.xlu0 %23652  ;;  %15140 = vmatprep.mubr.f32.mxu1 %v30424_v37  ;;  %v22191_v6 = vpack.c.bf16 %v13618_v51, %v13617_v21  ;;  %v13613_v50 = vsel %vm13576_vm4, %v23639_v57, %v23644_v27 }
 0x573   : > { %v23650_v53 = vunpack.i.h.bf16 %v27695_v20  ;;  %v23649_v10 = vunpack.i.l.bf16 %v27695_v20  ;;  %21453 = vmatmul.mubr.msk.f32.vlgmr.msra.gmra.mrb[176].mxu0 %vm14004_vm3, %v27673_v38  ;;  %v23655_v44 = vunpack.i.h.bf16 %v23653_v39  ;;  %v23654_v5 = vunpack.i.l.bf16 %v23653_v39 }
 0x574   : > { %19930 = vperm.xlu1 %23580, %v19764_v59   ;;  %15027 = vmatprep.mubr.f32.mxu0 %v30424_v37  ;;  %v22201_v25 = vpack.c.bf16 %v13614_v22, %v13613_v50 }
 0x575   : > { %21462 = vmatmul.mubr.msk.f32.gmra.mrb[178].mxu1 %vm14004_vm3, %v27701_v35  ;;  %v13609_v52 = vsel %vm13576_vm4, %v23644_v27, %v23649_v10  ;;  %v13610_v24 = vsel %vm13576_vm4, %v23645_v46, %v23650_v53  ;;  %22192 = vmatprep.subr.bf16.mxu0 %v22191_v6  ;;  %v13624_v34 = vsel %vm13576_vm4, %v23625_v54, %v23655_v44  ;;  %v27753_v54 = vld [vmem:[%s30217_s4 + $0x18] sm:$0xff]  ;;  %v27776_v6 = vld [vmem:[%s30217_s4 + $0x20] sm:$0xff] }
 0x576   : > { %v23663_v42 = vpop.permute.xlu0 %23662  ;;  %v23658_v32 = vpop.permute.xlu1 %23657  ;;  %15146 = vmatprep.mubr.f32.mxu1 %v30424_v37  ;;  %v22199_v49 = vpack.c.bf16 %v13610_v24, %v13609_v52  ;;  %22194 = vmatpush1.bf16.msra.mxu0 %v22193_v26  ;;  %v13623_v45 = vsel %vm13576_vm4, %v23624_v36, %v23654_v5 }
 0x577   : > { %v23660_v1 = vunpack.i.h.bf16 %v23658_v32  ;;  %v23659_v30 = vunpack.i.l.bf16 %v23658_v32  ;;  %21454 = vmatmul.mubr.msk.f32.gmra.mrb[178].mxu0 %vm14004_vm3, %v27701_v35  ;;  %v23665_v48 = vunpack.i.h.bf16 %v23663_v42  ;;  %v23664_v57 = vunpack.i.l.bf16 %v23663_v42 }
 0x578   : > { %22200 = vmatprep.subr.bf16.mxu1 %v22199_v49  ;;  %15033 = vmatprep.mubr.f32.mxu0 %v30424_v37  ;;  %v22197_v21 = vpack.c.bf16 %v13624_v34, %v13623_v45 }
 0x579   : > { %21463 = vmatmul.mubr.msk.f32.gmra.mrb[180].mxu1 %vm14004_vm3, %v27728_v18  ;;  %v13619_v2 = vsel %vm13576_vm4, %v23654_v5, %v23659_v30  ;;  %v13620_v58 = vsel %vm13576_vm4, %v23655_v44, %v23660_v1  ;;  %v13616_v39 = vsel %vm13576_vm4, %v23660_v1, %v23665_v48  ;;  %v13615_v51 = vsel %vm13576_vm4, %v23659_v30, %v23664_v57 }
 0x57a   : > { %22202 = vmatpush1.bf16.msra.mxu1 %v22201_v25  ;;  %v27745_v46 = vpop.permute.xlu1 %23667  ;;  %v27747_v11 = vpop.permute.xlu0 %23672  ;;  %15152 = vmatprep.mubr.f32.mxu1 %v30424_v37  ;;  %v22195_v27 = vpack.c.bf16 %v13620_v58, %v13619_v2  ;;  %v22205_v32 = vpack.c.bf16 %v13616_v39, %v13615_v51  ;;  %v27799_v25 = vld [vmem:[%s30217_s4 + $0x28] sm:$0xff] }
 0x57b   : > { %v23670_v14 = vunpack.i.h.bf16 %v27745_v46  ;;  %v23669_v36 = vunpack.i.l.bf16 %v27745_v46  ;;  %21455 = vmatmul.mubr.msk.f32.gmra.mrb[180].mxu0 %vm14004_vm3, %v27728_v18  ;;  %v23674_v44 = vunpack.i.l.bf16 %v27747_v11  ;;  %v23675_v5 = vunpack.i.h.bf16 %v27747_v11 }
 0x57c   : > { %15039 = vmatprep.mubr.f32.mxu0 %v30424_v37  ;;  %22196 = vmatprep.subr.bf16.mxu0 %v22195_v27 }
 0x57d   : > { %21464 = vmatmul.mubr.msk.f32.gmra.mrb[182].mxu1 %vm14004_vm3, %v27753_v54  ;;  %v13611_v59 = vsel %vm13576_vm4, %v23664_v57, %v23669_v36  ;;  %v13612_v50 = vsel %vm13576_vm4, %v23665_v48, %v23670_v14  ;;  %22198 = vmatpush1.bf16.msra.mxu0 %v22197_v21 }
 0x57e   : > { %v23683_v26 = vpop.permute.xlu0 %23682  ;;  %v23678_v22 = vpop.permute.xlu1 %23677  ;;  %15158 = vmatprep.mubr.f32.mxu1 %v30424_v37  ;;  %v22203_v42 = vpack.c.bf16 %v13612_v50, %v13611_v59  ;;  %v27818_v59 = vld [vmem:[%s30217_s4 + $0x30] sm:$0xff]  ;;  %v27837_v50 = vld [vmem:[%s30217_s4 + $0x38] sm:$0xff] }
 0x57f   : > { %v23680_v52 = vunpack.i.h.bf16 %v23678_v22  ;;  %v23679_v24 = vunpack.i.l.bf16 %v23678_v22  ;;  %21456 = vmatmul.mubr.msk.f32.gmra.mrb[182].mxu0 %vm14004_vm3, %v27753_v54  ;;  %v23684_v2 = vunpack.i.l.bf16 %v23683_v26  ;;  %v23685_v57 = vunpack.i.h.bf16 %v23683_v26 }
 0x580   : > { %15045 = vmatprep.mubr.f32.mxu0 %v30424_v37  ;;  %22204 = vmatprep.subr.bf16.mxu1 %v22203_v42 }
 0x581   : > { %21465 = vmatmul.mubr.msk.f32.gmra.mrb[184].mxu1 %vm14004_vm3, %v27776_v6  ;;  %v13601_v49 = vsel %vm13576_vm4, %v23674_v44, %v23679_v24  ;;  %v13602_v34 = vsel %vm13576_vm4, %v23675_v5, %v23680_v52  ;;  %v13598_v42 = vsel %vm13576_vm4, %v23680_v52, %v23685_v57 }
 0x582   : > { %v27791_v1 = vpop.permute.xlu1 %23687  ;;  %v27793_v30 = vpop.permute.xlu0 %23692  ;;  %15164 = vmatprep.mubr.f32.mxu1 %v30424_v37  ;;  %22206 = vmatpush1.bf16.msra.mxu1 %v22205_v32  ;;  %v22207_v11 = vpack.c.bf16 %v13602_v34, %v13601_v49 }
 0x583   : > { %v30334_v45 = vunpack.i.h.bf16 %v27791_v1  ;;  %v30333_v48 = vunpack.i.l.bf16 %v27791_v1  ;;  %21457 = vmatmul.mubr.msk.f32.gmra.mrb[184].mxu0 %vm14004_vm3, %v27776_v6 }
 0x584   : > { %15051 = vmatprep.mubr.f32.mxu0 %v30424_v37  ;;  %22208 = vmatprep.subr.bf16.mxu0 %v22207_v11  ;;  %v13597_v11 = vsel %vm13576_vm4, %v23679_v24, %v23684_v2  ;;  %v13606_v24 = vsel %vm13576_vm4, %v23650_v53, %v23675_v5  ;;  %v23695_v53 = vunpack.i.h.bf16 %v27793_v30 }
 0x585   : > { %21466 = vmatmul.mubr.msk.f32.gmra.mrb[186].mxu1 %vm14004_vm3, %v27799_v25  ;;  %v13593_v58 = vsel %vm13576_vm4, %v23684_v2, %v30333_v48  ;;  %v13594_v39 = vsel %vm13576_vm4, %v23685_v57, %v30334_v45  ;;  %v13605_v2 = vsel %vm13576_vm4, %v23649_v10, %v23674_v44  ;;  %v23694_v57 = vunpack.i.l.bf16 %v27793_v30 }
 0x586   : > { %v23703_v27 = vpop.permute.xlu0 %23702  ;;  %v23698_v21 = vpop.permute.xlu1 %23697  ;;  %15170 = vmatprep.mubr.f32.mxu1 %v30424_v37  ;;  %v22215_v51 = vpack.c.bf16 %v13594_v39, %v13593_v58  ;;  %v22217_v48 = vpack.c.bf16 %v13598_v42, %v13597_v11 }
 0x587   : > { %21458 = vmatmul.mubr.msk.f32.gmra.mrb[186].mxu0 %vm14004_vm3, %v27799_v25  ;;  %v23704_v32 = vunpack.i.l.bf16 %v23703_v27  ;;  %v23705_v58 = vunpack.i.h.bf16 %v23703_v27  ;;  %v23700_v39 = vunpack.i.h.bf16 %v23698_v21  ;;  %v13607_v23 = vsel %vm13576_vm4, %v23669_v36, %v23694_v57 }
 0x588   : > { %15057 = vmatprep.mubr.f32.mxu0 %v30424_v37  ;;  %22216 = vmatprep.subr.bf16.mxu1 %v22215_v51  ;;  %v23699_v51 = vunpack.i.l.bf16 %v23698_v21 }
 0x589   : > { %21467 = vmatmul.mubr.msk.f32.gmra.mrb[188].mxu1 %vm14004_vm3, %v27818_v59  ;;  %v13600_v44 = vsel %vm13576_vm4, %v23700_v39, %v23705_v58  ;;  %v13604_v11 = vsel %vm13576_vm4, %v23695_v53, %v23700_v39 }
 0x58a   : > { %v27829_v26 = vpop.permute.xlu1 %23707  ;;  %v27831_v22 = vpop.permute.xlu0 %23712  ;;  %15176 = vmatprep.mubr.f32.mxu1 %v30424_v37  ;;  %v13599_v5 = vsel %vm13576_vm4, %v23699_v51, %v23704_v32 }
 0x58b   : > { %v30335_v49 = vunpack.i.h.bf16 %v27829_v26  ;;  %v30332_v34 = vunpack.i.l.bf16 %v27829_v26  ;;  %21459 = vmatmul.mubr.msk.f32.gmra.mrb[188].mxu0 %vm14004_vm3, %v27818_v59 }
 0x58c   : > { %15063 = vmatprep.mubr.f32.mxu0 %v30424_v37 }
 0x58d   : > { %21468 = vmatmul.mubr.msk.f32.gmra.mrb[190].mxu1 %vm14004_vm3, %v27837_v50  ;;  %v13595_v52 = vsel %vm13576_vm4, %v23704_v32, %v30332_v34  ;;  %v13596_v34 = vsel %vm13576_vm4, %v23705_v58, %v30335_v49  ;;  %v13603_v49 = vsel %vm13576_vm4, %v23694_v57, %v23699_v51  ;;  %v22209_v51 = vpack.c.bf16 %v13606_v24, %v13605_v2 }
 0x58e   : > { %v27863_v27 = vpop.permute.xlu0 %23722  ;;  %v27865_v21 = vpop.permute.xlu1 %23717  ;;  %15360 = vmatprep.mubr.f32.mxu1 %v30424_v37  ;;  %v22219_v45 = vpack.c.bf16 %v13596_v34, %v13595_v52  ;;  %v23714_v52 = vunpack.i.l.bf16 %v27831_v22 }
 0x58f   : > { %v23725_v20 = vunpack.i.h.bf16 %v27863_v27  ;;  %v30336_v10 = vunpack.i.l.bf16 %v27863_v27  ;;  %21460 = vmatmul.mubr.msk.f32.gmra.mrb[190].mxu0 %vm14004_vm3, %v27837_v50  ;;  %v23720_v42 = vunpack.i.h.bf16 %v27865_v21  ;;  %v23719_v30 = vunpack.i.l.bf16 %v27865_v21 }
 0x590   : > { %15247 = vmatprep.mubr.f32.mxu0 %v30424_v37 }
 0x591   : > { %21477 = vmatmul.mubr.msk.f32.vlgmr.msra.gmra.mrb[192].mxu1 %vm14004_vm3, %v27673_v38  ;;  %v13577_v32 = vsel %vm13576_vm4, %v30336_v10, %v23619_v60  ;;  %v13578_v39 = vsel %vm13576_vm4, %v23725_v20, %v23620_v61  ;;  %v13608_v60 = vsel %vm13576_vm4, %v23670_v14, %v23695_v53  ;;  %v22221_v10 = vpack.c.bf16 %v13600_v44, %v13599_v5 }
 0x592   : > { %22218 = vmatpush1.bf16.msra.mxu1 %v22217_v48  ;;  %v27896_v34 = vpop.permute.xlu1 %23727  ;;  %v27898_v58 = vpop.permute.xlu0 %23732  ;;  %15366 = vmatprep.mubr.f32.mxu1 %v30424_v37  ;;  %v23715_v48 = vunpack.i.h.bf16 %v27831_v22  ;;  %v22211_v61 = vpack.c.bf16 %v13604_v11, %v13603_v49  ;;  %v22231_v24 = vpack.c.bf16 %v13578_v39, %v13577_v32  ;;  %v13585_v46 = vsel %vm13576_vm4, %v23714_v52, %v23719_v30 }
 0x593   : > { %22220 = vmatprep.subr.bf16.mxu1 %v22219_v45  ;;  %21469 = vmatmul.mubr.msk.f32.vlgmr.msra.gmra.mrb[192].mxu0 %vm14004_vm3, %v27673_v38  ;;  %v22213_v49 = vpack.c.bf16 %v13608_v60, %v13607_v23 }
 0x594   : > { %22210 = vmatpush1.bf16.msra.mxu0 %v22209_v51  ;;  %v13586_v14 = vsel %vm13576_vm4, %v23715_v48, %v23720_v42  ;;  %15253 = vmatprep.mubr.f32.mxu0 %v30424_v37 }
 0x595   : > { %21478 = vmatmul.mubr.msk.f32.gmra.mrb[194].mxu1 %vm14004_vm3, %v27701_v35  ;;  %22212 = vmatprep.subr.bf16.mxu0 %v22211_v61  ;;  %v22223_v53 = vpack.c.bf16 %v13586_v14, %v13585_v46  ;;  %v23734_v46 = vunpack.i.l.bf16 %v27898_v58  ;;  %v13582_v14 = vsel %vm13576_vm4, %v23720_v42, %v23725_v20  ;;  %v30758_v42 = vunpack.i.l.bf16 %v27791_v1 }
 0x596   : > { %22222 = vmatpush1.bf16.msra.mxu1 %v22221_v10  ;;  %v27933_v36 = vpop.permute.xlu1 %23737  ;;  %v27935_v45 = vpop.permute.xlu0 %23742  ;;  %15372 = vmatprep.mubr.f32.mxu1 %v30424_v37 }
 0x597   : > { %22232 = vmatprep.subr.bf16.mxu1 %v22231_v24  ;;  %v23740_v2 = vunpack.i.h.bf16 %v27933_v36  ;;  %v23739_v57 = vunpack.i.l.bf16 %v27933_v36  ;;  %21470 = vmatmul.mubr.msk.f32.gmra.mrb[194].mxu0 %vm14004_vm3, %v27701_v35  ;;  %v23729_v24 = vunpack.i.l.bf16 %v27896_v34  ;;  %v30756_v36 = vunpack.i.l.bf16 %v27863_v27 }
 0x598   : > { %22214 = vmatpush1.bf16.msra.mxu0 %v22213_v49  ;;  %15259 = vmatprep.mubr.f32.mxu0 %v30424_v37  ;;  %v30757_v27 = vunpack.i.h.bf16 %v27791_v1 }
 0x599   : > { %21479 = vmatmul.mubr.msk.f32.gmra.mrb[196].mxu1 %vm14004_vm3, %v27728_v18  ;;  %v13579_v10 = vsel %vm13576_vm4, %v23739_v57, %v23629_v15  ;;  %22224 = vmatprep.subr.bf16.mxu0 %v22223_v53  ;;  %v13580_v11 = vsel %vm13576_vm4, %v23740_v2, %v23630_v17  ;;  %v13581_v49 = vsel %vm13576_vm4, %v23719_v30, %v30756_v36  ;;  %v23730_v53 = vunpack.i.h.bf16 %v27896_v34 }
 0x59a   : > { %v27950_v44 = vpop.permute.xlu1 %23747  ;;  %v27952_v5 = vpop.permute.xlu0 %23752  ;;  %15378 = vmatprep.mubr.f32.mxu1 %v30424_v37  ;;  %v22235_v32 = vpack.c.bf16 %v13580_v11, %v13579_v10  ;;  %v23735_v10 = vunpack.i.h.bf16 %v27898_v58  ;;  %v13590_v21 = vsel %vm13576_vm4, %v30757_v27, %v23715_v48  ;;  %v13589_v30 = vsel %vm13576_vm4, %v30758_v42, %v23714_v52 }
 0x59b   : > { %21471 = vmatmul.mubr.msk.f32.gmra.mrb[196].mxu0 %vm14004_vm3, %v27728_v18  ;;  %v22233_v34 = vpack.c.bf16 %v13582_v14, %v13581_v49  ;;  %v13587_v58 = vsel %vm13576_vm4, %v23729_v24, %v23734_v46  ;;  %v13583_v36 = vsel %vm13576_vm4, %v23734_v46, %v23739_v57  ;;  %v22225_v52 = vpack.c.bf16 %v13590_v21, %v13589_v30 }
 0x59c   : > { %15265 = vmatprep.mubr.f32.mxu0 %v30424_v37  ;;  %v13584_v48 = vsel %vm13576_vm4, %v23735_v10, %v23740_v2  ;;  %v13588_v1 = vsel %vm13576_vm4, %v23730_v53, %v23735_v10  ;;  %v30759_v57 = vunpack.i.h.bf16 %v27829_v26  ;;  %v30760_v46 = vunpack.i.l.bf16 %v27829_v26 }
 0x59d   : > { %21480 = vmatmul.mubr.msk.f32.gmra.mrb[198].mxu1 %vm14004_vm3, %v27753_v54  ;;  %v22237_v10 = vpack.c.bf16 %v13584_v48, %v13583_v36  ;;  %v22227_v27 = vpack.c.bf16 %v13588_v1, %v13587_v58 }
 0x59e   : > { %v27964_v15 = vpop.permute.xlu1 %23757  ;;  %v27966_v39 = vpop.permute.xlu0 %23762  ;;  %15384 = vmatprep.mubr.f32.mxu1 %v30424_v37  ;;  %v13592_v2 = vsel %vm13576_vm4, %v30759_v57, %v23730_v53  ;;  %v13591_v49 = vsel %vm13576_vm4, %v30760_v46, %v23729_v24 }
 0x59f   : > { %21472 = vmatmul.mubr.msk.f32.gmra.mrb[198].mxu0 %vm14004_vm3, %v27753_v54  ;;  %v22229_v21 = vpack.c.bf16 %v13592_v2, %v13591_v49  ;;  %v30342_v46 = vunpack.i.h.bf16 %v27966_v39  ;;  %v30343_v49 = vunpack.i.l.bf16 %v27966_v39 }
 0x5a0   : > { %15271 = vmatprep.mubr.f32.mxu0 %v30424_v37 }
 0x5a1   : > { %21481 = vmatmul.mubr.msk.f32.gmra.mrb[200].mxu1 %vm14004_vm3, %v27776_v6 }
 0x5a2   : > { %v27974_v7 = vpop.permute.xlu1 %23767  ;;  %v27976_v17 = vpop.permute.xlu0 %23772  ;;  %15390 = vmatprep.mubr.f32.mxu1 %v30424_v37 }
 0x5a3   : > { %21473 = vmatmul.mubr.msk.f32.gmra.mrb[200].mxu0 %vm14004_vm3, %v27776_v6 }
 0x5a4   : > { %15277 = vmatprep.mubr.f32.mxu0 %v30424_v37 }
 0x5a5   : > { %21482 = vmatmul.mubr.msk.f32.gmra.mrb[202].mxu1 %vm14004_vm3, %v27799_v25 }
 0x5a6   : > { %v27984_v51 = vpop.permute.xlu1 %23777  ;;  %v27986_v60 = vpop.permute.xlu0 %23782  ;;  %15396 = vmatprep.mubr.f32.mxu1 %v30424_v37 }
 0x5a7   : > { %21474 = vmatmul.mubr.msk.f32.gmra.mrb[202].mxu0 %vm14004_vm3, %v27799_v25 }
 0x5a8   : > { %15283 = vmatprep.mubr.f32.mxu0 %v30424_v37 }
 0x5a9   : > { %21483 = vmatmul.mubr.msk.f32.gmra.mrb[204].mxu1 %vm14004_vm3, %v27818_v59 }
 0x5aa   : > { %v27994_v23 = vpop.permute.xlu1 %23787  ;;  %15402 = vmatprep.mubr.f32.mxu1 %v30424_v37 }
 0x5ab   : > { %v27997_v61 = vpop.permute.xlu0 %23792  ;;  %21475 = vmatmul.mubr.msk.f32.gmra.mrb[204].mxu0 %vm14004_vm3, %v27818_v59 }
 0x5ac   : > { %15289 = vmatprep.mubr.f32.mxu0 %v30424_v37 }
 0x5ad   : > { %21484 = vmatmul.mubr.msk.f32.gmra.mrb[206].mxu1 %vm14004_vm3, %v27837_v50 }
 0x5ae   : > { %v28020_v11 = vpop.permute.xlu1 %23797  ;;  %15586 = vmatprep.mubr.f32.mxu1 %v30424_v37 }
 0x5af   : > { %v28023_v20 = vpop.permute.xlu0 %23802  ;;  %21476 = vmatmul.mubr.msk.f32.gmra.mrb[206].mxu0 %vm14004_vm3, %v27837_v50 }
 0x5b0   : > { %15473 = vmatprep.mubr.f32.mxu0 %v30424_v37 }
 0x5b1   : > { %21493 = vmatmul.mubr.msk.f32.vlgmr.msra.gmra.mrb[208].mxu1 %vm14004_vm3, %v27673_v38 }
 0x5b2   : > { %22234 = vmatpush1.bf16.msra.mxu1 %v22233_v34  ;;  %v28050_v22 = vpop.permute.xlu1 %23807  ;;  %15592 = vmatprep.mubr.f32.mxu1 %v30424_v37 }
 0x5b3   : > { %22236 = vmatprep.subr.bf16.mxu1 %v22235_v32  ;;  %v28053_v14 = vpop.permute.xlu0 %23812  ;;  %21485 = vmatmul.mubr.msk.f32.vlgmr.msra.gmra.mrb[208].mxu0 %vm14004_vm3, %v27673_v38 }
 0x5b4   : > { %22226 = vmatpush1.bf16.msra.mxu0 %v22225_v52  ;;  %15479 = vmatprep.mubr.f32.mxu0 %v30424_v37 }
 0x5b5   : > { %21494 = vmatmul.mubr.msk.f32.gmra.mrb[210].mxu1 %vm14004_vm3, %v27701_v35  ;;  %22228 = vmatprep.subr.bf16.mxu0 %v22227_v27 }
 0x5b6   : > { %22238 = vmatpush1.bf16.msra.mxu1 %v22237_v10  ;;  %v28067_v32 = vpop.permute.xlu1 %23817  ;;  %15598 = vmatprep.mubr.f32.mxu1 %v30424_v37 }
 0x5b7   : > { %22248 = vmatprep.subr.bf16.mxu1 %v27253_v55  ;;  %v28071_v26 = vpop.permute.xlu0 %23822  ;;  %21486 = vmatmul.mubr.msk.f32.gmra.mrb[210].mxu0 %vm14004_vm3, %v27701_v35 }
 0x5b8   : > { %22230 = vmatpush1.bf16.msra.mxu0 %v22229_v21  ;;  %15485 = vmatprep.mubr.f32.mxu0 %v30424_v37 }
 0x5b9   : > { %21495 = vmatmul.mubr.msk.f32.gmra.mrb[212].mxu1 %vm14004_vm3, %v27728_v18  ;;  %22240 = vmatprep.subr.bf16.mxu0 %v27257_v19 }
 0x5ba   : > { %v28080_v24 = vpop.permute.xlu1 %23827  ;;  %15604 = vmatprep.mubr.f32.mxu1 %v30424_v37 }
 0x5bb   : > { %v28082_v53 = vpop.permute.xlu0 %23832  ;;  %21487 = vmatmul.mubr.msk.f32.gmra.mrb[212].mxu0 %vm14004_vm3, %v27728_v18 }
 0x5bc   : > { %15491 = vmatprep.mubr.f32.mxu0 %v30424_v37 }
 0x5bd   : > { %21496 = vmatmul.mubr.msk.f32.gmra.mrb[214].mxu1 %vm14004_vm3, %v27753_v54 }
 0x5be   : > { %v28090_v42 = vpop.permute.xlu1 %23837  ;;  %15610 = vmatprep.mubr.f32.mxu1 %v30424_v37 }
 0x5bf   : > { %v28093_v30 = vpop.permute.xlu0 %23842  ;;  %21488 = vmatmul.mubr.msk.f32.gmra.mrb[214].mxu0 %vm14004_vm3, %v27753_v54 }
 0x5c0   : > { %15497 = vmatprep.mubr.f32.mxu0 %v30424_v37 }
 0x5c1   : > { %21497 = vmatmul.mubr.msk.f32.gmra.mrb[216].mxu1 %vm14004_vm3, %v27776_v6 }
 0x5c2   : > { %v28100_v34 = vpop.permute.xlu1 %23847  ;;  %15616 = vmatprep.mubr.f32.mxu1 %v30424_v37 }
 0x5c3   : > { %v28103_v58 = vpop.permute.xlu0 %23852  ;;  %21489 = vmatmul.mubr.msk.f32.gmra.mrb[216].mxu0 %vm14004_vm3, %v27776_v6 }
 0x5c4   : > { %30761 = vst [vmem:[#allocation11_spill] sm:$0xff] %v28103_v58  ;;  %15503 = vmatprep.mubr.f32.mxu0 %v30424_v37  ;;  %v30349_v58 = vunpack.i.l.bf16 %v27994_v23 }
 0x5c5   : > { %21498 = vmatmul.mubr.msk.f32.gmra.mrb[218].mxu1 %vm14004_vm3, %v27799_v25 }
 0x5c6   : > { %v28110_v36 = vpop.permute.xlu1 %23857  ;;  %15622 = vmatprep.mubr.f32.mxu1 %v30424_v37 }
 0x5c7   : > { %30762 = vst [vmem:[#allocation8_spill] sm:$0xff] %v28110_v36  ;;  %v28113_v48 = vpop.permute.xlu0 %23862  ;;  %21490 = vmatmul.mubr.msk.f32.gmra.mrb[218].mxu0 %vm14004_vm3, %v27799_v25  ;;  %v30784_v36 = vld [vmem:[#allocation27_spill] sm:$0xff] }
 0x5c8   : > { %30763 = vst [vmem:[#allocation9_spill] sm:$0xff] %v28113_v48  ;;  %15509 = vmatprep.mubr.f32.mxu0 %v30424_v37  ;;  %v30783_v48 = vld [vmem:[#allocation24_spill] sm:$0xff] }
 0x5c9   : > { %21499 = vmatmul.mubr.msk.f32.gmra.mrb[220].mxu1 %vm14004_vm3, %v27818_v59 }
 0x5ca   : > { %v28120_v1 = vpop.permute.xlu1 %23867  ;;  %15628 = vmatprep.mubr.f32.mxu1 %v30424_v37 }
 0x5cb   : > { %30764 = vst [vmem:[#allocation14_spill] sm:$0xff] %v28120_v1  ;;  %v28123_v52 = vpop.permute.xlu0 %23872  ;;  %21491 = vmatmul.mubr.msk.f32.gmra.mrb[220].mxu0 %vm14004_vm3, %v27818_v59  ;;  %v30785_v1 = vld [vmem:[#allocation10_spill] sm:$0xff] }
 0x5cc   : > { %30765 = vst [vmem:[#allocation15_spill] sm:$0xff] %v28123_v52  ;;  %15515 = vmatprep.mubr.f32.mxu0 %v30424_v37 }
 0x5cd   : > { %21500 = vmatmul.mubr.msk.f32.gmra.mrb[222].mxu1 %vm14004_vm3, %v27837_v50 }
 0x5ce   : > { %v28130_v57 = vpop.permute.xlu1 %23877  ;;  %15812 = vmatprep.mubr.f32.mxu1 %v30424_v37 }
 0x5cf   : > { %30766 = vst [vmem:[#allocation12_spill] sm:$0xff] %v28130_v57  ;;  %v28133_v2 = vpop.permute.xlu0 %23882  ;;  %21492 = vmatmul.mubr.msk.f32.gmra.mrb[222].mxu0 %vm14004_vm3, %v27837_v50 }
 0x5d0   : > { %30767 = vst [vmem:[#allocation13_spill] sm:$0xff] %v28133_v2  ;;  %v30341_v10 = vunpack.i.h.bf16 %v28133_v2  ;;  %v30340_v27 = vunpack.i.l.bf16 %v28133_v2  ;;  %15699 = vmatprep.mubr.f32.mxu0 %v30424_v37 }
 0x5d1   : > { %21509 = vmatmul.mubr.msk.f32.vlgmr.msra.gmra.mrb[224].mxu1 %vm14004_vm3, %v27673_v38 }
 0x5d2   : > { %v28151_v21 = vsel %vm13849_vm7, %v30340_v27, %v30343_v49  ;;  %v28159_v52 = vsel %vm13849_vm7, %v30341_v10, %v30342_v46  ;;  %22250 = vmatpush1.bf16.msra.mxu1 %v27234_v47  ;;  %v28162_v57 = vpop.permute.xlu1 %23887  ;;  %15818 = vmatprep.mubr.f32.mxu1 %v30424_v37  ;;  %v30348_v10 = vunpack.i.h.bf16 %v27994_v23 }
 0x5d3   : > { %30768 = vst [vmem:[#allocation18_spill] sm:$0xff] %v28151_v21  ;;  %30769 = vst [vmem:[#allocation19_spill] sm:$0xff] %v28159_v52  ;;  %22252 = vmatprep.subr.bf16.mxu1 %v27284_v40  ;;  %21501 = vmatmul.mubr.msk.f32.vlgmr.msra.gmra.mrb[224].mxu0 %vm14004_vm3, %v27673_v38  ;;  %v30781_v21 = vld [vmem:[#allocation54_spill] sm:$0xff]  ;;  %v30782_v52 = vld [vmem:[#allocation47_spill] sm:$0xff] }
 0x5d4   : > { %30770 = vst [vmem:[#allocation16_spill] sm:$0xff] %v28162_v57  ;;  %22242 = vmatpush1.bf16.msra.mxu0 %v27230_v41  ;;  %15705 = vmatprep.mubr.f32.mxu0 %v30424_v37  ;;  %v28328_v57 = vld [vmem:[%s30217_s4 + $0xb8] sm:$0xff] }
 0x5d5   : > { %21510 = vmatmul.mubr.msk.f32.gmra.mrb[226].mxu1 %vm14004_vm3, %v27701_v35  ;;  %22244 = vmatprep.subr.bf16.mxu0 %v27288_v33 }
 0x5d6   : > { %22254 = vmatpush1.bf16.msra.mxu1 %v27268_v8  ;;  %v28175_v27 = vpop.permute.xlu1 %23897  ;;  %15824 = vmatprep.mubr.f32.mxu1 %v30424_v37 }
 0x5d7   : > { %30771 = vst [vmem:[#allocation17_spill] sm:$0xff] %v28175_v27  ;;  %22264 = vmatprep.subr.bf16.mxu1 %v27317_v16  ;;  %v30346_v46 = vunpack.i.h.bf16 %v28175_v27  ;;  %v30347_v38 = vunpack.i.l.bf16 %v28175_v27  ;;  %21502 = vmatmul.mubr.msk.f32.gmra.mrb[226].mxu0 %vm14004_vm3, %v27701_v35  ;;  %v28270_v35 = vld [vmem:[%s30217_s4 + $0x90] sm:$0xff] }
 0x5d8   : > { %22246 = vmatpush1.bf16.msra.mxu0 %v27263_v56  ;;  %15711 = vmatprep.mubr.f32.mxu0 %v30424_v37  ;;  %v28317_v27 = vld [vmem:[%s30217_s4 + $0xb0] sm:$0xff] }
 0x5d9   : > { %v28192_v49 = vsel %vm13849_vm7, %v30347_v38, %v30349_v58  ;;  %v28200_v2 = vsel %vm13849_vm7, %v30346_v46, %v30348_v10  ;;  %21511 = vmatmul.mubr.msk.f32.gmra.mrb[228].mxu1 %vm14004_vm3, %v27728_v18  ;;  %22256 = vmatprep.subr.bf16.mxu0 %v27321_v63  ;;  %v30778_v46 = vld [vmem:[#allocation46_spill] sm:$0xff]  ;;  %v30779_v38 = vld [vmem:[#allocation45_spill] sm:$0xff]  ;;  %v28284_v58 = vld [vmem:[%s30217_s4 + $0x98] sm:$0xff] }
 0x5da   : > { %30772 = vst [vmem:[#allocation22_spill] sm:$0xff] %v28192_v49  ;;  %30773 = vst [vmem:[#allocation23_spill] sm:$0xff] %v28200_v2  ;;  %15830 = vmatprep.mubr.f32.mxu1 %v30424_v37  ;;  %v30780_v10 = vld [vmem:[#allocation26_spill] sm:$0xff]  ;;  %v28295_v49 = vld [vmem:[%s30217_s4 + $0xa0] sm:$0xff] }
 0x5db   : > { %21503 = vmatmul.mubr.msk.f32.gmra.mrb[228].mxu0 %vm14004_vm3, %v27728_v18  ;;  %v28243_v18 = vld [vmem:[%s30217_s4 + $0x80] sm:$0xff]  ;;  %v28306_v2 = vld [vmem:[%s30217_s4 + $0xa8] sm:$0xff] }
 0x5dc   : > { %15717 = vmatprep.mubr.f32.mxu0 %v30424_v37 }
 0x5dd   : > { %21512 = vmatmul.mubr.msk.f32.gmra.mrb[230].mxu1 %vm14004_vm3, %v27753_v54 }
 0x5de   : > { %15836 = vmatprep.mubr.f32.mxu1 %v30424_v37 }
 0x5df   : > { %21504 = vmatmul.mubr.msk.f32.gmra.mrb[230].mxu0 %vm14004_vm3, %v27753_v54  ;;  %v28255_v54 = vld [vmem:[%s30217_s4 + $0x88] sm:$0xff] }
 0x5e0   : > { %15723 = vmatprep.mubr.f32.mxu0 %v30424_v37 }
 0x5e1   : > { %21513 = vmatmul.mubr.msk.f32.gmra.mrb[232].mxu1 %vm14004_vm3, %v27776_v6 }
 0x5e2   : > { %15842 = vmatprep.mubr.f32.mxu1 %v30424_v37 }
 0x5e3   : > { %21505 = vmatmul.mubr.msk.f32.gmra.mrb[232].mxu0 %vm14004_vm3, %v27776_v6  ;;  %v30774_v6 = vld [vmem:[#allocation44_spill] sm:$0xff] }
 0x5e4   : > { %15729 = vmatprep.mubr.f32.mxu0 %v30424_v37 }
 0x5e5   : > { %21514 = vmatmul.mubr.msk.f32.gmra.mrb[234].mxu1 %vm14004_vm3, %v27799_v25 }
 0x5e6   : > { %15848 = vmatprep.mubr.f32.mxu1 %v30424_v37 }
 0x5e7   : > { %21506 = vmatmul.mubr.msk.f32.gmra.mrb[234].mxu0 %vm14004_vm3, %v27799_v25  ;;  %v30775_v25 = vld [vmem:[#allocation53_spill] sm:$0xff] }
 0x5e8   : > { %15735 = vmatprep.mubr.f32.mxu0 %v30424_v37 }
 0x5e9   : > { %21515 = vmatmul.mubr.msk.f32.gmra.mrb[236].mxu1 %vm14004_vm3, %v27818_v59 }
 0x5ea   : > { %15854 = vmatprep.mubr.f32.mxu1 %v30424_v37 }
 0x5eb   : > { %21507 = vmatmul.mubr.msk.f32.gmra.mrb[236].mxu0 %vm14004_vm3, %v27818_v59  ;;  %v30776_v59 = vld [vmem:[#allocation55_spill] sm:$0xff] }
 0x5ec   : > { %15741 = vmatprep.mubr.f32.mxu0 %v30424_v37 }
 0x5ed   : > { %21516 = vmatmul.mubr.msk.f32.gmra.mrb[238].mxu1 %vm14004_vm3, %v27837_v50 }
 0x5ee   : > { %16062 = vmatprep.mubr.f32.mxu1 %v30424_v37 }
 0x5ef   : > { %21508 = vmatmul.mubr.msk.f32.gmra.mrb[238].mxu0 %vm14004_vm3, %v27837_v50  ;;  %v30777_v50 = vld [vmem:[#allocation52_spill] sm:$0xff] }
 0x5f0   : > { %15949 = vmatprep.mubr.f32.mxu0 %v30424_v37 }
 0x5f1   : > { %21525 = vmatmul.mubr.msk.f32.vlgmr.msra.gmra.mrb[176].mxu1 %vm14004_vm3, %v28243_v18 }
 0x5f2   : > { %22266 = vmatpush1.bf16.msra.mxu1 %v27297_v28  ;;  %16068 = vmatprep.mubr.f32.mxu1 %v30424_v37 }
 0x5f3   : > { %22268 = vmatprep.subr.bf16.mxu1 %v30774_v6  ;;  %21517 = vmatmul.mubr.msk.f32.vlgmr.msra.gmra.mrb[176].mxu0 %vm14004_vm3, %v28243_v18 }
 0x5f4   : > { %22258 = vmatpush1.bf16.msra.mxu0 %v30775_v25  ;;  %15955 = vmatprep.mubr.f32.mxu0 %v30424_v37 }
 0x5f5   : > { %21526 = vmatmul.mubr.msk.f32.gmra.mrb[178].mxu1 %vm14004_vm3, %v28255_v54  ;;  %22260 = vmatprep.subr.bf16.mxu0 %v30776_v59 }
 0x5f6   : > { %22270 = vmatpush1.bf16.msra.mxu1 %v30777_v50  ;;  %16074 = vmatprep.mubr.f32.mxu1 %v30424_v37 }
 0x5f7   : > { %22280 = vmatprep.subr.bf16.mxu1 %v30778_v46  ;;  %21518 = vmatmul.mubr.msk.f32.gmra.mrb[178].mxu0 %vm14004_vm3, %v28255_v54 }
 0x5f8   : > { %22262 = vmatpush1.bf16.msra.mxu0 %v30779_v38  ;;  %15961 = vmatprep.mubr.f32.mxu0 %v30424_v37 }
 0x5f9   : > { %21527 = vmatmul.mubr.msk.f32.gmra.mrb[180].mxu1 %vm14004_vm3, %v28270_v35  ;;  %22272 = vmatprep.subr.bf16.mxu0 %v30780_v10 }
 0x5fa   : > { %16080 = vmatprep.mubr.f32.mxu1 %v30424_v37 }
 0x5fb   : > { %21519 = vmatmul.mubr.msk.f32.gmra.mrb[180].mxu0 %vm14004_vm3, %v28270_v35 }
 0x5fc   : > { %15967 = vmatprep.mubr.f32.mxu0 %v30424_v37 }
 0x5fd   : > { %21528 = vmatmul.mubr.msk.f32.gmra.mrb[182].mxu1 %vm14004_vm3, %v28284_v58 }
 0x5fe   : > { %16086 = vmatprep.mubr.f32.mxu1 %v30424_v37 }
 0x5ff   : > { %21520 = vmatmul.mubr.msk.f32.gmra.mrb[182].mxu0 %vm14004_vm3, %v28284_v58 }
 0x600   : > { %15973 = vmatprep.mubr.f32.mxu0 %v30424_v37 }
 0x601   : > { %21529 = vmatmul.mubr.msk.f32.gmra.mrb[184].mxu1 %vm14004_vm3, %v28295_v49 }
 0x602   : > { %16092 = vmatprep.mubr.f32.mxu1 %v30424_v37 }
 0x603   : > { %21521 = vmatmul.mubr.msk.f32.gmra.mrb[184].mxu0 %vm14004_vm3, %v28295_v49 }
 0x604   : > { %15979 = vmatprep.mubr.f32.mxu0 %v30424_v37 }
 0x605   : > { %21530 = vmatmul.mubr.msk.f32.gmra.mrb[186].mxu1 %vm14004_vm3, %v28306_v2 }
 0x606   : > { %16098 = vmatprep.mubr.f32.mxu1 %v30424_v37 }
 0x607   : > { %21522 = vmatmul.mubr.msk.f32.gmra.mrb[186].mxu0 %vm14004_vm3, %v28306_v2 }
 0x608   : > { %15985 = vmatprep.mubr.f32.mxu0 %v30424_v37 }
 0x609   : > { %21531 = vmatmul.mubr.msk.f32.gmra.mrb[188].mxu1 %vm14004_vm3, %v28317_v27 }
 0x60a   : > { %16104 = vmatprep.mubr.f32.mxu1 %v30424_v37 }
 0x60b   : > { %21523 = vmatmul.mubr.msk.f32.gmra.mrb[188].mxu0 %vm14004_vm3, %v28317_v27 }
 0x60c   : > { %15991 = vmatprep.mubr.f32.mxu0 %v30424_v37 }
 0x60d   : > { %21532 = vmatmul.mubr.msk.f32.gmra.mrb[190].mxu1 %vm14004_vm3, %v28328_v57 }
 0x60e   : > { %16288 = vmatprep.mubr.f32.mxu1 %v30424_v37 }
 0x60f   : > { %21524 = vmatmul.mubr.msk.f32.gmra.mrb[190].mxu0 %vm14004_vm3, %v28328_v57 }
 0x610   : > { %16175 = vmatprep.mubr.f32.mxu0 %v30424_v37 }
 0x611   : > { %21541 = vmatmul.mubr.msk.f32.vlgmr.msra.gmra.mrb[192].mxu1 %vm14004_vm3, %v28243_v18 }
 0x612   : > { %22282 = vmatpush1.bf16.msra.mxu1 %v30781_v21  ;;  %16294 = vmatprep.mubr.f32.mxu1 %v30424_v37 }
 0x613   : > { %22284 = vmatprep.subr.bf16.mxu1 %v27423_v4  ;;  %21533 = vmatmul.mubr.msk.f32.vlgmr.msra.gmra.mrb[192].mxu0 %vm14004_vm3, %v28243_v18 }
 0x614   : > { %22274 = vmatpush1.bf16.msra.mxu0 %v30782_v52  ;;  %16181 = vmatprep.mubr.f32.mxu0 %v30424_v37 }
 0x615   : > { %21542 = vmatmul.mubr.msk.f32.gmra.mrb[194].mxu1 %vm14004_vm3, %v28255_v54  ;;  %22276 = vmatprep.subr.bf16.mxu0 %v27446_v0 }
 0x616   : > { %22286 = vmatpush1.bf16.msra.mxu1 %v30783_v48  ;;  %16300 = vmatprep.mubr.f32.mxu1 %v30424_v37 }
 0x617   : > { %22296 = vmatprep.subr.bf16.mxu1 %v27449_v29  ;;  %21534 = vmatmul.mubr.msk.f32.gmra.mrb[194].mxu0 %vm14004_vm3, %v28255_v54 }
 0x618   : > { %22278 = vmatpush1.bf16.msra.mxu0 %v30784_v36  ;;  %16187 = vmatprep.mubr.f32.mxu0 %v30424_v37 }
 0x619   : > { %21543 = vmatmul.mubr.msk.f32.gmra.mrb[196].mxu1 %vm14004_vm3, %v28270_v35  ;;  %22288 = vmatprep.subr.bf16.mxu0 %v27451_v3 }
 0x61a   : > { %16306 = vmatprep.mubr.f32.mxu1 %v30424_v37 }
 0x61b   : > { %21535 = vmatmul.mubr.msk.f32.gmra.mrb[196].mxu0 %vm14004_vm3, %v28270_v35 }
 0x61c   : > { %16193 = vmatprep.mubr.f32.mxu0 %v30424_v37 }
 0x61d   : > { %21544 = vmatmul.mubr.msk.f32.gmra.mrb[198].mxu1 %vm14004_vm3, %v28284_v58 }
 0x61e   : > { %16312 = vmatprep.mubr.f32.mxu1 %v30424_v37 }
 0x61f   : > { %21536 = vmatmul.mubr.msk.f32.gmra.mrb[198].mxu0 %vm14004_vm3, %v28284_v58 }
 0x620   : > { %16199 = vmatprep.mubr.f32.mxu0 %v30424_v37 }
 0x621   : > { %21545 = vmatmul.mubr.msk.f32.gmra.mrb[200].mxu1 %vm14004_vm3, %v28295_v49 }
 0x622   : > { %16318 = vmatprep.mubr.f32.mxu1 %v30424_v37 }
 0x623   : > { %21537 = vmatmul.mubr.msk.f32.gmra.mrb[200].mxu0 %vm14004_vm3, %v28295_v49 }
 0x624   : > { %16205 = vmatprep.mubr.f32.mxu0 %v30424_v37 }
 0x625   : > { %21546 = vmatmul.mubr.msk.f32.gmra.mrb[202].mxu1 %vm14004_vm3, %v28306_v2 }
 0x626   : > { %16324 = vmatprep.mubr.f32.mxu1 %v30424_v37 }
 0x627   : > { %21538 = vmatmul.mubr.msk.f32.gmra.mrb[202].mxu0 %vm14004_vm3, %v28306_v2 }
 0x628   : > { %16211 = vmatprep.mubr.f32.mxu0 %v30424_v37 }
 0x629   : > { %21547 = vmatmul.mubr.msk.f32.gmra.mrb[204].mxu1 %vm14004_vm3, %v28317_v27 }
 0x62a   : > { %16330 = vmatprep.mubr.f32.mxu1 %v30424_v37 }
 0x62b   : > { %21539 = vmatmul.mubr.msk.f32.gmra.mrb[204].mxu0 %vm14004_vm3, %v28317_v27 }
 0x62c   : > { %16217 = vmatprep.mubr.f32.mxu0 %v30424_v37 }
 0x62d   : > { %21548 = vmatmul.mubr.msk.f32.gmra.mrb[206].mxu1 %vm14004_vm3, %v28328_v57 }
 0x62e   : > { %16514 = vmatprep.mubr.f32.mxu1 %v30424_v37 }
 0x62f   : > { %21540 = vmatmul.mubr.msk.f32.gmra.mrb[206].mxu0 %vm14004_vm3, %v28328_v57 }
 0x630   : > { %16401 = vmatprep.mubr.f32.mxu0 %v30424_v37 }
 0x631   : > { %21557 = vmatmul.mubr.msk.f32.vlgmr.msra.gmra.mrb[208].mxu1 %vm14004_vm3, %v28243_v18 }
 0x632   : > { %22298 = vmatpush1.bf16.msra.mxu1 %v27431_v31  ;;  %16520 = vmatprep.mubr.f32.mxu1 %v30424_v37 }
 0x633   : > { %22300 = vmatprep.subr.bf16.mxu1 %v27461_v62  ;;  %21549 = vmatmul.mubr.msk.f32.vlgmr.msra.gmra.mrb[208].mxu0 %vm14004_vm3, %v28243_v18 }
 0x634   : > { %22290 = vmatpush1.bf16.msra.mxu0 %v30785_v1  ;;  %16407 = vmatprep.mubr.f32.mxu0 %v30424_v37 }
 0x635   : > { %21558 = vmatmul.mubr.msk.f32.gmra.mrb[210].mxu1 %vm14004_vm3, %v28255_v54  ;;  %22292 = vmatprep.subr.bf16.mxu0 %v27459_v12 }
 0x636   : > { %22302 = vmatpush1.bf16.msra.mxu1 %v27457_v13  ;;  %16526 = vmatprep.mubr.f32.mxu1 %v30424_v37 }
 0x637   : > { %22312 = vmatprep.subr.bf16.mxu1 %v27253_v55  ;;  %21550 = vmatmul.mubr.msk.f32.gmra.mrb[210].mxu0 %vm14004_vm3, %v28255_v54  ;;  %v28539_v55 = vld [vmem:[%s30217_s4 + $0x50] sm:$0xff] }
 0x638   : > { %22294 = vmatpush1.bf16.msra.mxu0 %v27453_v43  ;;  %16413 = vmatprep.mubr.f32.mxu0 %v30424_v37 }
 0x639   : > { %21559 = vmatmul.mubr.msk.f32.gmra.mrb[212].mxu1 %vm14004_vm3, %v28270_v35  ;;  %22304 = vmatprep.subr.bf16.mxu0 %v27257_v19  ;;  %v28551_v19 = vld [vmem:[%s30217_s4 + $0x58] sm:$0xff] }
 0x63a   : > { %16532 = vmatprep.mubr.f32.mxu1 %v30424_v37 }
 0x63b   : > { %21551 = vmatmul.mubr.msk.f32.gmra.mrb[212].mxu0 %vm14004_vm3, %v28270_v35 }
 0x63c   : > { %16419 = vmatprep.mubr.f32.mxu0 %v30424_v37 }
 0x63d   : > { %21560 = vmatmul.mubr.msk.f32.gmra.mrb[214].mxu1 %vm14004_vm3, %v28284_v58 }
 0x63e   : > { %16538 = vmatprep.mubr.f32.mxu1 %v30424_v37 }
 0x63f   : > { %21552 = vmatmul.mubr.msk.f32.gmra.mrb[214].mxu0 %vm14004_vm3, %v28284_v58 }
 0x640   : > { %16425 = vmatprep.mubr.f32.mxu0 %v30424_v37 }
 0x641   : > { %21561 = vmatmul.mubr.msk.f32.gmra.mrb[216].mxu1 %vm14004_vm3, %v28295_v49 }
 0x642   : > { %16544 = vmatprep.mubr.f32.mxu1 %v30424_v37 }
 0x643   : > { %21553 = vmatmul.mubr.msk.f32.gmra.mrb[216].mxu0 %vm14004_vm3, %v28295_v49 }
 0x644   : > { %16431 = vmatprep.mubr.f32.mxu0 %v30424_v37 }
 0x645   : > { %21562 = vmatmul.mubr.msk.f32.gmra.mrb[218].mxu1 %vm14004_vm3, %v28306_v2 }
 0x646   : > { %16550 = vmatprep.mubr.f32.mxu1 %v30424_v37 }
 0x647   : > { %21554 = vmatmul.mubr.msk.f32.gmra.mrb[218].mxu0 %vm14004_vm3, %v28306_v2 }
 0x648   : > { %16437 = vmatprep.mubr.f32.mxu0 %v30424_v37 }
 0x649   : > { %21563 = vmatmul.mubr.msk.f32.gmra.mrb[220].mxu1 %vm14004_vm3, %v28317_v27 }
 0x64a   : > { %16556 = vmatprep.mubr.f32.mxu1 %v30424_v37 }
 0x64b   : > { %21555 = vmatmul.mubr.msk.f32.gmra.mrb[220].mxu0 %vm14004_vm3, %v28317_v27 }
 0x64c   : > { %16443 = vmatprep.mubr.f32.mxu0 %v30424_v37 }
 0x64d   : > { %21564 = vmatmul.mubr.msk.f32.gmra.mrb[222].mxu1 %vm14004_vm3, %v28328_v57 }
 0x64e   : > { %16740 = vmatprep.mubr.f32.mxu1 %v30424_v37 }
 0x64f   : > { %21556 = vmatmul.mubr.msk.f32.gmra.mrb[222].mxu0 %vm14004_vm3, %v28328_v57 }
 0x650   : > { %16627 = vmatprep.mubr.f32.mxu0 %v30424_v37 }
 0x651   : > { %21573 = vmatmul.mubr.msk.f32.vlgmr.msra.gmra.mrb[224].mxu1 %vm14004_vm3, %v28243_v18 }
 0x652   : > { %22314 = vmatpush1.bf16.msra.mxu1 %v27234_v47  ;;  %16746 = vmatprep.mubr.f32.mxu1 %v30424_v37  ;;  %v28524_v47 = vld [vmem:[%s30217_s4 + $0x48] sm:$0xff] }
 0x653   : > { %22316 = vmatprep.subr.bf16.mxu1 %v27284_v40  ;;  %21565 = vmatmul.mubr.msk.f32.vlgmr.msra.gmra.mrb[224].mxu0 %vm14004_vm3, %v28243_v18  ;;  %v28584_v40 = vld [vmem:[%s30217_s4 + $0x70] sm:$0xff]  ;;  %v30795_v18 = vld [vmem:[#allocation95_spill] sm:$0xff] }
 0x654   : > { %22306 = vmatpush1.bf16.msra.mxu0 %v27230_v41  ;;  %16633 = vmatprep.mubr.f32.mxu0 %v30424_v37  ;;  %v28510_v41 = vld [vmem:[%s30217_s4 + $0x40] sm:$0xff] }
 0x655   : > { %21574 = vmatmul.mubr.msk.f32.gmra.mrb[226].mxu1 %vm14004_vm3, %v28255_v54  ;;  %22308 = vmatprep.subr.bf16.mxu0 %v27288_v33  ;;  %v28595_v33 = vld [vmem:[%s30217_s4 + $0x78] sm:$0xff] }
 0x656   : > { %22318 = vmatpush1.bf16.msra.mxu1 %v27268_v8  ;;  %16752 = vmatprep.mubr.f32.mxu1 %v30424_v37  ;;  %v28573_v8 = vld [vmem:[%s30217_s4 + $0x68] sm:$0xff] }
 0x657   : > { %22328 = vmatprep.subr.bf16.mxu1 %v27317_v16  ;;  %21566 = vmatmul.mubr.msk.f32.gmra.mrb[226].mxu0 %vm14004_vm3, %v28255_v54  ;;  %v30787_v16 = vld [vmem:[#allocation30_spill] sm:$0xff] }
 0x658   : > { %22310 = vmatpush1.bf16.msra.mxu0 %v27263_v56  ;;  %16639 = vmatprep.mubr.f32.mxu0 %v30424_v37  ;;  %v28562_v56 = vld [vmem:[%s30217_s4 + $0x60] sm:$0xff] }
 0x659   : > { %21575 = vmatmul.mubr.msk.f32.gmra.mrb[228].mxu1 %vm14004_vm3, %v28270_v35  ;;  %22320 = vmatprep.subr.bf16.mxu0 %v27321_v63 }
 0x65a   : > { %16758 = vmatprep.mubr.f32.mxu1 %v30424_v37 }
 0x65b   : > { %21567 = vmatmul.mubr.msk.f32.gmra.mrb[228].mxu0 %vm14004_vm3, %v28270_v35 }
 0x65c   : > { %16645 = vmatprep.mubr.f32.mxu0 %v30424_v37 }
 0x65d   : > { %21576 = vmatmul.mubr.msk.f32.gmra.mrb[230].mxu1 %vm14004_vm3, %v28284_v58 }
 0x65e   : > { %16764 = vmatprep.mubr.f32.mxu1 %v30424_v37 }
 0x65f   : > { %21568 = vmatmul.mubr.msk.f32.gmra.mrb[230].mxu0 %vm14004_vm3, %v28284_v58 }
 0x660   : > { %16651 = vmatprep.mubr.f32.mxu0 %v30424_v37 }
 0x661   : > { %21577 = vmatmul.mubr.msk.f32.gmra.mrb[232].mxu1 %vm14004_vm3, %v28295_v49 }
 0x662   : > { %16770 = vmatprep.mubr.f32.mxu1 %v30424_v37 }
 0x663   : > { %21569 = vmatmul.mubr.msk.f32.gmra.mrb[232].mxu0 %vm14004_vm3, %v28295_v49 }
 0x664   : > { %16657 = vmatprep.mubr.f32.mxu0 %v30424_v37 }
 0x665   : > { %21578 = vmatmul.mubr.msk.f32.gmra.mrb[234].mxu1 %vm14004_vm3, %v28306_v2 }
 0x666   : > { %16776 = vmatprep.mubr.f32.mxu1 %v30424_v37 }
 0x667   : > { %21570 = vmatmul.mubr.msk.f32.gmra.mrb[234].mxu0 %vm14004_vm3, %v28306_v2  ;;  %v30789_v2 = vld [vmem:[#allocation90_spill] sm:$0xff] }
 0x668   : > { %16663 = vmatprep.mubr.f32.mxu0 %v30424_v37 }
 0x669   : > { %21579 = vmatmul.mubr.msk.f32.gmra.mrb[236].mxu1 %vm14004_vm3, %v28317_v27 }
 0x66a   : > { %16782 = vmatprep.mubr.f32.mxu1 %v30424_v37 }
 0x66b   : > { %21571 = vmatmul.mubr.msk.f32.gmra.mrb[236].mxu0 %vm14004_vm3, %v28317_v27 }
 0x66c   : > { %16669 = vmatprep.mubr.f32.mxu0 %v30424_v37 }
 0x66d   : > { %21580 = vmatmul.mubr.msk.f32.gmra.mrb[238].mxu1 %vm14004_vm3, %v28328_v57 }
 0x66e   : > { %17094 = vmatprep.mubr.f32.mxu1 %v30424_v37 }
 0x66f   : > { %21572 = vmatmul.mubr.msk.f32.gmra.mrb[238].mxu0 %vm14004_vm3, %v28328_v57 }
 0x670   : > { %16981 = vmatprep.mubr.f32.mxu0 %v30424_v37 }
 0x671   : > { %21589 = vmatmul.mubr.msk.f32.vlgmr.msra.gmra.mrb[240].mxu1 %vm14004_vm3, %v28510_v41 }
 0x672   : > { %22330 = vmatpush1.bf16.msra.mxu1 %v27297_v28  ;;  %17100 = vmatprep.mubr.f32.mxu1 %v30424_v37  ;;  %v30786_v28 = vld [vmem:[#allocation28_spill] sm:$0xff] }
 0x673   : > { %22332 = vmatprep.subr.bf16.mxu1 %v30774_v6  ;;  %21581 = vmatmul.mubr.msk.f32.vlgmr.msra.gmra.mrb[240].mxu0 %vm14004_vm3, %v28510_v41 }
 0x674   : > { %22322 = vmatpush1.bf16.msra.mxu0 %v30775_v25  ;;  %16987 = vmatprep.mubr.f32.mxu0 %v30424_v37  ;;  %v30798_v25 = vld [vmem:[#allocation36_spill] sm:$0xff] }
 0x675   : > { %21590 = vmatmul.mubr.msk.f32.gmra.mrb[242].mxu1 %vm14004_vm3, %v28524_v47  ;;  %22324 = vmatprep.subr.bf16.mxu0 %v30776_v59 }
 0x676   : > { %22334 = vmatpush1.bf16.msra.mxu1 %v30777_v50  ;;  %17106 = vmatprep.mubr.f32.mxu1 %v30424_v37  ;;  %v30800_v50 = vld [vmem:[#allocation94_spill] sm:$0xff] }
 0x677   : > { %22344 = vmatprep.subr.bf16.mxu1 %v30778_v46  ;;  %21582 = vmatmul.mubr.msk.f32.gmra.mrb[242].mxu0 %vm14004_vm3, %v28524_v47 }
 0x678   : > { %22326 = vmatpush1.bf16.msra.mxu0 %v30779_v38  ;;  %16993 = vmatprep.mubr.f32.mxu0 %v30424_v37  ;;  %v30793_v38 = vld [vmem:[#allocation89_spill] sm:$0xff] }
 0x679   : > { %21591 = vmatmul.mubr.msk.f32.gmra.mrb[244].mxu1 %vm14004_vm3, %v28539_v55  ;;  %22336 = vmatprep.subr.bf16.mxu0 %v30780_v10  ;;  %v30790_v10 = vld [vmem:[#allocation25_spill] sm:$0xff] }
 0x67a   : > { %17112 = vmatprep.mubr.f32.mxu1 %v30424_v37 }
 0x67b   : > { %21583 = vmatmul.mubr.msk.f32.gmra.mrb[244].mxu0 %vm14004_vm3, %v28539_v55 }
 0x67c   : > { %16999 = vmatprep.mubr.f32.mxu0 %v30424_v37 }
 0x67d   : > { %21592 = vmatmul.mubr.msk.f32.gmra.mrb[246].mxu1 %vm14004_vm3, %v28551_v19 }
 0x67e   : > { %17118 = vmatprep.mubr.f32.mxu1 %v30424_v37 }
 0x67f   : > { %21584 = vmatmul.mubr.msk.f32.gmra.mrb[246].mxu0 %vm14004_vm3, %v28551_v19 }
 0x680   : > { %17005 = vmatprep.mubr.f32.mxu0 %v30424_v37 }
 0x681   : > { %21593 = vmatmul.mubr.msk.f32.gmra.mrb[248].mxu1 %vm14004_vm3, %v28562_v56 }
 0x682   : > { %17124 = vmatprep.mubr.f32.mxu1 %v30424_v37 }
 0x683   : > { %21585 = vmatmul.mubr.msk.f32.gmra.mrb[248].mxu0 %vm14004_vm3, %v28562_v56 }
 0x684   : > { %17011 = vmatprep.mubr.f32.mxu0 %v30424_v37 }
 0x685   : > { %21594 = vmatmul.mubr.msk.f32.gmra.mrb[250].mxu1 %vm14004_vm3, %v28573_v8 }
 0x686   : > { %17130 = vmatprep.mubr.f32.mxu1 %v30424_v37 }
 0x687   : > { %21586 = vmatmul.mubr.msk.f32.gmra.mrb[250].mxu0 %vm14004_vm3, %v28573_v8 }
 0x688   : > { %17017 = vmatprep.mubr.f32.mxu0 %v30424_v37 }
 0x689   : > { %21595 = vmatmul.mubr.msk.f32.gmra.mrb[252].mxu1 %vm14004_vm3, %v28584_v40 }
 0x68a   : > { %17136 = vmatprep.mubr.f32.mxu1 %v30424_v37 }
 0x68b   : > { %21587 = vmatmul.mubr.msk.f32.gmra.mrb[252].mxu0 %vm14004_vm3, %v28584_v40 }
 0x68c   : > { %17023 = vmatprep.mubr.f32.mxu0 %v30424_v37 }
 0x68d   : > { %21596 = vmatmul.mubr.msk.f32.gmra.mrb[254].mxu1 %vm14004_vm3, %v28595_v33 }
 0x68e   : > { %17320 = vmatprep.mubr.f32.mxu1 %v30424_v37 }
 0x68f   : > { %21588 = vmatmul.mubr.msk.f32.gmra.mrb[254].mxu0 %vm14004_vm3, %v28595_v33 }
 0x690   : > { %17207 = vmatprep.mubr.f32.mxu0 %v30424_v37 }
 0x691   : > { %21605 = vmatmul.mubr.msk.f32.vlgmr.msra.gmra.mrb[0].mxu1 %vm14004_vm3, %v28510_v41 }
 0x692   : > { %22346 = vmatpush1.bf16.msra.mxu1 %v30781_v21  ;;  %17326 = vmatprep.mubr.f32.mxu1 %v30424_v37  ;;  %v30792_v21 = vld [vmem:[#allocation37_spill] sm:$0xff] }
 0x693   : > { %22348 = vmatprep.subr.bf16.mxu1 %v27423_v4  ;;  %21597 = vmatmul.mubr.msk.f32.vlgmr.msra.gmra.mrb[0].mxu0 %vm14004_vm3, %v28510_v41 }
 0x694   : > { %22338 = vmatpush1.bf16.msra.mxu0 %v30782_v52  ;;  %17213 = vmatprep.mubr.f32.mxu0 %v30424_v37  ;;  %v30788_v52 = vld [vmem:[#allocation31_spill] sm:$0xff] }
 0x695   : > { %21606 = vmatmul.mubr.msk.f32.gmra.mrb[2].mxu1 %vm14004_vm3, %v28524_v47  ;;  %22340 = vmatprep.subr.bf16.mxu0 %v27446_v0 }
 0x696   : > { %22350 = vmatpush1.bf16.msra.mxu1 %v30783_v48  ;;  %17332 = vmatprep.mubr.f32.mxu1 %v30424_v37 }
 0x697   : > { %22360 = vmatprep.subr.bf16.mxu1 %v27449_v29  ;;  %21598 = vmatmul.mubr.msk.f32.gmra.mrb[2].mxu0 %vm14004_vm3, %v28524_v47 }
 0x698   : > { %22342 = vmatpush1.bf16.msra.mxu0 %v30784_v36  ;;  %17219 = vmatprep.mubr.f32.mxu0 %v30424_v37 }
 0x699   : > { %21607 = vmatmul.mubr.msk.f32.gmra.mrb[4].mxu1 %vm14004_vm3, %v28539_v55  ;;  %22352 = vmatprep.subr.bf16.mxu0 %v27451_v3 }
 0x69a   : > { %17338 = vmatprep.mubr.f32.mxu1 %v30424_v37 }
 0x69b   : > { %21599 = vmatmul.mubr.msk.f32.gmra.mrb[4].mxu0 %vm14004_vm3, %v28539_v55 }
 0x69c   : > { %17225 = vmatprep.mubr.f32.mxu0 %v30424_v37 }
 0x69d   : > { %21608 = vmatmul.mubr.msk.f32.gmra.mrb[6].mxu1 %vm14004_vm3, %v28551_v19 }
 0x69e   : > { %17344 = vmatprep.mubr.f32.mxu1 %v30424_v37 }
 0x69f   : > { %21600 = vmatmul.mubr.msk.f32.gmra.mrb[6].mxu0 %vm14004_vm3, %v28551_v19 }
 0x6a0   : > { %17231 = vmatprep.mubr.f32.mxu0 %v30424_v37 }
 0x6a1   : > { %21609 = vmatmul.mubr.msk.f32.gmra.mrb[8].mxu1 %vm14004_vm3, %v28562_v56 }
 0x6a2   : > { %17350 = vmatprep.mubr.f32.mxu1 %v30424_v37 }
 0x6a3   : > { %21601 = vmatmul.mubr.msk.f32.gmra.mrb[8].mxu0 %vm14004_vm3, %v28562_v56 }
 0x6a4   : > { %17237 = vmatprep.mubr.f32.mxu0 %v30424_v37 }
 0x6a5   : > { %21610 = vmatmul.mubr.msk.f32.gmra.mrb[10].mxu1 %vm14004_vm3, %v28573_v8 }
 0x6a6   : > { %17356 = vmatprep.mubr.f32.mxu1 %v30424_v37 }
 0x6a7   : > { %21602 = vmatmul.mubr.msk.f32.gmra.mrb[10].mxu0 %vm14004_vm3, %v28573_v8 }
 0x6a8   : > { %17243 = vmatprep.mubr.f32.mxu0 %v30424_v37 }
 0x6a9   : > { %21611 = vmatmul.mubr.msk.f32.gmra.mrb[12].mxu1 %vm14004_vm3, %v28584_v40 }
 0x6aa   : > { %17362 = vmatprep.mubr.f32.mxu1 %v30424_v37 }
 0x6ab   : > { %21603 = vmatmul.mubr.msk.f32.gmra.mrb[12].mxu0 %vm14004_vm3, %v28584_v40 }
 0x6ac   : > { %17249 = vmatprep.mubr.f32.mxu0 %v30424_v37 }
 0x6ad   : > { %21612 = vmatmul.mubr.msk.f32.gmra.mrb[14].mxu1 %vm14004_vm3, %v28595_v33 }
 0x6ae   : > { %17546 = vmatprep.mubr.f32.mxu1 %v30424_v37 }
 0x6af   : > { %21604 = vmatmul.mubr.msk.f32.gmra.mrb[14].mxu0 %vm14004_vm3, %v28595_v33 }
 0x6b0   : > { %17433 = vmatprep.mubr.f32.mxu0 %v30424_v37 }
 0x6b1   : > { %21621 = vmatmul.mubr.msk.f32.vlgmr.msra.gmra.mrb[16].mxu1 %vm14004_vm3, %v28510_v41 }
 0x6b2   : > { %22362 = vmatpush1.bf16.msra.mxu1 %v27431_v31  ;;  %17552 = vmatprep.mubr.f32.mxu1 %v30424_v37 }
 0x6b3   : > { %22364 = vmatprep.subr.bf16.mxu1 %v27461_v62  ;;  %21613 = vmatmul.mubr.msk.f32.vlgmr.msra.gmra.mrb[16].mxu0 %vm14004_vm3, %v28510_v41 }
 0x6b4   : > { %22354 = vmatpush1.bf16.msra.mxu0 %v30785_v1  ;;  %17439 = vmatprep.mubr.f32.mxu0 %v30424_v37 }
 0x6b5   : > { %21622 = vmatmul.mubr.msk.f32.gmra.mrb[18].mxu1 %vm14004_vm3, %v28524_v47  ;;  %22356 = vmatprep.subr.bf16.mxu0 %v27459_v12 }
 0x6b6   : > { %22366 = vmatpush1.bf16.msra.mxu1 %v27457_v13  ;;  %17558 = vmatprep.mubr.f32.mxu1 %v30424_v37 }
 0x6b7   : > { %22376 = vmatprep.subr.bf16.mxu1 %v30786_v28  ;;  %21614 = vmatmul.mubr.msk.f32.gmra.mrb[18].mxu0 %vm14004_vm3, %v28524_v47 }
 0x6b8   : > { %22358 = vmatpush1.bf16.msra.mxu0 %v27453_v43  ;;  %17445 = vmatprep.mubr.f32.mxu0 %v30424_v37 }
 0x6b9   : > { %21623 = vmatmul.mubr.msk.f32.gmra.mrb[20].mxu1 %vm14004_vm3, %v28539_v55  ;;  %22368 = vmatprep.subr.bf16.mxu0 %v30787_v16 }
 0x6ba   : > { %17564 = vmatprep.mubr.f32.mxu1 %v30424_v37 }
 0x6bb   : > { %21615 = vmatmul.mubr.msk.f32.gmra.mrb[20].mxu0 %vm14004_vm3, %v28539_v55 }
 0x6bc   : > { %17451 = vmatprep.mubr.f32.mxu0 %v30424_v37 }
 0x6bd   : > { %21624 = vmatmul.mubr.msk.f32.gmra.mrb[22].mxu1 %vm14004_vm3, %v28551_v19 }
 0x6be   : > { %17570 = vmatprep.mubr.f32.mxu1 %v30424_v37 }
 0x6bf   : > { %21616 = vmatmul.mubr.msk.f32.gmra.mrb[22].mxu0 %vm14004_vm3, %v28551_v19 }
 0x6c0   : > { %17457 = vmatprep.mubr.f32.mxu0 %v30424_v37 }
 0x6c1   : > { %21625 = vmatmul.mubr.msk.f32.gmra.mrb[24].mxu1 %vm14004_vm3, %v28562_v56 }
 0x6c2   : > { %17576 = vmatprep.mubr.f32.mxu1 %v30424_v37 }
 0x6c3   : > { %21617 = vmatmul.mubr.msk.f32.gmra.mrb[24].mxu0 %vm14004_vm3, %v28562_v56 }
 0x6c4   : > { %v28696_v63 = vpop.f32.mrb[176].mxu1  ;;  %17463 = vmatprep.mubr.f32.mxu0 %v30424_v37 }
 0x6c5   : > { %v28699_v4 = vpop.f32.mrb[177].mxu1  ;;  %21626 = vmatmul.mubr.msk.f32.gmra.mrb[26].mxu1 %vm14004_vm3, %v28573_v8 }
 0x6c6   : > { %v28703_v31 = vpop.f32.mrb[176].mxu0  ;;  %17582 = vmatprep.mubr.f32.mxu1 %v30424_v37 }
 0x6c7   : > { %v28706_v0 = vpop.f32.mrb[177].mxu0  ;;  %21618 = vmatmul.mubr.msk.f32.gmra.mrb[26].mxu0 %vm14004_vm3, %v28573_v8 }
 0x6c8   : > { %v28710_v29 = vpop.f32.mrb[178].mxu1  ;;  %17469 = vmatprep.mubr.f32.mxu0 %v30424_v37 }
 0x6c9   : > { %v28713_v3 = vpop.f32.mrb[179].mxu1  ;;  %21627 = vmatmul.mubr.msk.f32.gmra.mrb[28].mxu1 %vm14004_vm3, %v28584_v40 }
 0x6ca   : > { %v28717_v43 = vpop.f32.mrb[178].mxu0  ;;  %17588 = vmatprep.mubr.f32.mxu1 %v30424_v37 }
 0x6cb   : > { %v28720_v13 = vpop.f32.mrb[179].mxu0  ;;  %21619 = vmatmul.mubr.msk.f32.gmra.mrb[28].mxu0 %vm14004_vm3, %v28584_v40 }
 0x6cc   : > { %v28724_v12 = vpop.f32.mrb[180].mxu1  ;;  %17475 = vmatprep.mubr.f32.mxu0 %v30424_v37 }
 0x6cd   : > { %v28727_v62 = vpop.f32.mrb[181].mxu1  ;;  %21628 = vmatmul.mubr.msk.f32.gmra.mrb[30].mxu1 %vm14004_vm3, %v28595_v33 }
 0x6ce   : > { %v28731_v58 = vpop.f32.mrb[180].mxu0  ;;  %17772 = vmatprep.mubr.f32.mxu1 %v30424_v37 }
 0x6cf   : > { %v28734_v36 = vpop.f32.mrb[181].mxu0  ;;  %21620 = vmatmul.mubr.msk.f32.gmra.mrb[30].mxu0 %vm14004_vm3, %v28595_v33 }
 0x6d0   : > { %v28738_v48 = vpop.f32.mrb[182].mxu1  ;;  %17659 = vmatprep.mubr.f32.mxu0 %v30424_v37 }
 0x6d1   : > { %v28741_v1 = vpop.f32.mrb[183].mxu1  ;;  %21637 = vmatmul.mubr.msk.f32.vlgmr.msra.gmra.mrb[32].mxu1 %vm14004_vm3, %v28510_v41 }
 0x6d2   : > { %22378 = vmatpush1.bf16.msra.mxu1 %v30788_v52  ;;  %v28746_v57 = vpop.f32.mrb[182].mxu0  ;;  %17778 = vmatprep.mubr.f32.mxu1 %v30424_v37 }
 0x6d3   : > { %22380 = vmatprep.subr.bf16.mxu1 %v30789_v2  ;;  %v28750_v46 = vpop.f32.mrb[183].mxu0  ;;  %21629 = vmatmul.mubr.msk.f32.vlgmr.msra.gmra.mrb[32].mxu0 %vm14004_vm3, %v28510_v41 }
 0x6d4   : > { %v28754_v49 = vpop.f32.mrb[184].mxu1  ;;  %22370 = vmatpush1.bf16.msra.mxu0 %v30790_v10  ;;  %17665 = vmatprep.mubr.f32.mxu0 %v30424_v37 }
 0x6d5   : > { %v28758_v27 = vpop.f32.mrb[185].mxu1  ;;  %21638 = vmatmul.mubr.msk.f32.gmra.mrb[34].mxu1 %vm14004_vm3, %v28524_v47  ;;  %22372 = vmatprep.subr.bf16.mxu0 %v30792_v21 }
 0x6d6   : > { %30791 = vst [vmem:[#allocation20_spill] sm:$0xff] %v28758_v27  ;;  %22382 = vmatpush1.bf16.msra.mxu1 %v30793_v38  ;;  %v28764_v35 = vpop.f32.mrb[184].mxu0  ;;  %17784 = vmatprep.mubr.f32.mxu1 %v30424_v37  ;;  %v23795_v27 = vunpack.i.h.bf16 %v27997_v61 }
 0x6d7   : > { %30794 = vst [vmem:[#allocation21_spill] sm:$0xff] %v28764_v35  ;;  %22392 = vmatprep.subr.bf16.mxu1 %v30795_v18  ;;  %v28768_v54 = vpop.f32.mrb[185].mxu0  ;;  %21630 = vmatmul.mubr.msk.f32.gmra.mrb[34].mxu0 %vm14004_vm3, %v28524_v47 }
 0x6d8   : > { %30796 = vst [vmem:[#allocation49_spill] sm:$0xff] %v28768_v54  ;;  %v28772_v6 = vpop.f32.mrb[186].mxu1  ;;  %22374 = vmatpush1.bf16.msra.mxu0 %v30798_v25  ;;  %17671 = vmatprep.mubr.f32.mxu0 %v30424_v37 }
 0x6d9   : > { %30797 = vst [vmem:[#allocation41_spill] sm:$0xff] %v28772_v6  ;;  %v28776_v59 = vpop.f32.mrb[187].mxu1  ;;  %21639 = vmatmul.mubr.msk.f32.gmra.mrb[36].mxu1 %vm14004_vm3, %v28539_v55  ;;  %22384 = vmatprep.subr.bf16.mxu0 %v30800_v50  ;;  %v30920_v6 = vld [vmem:[#allocation101_spill] sm:$0xff] }
 0x6da   : > { %30799 = vst [vmem:[#allocation48_spill] sm:$0xff] %v28776_v59  ;;  %v28781_v41 = vpop.f32.mrb[186].mxu0  ;;  %17790 = vmatprep.mubr.f32.mxu1 %v30424_v37 }
 0x6db   : > { %30801 = vst [vmem:[#allocation40_spill] sm:$0xff] %v28781_v41  ;;  %v28784_v28 = vpop.f32.mrb[187].mxu0  ;;  %21631 = vmatmul.mubr.msk.f32.gmra.mrb[36].mxu0 %vm14004_vm3, %v28539_v55  ;;  %v30913_v41 = vld [vmem:[#allocation80_spill] sm:$0xff] }
 0x6dc   : > { %30802 = vst [vmem:[#allocation51_spill] sm:$0xff] %v28784_v28  ;;  %v28788_v47 = vpop.f32.mrb[188].mxu1  ;;  %17677 = vmatprep.mubr.f32.mxu0 %v30424_v37  ;;  %v30909_v28 = vunpack.i.h.bf16 %v27952_v5 }
 0x6dd   : > { %30803 = vst [vmem:[#allocation43_spill] sm:$0xff] %v28788_v47  ;;  %v28791_v16 = vpop.f32.mrb[189].mxu1  ;;  %21640 = vmatmul.mubr.msk.f32.gmra.mrb[38].mxu1 %vm14004_vm3, %v28551_v19  ;;  %v30360_v47 = vunpack.i.l.bf16 %v27952_v5 }
 0x6de   : > { %30804 = vst [vmem:[#allocation50_spill] sm:$0xff] %v28791_v16  ;;  %v28795_v52 = vpop.f32.mrb[188].mxu0  ;;  %17796 = vmatprep.mubr.f32.mxu1 %v30424_v37  ;;  %v30870_v16 = vld [vmem:[#allocation67_spill] sm:$0xff] }
 0x6df   : > { %30805 = vst [vmem:[#allocation42_spill] sm:$0xff] %v28795_v52  ;;  %v28798_v2 = vpop.f32.mrb[189].mxu0  ;;  %21632 = vmatmul.mubr.msk.f32.gmra.mrb[38].mxu0 %vm14004_vm3, %v28551_v19 }
 0x6e0   : > { %30806 = vst [vmem:[#allocation29_spill] sm:$0xff] %v28798_v2  ;;  %v28802_v10 = vpop.f32.mrb[190].mxu1  ;;  %17683 = vmatprep.mubr.f32.mxu0 %v30424_v37  ;;  %v30865_v2 = vld [vmem:[#allocation68_spill] sm:$0xff] }
 0x6e1   : > { %30807 = vst [vmem:[#allocation34_spill] sm:$0xff] %v28802_v10  ;;  %v28805_v55 = vpop.f32.mrb[191].mxu1  ;;  %21641 = vmatmul.mubr.msk.f32.gmra.mrb[40].mxu1 %vm14004_vm3, %v28562_v56  ;;  %v29007_v10 = vld [vmem:[%s30217_s4 + $0x38] sm:$0xff] }
 0x6e2   : > { %30808 = vst [vmem:[#allocation35_spill] sm:$0xff] %v28805_v55  ;;  %v28809_v21 = vpop.f32.mrb[190].mxu0  ;;  %17802 = vmatprep.mubr.f32.mxu1 %v30424_v37  ;;  %v28988_v55 = vld [vmem:[%s30217_s4 + $0x30] sm:$0xff] }
 0x6e3   : > { %30809 = vst [vmem:[#allocation59_spill] sm:$0xff] %v28809_v21  ;;  %v28812_v38 = vpop.f32.mrb[191].mxu0  ;;  %21633 = vmatmul.mubr.msk.f32.gmra.mrb[40].mxu0 %vm14004_vm3, %v28562_v56  ;;  %v28969_v21 = vld [vmem:[%s30217_s4 + $0x28] sm:$0xff] }
 0x6e4   : > { %30810 = vst [vmem:[#allocation56_spill] sm:$0xff] %v28812_v38  ;;  %v28816_v18 = vpop.f32.mrb[192].mxu1  ;;  %17689 = vmatprep.mubr.f32.mxu0 %v30424_v37 }
 0x6e5   : > { %30811 = vst [vmem:[#allocation91_spill] sm:$0xff] %v28816_v18  ;;  %v28819_v19 = vpop.f32.mrb[193].mxu1  ;;  %21642 = vmatmul.mubr.msk.f32.gmra.mrb[42].mxu1 %vm14004_vm3, %v28573_v8  ;;  %v30838_v18 = vld [vmem:[#allocation61_spill] sm:$0xff] }
 0x6e6   : > { %30812 = vst [vmem:[#allocation92_spill] sm:$0xff] %v28819_v19  ;;  %v28823_v25 = vpop.f32.mrb[192].mxu0  ;;  %17808 = vmatprep.mubr.f32.mxu1 %v30424_v37 }
 0x6e7   : > { %30813 = vst [vmem:[#allocation57_spill] sm:$0xff] %v28823_v25  ;;  %v28826_v50 = vpop.f32.mrb[193].mxu0  ;;  %21634 = vmatmul.mubr.msk.f32.gmra.mrb[42].mxu0 %vm14004_vm3, %v28573_v8 }
 0x6e8   : > { %30814 = vst [vmem:[#allocation64_spill] sm:$0xff] %v28826_v50  ;;  %v28830_v38 = vpop.f32.mrb[194].mxu1  ;;  %17695 = vmatprep.mubr.f32.mxu0 %v30424_v37 }
 0x6e9   : > { %30815 = vst [vmem:[#allocation60_spill] sm:$0xff] %v28830_v38  ;;  %v28833_v56 = vpop.f32.mrb[195].mxu1  ;;  %21643 = vmatmul.mubr.msk.f32.gmra.mrb[44].mxu1 %vm14004_vm3, %v28584_v40 }
 0x6ea   : > { %30816 = vst [vmem:[#allocation96_spill] sm:$0xff] %v28833_v56  ;;  %v28837_v19 = vpop.f32.mrb[194].mxu0  ;;  %17814 = vmatprep.mubr.f32.mxu1 %v30424_v37 }
 0x6eb   : > { %30817 = vst [vmem:[#allocation65_spill] sm:$0xff] %v28837_v19  ;;  %v28840_v25 = vpop.f32.mrb[195].mxu0  ;;  %21635 = vmatmul.mubr.msk.f32.gmra.mrb[44].mxu0 %vm14004_vm3, %v28584_v40 }
 0x6ec   : > { %30818 = vst [vmem:[#allocation98_spill] sm:$0xff] %v28840_v25  ;;  %v28844_v50 = vpop.f32.mrb[196].mxu1  ;;  %17701 = vmatprep.mubr.f32.mxu0 %v30424_v37 }
 0x6ed   : > { %30819 = vst [vmem:[#allocation69_spill] sm:$0xff] %v28844_v50  ;;  %v28847_v8 = vpop.f32.mrb[197].mxu1  ;;  %21644 = vmatmul.mubr.msk.f32.gmra.mrb[46].mxu1 %vm14004_vm3, %v28595_v33  ;;  %v30830_v50 = vld [vmem:[#allocation58_spill] sm:$0xff] }
 0x6ee   : > { %30820 = vst [vmem:[#allocation66_spill] sm:$0xff] %v28847_v8  ;;  %v28851_v56 = vpop.f32.mrb[196].mxu0  ;;  %17998 = vmatprep.mubr.f32.mxu1 %v30424_v37  ;;  %v28866_v8 = vld [vmem:[%s30217_s4] sm:$0xff] }
 0x6ef   : > { %30821 = vst [vmem:[#allocation70_spill] sm:$0xff] %v28851_v56  ;;  %v28854_v19 = vpop.f32.mrb[197].mxu0  ;;  %21636 = vmatmul.mubr.msk.f32.gmra.mrb[46].mxu0 %vm14004_vm3, %v28595_v33  ;;  %v30825_v56 = vld [vmem:[#allocation93_spill] sm:$0xff]  ;;  %v30827_v33 = vld [vmem:[#allocation63_spill] sm:$0xff] }
 0x6f0   : > { %30822 = vst [vmem:[#allocation71_spill] sm:$0xff] %v28854_v19  ;;  %v28858_v25 = vpop.f32.mrb[198].mxu1  ;;  %17885 = vmatprep.mubr.f32.mxu0 %v30424_v37 }
 0x6f1   : > { %30823 = vst [vmem:[#allocation76_spill] sm:$0xff] %v28858_v25  ;;  %v28861_v40 = vpop.f32.mrb[199].mxu1  ;;  %21653 = vmatmul.mubr.msk.f32.vlgmr.msra.gmra.mrb[240].mxu1 %vm14004_vm3, %v28866_v8 }
 0x6f2   : > { %30824 = vst [vmem:[#allocation79_spill] sm:$0xff] %v28861_v40  ;;  %22394 = vmatpush1.bf16.msra.mxu1 %v30825_v56  ;;  %v28871_v19 = vpop.f32.mrb[198].mxu0  ;;  %18004 = vmatprep.mubr.f32.mxu1 %v30424_v37  ;;  %v28888_v56 = vld [vmem:[%s30217_s4 + $0x8] sm:$0xff] }
 0x6f3   : > { %30826 = vst [vmem:[#allocation77_spill] sm:$0xff] %v28871_v19  ;;  %22396 = vmatprep.subr.bf16.mxu1 %v30827_v33  ;;  %v28875_v25 = vpop.f32.mrb[199].mxu0  ;;  %21645 = vmatmul.mubr.msk.f32.vlgmr.msra.gmra.mrb[240].mxu0 %vm14004_vm3, %v28866_v8  ;;  %v30832_v33 = vld [vmem:[#allocation97_spill] sm:$0xff] }
 0x6f4   : > { %30828 = vst [vmem:[#allocation78_spill] sm:$0xff] %v28875_v25  ;;  %v28879_v40 = vpop.f32.mrb[200].mxu1  ;;  %22386 = vmatpush1.bf16.msra.mxu0 %v30830_v50  ;;  %17891 = vmatprep.mubr.f32.mxu0 %v30424_v37  ;;  %v30833_v25 = vld [vmem:[#allocation62_spill] sm:$0xff]  ;;  %v30835_v50 = vld [vmem:[#allocation100_spill] sm:$0xff] }
 0x6f5   : > { %30829 = vst [vmem:[#allocation84_spill] sm:$0xff] %v28879_v40  ;;  %v28883_v38 = vpop.f32.mrb[201].mxu1  ;;  %21654 = vmatmul.mubr.msk.f32.gmra.mrb[242].mxu1 %vm14004_vm3, %v28888_v56  ;;  %22388 = vmatprep.subr.bf16.mxu0 %v30832_v33 }
 0x6f6   : > { %30831 = vst [vmem:[#allocation85_spill] sm:$0xff] %v28883_v38  ;;  %22398 = vmatpush1.bf16.msra.mxu1 %v30833_v25  ;;  %v28894_v19 = vpop.f32.mrb[200].mxu0  ;;  %18010 = vmatprep.mubr.f32.mxu1 %v30424_v37  ;;  %v28911_v25 = vld [vmem:[%s30217_s4 + $0x10] sm:$0xff] }
 0x6f7   : > { %30834 = vst [vmem:[#allocation86_spill] sm:$0xff] %v28894_v19  ;;  %22408 = vmatprep.subr.bf16.mxu1 %v30835_v50  ;;  %v28898_v40 = vpop.f32.mrb[201].mxu0  ;;  %21646 = vmatmul.mubr.msk.f32.gmra.mrb[242].mxu0 %vm14004_vm3, %v28888_v56  ;;  %v30840_v50 = vld [vmem:[#allocation99_spill] sm:$0xff] }
 0x6f8   : > { %30836 = vst [vmem:[#allocation87_spill] sm:$0xff] %v28898_v40  ;;  %v28902_v38 = vpop.f32.mrb[202].mxu1  ;;  %22390 = vmatpush1.bf16.msra.mxu0 %v30838_v18  ;;  %17897 = vmatprep.mubr.f32.mxu0 %v30424_v37  ;;  %v28931_v19 = vld [vmem:[%s30217_s4 + $0x18] sm:$0xff] }
 0x6f9   : > { %30837 = vst [vmem:[#allocation38_spill] sm:$0xff] %v28902_v38  ;;  %v28906_v33 = vpop.f32.mrb[203].mxu1  ;;  %21655 = vmatmul.mubr.msk.f32.gmra.mrb[244].mxu1 %vm14004_vm3, %v28911_v25  ;;  %22400 = vmatprep.subr.bf16.mxu0 %v30840_v50 }
 0x6fa   : > { %30839 = vst [vmem:[#allocation32_spill] sm:$0xff] %v28906_v33  ;;  %v28916_v40 = vpop.f32.mrb[202].mxu0  ;;  %18016 = vmatprep.mubr.f32.mxu1 %v30424_v37 }
 0x6fb   : > { %30841 = vst [vmem:[#allocation88_spill] sm:$0xff] %v28916_v40  ;;  %v28919_v38 = vpop.f32.mrb[203].mxu0  ;;  %21647 = vmatmul.mubr.msk.f32.gmra.mrb[244].mxu0 %vm14004_vm3, %v28911_v25  ;;  %v28950_v40 = vld [vmem:[%s30217_s4 + $0x20] sm:$0xff] }
 0x6fc   : > { %30842 = vst [vmem:[#allocation39_spill] sm:$0xff] %v28919_v38  ;;  %v28923_v18 = vpop.f32.mrb[204].mxu1  ;;  %17903 = vmatprep.mubr.f32.mxu0 %v30424_v37 }
 0x6fd   : > { %30843 = vst [vmem:[#allocation103_spill] sm:$0xff] %v28923_v18  ;;  %v28926_v33 = vpop.f32.mrb[205].mxu1  ;;  %21656 = vmatmul.mubr.msk.f32.gmra.mrb[246].mxu1 %vm14004_vm3, %v28931_v19 }
 0x6fe   : > { %30844 = vst [vmem:[#allocation104_spill] sm:$0xff] %v28926_v33  ;;  %v28935_v50 = vpop.f32.mrb[204].mxu0  ;;  %18022 = vmatprep.mubr.f32.mxu1 %v30424_v37 }
 0x6ff   : > { %30845 = vst [vmem:[#allocation106_spill] sm:$0xff] %v28935_v50  ;;  %v28938_v38 = vpop.f32.mrb[205].mxu0  ;;  %21648 = vmatmul.mubr.msk.f32.gmra.mrb[246].mxu0 %vm14004_vm3, %v28931_v19 }
 0x700   : > { %30846 = vst [vmem:[#allocation44_spill] sm:$0xff] %v28938_v38  ;;  %v28942_v18 = vpop.f32.mrb[206].mxu1  ;;  %17909 = vmatprep.mubr.f32.mxu0 %v30424_v37 }
 0x701   : > { %30847 = vst [vmem:[#allocation53_spill] sm:$0xff] %v28942_v18  ;;  %v28945_v33 = vpop.f32.mrb[207].mxu1  ;;  %21657 = vmatmul.mubr.msk.f32.gmra.mrb[248].mxu1 %vm14004_vm3, %v28950_v40 }
 0x702   : > { %30848 = vst [vmem:[#allocation55_spill] sm:$0xff] %v28945_v33  ;;  %v28954_v50 = vpop.f32.mrb[206].mxu0  ;;  %18028 = vmatprep.mubr.f32.mxu1 %v30424_v37 }
 0x703   : > { %30849 = vst [vmem:[#allocation52_spill] sm:$0xff] %v28954_v50  ;;  %v28957_v38 = vpop.f32.mrb[207].mxu0  ;;  %21649 = vmatmul.mubr.msk.f32.gmra.mrb[248].mxu0 %vm14004_vm3, %v28950_v40 }
 0x704   : > { %30850 = vst [vmem:[#allocation46_spill] sm:$0xff] %v28957_v38  ;;  %v28961_v18 = vpop.f32.mrb[208].mxu1  ;;  %17915 = vmatprep.mubr.f32.mxu0 %v30424_v37 }
 0x705   : > { %30851 = vst [vmem:[#allocation45_spill] sm:$0xff] %v28961_v18  ;;  %v28964_v33 = vpop.f32.mrb[209].mxu1  ;;  %21658 = vmatmul.mubr.msk.f32.gmra.mrb[250].mxu1 %vm14004_vm3, %v28969_v21 }
 0x706   : > { %30852 = vst [vmem:[#allocation26_spill] sm:$0xff] %v28964_v33  ;;  %v28973_v50 = vpop.f32.mrb[208].mxu0  ;;  %18034 = vmatprep.mubr.f32.mxu1 %v30424_v37 }
 0x707   : > { %30853 = vst [vmem:[#allocation54_spill] sm:$0xff] %v28973_v50  ;;  %v28976_v38 = vpop.f32.mrb[209].mxu0  ;;  %21650 = vmatmul.mubr.msk.f32.gmra.mrb[250].mxu0 %vm14004_vm3, %v28969_v21 }
 0x708   : > { %30854 = vst [vmem:[#allocation47_spill] sm:$0xff] %v28976_v38  ;;  %v28980_v18 = vpop.f32.mrb[210].mxu1  ;;  %17921 = vmatprep.mubr.f32.mxu0 %v30424_v37 }
 0x709   : > { %30855 = vst [vmem:[#allocation24_spill] sm:$0xff] %v28980_v18  ;;  %v28983_v33 = vpop.f32.mrb[211].mxu1  ;;  %21659 = vmatmul.mubr.msk.f32.gmra.mrb[252].mxu1 %vm14004_vm3, %v28988_v55 }
 0x70a   : > { %30856 = vst [vmem:[#allocation27_spill] sm:$0xff] %v28983_v33  ;;  %v28992_v50 = vpop.f32.mrb[210].mxu0  ;;  %18040 = vmatprep.mubr.f32.mxu1 %v30424_v37 }
 0x70b   : > { %30857 = vst [vmem:[#allocation10_spill] sm:$0xff] %v28992_v50  ;;  %v28995_v38 = vpop.f32.mrb[211].mxu0  ;;  %21651 = vmatmul.mubr.msk.f32.gmra.mrb[252].mxu0 %vm14004_vm3, %v28988_v55 }
 0x70c   : > { %30858 = vst [vmem:[#allocation28_spill] sm:$0xff] %v28995_v38  ;;  %v28999_v18 = vpop.f32.mrb[212].mxu1  ;;  %17927 = vmatprep.mubr.f32.mxu0 %v30424_v37 }
 0x70d   : > { %30859 = vst [vmem:[#allocation30_spill] sm:$0xff] %v28999_v18  ;;  %v29002_v33 = vpop.f32.mrb[213].mxu1  ;;  %21660 = vmatmul.mubr.msk.f32.gmra.mrb[254].mxu1 %vm14004_vm3, %v29007_v10 }
 0x70e   : > { %30860 = vst [vmem:[#allocation31_spill] sm:$0xff] %v29002_v33  ;;  %v29011_v50 = vpop.f32.mrb[212].mxu0  ;;  %18224 = vmatprep.mubr.f32.mxu1 %v30424_v37 }
 0x70f   : > { %30861 = vst [vmem:[#allocation90_spill] sm:$0xff] %v29011_v50  ;;  %v29014_v38 = vpop.f32.mrb[213].mxu0  ;;  %21652 = vmatmul.mubr.msk.f32.gmra.mrb[254].mxu0 %vm14004_vm3, %v29007_v10  ;;  %v30867_v50 = vld [vmem:[#allocation75_spill] sm:$0xff] }
 0x710   : > { %30862 = vst [vmem:[#allocation25_spill] sm:$0xff] %v29014_v38  ;;  %v29018_v18 = vpop.f32.mrb[214].mxu1  ;;  %18111 = vmatprep.mubr.f32.mxu0 %v30424_v37 }
 0x711   : > { %30863 = vst [vmem:[#allocation37_spill] sm:$0xff] %v29018_v18  ;;  %v29021_v33 = vpop.f32.mrb[215].mxu1  ;;  %21669 = vmatmul.mubr.msk.f32.vlgmr.msra.gmra.mrb[0].mxu1 %vm14004_vm3, %v28866_v8 }
 0x712   : > { %30864 = vst [vmem:[#allocation89_spill] sm:$0xff] %v29021_v33  ;;  %22410 = vmatpush1.bf16.msra.mxu1 %v30865_v2  ;;  %v29026_v52 = vpop.f32.mrb[214].mxu0  ;;  %18230 = vmatprep.mubr.f32.mxu1 %v30424_v37  ;;  %v30872_v2 = vld [vmem:[#allocation74_spill] sm:$0xff] }
 0x713   : > { %30866 = vst [vmem:[#allocation95_spill] sm:$0xff] %v29026_v52  ;;  %22412 = vmatprep.subr.bf16.mxu1 %v30867_v50  ;;  %v29030_v38 = vpop.f32.mrb[215].mxu0  ;;  %21661 = vmatmul.mubr.msk.f32.vlgmr.msra.gmra.mrb[0].mxu0 %vm14004_vm3, %v28866_v8  ;;  %v30873_v52 = vld [vmem:[#allocation73_spill] sm:$0xff] }
 0x714   : > { %30868 = vst [vmem:[#allocation36_spill] sm:$0xff] %v29030_v38  ;;  %v29034_v18 = vpop.f32.mrb[216].mxu1  ;;  %22402 = vmatpush1.bf16.msra.mxu0 %v30870_v16  ;;  %18117 = vmatprep.mubr.f32.mxu0 %v30424_v37  ;;  %v30875_v38 = vld [vmem:[#allocation83_spill] sm:$0xff] }
 0x715   : > { %30869 = vst [vmem:[#allocation94_spill] sm:$0xff] %v29034_v18  ;;  %v29038_v33 = vpop.f32.mrb[217].mxu1  ;;  %21670 = vmatmul.mubr.msk.f32.gmra.mrb[2].mxu1 %vm14004_vm3, %v28888_v56  ;;  %22404 = vmatprep.subr.bf16.mxu0 %v30872_v2 }
 0x716   : > { %30871 = vst [vmem:[#allocation93_spill] sm:$0xff] %v29038_v33  ;;  %22414 = vmatpush1.bf16.msra.mxu1 %v30873_v52  ;;  %v29044_v50 = vpop.f32.mrb[216].mxu0  ;;  %18236 = vmatprep.mubr.f32.mxu1 %v30424_v37  ;;  %v30878_v33 = vld [vmem:[#allocation72_spill] sm:$0xff]  ;;  %v30880_v52 = vld [vmem:[#allocation82_spill] sm:$0xff] }
 0x717   : > { %30874 = vst [vmem:[#allocation63_spill] sm:$0xff] %v29044_v50  ;;  %22424 = vmatprep.subr.bf16.mxu1 %v30875_v38  ;;  %v29048_v18 = vpop.f32.mrb[217].mxu0  ;;  %21662 = vmatmul.mubr.msk.f32.gmra.mrb[2].mxu0 %vm14004_vm3, %v28888_v56 }
 0x718   : > { %30876 = vst [vmem:[#allocation58_spill] sm:$0xff] %v29048_v18  ;;  %v29052_v16 = vpop.f32.mrb[218].mxu1  ;;  %22406 = vmatpush1.bf16.msra.mxu0 %v30878_v33  ;;  %18123 = vmatprep.mubr.f32.mxu0 %v30424_v37  ;;  %v30907_v18 = vunpack.i.l.bf16 %v27964_v15 }
 0x719   : > { %30877 = vst [vmem:[#allocation97_spill] sm:$0xff] %v29052_v16  ;;  %v29056_v2 = vpop.f32.mrb[219].mxu1  ;;  %21671 = vmatmul.mubr.msk.f32.gmra.mrb[4].mxu1 %vm14004_vm3, %v28911_v25  ;;  %22416 = vmatprep.subr.bf16.mxu0 %v30880_v52 }
 0x71a   : > { %30879 = vst [vmem:[#allocation62_spill] sm:$0xff] %v29056_v2  ;;  %v29061_v50 = vpop.f32.mrb[218].mxu0  ;;  %18242 = vmatprep.mubr.f32.mxu1 %v30424_v37 }
 0x71b   : > { %30881 = vst [vmem:[#allocation100_spill] sm:$0xff] %v29061_v50  ;;  %v29064_v38 = vpop.f32.mrb[219].mxu0  ;;  %21663 = vmatmul.mubr.msk.f32.gmra.mrb[4].mxu0 %vm14004_vm3, %v28911_v25 }
 0x71c   : > { %30882 = vst [vmem:[#allocation61_spill] sm:$0xff] %v29064_v38  ;;  %v29068_v16 = vpop.f32.mrb[220].mxu1  ;;  %18129 = vmatprep.mubr.f32.mxu0 %v30424_v37 }
 0x71d   : > { %30883 = vst [vmem:[#allocation99_spill] sm:$0xff] %v29068_v16  ;;  %v29071_v33 = vpop.f32.mrb[221].mxu1  ;;  %21672 = vmatmul.mubr.msk.f32.gmra.mrb[6].mxu1 %vm14004_vm3, %v28931_v19 }
 0x71e   : > { %30884 = vst [vmem:[#allocation68_spill] sm:$0xff] %v29071_v33  ;;  %v29075_v2 = vpop.f32.mrb[220].mxu0  ;;  %18248 = vmatprep.mubr.f32.mxu1 %v30424_v37 }
 0x71f   : > { %30885 = vst [vmem:[#allocation75_spill] sm:$0xff] %v29075_v2  ;;  %v29078_v52 = vpop.f32.mrb[221].mxu0  ;;  %21664 = vmatmul.mubr.msk.f32.gmra.mrb[6].mxu0 %vm14004_vm3, %v28931_v19 }
 0x720   : > { %30886 = vst [vmem:[#allocation67_spill] sm:$0xff] %v29078_v52  ;;  %v29082_v38 = vpop.f32.mrb[222].mxu1  ;;  %18135 = vmatprep.mubr.f32.mxu0 %v30424_v37 }
 0x721   : > { %30887 = vst [vmem:[#allocation74_spill] sm:$0xff] %v29082_v38  ;;  %v29085_v16 = vpop.f32.mrb[223].mxu1  ;;  %21673 = vmatmul.mubr.msk.f32.gmra.mrb[8].mxu1 %vm14004_vm3, %v28950_v40 }
 0x722   : > { %30888 = vst [vmem:[#allocation73_spill] sm:$0xff] %v29085_v16  ;;  %v29089_v33 = vpop.f32.mrb[222].mxu0  ;;  %18254 = vmatprep.mubr.f32.mxu1 %v30424_v37 }
 0x723   : > { %30889 = vst [vmem:[#allocation83_spill] sm:$0xff] %v29089_v33  ;;  %v29092_v2 = vpop.f32.mrb[223].mxu0  ;;  %21665 = vmatmul.mubr.msk.f32.gmra.mrb[8].mxu0 %vm14004_vm3, %v28950_v40 }
 0x724   : > { %30890 = vst [vmem:[#allocation72_spill] sm:$0xff] %v29092_v2  ;;  %v29096_v52 = vpop.f32.mrb[224].mxu1  ;;  %18141 = vmatprep.mubr.f32.mxu0 %v30424_v37 }
 0x725   : > { %30891 = vst [vmem:[#allocation82_spill] sm:$0xff] %v29096_v52  ;;  %v29099_v38 = vpop.f32.mrb[225].mxu1  ;;  %21674 = vmatmul.mubr.msk.f32.gmra.mrb[10].mxu1 %vm14004_vm3, %v28969_v21 }
 0x726   : > { %30892 = vst [vmem:[#allocation107_spill] sm:$0xff] %v29099_v38  ;;  %v29103_v16 = vpop.f32.mrb[224].mxu0  ;;  %18260 = vmatprep.mubr.f32.mxu1 %v30424_v37 }
 0x727   : > { %30893 = vst [vmem:[#allocation108_spill] sm:$0xff] %v29103_v16  ;;  %v29106_v33 = vpop.f32.mrb[225].mxu0  ;;  %21666 = vmatmul.mubr.msk.f32.gmra.mrb[10].mxu0 %vm14004_vm3, %v28969_v21 }
 0x728   : > { %30894 = vst [vmem:[#allocation109_spill] sm:$0xff] %v29106_v33  ;;  %v29110_v2 = vpop.f32.mrb[226].mxu1  ;;  %18147 = vmatprep.mubr.f32.mxu0 %v30424_v37 }
 0x729   : > { %30895 = vst [vmem:[#allocation110_spill] sm:$0xff] %v29110_v2  ;;  %v29113_v52 = vpop.f32.mrb[227].mxu1  ;;  %21675 = vmatmul.mubr.msk.f32.gmra.mrb[12].mxu1 %vm14004_vm3, %v28988_v55 }
 0x72a   : > { %30896 = vst [vmem:[#allocation111_spill] sm:$0xff] %v29113_v52  ;;  %v29117_v38 = vpop.f32.mrb[226].mxu0  ;;  %18266 = vmatprep.mubr.f32.mxu1 %v30424_v37 }
 0x72b   : > { %30897 = vst [vmem:[#allocation112_spill] sm:$0xff] %v29117_v38  ;;  %v29120_v16 = vpop.f32.mrb[227].mxu0  ;;  %21667 = vmatmul.mubr.msk.f32.gmra.mrb[12].mxu0 %vm14004_vm3, %v28988_v55 }
 0x72c   : > { %30898 = vst [vmem:[#allocation113_spill] sm:$0xff] %v29120_v16  ;;  %v29124_v33 = vpop.f32.mrb[228].mxu1  ;;  %18153 = vmatprep.mubr.f32.mxu0 %v30424_v37 }
 0x72d   : > { %30899 = vst [vmem:[#allocation114_spill] sm:$0xff] %v29124_v33  ;;  %v29127_v2 = vpop.f32.mrb[229].mxu1  ;;  %21676 = vmatmul.mubr.msk.f32.gmra.mrb[14].mxu1 %vm14004_vm3, %v29007_v10  ;;  %v30905_v33 = vld [vmem:[#allocation81_spill] sm:$0xff] }
 0x72e   : > { %30900 = vst [vmem:[#allocation115_spill] sm:$0xff] %v29127_v2  ;;  %v29133_v50 = vpop.f32.mrb[228].mxu0  ;;  %18450 = vmatprep.mubr.f32.mxu1 %v30424_v37 }
 0x72f   : > { %30901 = vst [vmem:[#allocation116_spill] sm:$0xff] %v29133_v50  ;;  %v29136_v16 = vpop.f32.mrb[229].mxu0  ;;  %21668 = vmatmul.mubr.msk.f32.gmra.mrb[14].mxu0 %vm14004_vm3, %v29007_v10  ;;  %v30910_v50 = vld [vmem:[#allocation105_spill] sm:$0xff] }
 0x730   : > { %30902 = vst [vmem:[#allocation117_spill] sm:$0xff] %v29136_v16  ;;  %v29144_v52 = vpop.f32.mrb[230].mxu1  ;;  %18337 = vmatprep.mubr.f32.mxu0 %v30424_v37 }
 0x731   : > { %30903 = vst [vmem:[#allocation118_spill] sm:$0xff] %v29144_v52  ;;  %v29147_v38 = vpop.f32.mrb[231].mxu1  ;;  %21685 = vmatmul.mubr.msk.f32.vlgmr.msra.gmra.mrb[16].mxu1 %vm14004_vm3, %v28866_v8  ;;  %v30908_v52 = vunpack.i.h.bf16 %v27964_v15 }
 0x732   : > { %30904 = vst [vmem:[#allocation119_spill] sm:$0xff] %v29147_v38  ;;  %22426 = vmatpush1.bf16.msra.mxu1 %v30905_v33  ;;  %v29154_v2 = vpop.f32.mrb[230].mxu0  ;;  %18456 = vmatprep.mubr.f32.mxu1 %v30424_v37  ;;  %v13894_v38 = vsel %vm13849_vm7, %v30360_v47, %v30907_v18  ;;  %v30914_v18 = vunpack.i.l.bf16 %v27950_v44  ;;  %v30915_v47 = vunpack.i.l.bf16 %v27935_v45 }
 0x733   : > { %30906 = vst [vmem:[#allocation81_spill] sm:$0xff] %v29154_v2  ;;  %v13895_v16 = vsel %vm13849_vm7, %v30909_v28, %v30908_v52  ;;  %22428 = vmatprep.subr.bf16.mxu1 %v30910_v50  ;;  %v29170_v33 = vpop.f32.mrb[231].mxu0  ;;  %21677 = vmatmul.mubr.msk.f32.vlgmr.msra.gmra.mrb[16].mxu0 %vm14004_vm3, %v28866_v8  ;;  %v30916_v50 = vunpack.i.h.bf16 %v27950_v44  ;;  %v30917_v52 = vunpack.i.h.bf16 %v27935_v45 }
 0x734   : > { %30911 = vst [vmem:[#allocation105_spill] sm:$0xff] %v29170_v33  ;;  %v29174_v2 = vpop.f32.mrb[232].mxu1  ;;  %22418 = vmatpush1.bf16.msra.mxu0 %v30913_v41  ;;  %18343 = vmatprep.mubr.f32.mxu0 %v30424_v37  ;;  %v13902_v28 = vsel %vm13849_vm7, %v30915_v47, %v30914_v18  ;;  %v30919_v41 = vld [vmem:[#allocation102_spill] sm:$0xff] }
 0x735   : > { %30912 = vst [vmem:[#allocation120_spill] sm:$0xff] %v29174_v2  ;;  %v13903_v33 = vsel %vm13849_vm7, %v30917_v52, %v30916_v50  ;;  %v29190_v59 = vpop.f32.mrb[233].mxu1  ;;  %21686 = vmatmul.mubr.msk.f32.gmra.mrb[18].mxu1 %vm14004_vm3, %v28888_v56  ;;  %22420 = vmatprep.subr.bf16.mxu0 %v30919_v41  ;;  %v22439_v2 = vpack.c.bf16 %v13895_v16, %v13894_v38  ;;  %v30924_v52 = vld [vmem:[#allocation33_spill] sm:$0xff] }
 0x736   : > { %30918 = vst [vmem:[#allocation80_spill] sm:$0xff] %v29190_v59  ;;  %22430 = vmatpush1.bf16.msra.mxu1 %v30920_v6  ;;  %v29196_v54 = vpop.f32.mrb[232].mxu0  ;;  %18462 = vmatprep.mubr.f32.mxu1 %v30424_v37  ;;  %v22431_v18 = vpack.c.bf16 %v13903_v33, %v13902_v28  ;;  %v30942_v59 = vunpack.i.h.bf16 %v27935_v45 }
 0x737   : > { %30921 = vst [vmem:[#allocation102_spill] sm:$0xff] %v29196_v54  ;;  %22440 = vmatprep.subr.bf16.mxu1 %v22439_v2  ;;  %v29199_v47 = vpop.f32.mrb[233].mxu0  ;;  %21678 = vmatmul.mubr.msk.f32.gmra.mrb[18].mxu0 %vm14004_vm3, %v28888_v56 }
 0x738   : > { %30922 = vst [vmem:[#allocation101_spill] sm:$0xff] %v29199_v47  ;;  %v29203_v50 = vpop.f32.mrb[234].mxu1  ;;  %22422 = vmatpush1.bf16.msra.mxu0 %v30924_v52  ;;  %18349 = vmatprep.mubr.f32.mxu0 %v30424_v37  ;;  %v30941_v47 = vunpack.i.l.bf16 %v27966_v39 }
 0x739   : > { %30923 = vst [vmem:[#allocation121_spill] sm:$0xff] %v29203_v50  ;;  %v29207_v16 = vpop.f32.mrb[235].mxu1  ;;  %21687 = vmatmul.mubr.msk.f32.gmra.mrb[20].mxu1 %vm14004_vm3, %v28911_v25  ;;  %22432 = vmatprep.subr.bf16.mxu0 %v22431_v18  ;;  %v30939_v50 = vunpack.i.l.bf16 %v27950_v44 }
 0x73a   : > { %30925 = vst [vmem:[#allocation33_spill] sm:$0xff] %v29207_v16  ;;  %v29211_v6 = vpop.f32.mrb[234].mxu0  ;;  %18468 = vmatprep.mubr.f32.mxu1 %v30424_v37  ;;  %v30936_v16 = vunpack.i.h.bf16 %v27952_v5 }
 0x73b   : > { %30926 = vst [vmem:[#allocation122_spill] sm:$0xff] %v29211_v6  ;;  %v29214_v2 = vpop.f32.mrb[235].mxu0  ;;  %21679 = vmatmul.mubr.msk.f32.gmra.mrb[20].mxu0 %vm14004_vm3, %v28911_v25  ;;  %v23774_v6 = vunpack.i.l.bf16 %v27976_v17 }
 0x73c   : > { %30927 = vst [vmem:[#allocation123_spill] sm:$0xff] %v29214_v2  ;;  %v29218_v38 = vpop.f32.mrb[236].mxu1  ;;  %18355 = vmatprep.mubr.f32.mxu0 %v30424_v37  ;;  %v23775_v2 = vunpack.i.h.bf16 %v27976_v17  ;;  %v30940_v17 = vunpack.i.l.bf16 %v27935_v45  ;;  %v30945_v45 = vunpack.i.h.bf16 %v27986_v60 }
 0x73d   : > { %30928 = vst [vmem:[#allocation124_spill] sm:$0xff] %v29218_v38  ;;  %v29221_v33 = vpop.f32.mrb[237].mxu1  ;;  %21688 = vmatmul.mubr.msk.f32.gmra.mrb[22].mxu1 %vm14004_vm3, %v28931_v19  ;;  %v23769_v38 = vunpack.i.l.bf16 %v27974_v7 }
 0x73e   : > { %30929 = vst [vmem:[#allocation125_spill] sm:$0xff] %v29221_v33  ;;  %v29225_v28 = vpop.f32.mrb[236].mxu0  ;;  %18474 = vmatprep.mubr.f32.mxu1 %v30424_v37  ;;  %v13906_v54 = vsel %vm13849_vm7, %v30941_v47, %v30940_v17 }
 0x73f   : > { %30930 = vst [vmem:[#allocation126_spill] sm:$0xff] %v29225_v28  ;;  %v29228_v41 = vpop.f32.mrb[237].mxu0  ;;  %21680 = vmatmul.mubr.msk.f32.gmra.mrb[22].mxu0 %vm14004_vm3, %v28931_v19 }
 0x740   : > { %30931 = vst [vmem:[#allocation127_spill] sm:$0xff] %v29228_v41  ;;  %v29232_v18 = vpop.f32.mrb[238].mxu1  ;;  %18361 = vmatprep.mubr.f32.mxu0 %v30424_v37  ;;  %v23770_v41 = vunpack.i.h.bf16 %v27974_v7 }
 0x741   : > { %30932 = vst [vmem:[#allocation128_spill] sm:$0xff] %v29232_v18  ;;  %v29235_v52 = vpop.f32.mrb[239].mxu1  ;;  %21689 = vmatmul.mubr.msk.f32.gmra.mrb[24].mxu1 %vm14004_vm3, %v28950_v40  ;;  %v30938_v18 = vunpack.i.l.bf16 %v27952_v5 }
 0x742   : > { %30933 = vst [vmem:[#allocation129_spill] sm:$0xff] %v29235_v52  ;;  %v29239_v33 = vpop.f32.mrb[238].mxu0  ;;  %18480 = vmatprep.mubr.f32.mxu1 %v30424_v37  ;;  %v13905_v17 = vsel %vm13849_vm7, %v23770_v41, %v23775_v2 }
 0x743   : > { %30934 = vst [vmem:[#allocation130_spill] sm:$0xff] %v29239_v33  ;;  %v29242_v28 = vpop.f32.mrb[239].mxu0  ;;  %21681 = vmatmul.mubr.msk.f32.gmra.mrb[24].mxu0 %vm14004_vm3, %v28950_v40  ;;  %v23779_v33 = vunpack.i.l.bf16 %v27984_v51  ;;  %v13898_v7 = vsel %vm13849_vm7, %v30939_v50, %v30938_v18  ;;  %v30944_v18 = vunpack.i.l.bf16 %v27986_v60  ;;  %v23804_v50 = vunpack.i.l.bf16 %v28023_v20 }
 0x744   : > { %30935 = vst [vmem:[#allocation131_spill] sm:$0xff] %v29242_v28  ;;  %18367 = vmatprep.mubr.f32.mxu0 %v30424_v37  ;;  %v23780_v28 = vunpack.i.h.bf16 %v27984_v51  ;;  %v30937_v51 = vunpack.i.h.bf16 %v27950_v44  ;;  %v23799_v44 = vunpack.i.l.bf16 %v28020_v11 }
 0x745   : > { %21690 = vmatmul.mubr.msk.f32.gmra.mrb[26].mxu1 %vm14004_vm3, %v28969_v21  ;;  %v13896_v47 = vsel %vm13849_vm7, %v23779_v33, %v30944_v18  ;;  %v23805_v18 = vunpack.i.h.bf16 %v28023_v20  ;;  %v30946_v20 = vunpack.i.l.bf16 %v28050_v22 }
 0x746   : > { %18486 = vmatprep.mubr.f32.mxu1 %v30424_v37  ;;  %v13899_v52 = vsel %vm13849_vm7, %v30937_v51, %v30936_v16  ;;  %v30943_v16 = vunpack.i.h.bf16 %v27966_v39  ;;  %v13897_v39 = vsel %vm13849_vm7, %v23780_v28, %v30945_v45  ;;  %v13904_v51 = vsel %vm13849_vm7, %v23769_v38, %v23774_v6 }
 0x747   : > { %21682 = vmatmul.mubr.msk.f32.gmra.mrb[26].mxu0 %vm14004_vm3, %v28969_v21  ;;  %v13901_v45 = vsel %vm13849_vm7, %v23775_v2, %v23780_v28  ;;  %v22443_v35 = vpack.c.bf16 %v13897_v39, %v13896_v47  ;;  %v22435_v47 = vpack.c.bf16 %v13905_v17, %v13904_v51  ;;  %v23825_v51 = vunpack.i.h.bf16 %v28071_v26 }
 0x748   : > { %18373 = vmatprep.mubr.f32.mxu0 %v30424_v37  ;;  %v13907_v5 = vsel %vm13849_vm7, %v30943_v16, %v30942_v59  ;;  %v22441_v59 = vpack.c.bf16 %v13899_v52, %v13898_v7  ;;  %v23800_v16 = vunpack.i.h.bf16 %v28020_v11  ;;  %v13900_v7 = vsel %vm13849_vm7, %v23774_v6, %v23779_v33 }
 0x749   : > { %21691 = vmatmul.mubr.msk.f32.gmra.mrb[28].mxu1 %vm14004_vm3, %v28988_v55  ;;  %v22433_v52 = vpack.c.bf16 %v13907_v5, %v13906_v54  ;;  %v23794_v11 = vunpack.i.l.bf16 %v27997_v61  ;;  %v13878_v54 = vsel %vm13849_vm7, %v23804_v50, %v30946_v20  ;;  %v30947_v6 = vunpack.i.h.bf16 %v28050_v22 }
 0x74a   : > { %18492 = vmatprep.mubr.f32.mxu1 %v30424_v37  ;;  %v30948_v33 = vunpack.i.l.bf16 %v27994_v23  ;;  %v30949_v61 = vunpack.i.h.bf16 %v27994_v23  ;;  %v22445_v39 = vpack.c.bf16 %v13901_v45, %v13900_v7  ;;  %v23824_v17 = vunpack.i.l.bf16 %v28071_v26 }
 0x74b   : > { %21683 = vmatmul.mubr.msk.f32.gmra.mrb[28].mxu0 %vm14004_vm3, %v28988_v55  ;;  %v13879_v2 = vsel %vm13849_vm7, %v23805_v18, %v30947_v6  ;;  %v30951_v7 = vunpack.i.l.bf16 %v27964_v15  ;;  %v23850_v26 = vunpack.i.h.bf16 %v28100_v34  ;;  %v23839_v20 = vunpack.i.l.bf16 %v28090_v42 }
 0x74c   : > { %18379 = vmatprep.mubr.f32.mxu0 %v30424_v37  ;;  %v13908_v28 = vsel %vm13849_vm7, %v30948_v33, %v23769_v38  ;;  %v13909_v5 = vsel %vm13849_vm7, %v30949_v61, %v23770_v41  ;;  %v13887_v38 = vsel %vm13849_vm7, %v23795_v27, %v23800_v16  ;;  %v22455_v23 = vpack.c.bf16 %v13879_v2, %v13878_v54 }
 0x74d   : > { %21692 = vmatmul.mubr.msk.f32.gmra.mrb[30].mxu1 %vm14004_vm3, %v29007_v10  ;;  %v13882_v41 = vsel %vm13849_vm7, %v23799_v44, %v23804_v50  ;;  %v23849_v50 = vunpack.i.l.bf16 %v28100_v34  ;;  %v23845_v54 = vunpack.i.h.bf16 %v28093_v30  ;;  %v23844_v6 = vunpack.i.l.bf16 %v28093_v30 }
 0x74e   : > { %18676 = vmatprep.mubr.f32.mxu1 %v30424_v37  ;;  %v13431_v30 = vadd.s32 1920, %v27512_v9 }
 0x74f   : > { %21684 = vmatmul.mubr.msk.f32.gmra.mrb[30].mxu0 %vm14004_vm3, %v29007_v10 }
 0x750   : > { %18563 = vmatprep.mubr.f32.mxu0 %v30424_v37  ;;  %vm21916_vm8 = vcmp.ne.s32.totalorder %v13431_v30, 2047  ;;  %v30964_v30 = vld [vmem:[#allocation19_spill] sm:$0xff] }
 0x751   : > { %21701 = vmatmul.mubr.msk.f32.vlgmr.msra.gmra.mrb[32].mxu1 %vm14004_vm3, %v28866_v8  ;;  %vm29619_vm9 = vmpackc.low %vm21916_vm8, %vm21916_vm8 }
 0x752   : > { %22442 = vmatpush1.bf16.msra.mxu1 %v22441_v59  ;;  %18682 = vmatprep.mubr.f32.mxu1 %v30424_v37  ;;  %v13886_v59 = vsel %vm13849_vm7, %v23794_v11, %v23799_v44  ;;  %v23814_v44 = vunpack.i.l.bf16 %v28053_v14 }
 0x753   : > { %22444 = vmatprep.subr.bf16.mxu1 %v22443_v35  ;;  %21693 = vmatmul.mubr.msk.f32.vlgmr.msra.gmra.mrb[32].mxu0 %vm14004_vm3, %v28866_v8  ;;  %v22437_v35 = vpack.c.bf16 %v13909_v5, %v13908_v28  ;;  %v22447_v8 = vpack.c.bf16 %v13887_v38, %v13886_v59  ;;  %v29434_v28 = vld [vmem:[%s30217_s4 + $0x80] sm:$0xff]  ;;  %v23835_v5 = vunpack.i.h.bf16 %v28082_v53  ;;  %v13863_v59 = vsel %vm13849_vm7, %v23845_v54, %v23850_v26 }
 0x754   : > { %22434 = vmatpush1.bf16.msra.mxu0 %v22433_v52  ;;  %18569 = vmatprep.mubr.f32.mxu0 %v30424_v37  ;;  %v30950_v52 = vunpack.i.h.bf16 %v27964_v15  ;;  %v30952_v38 = vunpack.i.l.bf16 %v27986_v60 }
 0x755   : > { %21702 = vmatmul.mubr.msk.f32.gmra.mrb[34].mxu1 %vm14004_vm3, %v28888_v56  ;;  %22436 = vmatprep.subr.bf16.mxu0 %v22435_v47  ;;  %v23834_v47 = vunpack.i.l.bf16 %v28082_v53 }
 0x756   : > { %22446 = vmatpush1.bf16.msra.mxu1 %v22445_v39  ;;  %18688 = vmatprep.mubr.f32.mxu1 %v30424_v37  ;;  %v13862_v39 = vsel %vm13849_vm7, %v23844_v6, %v23849_v50 }
 0x757   : > { %22456 = vmatprep.subr.bf16.mxu1 %v22455_v23  ;;  %21694 = vmatmul.mubr.msk.f32.gmra.mrb[34].mxu0 %vm14004_vm3, %v28888_v56  ;;  %v23829_v56 = vunpack.i.l.bf16 %v28080_v24  ;;  %v13892_v23 = vsel %vm13849_vm7, %v30952_v38, %v23814_v44 }
 0x758   : > { %22438 = vmatpush1.bf16.msra.mxu0 %v22437_v35  ;;  %18575 = vmatprep.mubr.f32.mxu0 %v30424_v37  ;;  %v30953_v35 = vunpack.i.h.bf16 %v27986_v60 }
 0x759   : > { %21703 = vmatmul.mubr.msk.f32.gmra.mrb[36].mxu1 %vm14004_vm3, %v28911_v25  ;;  %22448 = vmatprep.subr.bf16.mxu0 %v22447_v8  ;;  %v13880_v15 = vsel %vm13849_vm7, %v23824_v17, %v23829_v56 }
 0x75a   : > { %18694 = vmatprep.mubr.f32.mxu1 %v30424_v37 }
 0x75b   : > { %21695 = vmatmul.mubr.msk.f32.gmra.mrb[36].mxu0 %vm14004_vm3, %v28911_v25  ;;  %v23819_v25 = vunpack.i.l.bf16 %v28067_v32 }
 0x75c   : > { %18581 = vmatprep.mubr.f32.mxu0 %v30424_v37 }
 0x75d   : > { %21704 = vmatmul.mubr.msk.f32.gmra.mrb[38].mxu1 %vm14004_vm3, %v28931_v19  ;;  %v13884_v33 = vsel %vm13849_vm7, %v23819_v25, %v23824_v17 }
 0x75e   : > { %18700 = vmatprep.mubr.f32.mxu1 %v30424_v37 }
 0x75f   : > { %21696 = vmatmul.mubr.msk.f32.gmra.mrb[38].mxu0 %vm14004_vm3, %v28931_v19  ;;  %v23830_v19 = vunpack.i.h.bf16 %v28080_v24 }
 0x760   : > { %18587 = vmatprep.mubr.f32.mxu0 %v30424_v37 }
 0x761   : > { %21705 = vmatmul.mubr.msk.f32.gmra.mrb[40].mxu1 %vm14004_vm3, %v28950_v40 }
 0x762   : > { %18706 = vmatprep.mubr.f32.mxu1 %v30424_v37 }
 0x763   : > { %21697 = vmatmul.mubr.msk.f32.gmra.mrb[40].mxu0 %vm14004_vm3, %v28950_v40  ;;  %v23820_v40 = vunpack.i.h.bf16 %v28067_v32  ;;  %v13891_v32 = vsel %vm13849_vm7, %v30950_v52, %v23795_v27  ;;  %v13881_v27 = vsel %vm13849_vm7, %v23825_v51, %v23830_v19 }
 0x764   : > { %18593 = vmatprep.mubr.f32.mxu0 %v30424_v37  ;;  %v22459_v61 = vpack.c.bf16 %v13881_v27, %v13880_v15  ;;  %v30954_v15 = vld [vmem:[#allocation14_spill] sm:$0xff] }
 0x765   : > { %21706 = vmatmul.mubr.msk.f32.gmra.mrb[42].mxu1 %vm14004_vm3, %v28969_v21  ;;  %v23870_v27 = vunpack.i.h.bf16 %v30954_v15 }
 0x766   : > { %18712 = vmatprep.mubr.f32.mxu1 %v30424_v37 }
 0x767   : > { %21698 = vmatmul.mubr.msk.f32.gmra.mrb[42].mxu0 %vm14004_vm3, %v28969_v21  ;;  %v13883_v21 = vsel %vm13849_vm7, %v23800_v16, %v23805_v18  ;;  %v23815_v16 = vunpack.i.h.bf16 %v28053_v14  ;;  %v13888_v18 = vsel %vm13849_vm7, %v23814_v44, %v23819_v25  ;;  %v29534_v44 = vld [vmem:[%s30217_s4 + $0xb0] sm:$0xff] }
 0x768   : > { %18599 = vmatprep.mubr.f32.mxu0 %v30424_v37  ;;  %v22457_v14 = vpack.c.bf16 %v13883_v21, %v13882_v41  ;;  %v13870_v21 = vsel %vm13849_vm7, %v23834_v47, %v23839_v20  ;;  %v29479_v41 = vld [vmem:[%s30217_s4 + $0x88] sm:$0xff] }
 0x769   : > { %21707 = vmatmul.mubr.msk.f32.gmra.mrb[44].mxu1 %vm14004_vm3, %v28988_v55  ;;  %v13889_v45 = vsel %vm13849_vm7, %v23815_v16, %v23820_v40  ;;  %v13893_v8 = vsel %vm13849_vm7, %v30953_v35, %v23815_v16  ;;  %v29523_v16 = vld [vmem:[%s30217_s4 + $0xa8] sm:$0xff] }
 0x76a   : > { %18718 = vmatprep.mubr.f32.mxu1 %v30424_v37  ;;  %v22453_v17 = vpack.c.bf16 %v13893_v8, %v13892_v23  ;;  %v30958_v23 = vunpack.i.h.bf16 %v28050_v22  ;;  %v30959_v8 = vunpack.i.l.bf16 %v28050_v22 }
 0x76b   : > { %21699 = vmatmul.mubr.msk.f32.gmra.mrb[44].mxu0 %vm14004_vm3, %v28988_v55  ;;  %v13890_v55 = vsel %vm13849_vm7, %v30951_v7, %v23794_v11  ;;  %v23840_v11 = vunpack.i.h.bf16 %v28090_v42  ;;  %v29501_v7 = vld [vmem:[%s30217_s4 + $0x98] sm:$0xff] }
 0x76c   : > { %18605 = vmatprep.mubr.f32.mxu0 %v30424_v37  ;;  %v22449_v2 = vpack.c.bf16 %v13891_v32, %v13890_v55  ;;  %v29490_v32 = vld [vmem:[%s30217_s4 + $0x90] sm:$0xff]  ;;  %v29512_v55 = vld [vmem:[%s30217_s4 + $0xa0] sm:$0xff]  ;;  %v29563_v42 = vld [vmem:[%s30217_s4 + $0xb8] sm:$0xff]  ;;  %v13875_v35 = vsel %vm13849_vm7, %v30958_v23, %v23835_v5 }
 0x76d   : > { %21708 = vmatmul.mubr.msk.f32.gmra.mrb[46].mxu1 %vm14004_vm3, %v29007_v10  ;;  %v13871_v60 = vsel %vm13849_vm7, %v23835_v5, %v23840_v11 }
 0x76e   : > { %18902 = vmatprep.mubr.f32.mxu1 %v30424_v37  ;;  %v22463_v52 = vpack.c.bf16 %v13871_v60, %v13870_v21  ;;  %v30960_v21 = vld [vmem:[#allocation12_spill] sm:$0xff] }
 0x76f   : > { %21700 = vmatmul.mubr.msk.f32.gmra.mrb[46].mxu0 %vm14004_vm3, %v29007_v10  ;;  %v13885_v10 = vsel %vm13849_vm7, %v23820_v40, %v23825_v51  ;;  %v22451_v40 = vpack.c.bf16 %v13889_v45, %v13888_v18  ;;  %v22471_v51 = vpack.c.bf16 %v13863_v59, %v13862_v39  ;;  %v13867_v18 = vsel %vm13849_vm7, %v23840_v11, %v23845_v54  ;;  %v30957_v11 = vld [vmem:[#allocation11_spill] sm:$0xff] }
 0x770   : > { %18789 = vmatprep.mubr.f32.mxu0 %v30424_v37  ;;  %v22461_v25 = vpack.c.bf16 %v13885_v10, %v13884_v33  ;;  %v13866_v45 = vsel %vm13849_vm7, %v23839_v20, %v23844_v6  ;;  %v23855_v20 = vunpack.i.h.bf16 %v30957_v11  ;;  %v23854_v54 = vunpack.i.l.bf16 %v30957_v11  ;;  %v30965_v11 = vld [vmem:[#allocation18_spill] sm:$0xff] }
 0x771   : > { %21717 = vmatmul.mubr.msk.f32.vlgmr.msra.gmra.mrb[240].mxu1 %vm14004_vm3, %v29434_v28  ;;  %v23880_v60 = vunpack.i.h.bf16 %v30960_v21 }
 0x772   : > { %22458 = vmatpush1.bf16.msra.mxu1 %v22457_v14  ;;  %18908 = vmatprep.mubr.f32.mxu1 %v30424_v37  ;;  %v23869_v14 = vunpack.i.l.bf16 %v30954_v15 }
 0x773   : > { %22460 = vmatprep.subr.bf16.mxu1 %v22459_v61  ;;  %21709 = vmatmul.mubr.msk.f32.vlgmr.msra.gmra.mrb[240].mxu0 %vm14004_vm3, %v29434_v28  ;;  %v30956_v61 = vld [vmem:[#allocation9_spill] sm:$0xff] }
 0x774   : > { %22450 = vmatpush1.bf16.msra.mxu0 %v22449_v2  ;;  %18795 = vmatprep.mubr.f32.mxu0 %v30424_v37  ;;  %v30955_v2 = vld [vmem:[#allocation8_spill] sm:$0xff]  ;;  %v23865_v39 = vunpack.i.h.bf16 %v30956_v61  ;;  %v23864_v59 = vunpack.i.l.bf16 %v30956_v61 }
 0x775   : > { %21718 = vmatmul.mubr.msk.f32.gmra.mrb[242].mxu1 %vm14004_vm3, %v29479_v41  ;;  %22452 = vmatprep.subr.bf16.mxu0 %v22451_v40  ;;  %v23860_v10 = vunpack.i.h.bf16 %v30955_v2  ;;  %v23859_v33 = vunpack.i.l.bf16 %v30955_v2  ;;  %v13874_v40 = vsel %vm13849_vm7, %v30959_v8, %v23834_v47 }
 0x776   : > { %22462 = vmatpush1.bf16.msra.mxu1 %v22461_v25  ;;  %18914 = vmatprep.mubr.f32.mxu1 %v30424_v37  ;;  %v13864_v6 = vsel %vm13849_vm7, %v23864_v59, %v23869_v14  ;;  %v13865_v38 = vsel %vm13849_vm7, %v23865_v39, %v23870_v27  ;;  %v22473_v25 = vpack.c.bf16 %v13867_v18, %v13866_v45  ;;  %v30961_v18 = vld [vmem:[#allocation15_spill] sm:$0xff] }
 0x777   : > { %22472 = vmatprep.subr.bf16.mxu1 %v22471_v51  ;;  %21710 = vmatmul.mubr.msk.f32.gmra.mrb[242].mxu0 %vm14004_vm3, %v29479_v41  ;;  %v23879_v51 = vunpack.i.l.bf16 %v30960_v21  ;;  %v13872_v5 = vsel %vm13849_vm7, %v23854_v54, %v23859_v33  ;;  %v13873_v53 = vsel %vm13849_vm7, %v23855_v20, %v23860_v10  ;;  %v13869_v22 = vsel %vm13849_vm7, %v23860_v10, %v23865_v39 }
 0x778   : > { %22454 = vmatpush1.bf16.msra.mxu0 %v22453_v17  ;;  %18801 = vmatprep.mubr.f32.mxu0 %v30424_v37  ;;  %v13868_v47 = vsel %vm13849_vm7, %v23859_v33, %v23864_v59  ;;  %v22475_v17 = vpack.c.bf16 %v13865_v38, %v13864_v6  ;;  %v23875_v45 = vunpack.i.h.bf16 %v30961_v18  ;;  %v23874_v2 = vunpack.i.l.bf16 %v30961_v18  ;;  %v23893_v6 = vpop.permute.xlu0 %23892  ;;  %v30967_v38 = vld [vmem:[#allocation16_spill] sm:$0xff]  ;;  %v30971_v18 = vld [vmem:[#allocation17_spill] sm:$0xff] }
 0x779   : > { %21719 = vmatmul.mubr.msk.f32.gmra.mrb[244].mxu1 %vm14004_vm3, %v29490_v32  ;;  %22464 = vmatprep.subr.bf16.mxu0 %v22463_v52  ;;  %v22465_v52 = vpack.c.bf16 %v13875_v35, %v13874_v40  ;;  %v13877_v10 = vsel %vm13849_vm7, %v23830_v19, %v23855_v20  ;;  %v13876_v33 = vsel %vm13849_vm7, %v23829_v56, %v23854_v54  ;;  %v23890_v23 = vunpack.i.h.bf16 %v30967_v38 }
 0x77a   : > { %18920 = vmatprep.mubr.f32.mxu1 %v30424_v37  ;;  %v22467_v61 = vpack.c.bf16 %v13873_v53, %v13872_v5  ;;  %v22477_v39 = vpack.c.bf16 %v13869_v22, %v13868_v47  ;;  %v13854_v24 = vsel %vm13849_vm7, %v23874_v2, %v23879_v51  ;;  %v13855_v19 = vsel %vm13849_vm7, %v23875_v45, %v23880_v60 }
 0x77b   : > { %21711 = vmatmul.mubr.msk.f32.gmra.mrb[244].mxu0 %vm14004_vm3, %v29490_v32  ;;  %v22469_v56 = vpack.c.bf16 %v13877_v10, %v13876_v33  ;;  %v30966_v20 = vpack.c.bf16 %v30964_v30, %v30965_v11  ;;  %v22479_v54 = vpack.c.bf16 %v13855_v19, %v13854_v24  ;;  %v23889_v35 = vunpack.i.l.bf16 %v30967_v38 }
 0x77c   : > { %18807 = vmatprep.mubr.f32.mxu0 %v30424_v37  ;;  %v23895_v8 = vunpack.i.h.bf16 %v23893_v6  ;;  %v23894_v40 = vunpack.i.l.bf16 %v23893_v6  ;;  %v30972_v10 = vunpack.i.l.bf16 %v30971_v18  ;;  %v13861_v33 = vsel %vm13849_vm7, %v23870_v27, %v23890_v23 }
 0x77d   : > { %21720 = vmatmul.mubr.msk.f32.gmra.mrb[246].mxu1 %vm14004_vm3, %v29501_v7 }
 0x77e   : > { %18926 = vmatprep.mubr.f32.mxu1 %v30424_v37  ;;  %v13852_v34 = vsel %vm13849_vm7, %v23894_v40, %v30972_v10 }
 0x77f   : > { %21712 = vmatmul.mubr.msk.f32.gmra.mrb[246].mxu0 %vm14004_vm3, %v29501_v7 }
 0x780   : > { %18813 = vmatprep.mubr.f32.mxu0 %v30424_v37 }
 0x781   : > { %21721 = vmatmul.mubr.msk.f32.gmra.mrb[248].mxu1 %vm14004_vm3, %v29512_v55 }
 0x782   : > { %18932 = vmatprep.mubr.f32.mxu1 %v30424_v37 }
 0x783   : > { %21713 = vmatmul.mubr.msk.f32.gmra.mrb[248].mxu0 %vm14004_vm3, %v29512_v55 }
 0x784   : > { %18819 = vmatprep.mubr.f32.mxu0 %v30424_v37 }
 0x785   : > { %21722 = vmatmul.mubr.msk.f32.gmra.mrb[250].mxu1 %vm14004_vm3, %v29523_v16 }
 0x786   : > { %18938 = vmatprep.mubr.f32.mxu1 %v30424_v37 }
 0x787   : > { %21714 = vmatmul.mubr.msk.f32.gmra.mrb[250].mxu0 %vm14004_vm3, %v29523_v16 }
 0x788   : > { %18825 = vmatprep.mubr.f32.mxu0 %v30424_v37 }
 0x789   : > { %21723 = vmatmul.mubr.msk.f32.gmra.mrb[252].mxu1 %vm14004_vm3, %v29534_v44 }
 0x78a   : > { %18944 = vmatprep.mubr.f32.mxu1 %v30424_v37 }
 0x78b   : > { %21715 = vmatmul.mubr.msk.f32.gmra.mrb[252].mxu0 %vm14004_vm3, %v29534_v44 }
 0x78c   : > { %18831 = vmatprep.mubr.f32.mxu0 %v30424_v37 }
 0x78d   : > { %21724 = vmatmul.mubr.msk.f32.gmra.mrb[254].mxu1 %vm14004_vm3, %v29563_v42 }
 0x78e   : > { %19128 = vmatprep.mubr.f32.mxu1 %v30424_v37 }
 0x78f   : > { %21716 = vmatmul.mubr.msk.f32.gmra.mrb[254].mxu0 %vm14004_vm3, %v29563_v42 }
 0x790   : > { %19015 = vmatprep.mubr.f32.mxu0 %v30424_v37 }
 0x791   : > { %21733 = vmatmul.mubr.msk.f32.vlgmr.msra.gmra.mrb[0].mxu1 %vm14004_vm3, %v29434_v28 }
 0x792   : > { %22474 = vmatpush1.bf16.msra.mxu1 %v22473_v25  ;;  %19134 = vmatprep.mubr.f32.mxu1 %v30424_v37  ;;  %v30968_v25 = vld [vmem:[#allocation13_spill] sm:$0xff] }
 0x793   : > { %22476 = vmatprep.subr.bf16.mxu1 %v22475_v17  ;;  %21725 = vmatmul.mubr.msk.f32.vlgmr.msra.gmra.mrb[0].mxu0 %vm14004_vm3, %v29434_v28  ;;  %v30969_v5 = vunpack.i.h.bf16 %v30968_v25  ;;  %v30970_v22 = vunpack.i.l.bf16 %v30968_v25  ;;  %v13859_v17 = vsel %vm13849_vm7, %v23850_v26, %v23875_v45  ;;  %v30973_v26 = vunpack.i.h.bf16 %v30971_v18 }
 0x794   : > { %22466 = vmatpush1.bf16.msra.mxu0 %v22465_v52  ;;  %19021 = vmatprep.mubr.f32.mxu0 %v30424_v37  ;;  %v13857_v52 = vsel %vm13849_vm7, %v23890_v23, %v23895_v8 }
 0x795   : > { %21734 = vmatmul.mubr.msk.f32.gmra.mrb[2].mxu1 %vm14004_vm3, %v29479_v41  ;;  %22468 = vmatprep.subr.bf16.mxu0 %v22467_v61  ;;  %v13851_v53 = vsel %vm13849_vm7, %v23880_v60, %v30969_v5  ;;  %v13850_v47 = vsel %vm13849_vm7, %v23879_v51, %v30970_v22  ;;  %v13858_v60 = vsel %vm13849_vm7, %v23849_v50, %v23874_v2  ;;  %v30974_v61 = vld [vmem:[#allocation23_spill] sm:$0xff] }
 0x796   : > { %22478 = vmatpush1.bf16.msra.mxu1 %v22477_v39  ;;  %19140 = vmatprep.mubr.f32.mxu1 %v30424_v37  ;;  %v22490_v21 = vpack.c.bf16 %v13851_v53, %v13850_v47  ;;  %v13856_v51 = vsel %vm13849_vm7, %v23889_v35, %v23894_v40  ;;  %v13853_v50 = vsel %vm13849_vm7, %v23895_v8, %v30973_v26  ;;  %v30975_v39 = vld [vmem:[#allocation22_spill] sm:$0xff] }
 0x797   : > { %22489 = vmatprep.subr.msk.bf16.mxu1 %vm29619_vm9, %v30966_v20  ;;  %21726 = vmatmul.mubr.msk.f32.gmra.mrb[2].mxu0 %vm14004_vm3, %v29479_v41  ;;  %v22481_v45 = vpack.c.bf16 %v13859_v17, %v13858_v60  ;;  %v13860_v2 = vsel %vm13849_vm7, %v23869_v14, %v23889_v35  ;;  %v30976_v24 = vpack.c.bf16 %v30974_v61, %v30975_v39 }
 0x798   : > { %22470 = vmatpush1.bf16.msra.mxu0 %v22469_v56  ;;  %19027 = vmatprep.mubr.f32.mxu0 %v30424_v37  ;;  %v22483_v19 = vpack.c.bf16 %v13857_v52, %v13856_v51  ;;  %v22495_v56 = vpack.c.bf16 %v13853_v50, %v13852_v34  ;;  %v22485_v9 = vpack.c.bf16 %v13861_v33, %v13860_v2 }
 0x799   : > { %21735 = vmatmul.mubr.msk.f32.gmra.mrb[4].mxu1 %vm14004_vm3, %v29490_v32  ;;  %22480 = vmatprep.subr.bf16.mxu0 %v22479_v54 }
 0x79a   : > { %19146 = vmatprep.mubr.f32.mxu1 %v30424_v37 }
 0x79b   : > { %21727 = vmatmul.mubr.msk.f32.gmra.mrb[4].mxu0 %vm14004_vm3, %v29490_v32 }
 0x79c   : > { %19033 = vmatprep.mubr.f32.mxu0 %v30424_v37 }
 0x79d   : > { %21736 = vmatmul.mubr.msk.f32.gmra.mrb[6].mxu1 %vm14004_vm3, %v29501_v7 }
 0x79e   : > { %19152 = vmatprep.mubr.f32.mxu1 %v30424_v37 }
 0x79f   : > { %21728 = vmatmul.mubr.msk.f32.gmra.mrb[6].mxu0 %vm14004_vm3, %v29501_v7 }
 0x7a0   : > { %19039 = vmatprep.mubr.f32.mxu0 %v30424_v37 }
 0x7a1   : > { %21737 = vmatmul.mubr.msk.f32.gmra.mrb[8].mxu1 %vm14004_vm3, %v29512_v55 }
 0x7a2   : > { %19158 = vmatprep.mubr.f32.mxu1 %v30424_v37 }
 0x7a3   : > { %21729 = vmatmul.mubr.msk.f32.gmra.mrb[8].mxu0 %vm14004_vm3, %v29512_v55 }
 0x7a4   : > { %19045 = vmatprep.mubr.f32.mxu0 %v30424_v37 }
 0x7a5   : > { %21738 = vmatmul.mubr.msk.f32.gmra.mrb[10].mxu1 %vm14004_vm3, %v29523_v16 }
 0x7a6   : > { %19164 = vmatprep.mubr.f32.mxu1 %v30424_v37 }
 0x7a7   : > { %21730 = vmatmul.mubr.msk.f32.gmra.mrb[10].mxu0 %vm14004_vm3, %v29523_v16 }
 0x7a8   : > { %19051 = vmatprep.mubr.f32.mxu0 %v30424_v37 }
 0x7a9   : > { %21739 = vmatmul.mubr.msk.f32.gmra.mrb[12].mxu1 %vm14004_vm3, %v29534_v44 }
 0x7aa   : > { %19170 = vmatprep.mubr.f32.mxu1 %v30424_v37 }
 0x7ab   : > { %21731 = vmatmul.mubr.msk.f32.gmra.mrb[12].mxu0 %vm14004_vm3, %v29534_v44 }
 0x7ac   : > { %19057 = vmatprep.mubr.f32.mxu0 %v30424_v37 }
 0x7ad   : > { %21740 = vmatmul.mubr.msk.f32.gmra.mrb[14].mxu1 %vm14004_vm3, %v29563_v42 }
 0x7ae   : > { %19354 = vmatprep.mubr.f32.mxu1 %v30424_v37 }
 0x7af   : > { %21732 = vmatmul.mubr.msk.f32.gmra.mrb[14].mxu0 %vm14004_vm3, %v29563_v42 }
 0x7b0   : > { %19241 = vmatprep.mubr.f32.mxu0 %v30424_v37 }
 0x7b1   : > { %21749 = vmatmul.mubr.msk.f32.vlgmr.msra.gmra.mrb[16].mxu1 %vm14004_vm3, %v29434_v28 }
 0x7b2   : > { %22491 = vmatpush1.bf16.msra.mxu1 %v22490_v21  ;;  %19360 = vmatprep.mubr.f32.mxu1 %v30424_v37 }
 0x7b3   : > { %22494 = vmatprep.subr.msk.bf16.mxu1 %vm29619_vm9, %v30976_v24  ;;  %21741 = vmatmul.mubr.msk.f32.vlgmr.msra.gmra.mrb[16].mxu0 %vm14004_vm3, %v29434_v28 }
 0x7b4   : > { %22482 = vmatpush1.bf16.msra.mxu0 %v22481_v45  ;;  %19247 = vmatprep.mubr.f32.mxu0 %v30424_v37 }
 0x7b5   : > { %21750 = vmatmul.mubr.msk.f32.gmra.mrb[18].mxu1 %vm14004_vm3, %v29479_v41  ;;  %22484 = vmatprep.subr.bf16.mxu0 %v22483_v19 }
 0x7b6   : > { %22496 = vmatpush1.bf16.msra.mxu1 %v22495_v56  ;;  %19366 = vmatprep.mubr.f32.mxu1 %v30424_v37 }
 0x7b7   : > { %21742 = vmatmul.mubr.msk.f32.gmra.mrb[18].mxu0 %vm14004_vm3, %v29479_v41 }
 0x7b8   : > { %22486 = vmatpush1.bf16.msra.mxu0 %v22485_v9  ;;  %19253 = vmatprep.mubr.f32.mxu0 %v30424_v37 }
 0x7b9   : > { %21751 = vmatmul.mubr.msk.f32.gmra.mrb[20].mxu1 %vm14004_vm3, %v29490_v32 }
 0x7ba   : > { %19372 = vmatprep.mubr.f32.mxu1 %v30424_v37 }
 0x7bb   : > { %21743 = vmatmul.mubr.msk.f32.gmra.mrb[20].mxu0 %vm14004_vm3, %v29490_v32 }
 0x7bc   : > { %19259 = vmatprep.mubr.f32.mxu0 %v30424_v37 }
 0x7bd   : > { %21752 = vmatmul.mubr.msk.f32.gmra.mrb[22].mxu1 %vm14004_vm3, %v29501_v7 }
 0x7be   : > { %19378 = vmatprep.mubr.f32.mxu1 %v30424_v37 }
 0x7bf   : > { %21744 = vmatmul.mubr.msk.f32.gmra.mrb[22].mxu0 %vm14004_vm3, %v29501_v7 }
 0x7c0   : > { %19265 = vmatprep.mubr.f32.mxu0 %v30424_v37 }
 0x7c1   : > { %21753 = vmatmul.mubr.msk.f32.gmra.mrb[24].mxu1 %vm14004_vm3, %v29512_v55 }
 0x7c2   : > { %19384 = vmatprep.mubr.f32.mxu1 %v30424_v37 }
 0x7c3   : > { %21745 = vmatmul.mubr.msk.f32.gmra.mrb[24].mxu0 %vm14004_vm3, %v29512_v55 }
 0x7c4   : > { %19271 = vmatprep.mubr.f32.mxu0 %v30424_v37 }
 0x7c5   : > { %21754 = vmatmul.mubr.msk.f32.gmra.mrb[26].mxu1 %vm14004_vm3, %v29523_v16 }
 0x7c6   : > { %19390 = vmatprep.mubr.f32.mxu1 %v30424_v37 }
 0x7c7   : > { %21746 = vmatmul.mubr.msk.f32.gmra.mrb[26].mxu0 %vm14004_vm3, %v29523_v16 }
 0x7c8   : > { %19277 = vmatprep.mubr.f32.mxu0 %v30424_v37 }
 0x7c9   : > { %21755 = vmatmul.mubr.msk.f32.gmra.mrb[28].mxu1 %vm14004_vm3, %v29534_v44 }
 0x7ca   : > { %19396 = vmatprep.mubr.f32.mxu1 %v30424_v37 }
 0x7cb   : > { %21747 = vmatmul.mubr.msk.f32.gmra.mrb[28].mxu0 %vm14004_vm3, %v29534_v44 }
 0x7cc   : > { %19283 = vmatprep.mubr.f32.mxu0 %v30424_v37 }
 0x7cd   : > { %21756 = vmatmul.mubr.msk.f32.gmra.mrb[30].mxu1 %vm14004_vm3, %v29563_v42 }
 0x7ce   : > { %19580 = vmatprep.mubr.f32.mxu1 %v30424_v37 }
 0x7cf   : > { %21748 = vmatmul.mubr.msk.f32.gmra.mrb[30].mxu0 %vm14004_vm3, %v29563_v42 }
 0x7d0   : > { %19467 = vmatprep.mubr.f32.mxu0 %v30424_v37 }
 0x7d1   : > { %21773 = vmatmul.mubr.msk.f32.vlgmr.msra.gmra.mrb[32].mxu1 %vm14004_vm3, %v29434_v28 }
 0x7d2   : > { %19586 = vmatprep.mubr.f32.mxu1 %v30424_v37 }
 0x7d3   : > { %21757 = vmatmul.mubr.msk.f32.vlgmr.msra.gmra.mrb[32].mxu0 %vm14004_vm3, %v29434_v28 }
 0x7d4   : > { %19473 = vmatprep.mubr.f32.mxu0 %v30424_v37 }
 0x7d5   : > { %21774 = vmatmul.mubr.msk.f32.gmra.mrb[34].mxu1 %vm14004_vm3, %v29479_v41 }
 0x7d6   : > { %19592 = vmatprep.mubr.f32.mxu1 %v30424_v37 }
 0x7d7   : > { %21758 = vmatmul.mubr.msk.f32.gmra.mrb[34].mxu0 %vm14004_vm3, %v29479_v41 }
 0x7d8   : > { %19479 = vmatprep.mubr.f32.mxu0 %v30424_v37 }
 0x7d9   : > { %21775 = vmatmul.mubr.msk.f32.gmra.mrb[36].mxu1 %vm14004_vm3, %v29490_v32 }
 0x7da   : > { %19598 = vmatprep.mubr.f32.mxu1 %v30424_v37 }
 0x7db   : > { %21759 = vmatmul.mubr.msk.f32.gmra.mrb[36].mxu0 %vm14004_vm3, %v29490_v32 }
 0x7dc   : > { %19485 = vmatprep.mubr.f32.mxu0 %v30424_v37 }
 0x7dd   : > { %21776 = vmatmul.mubr.msk.f32.gmra.mrb[38].mxu1 %vm14004_vm3, %v29501_v7 }
 0x7de   : > { %19604 = vmatprep.mubr.f32.mxu1 %v30424_v37 }
 0x7df   : > { %21760 = vmatmul.mubr.msk.f32.gmra.mrb[38].mxu0 %vm14004_vm3, %v29501_v7  ;;  %v29822_v7 = vpop.permute.xlu0 %19895 }
 0x7e0   : > { %19491 = vmatprep.mubr.f32.mxu0 %v30424_v37 }
 0x7e1   : > { %21777 = vmatmul.mubr.msk.f32.gmra.mrb[40].mxu1 %vm14004_vm3, %v29512_v55 }
 0x7e2   : > { %19610 = vmatprep.mubr.f32.mxu1 %v30424_v37 }
 0x7e3   : > { %21761 = vmatmul.mubr.msk.f32.gmra.mrb[40].mxu0 %vm14004_vm3, %v29512_v55  ;;  %v29843_v17 = vpop.permute.xlu0 %19905 }
 0x7e4   : > { %19497 = vmatprep.mubr.f32.mxu0 %v30424_v37 }
 0x7e5   : > { %21778 = vmatmul.mubr.msk.f32.gmra.mrb[42].mxu1 %vm14004_vm3, %v29523_v16 }
 0x7e6   : > { %19616 = vmatprep.mubr.f32.mxu1 %v30424_v37 }
 0x7e7   : > { %21762 = vmatmul.mubr.msk.f32.gmra.mrb[42].mxu0 %vm14004_vm3, %v29523_v16 }
 0x7e8   : > { %19503 = vmatprep.mubr.f32.mxu0 %v30424_v37 }
 0x7e9   : > { %21779 = vmatmul.mubr.msk.f32.gmra.mrb[44].mxu1 %vm14004_vm3, %v29534_v44 }
 0x7ea   : > { %19622 = vmatprep.mubr.f32.mxu1 %v30424_v37 }
 0x7eb   : > { %21763 = vmatmul.mubr.msk.f32.gmra.mrb[44].mxu0 %vm14004_vm3, %v29534_v44 }
 0x7ec   : > { %19509 = vmatprep.mubr.f32.mxu0 %v30424_v37 }
 0x7ed   : > { %21780 = vmatmul.mubr.msk.f32.gmra.mrb[46].mxu1 %vm14004_vm3, %v29563_v42 }
 0x7ef   : > { %21764 = vmatmul.mubr.msk.f32.gmra.mrb[46].mxu0 %vm14004_vm3, %v29563_v42 }
 0x844   : > { %v18904_v28 = vpop.f32.mrb[240].mxu1 }
 0x845   : > { %v19767_v41 = vmax.f32 %v28696_v63, %v18904_v28  ;;  %v18906_v32 = vpop.f32.mrb[241].mxu1 }
 0x846   : > { %v19768_v55 = vmax.f32 %v28699_v4, %v18906_v32  ;;  %v18791_v16 = vpop.f32.mrb[240].mxu0  ;;  %v29833_v4 = vpop.permute.xlu1 %19900 }
 0x847   : > { %v19935_v44 = vadd.f32 %v29822_v7, %v19767_v41  ;;  %v19765_v37 = vmax.f32 %v28703_v31, %v18791_v16  ;;  %v18793_v15 = vpop.f32.mrb[241].mxu0 }
 0x848   : > { %v19936_v27 = vadd.f32 %v29822_v7, %v19768_v55  ;;  %v19766_v14 = vmax.f32 %v28706_v0, %v18793_v15  ;;  %v18910_v42 = vpop.f32.mrb[242].mxu1 }
 0x849   : > { %v20063_v63 = vmax.f32 %v19935_v44, 0.0  ;;  %v19933_v59 = vadd.f32 %v29822_v7, %v19765_v37  ;;  %v19783_v30 = vmax.f32 %v28710_v29, %v18910_v42  ;;  %v18912_v11 = vpop.f32.mrb[243].mxu1 }
 0x84a   : > { %v20064_v20 = vmax.f32 %v19936_v27, 0.0  ;;  %v19934_v54 = vadd.f32 %v29822_v7, %v19766_v14  ;;  %v19784_v31 = vmax.f32 %v28713_v3, %v18912_v11  ;;  %v18797_v6 = vpop.f32.mrb[242].mxu0  ;;  %v29857_v24 = vpop.permute.xlu1 %19910  ;;  %v30977_v11 = vld [vmem:[#allocation20_spill] sm:$0xff] }
 0x84b   : > { %v20061_v38 = vmax.f32 %v19933_v59, 0.0  ;;  %v19951_v23 = vadd.f32 %v29833_v4, %v19783_v30  ;;  %v19781_v0 = vmax.f32 %v28717_v43, %v18797_v6  ;;  %v18799_v35 = vpop.f32.mrb[243].mxu0  ;;  %v30978_v6 = vld [vmem:[#allocation21_spill] sm:$0xff] }
 0x84c   : > { %v21851_v8 = vpack.c.bf16 %v20064_v20, %v20063_v63  ;;  %v20062_v40 = vmax.f32 %v19934_v54, 0.0  ;;  %v19952_v25 = vadd.f32 %v29833_v4, %v19784_v31  ;;  %v19782_v29 = vmax.f32 %v28720_v13, %v18799_v35  ;;  %v18916_v5 = vpop.f32.mrb[244].mxu1  ;;  %v29869_v63 = vpop.permute.xlu0 %19915 }
 0x84d   : > { %v20079_v53 = vmax.f32 %v19951_v23, 0.0  ;;  %v19949_v22 = vadd.f32 %v29833_v4, %v19781_v0  ;;  %v19799_v47 = vmax.f32 %v28724_v12, %v18916_v5  ;;  %v18918_v3 = vpop.f32.mrb[245].mxu1 }
 0x84e   : > { %20574 = vst [vmem:[%s29845_s16 + $0x8] sm:$0xff] %v21851_v8  ;;  %v21850_v43 = vpack.c.bf16 %v20062_v40, %v20061_v38  ;;  %v20080_v60 = vmax.f32 %v19952_v25, 0.0  ;;  %v19950_v21 = vadd.f32 %v29833_v4, %v19782_v29  ;;  %v19800_v13 = vmax.f32 %v28727_v62, %v18918_v3  ;;  %v18803_v51 = vpop.f32.mrb[244].mxu0  ;;  %v30979_v8 = vld [vmem:[#allocation49_spill] sm:$0xff]  ;;  %v29881_v3 = vpop.permute.xlu1 %19920 }
 0x84f   : > { %v20077_v52 = vmax.f32 %v19949_v22, 0.0  ;;  %v19967_v18 = vadd.f32 %v29843_v17, %v19799_v47  ;;  %v19797_v12 = vmax.f32 %v28731_v58, %v18803_v51  ;;  %v18805_v10 = vpop.f32.mrb[245].mxu0 }
 0x850   : > { %20573 = vst [vmem:[%s29845_s16] sm:$0xff] %v21850_v43  ;;  %v21859_v34 = vpack.c.bf16 %v20080_v60, %v20079_v53  ;;  %v20078_v26 = vmax.f32 %v19950_v21, 0.0  ;;  %v19968_v50 = vadd.f32 %v29843_v17, %v19800_v13  ;;  %v19798_v45 = vmax.f32 %v28734_v36, %v18805_v10  ;;  %v18922_v2 = vpop.f32.mrb[246].mxu1  ;;  %v30980_v53 = vld [vmem:[#allocation41_spill] sm:$0xff]  ;;  %v30981_v13 = vld [vmem:[#allocation48_spill] sm:$0xff] }
 0x851   : > { %v20095_v33 = vmax.f32 %v19967_v18, 0.0  ;;  %v19965_v62 = vadd.f32 %v29843_v17, %v19797_v12  ;;  %v19815_v61 = vmax.f32 %v28738_v48, %v18922_v2  ;;  %v18924_v39 = vpop.f32.mrb[247].mxu1  ;;  %v30982_v10 = vld [vmem:[#allocation40_spill] sm:$0xff] }
 0x852   : > { %20582 = vst [vmem:[%s29845_s16 + $0x48] sm:$0xff] %v21859_v34  ;;  %v21858_v58 = vpack.c.bf16 %v20078_v26, %v20077_v52  ;;  %v20096_v19 = vmax.f32 %v19968_v50, 0.0  ;;  %v19966_v56 = vadd.f32 %v29843_v17, %v19798_v45  ;;  %v19816_v9 = vmax.f32 %v28741_v1, %v18924_v39  ;;  %v18809_v28 = vpop.f32.mrb[246].mxu0 }
 0x853   : > { %v20093_v36 = vmax.f32 %v19965_v62, 0.0  ;;  %v19983_v41 = vadd.f32 %v29857_v24, %v19815_v61  ;;  %v19813_v32 = vmax.f32 %v28746_v57, %v18809_v28  ;;  %v18811_v55 = vpop.f32.mrb[247].mxu0  ;;  %v29893_v28 = vpop.permute.xlu0 %19925 }
 0x854   : > { %20581 = vst [vmem:[%s29845_s16 + $0x40] sm:$0xff] %v21858_v58  ;;  %v21867_v48 = vpack.c.bf16 %v20096_v19, %v20095_v33  ;;  %v20094_v16 = vmax.f32 %v19966_v56, 0.0  ;;  %v19984_v44 = vadd.f32 %v29857_v24, %v19816_v9  ;;  %v19814_v37 = vmax.f32 %v28750_v46, %v18811_v55  ;;  %v18928_v15 = vpop.f32.mrb[248].mxu1  ;;  %v30983_v33 = vld [vmem:[#allocation51_spill] sm:$0xff]  ;;  %v30985_v55 = vld [vmem:[#allocation50_spill] sm:$0xff] }
 0x855   : > { %v20111_v27 = vmax.f32 %v19983_v41, 0.0  ;;  %v19981_v1 = vadd.f32 %v29857_v24, %v19813_v32  ;;  %v19831_v14 = vmax.f32 %v28754_v49, %v18928_v15  ;;  %v18930_v42 = vpop.f32.mrb[249].mxu1  ;;  %v30984_v19 = vld [vmem:[#allocation43_spill] sm:$0xff]  ;;  %v30986_v15 = vld [vmem:[#allocation42_spill] sm:$0xff] }
 0x856   : > { %20590 = vst [vmem:[%s29845_s16 + $0x88] sm:$0xff] %v21867_v48  ;;  %v21866_v57 = vpack.c.bf16 %v20094_v16, %v20093_v36  ;;  %v20112_v59 = vmax.f32 %v19984_v44, 0.0  ;;  %v19982_v30 = vadd.f32 %v29857_v24, %v19814_v37  ;;  %v19832_v20 = vmax.f32 %v30977_v11, %v18930_v42  ;;  %v18815_v54 = vpop.f32.mrb[248].mxu0 }
 0x857   : > { %v20109_v46 = vmax.f32 %v19981_v1, 0.0  ;;  %v19999_v31 = vadd.f32 %v29869_v63, %v19831_v14  ;;  %v19829_v38 = vmax.f32 %v30978_v6, %v18815_v54  ;;  %v18817_v23 = vpop.f32.mrb[249].mxu0 }
 0x858   : > { %20589 = vst [vmem:[%s29845_s16 + $0x80] sm:$0xff] %v21866_v57  ;;  %v21875_v49 = vpack.c.bf16 %v20112_v59, %v20111_v27  ;;  %v20110_v0 = vmax.f32 %v19982_v30, 0.0  ;;  %v20000_v35 = vadd.f32 %v29869_v63, %v19832_v20  ;;  %v19830_v40 = vmax.f32 %v30979_v8, %v18817_v23  ;;  %v18934_v25 = vpop.f32.mrb[250].mxu1  ;;  %v30987_v59 = vld [vmem:[#allocation29_spill] sm:$0xff] }
 0x859   : > { %v20127_v29 = vmax.f32 %v19999_v31, 0.0  ;;  %v19997_v5 = vadd.f32 %v29869_v63, %v19829_v38  ;;  %v19847_v22 = vmax.f32 %v30980_v53, %v18934_v25  ;;  %v18936_v47 = vpop.f32.mrb[251].mxu1  ;;  %v29905_v38 = vpop.permute.xlu1 %19930 }
 0x85a   : > { %20598 = vst [vmem:[%s29845_s16 + $0xc8] sm:$0xff] %v21875_v49  ;;  %v21874_v43 = vpack.c.bf16 %v20110_v0, %v20109_v46  ;;  %v20128_v60 = vmax.f32 %v20000_v35, 0.0  ;;  %v19998_v21 = vadd.f32 %v29869_v63, %v19830_v40  ;;  %v19848_v51 = vmax.f32 %v30981_v13, %v18936_v47  ;;  %v18821_v52 = vpop.f32.mrb[250].mxu0  ;;  %v30988_v46 = vld [vmem:[#allocation34_spill] sm:$0xff]  ;;  %v30989_v35 = vld [vmem:[#allocation35_spill] sm:$0xff] }
 0x85b   : > { %v20125_v18 = vmax.f32 %v19997_v5, 0.0  ;;  %v20015_v12 = vadd.f32 %v29881_v3, %v19847_v22  ;;  %v19845_v34 = vmax.f32 %v30982_v10, %v18821_v52  ;;  %v18823_v26 = vpop.f32.mrb[251].mxu0  ;;  %v30990_v5 = vld [vmem:[#allocation59_spill] sm:$0xff] }
 0x85c   : > { %20597 = vst [vmem:[%s29845_s16 + $0xc0] sm:$0xff] %v21874_v43  ;;  %v21883_v50 = vpack.c.bf16 %v20128_v60, %v20127_v29  ;;  %v20126_v45 = vmax.f32 %v19998_v21, 0.0  ;;  %v20016_v2 = vadd.f32 %v29881_v3, %v19848_v51  ;;  %v19846_v62 = vmax.f32 %v30983_v33, %v18823_v26  ;;  %v18940_v61 = vpop.f32.mrb[252].mxu1  ;;  %v30991_v21 = vld [vmem:[#allocation56_spill] sm:$0xff] }
 0x85d   : > { %v20143_v39 = vmax.f32 %v20015_v12, 0.0  ;;  %v20013_v58 = vadd.f32 %v29881_v3, %v19845_v34  ;;  %v19863_v56 = vmax.f32 %v30984_v19, %v18940_v61  ;;  %v18942_v9 = vpop.f32.mrb[253].mxu1  ;;  %v30992_v12 = vld [vmem:[#allocation91_spill] sm:$0xff] }
 0x85e   : > { %20606 = vst [vmem:[%s29845_s16 + $0x108] sm:$0xff] %v21883_v50  ;;  %v21882_v36 = vpack.c.bf16 %v20126_v45, %v20125_v18  ;;  %v20144_v41 = vmax.f32 %v20016_v2, 0.0  ;;  %v20014_v32 = vadd.f32 %v29881_v3, %v19846_v62  ;;  %v19864_v48 = vmax.f32 %v30985_v55, %v18942_v9  ;;  %v18827_v16 = vpop.f32.mrb[252].mxu0  ;;  %v30993_v2 = vld [vmem:[#allocation92_spill] sm:$0xff] }
 0x85f   : > { %v20141_v44 = vmax.f32 %v20013_v58, 0.0  ;;  %v20031_v37 = vadd.f32 %v29893_v28, %v19863_v56  ;;  %v19861_v27 = vmax.f32 %v30986_v15, %v18827_v16  ;;  %v18829_v1 = vpop.f32.mrb[253].mxu0  ;;  %v30994_v58 = vld [vmem:[#allocation57_spill] sm:$0xff] }
 0x860   : > { %20605 = vst [vmem:[%s29845_s16 + $0x100] sm:$0xff] %v21882_v36  ;;  %v21891_v14 = vpack.c.bf16 %v20144_v41, %v20143_v39  ;;  %v20142_v42 = vmax.f32 %v20014_v32, 0.0  ;;  %v20032_v57 = vadd.f32 %v29893_v28, %v19864_v48  ;;  %v19862_v30 = vmax.f32 %v30987_v59, %v18829_v1  ;;  %v18946_v11 = vpop.f32.mrb[254].mxu1  ;;  %v30995_v32 = vld [vmem:[#allocation64_spill] sm:$0xff] }
 0x861   : > { %v20159_v20 = vmax.f32 %v20031_v37, 0.0  ;;  %v20029_v54 = vadd.f32 %v29893_v28, %v19861_v27  ;;  %v19879_v31 = vmax.f32 %v30988_v46, %v18946_v11  ;;  %v18948_v6 = vpop.f32.mrb[255].mxu1  ;;  %v30996_v37 = vld [vmem:[#allocation60_spill] sm:$0xff] }
 0x862   : > { %20614 = vst [vmem:[%s29845_s16 + $0x148] sm:$0xff] %v21891_v14  ;;  %v21890_v23 = vpack.c.bf16 %v20142_v42, %v20141_v44  ;;  %v20160_v49 = vmax.f32 %v20032_v57, 0.0  ;;  %v20030_v0 = vadd.f32 %v29893_v28, %v19862_v30  ;;  %v19880_v8 = vmax.f32 %v30989_v35, %v18948_v6  ;;  %v18833_v40 = vpop.f32.mrb[254].mxu0  ;;  %v30997_v57 = vld [vmem:[#allocation96_spill] sm:$0xff] }
 0x863   : > { %v20157_v25 = vmax.f32 %v20029_v54, 0.0  ;;  %v20047_v29 = vadd.f32 %v29905_v38, %v19879_v31  ;;  %v19877_v53 = vmax.f32 %v30990_v5, %v18833_v40  ;;  %v18835_v22 = vpop.f32.mrb[255].mxu0  ;;  %v30998_v54 = vld [vmem:[#allocation65_spill] sm:$0xff] }
 0x864   : > { %20613 = vst [vmem:[%s29845_s16 + $0x140] sm:$0xff] %v21890_v23  ;;  %v21899_v47 = vpack.c.bf16 %v20160_v49, %v20159_v20  ;;  %v20158_v43 = vmax.f32 %v20030_v0, 0.0  ;;  %v20048_v60 = vadd.f32 %v29905_v38, %v19880_v8  ;;  %v19878_v13 = vmax.f32 %v30991_v21, %v18835_v22  ;;  %v19130_v51 = vpop.f32.mrb[0].mxu1  ;;  %v30999_v0 = vld [vmem:[#allocation98_spill] sm:$0xff] }
 0x865   : > { %v20175_v52 = vmax.f32 %v20047_v29, 0.0  ;;  %v20045_v18 = vadd.f32 %v29905_v38, %v19877_v53  ;;  %v19771_v10 = vmax.f32 %v30992_v12, %v19130_v51  ;;  %v19132_v34 = vpop.f32.mrb[1].mxu1  ;;  %v31000_v29 = vld [vmem:[#allocation69_spill] sm:$0xff] }
 0x866   : > { %20622 = vst [vmem:[%s29845_s16 + $0x188] sm:$0xff] %v21899_v47  ;;  %v21898_v26 = vpack.c.bf16 %v20158_v43, %v20157_v25  ;;  %v20176_v50 = vmax.f32 %v20048_v60, 0.0  ;;  %v20046_v45 = vadd.f32 %v29905_v38, %v19878_v13  ;;  %v19772_v33 = vmax.f32 %v30993_v2, %v19132_v34  ;;  %v19017_v62 = vpop.f32.mrb[0].mxu0  ;;  %v31001_v60 = vld [vmem:[#allocation66_spill] sm:$0xff] }
 0x867   : > { %v20173_v61 = vmax.f32 %v20045_v18, 0.0  ;;  %v19939_v39 = vadd.f32 %v29822_v7, %v19771_v10  ;;  %v19769_v19 = vmax.f32 %v30994_v58, %v19017_v62  ;;  %v19019_v56 = vpop.f32.mrb[1].mxu0  ;;  %v31002_v18 = vld [vmem:[#allocation70_spill] sm:$0xff] }
 0x868   : > { %20621 = vst [vmem:[%s29845_s16 + $0x180] sm:$0xff] %v21898_v26  ;;  %v21907_v9 = vpack.c.bf16 %v20176_v50, %v20175_v52  ;;  %v20174_v36 = vmax.f32 %v20046_v45, 0.0  ;;  %v19940_v41 = vadd.f32 %v29822_v7, %v19772_v33  ;;  %v19770_v55 = vmax.f32 %v30995_v32, %v19019_v56  ;;  %v19136_v48 = vpop.f32.mrb[2].mxu1  ;;  %v31003_v45 = vld [vmem:[#allocation71_spill] sm:$0xff] }
 0x869   : > { %v20067_v16 = vmax.f32 %v19939_v39, 0.0  ;;  %v19937_v44 = vadd.f32 %v29822_v7, %v19769_v19  ;;  %v19787_v15 = vmax.f32 %v30996_v37, %v19136_v48  ;;  %v19138_v27 = vpop.f32.mrb[3].mxu1  ;;  %v31004_v39 = vld [vmem:[#allocation76_spill] sm:$0xff] }
 0x86a   : > { %20630 = vst [vmem:[%s29845_s16 + $0x1c8] sm:$0xff] %v21907_v9  ;;  %v21906_v1 = vpack.c.bf16 %v20174_v36, %v20173_v61  ;;  %v20068_v14 = vmax.f32 %v19940_v41, 0.0  ;;  %v19938_v42 = vadd.f32 %v29822_v7, %v19770_v55  ;;  %v19788_v59 = vmax.f32 %v30997_v57, %v19138_v27  ;;  %v19023_v30 = vpop.f32.mrb[2].mxu0  ;;  %v31005_v41 = vld [vmem:[#allocation79_spill] sm:$0xff] }
 0x86b   : > { %v20065_v11 = vmax.f32 %v19937_v44, 0.0  ;;  %v19955_v20 = vadd.f32 %v29833_v4, %v19787_v15  ;;  %v19785_v46 = vmax.f32 %v30998_v54, %v19023_v30  ;;  %v19025_v31 = vpop.f32.mrb[3].mxu0  ;;  %v31006_v44 = vld [vmem:[#allocation77_spill] sm:$0xff] }
 0x86c   : > { %20629 = vst [vmem:[%s29845_s16 + $0x1c0] sm:$0xff] %v21906_v1  ;;  %v21853_v6 = vpack.c.bf16 %v20068_v14, %v20067_v16  ;;  %v20066_v23 = vmax.f32 %v19938_v42, 0.0  ;;  %v19956_v49 = vadd.f32 %v29833_v4, %v19788_v59  ;;  %v19786_v35 = vmax.f32 %v30999_v0, %v19025_v31  ;;  %v19142_v8 = vpop.f32.mrb[4].mxu1  ;;  %v31007_v42 = vld [vmem:[#allocation78_spill] sm:$0xff] }
 0x86d   : > { %v20083_v40 = vmax.f32 %v19955_v20, 0.0  ;;  %v19953_v25 = vadd.f32 %v29833_v4, %v19785_v46  ;;  %v19803_v5 = vmax.f32 %v31000_v29, %v19142_v8  ;;  %v19144_v53 = vpop.f32.mrb[5].mxu1  ;;  %v31008_v20 = vld [vmem:[#allocation84_spill] sm:$0xff] }
 0x86e   : > { %20576 = vst [vmem:[%s29845_s16 + $0x18] sm:$0xff] %v21853_v6  ;;  %v21852_v22 = vpack.c.bf16 %v20066_v23, %v20065_v11  ;;  %v20084_v47 = vmax.f32 %v19956_v49, 0.0  ;;  %v19954_v43 = vadd.f32 %v29833_v4, %v19786_v35  ;;  %v19804_v21 = vmax.f32 %v31001_v60, %v19144_v53  ;;  %v19029_v13 = vpop.f32.mrb[4].mxu0  ;;  %v31009_v49 = vld [vmem:[#allocation85_spill] sm:$0xff] }
 0x86f   : > { %v20081_v51 = vmax.f32 %v19953_v25, 0.0  ;;  %v19971_v52 = vadd.f32 %v29843_v17, %v19803_v5  ;;  %v19801_v12 = vmax.f32 %v31002_v18, %v19029_v13  ;;  %v19031_v10 = vpop.f32.mrb[5].mxu0  ;;  %v31010_v25 = vld [vmem:[#allocation86_spill] sm:$0xff] }
 0x870   : > { %20575 = vst [vmem:[%s29845_s16 + $0x10] sm:$0xff] %v21852_v22  ;;  %v21861_v34 = vpack.c.bf16 %v20084_v47, %v20083_v40  ;;  %v20082_v26 = vmax.f32 %v19954_v43, 0.0  ;;  %v19972_v50 = vadd.f32 %v29843_v17, %v19804_v21  ;;  %v19802_v2 = vmax.f32 %v31003_v45, %v19031_v10  ;;  %v19148_v33 = vpop.f32.mrb[6].mxu1  ;;  %v31011_v43 = vld [vmem:[#allocation87_spill] sm:$0xff] }
 0x871   : > { %v20099_v62 = vmax.f32 %v19971_v52, 0.0  ;;  %v19969_v61 = vadd.f32 %v29843_v17, %v19801_v12  ;;  %v19819_v58 = vmax.f32 %v31004_v39, %v19148_v33  ;;  %v19150_v19 = vpop.f32.mrb[7].mxu1  ;;  %v31012_v52 = vld [vmem:[#allocation38_spill] sm:$0xff] }
 0x872   : > { %20584 = vst [vmem:[%s29845_s16 + $0x58] sm:$0xff] %v21861_v34  ;;  %v21860_v56 = vpack.c.bf16 %v20082_v26, %v20081_v51  ;;  %v20100_v9 = vmax.f32 %v19972_v50, 0.0  ;;  %v19970_v36 = vadd.f32 %v29843_v17, %v19802_v2  ;;  %v19820_v32 = vmax.f32 %v31005_v41, %v19150_v19  ;;  %v19035_v55 = vpop.f32.mrb[6].mxu0  ;;  %v31013_v50 = vld [vmem:[#allocation32_spill] sm:$0xff] }
 0x873   : > { %v20097_v48 = vmax.f32 %v19969_v61, 0.0  ;;  %v19987_v16 = vadd.f32 %v29857_v24, %v19819_v58  ;;  %v19817_v37 = vmax.f32 %v31006_v44, %v19035_v55  ;;  %v19037_v15 = vpop.f32.mrb[7].mxu0  ;;  %v31014_v61 = vld [vmem:[#allocation88_spill] sm:$0xff] }
 0x874   : > { %20583 = vst [vmem:[%s29845_s16 + $0x50] sm:$0xff] %v21860_v56  ;;  %v21869_v27 = vpack.c.bf16 %v20100_v9, %v20099_v62  ;;  %v20098_v1 = vmax.f32 %v19970_v36, 0.0  ;;  %v19988_v14 = vadd.f32 %v29857_v24, %v19820_v32  ;;  %v19818_v57 = vmax.f32 %v31007_v42, %v19037_v15  ;;  %v19154_v59 = vpop.f32.mrb[8].mxu1  ;;  %v31015_v36 = vld [vmem:[#allocation39_spill] sm:$0xff] }
 0x875   : > { %v20115_v30 = vmax.f32 %v19987_v16, 0.0  ;;  %v19985_v11 = vadd.f32 %v29857_v24, %v19817_v37  ;;  %v19835_v54 = vmax.f32 %v31008_v20, %v19154_v59  ;;  %v19156_v46 = vpop.f32.mrb[9].mxu1  ;;  %v31016_v16 = vld [vmem:[#allocation103_spill] sm:$0xff] }
 0x876   : > { %20592 = vst [vmem:[%s29845_s16 + $0x98] sm:$0xff] %v21869_v27  ;;  %v21868_v31 = vpack.c.bf16 %v20098_v1, %v20097_v48  ;;  %v20116_v6 = vmax.f32 %v19988_v14, 0.0  ;;  %v19986_v23 = vadd.f32 %v29857_v24, %v19818_v57  ;;  %v19836_v0 = vmax.f32 %v31009_v49, %v19156_v46  ;;  %v19041_v35 = vpop.f32.mrb[8].mxu0  ;;  %v31017_v14 = vld [vmem:[#allocation104_spill] sm:$0xff] }
 0x877   : > { %v20113_v8 = vmax.f32 %v19985_v11, 0.0  ;;  %v20003_v40 = vadd.f32 %v29869_v63, %v19835_v54  ;;  %v19833_v29 = vmax.f32 %v31010_v25, %v19041_v35  ;;  %v19043_v5 = vpop.f32.mrb[9].mxu0  ;;  %v31018_v11 = vld [vmem:[#allocation106_spill] sm:$0xff] }
 0x878   : > { %20591 = vst [vmem:[%s29845_s16 + $0x90] sm:$0xff] %v21868_v31  ;;  %v21877_v53 = vpack.c.bf16 %v20116_v6, %v20115_v30  ;;  %v20114_v22 = vmax.f32 %v19986_v23, 0.0  ;;  %v20004_v47 = vadd.f32 %v29869_v63, %v19836_v0  ;;  %v19834_v60 = vmax.f32 %v31011_v43, %v19043_v5  ;;  %v19160_v21 = vpop.f32.mrb[10].mxu1  ;;  %v31019_v23 = vld [vmem:[#allocation44_spill] sm:$0xff] }
 0x879   : > { %v20131_v13 = vmax.f32 %v20003_v40, 0.0  ;;  %v20001_v51 = vadd.f32 %v29869_v63, %v19833_v29  ;;  %v19851_v18 = vmax.f32 %v31012_v52, %v19160_v21  ;;  %v19162_v12 = vpop.f32.mrb[11].mxu1  ;;  %v31020_v40 = vld [vmem:[#allocation53_spill] sm:$0xff] }
 0x87a   : > { %20600 = vst [vmem:[%s29845_s16 + $0xd8] sm:$0xff] %v21877_v53  ;;  %v21876_v10 = vpack.c.bf16 %v20114_v22, %v20113_v8  ;;  %v20132_v34 = vmax.f32 %v20004_v47, 0.0  ;;  %v20002_v26 = vadd.f32 %v29869_v63, %v19834_v60  ;;  %v19852_v45 = vmax.f32 %v31013_v50, %v19162_v12  ;;  %v19047_v2 = vpop.f32.mrb[10].mxu0  ;;  %v31021_v47 = vld [vmem:[#allocation55_spill] sm:$0xff] }
 0x87b   : > { %v20129_v33 = vmax.f32 %v20001_v51, 0.0  ;;  %v20019_v62 = vadd.f32 %v29881_v3, %v19851_v18  ;;  %v19849_v39 = vmax.f32 %v31014_v61, %v19047_v2  ;;  %v19049_v58 = vpop.f32.mrb[11].mxu0  ;;  %v31022_v51 = vld [vmem:[#allocation52_spill] sm:$0xff] }
 0x87c   : > { %20599 = vst [vmem:[%s29845_s16 + $0xd0] sm:$0xff] %v21876_v10  ;;  %v21885_v19 = vpack.c.bf16 %v20132_v34, %v20131_v13  ;;  %v20130_v56 = vmax.f32 %v20002_v26, 0.0  ;;  %v20020_v9 = vadd.f32 %v29881_v3, %v19852_v45  ;;  %v19850_v41 = vmax.f32 %v31015_v36, %v19049_v58  ;;  %v19166_v32 = vpop.f32.mrb[12].mxu1  ;;  %v31023_v26 = vld [vmem:[#allocation46_spill] sm:$0xff] }
 0x87d   : > { %v20147_v55 = vmax.f32 %v20019_v62, 0.0  ;;  %v20017_v48 = vadd.f32 %v29881_v3, %v19849_v39  ;;  %v19867_v44 = vmax.f32 %v31016_v16, %v19166_v32  ;;  %v19168_v37 = vpop.f32.mrb[13].mxu1  ;;  %v31024_v62 = vld [vmem:[#allocation45_spill] sm:$0xff] }
 0x87e   : > { %20608 = vst [vmem:[%s29845_s16 + $0x118] sm:$0xff] %v21885_v19  ;;  %v21884_v15 = vpack.c.bf16 %v20130_v56, %v20129_v33  ;;  %v20148_v27 = vmax.f32 %v20020_v9, 0.0  ;;  %v20018_v1 = vadd.f32 %v29881_v3, %v19850_v41  ;;  %v19868_v42 = vmax.f32 %v31017_v14, %v19168_v37  ;;  %v19053_v57 = vpop.f32.mrb[12].mxu0  ;;  %v31025_v9 = vld [vmem:[#allocation26_spill] sm:$0xff] }
 0x87f   : > { %v20145_v59 = vmax.f32 %v20017_v48, 0.0  ;;  %v20035_v30 = vadd.f32 %v29893_v28, %v19867_v44  ;;  %v19865_v20 = vmax.f32 %v31018_v11, %v19053_v57  ;;  %v19055_v54 = vpop.f32.mrb[13].mxu0  ;;  %v31026_v48 = vld [vmem:[#allocation54_spill] sm:$0xff] }
 0x880   : > { %20607 = vst [vmem:[%s29845_s16 + $0x110] sm:$0xff] %v21884_v15  ;;  %v21893_v46 = vpack.c.bf16 %v20148_v27, %v20147_v55  ;;  %v20146_v31 = vmax.f32 %v20018_v1, 0.0  ;;  %v20036_v6 = vadd.f32 %v29893_v28, %v19868_v42  ;;  %v19866_v49 = vmax.f32 %v31019_v23, %v19055_v54  ;;  %v19172_v0 = vpop.f32.mrb[14].mxu1  ;;  %v31027_v1 = vld [vmem:[#allocation47_spill] sm:$0xff] }
 0x881   : > { %v20163_v35 = vmax.f32 %v20035_v30, 0.0  ;;  %v20033_v8 = vadd.f32 %v29893_v28, %v19865_v20  ;;  %v19883_v25 = vmax.f32 %v31020_v40, %v19172_v0  ;;  %v19174_v29 = vpop.f32.mrb[15].mxu1  ;;  %v31028_v30 = vld [vmem:[#allocation24_spill] sm:$0xff] }
 0x882   : > { %20616 = vst [vmem:[%s29845_s16 + $0x158] sm:$0xff] %v21893_v46  ;;  %v21892_v5 = vpack.c.bf16 %v20146_v31, %v20145_v59  ;;  %v20164_v53 = vmax.f32 %v20036_v6, 0.0  ;;  %v20034_v22 = vadd.f32 %v29893_v28, %v19866_v49  ;;  %v19884_v43 = vmax.f32 %v31021_v47, %v19174_v29  ;;  %v19059_v60 = vpop.f32.mrb[14].mxu0  ;;  %v31029_v6 = vld [vmem:[#allocation27_spill] sm:$0xff] }
 0x883   : > { %v20161_v21 = vmax.f32 %v20033_v8, 0.0  ;;  %v20051_v13 = vadd.f32 %v29905_v38, %v19883_v25  ;;  %v19881_v52 = vmax.f32 %v31022_v51, %v19059_v60  ;;  %v19061_v18 = vpop.f32.mrb[15].mxu0  ;;  %v31030_v8 = vld [vmem:[#allocation10_spill] sm:$0xff] }
 0x884   : > { %20615 = vst [vmem:[%s29845_s16 + $0x150] sm:$0xff] %v21892_v5  ;;  %v21901_v12 = vpack.c.bf16 %v20164_v53, %v20163_v35  ;;  %v20162_v10 = vmax.f32 %v20034_v22, 0.0  ;;  %v20052_v34 = vadd.f32 %v29905_v38, %v19884_v43  ;;  %v19882_v50 = vmax.f32 %v31023_v26, %v19061_v18  ;;  %v19356_v45 = vpop.f32.mrb[16].mxu1  ;;  %v31031_v22 = vld [vmem:[#allocation28_spill] sm:$0xff] }
 0x885   : > { %v20179_v2 = vmax.f32 %v20051_v13, 0.0  ;;  %v20049_v33 = vadd.f32 %v29905_v38, %v19881_v52  ;;  %v19775_v61 = vmax.f32 %v31024_v62, %v19356_v45  ;;  %v19358_v39 = vpop.f32.mrb[17].mxu1  ;;  %v31032_v13 = vld [vmem:[#allocation30_spill] sm:$0xff] }
 0x886   : > { %20624 = vst [vmem:[%s29845_s16 + $0x198] sm:$0xff] %v21901_v12  ;;  %v21900_v58 = vpack.c.bf16 %v20162_v10, %v20161_v21  ;;  %v20180_v19 = vmax.f32 %v20052_v34, 0.0  ;;  %v20050_v56 = vadd.f32 %v29905_v38, %v19882_v50  ;;  %v19776_v36 = vmax.f32 %v31025_v9, %v19358_v39  ;;  %v19243_v41 = vpop.f32.mrb[16].mxu0  ;;  %v31033_v34 = vld [vmem:[#allocation31_spill] sm:$0xff] }
 0x887   : > { %v20177_v32 = vmax.f32 %v20049_v33, 0.0  ;;  %v19943_v55 = vadd.f32 %v29822_v7, %v19775_v61  ;;  %v19773_v16 = vmax.f32 %v31026_v48, %v19243_v41  ;;  %v19245_v44 = vpop.f32.mrb[17].mxu0  ;;  %v31034_v33 = vld [vmem:[#allocation90_spill] sm:$0xff] }
 0x888   : > { %20623 = vst [vmem:[%s29845_s16 + $0x190] sm:$0xff] %v21900_v58  ;;  %v21909_v37 = vpack.c.bf16 %v20180_v19, %v20179_v2  ;;  %v20178_v15 = vmax.f32 %v20050_v56, 0.0  ;;  %v19944_v27 = vadd.f32 %v29822_v7, %v19776_v36  ;;  %v19774_v14 = vmax.f32 %v31027_v1, %v19245_v44  ;;  %v19362_v42 = vpop.f32.mrb[18].mxu1  ;;  %v31035_v56 = vld [vmem:[#allocation25_spill] sm:$0xff] }
 0x889   : > { %v20071_v57 = vmax.f32 %v19943_v55, 0.0  ;;  %v19941_v59 = vadd.f32 %v29822_v7, %v19773_v16  ;;  %v19791_v11 = vmax.f32 %v31028_v30, %v19362_v42  ;;  %v19364_v20 = vpop.f32.mrb[19].mxu1  ;;  %v31036_v55 = vld [vmem:[#allocation37_spill] sm:$0xff] }
 0x88a   : > { %20632 = vst [vmem:[%s29845_s16 + $0x1d8] sm:$0xff] %v21909_v37  ;;  %v21908_v54 = vpack.c.bf16 %v20178_v15, %v20177_v32  ;;  %v20072_v46 = vmax.f32 %v19944_v27, 0.0  ;;  %v19942_v31 = vadd.f32 %v29822_v7, %v19774_v14  ;;  %v19792_v23 = vmax.f32 %v31029_v6, %v19364_v20  ;;  %v19249_v49 = vpop.f32.mrb[18].mxu0  ;;  %v31037_v27 = vld [vmem:[#allocation89_spill] sm:$0xff] }
 0x88b   : > { %v20069_v0 = vmax.f32 %v19941_v59, 0.0  ;;  %v19959_v35 = vadd.f32 %v29833_v4, %v19791_v11  ;;  %v19789_v40 = vmax.f32 %v31030_v8, %v19249_v49  ;;  %v19251_v25 = vpop.f32.mrb[19].mxu0  ;;  %v31038_v59 = vld [vmem:[#allocation95_spill] sm:$0xff] }
 0x88c   : > { %20631 = vst [vmem:[%s29845_s16 + $0x1d0] sm:$0xff] %v21908_v54  ;;  %v21855_v29 = vpack.c.bf16 %v20072_v46, %v20071_v57  ;;  %v20070_v5 = vmax.f32 %v19942_v31, 0.0  ;;  %v19960_v53 = vadd.f32 %v29833_v4, %v19792_v23  ;;  %v19790_v47 = vmax.f32 %v31031_v22, %v19251_v25  ;;  %v19368_v43 = vpop.f32.mrb[20].mxu1  ;;  %v31039_v31 = vld [vmem:[#allocation36_spill] sm:$0xff] }
 0x88d   : > { %v20087_v60 = vmax.f32 %v19959_v35, 0.0  ;;  %v19957_v21 = vadd.f32 %v29833_v4, %v19789_v40  ;;  %v19807_v51 = vmax.f32 %v31032_v13, %v19368_v43  ;;  %v19370_v52 = vpop.f32.mrb[21].mxu1  ;;  %v31040_v35 = vld [vmem:[#allocation94_spill] sm:$0xff] }
 0x88e   : > { %20578 = vst [vmem:[%s29845_s16 + $0x28] sm:$0xff] %v21855_v29  ;;  %v21854_v18 = vpack.c.bf16 %v20070_v5, %v20069_v0  ;;  %v20088_v12 = vmax.f32 %v19960_v53, 0.0  ;;  %v19958_v10 = vadd.f32 %v29833_v4, %v19790_v47  ;;  %v19808_v26 = vmax.f32 %v31033_v34, %v19370_v52  ;;  %v19255_v50 = vpop.f32.mrb[20].mxu0  ;;  %v31041_v53 = vld [vmem:[#allocation93_spill] sm:$0xff] }
 0x88f   : > { %v20085_v45 = vmax.f32 %v19957_v21, 0.0  ;;  %v19975_v2 = vadd.f32 %v29843_v17, %v19807_v51  ;;  %v19805_v62 = vmax.f32 %v31034_v33, %v19255_v50  ;;  %v19257_v61 = vpop.f32.mrb[21].mxu0  ;;  %v31042_v21 = vld [vmem:[#allocation63_spill] sm:$0xff] }
 0x890   : > { %20577 = vst [vmem:[%s29845_s16 + $0x20] sm:$0xff] %v21854_v18  ;;  %v21863_v39 = vpack.c.bf16 %v20088_v12, %v20087_v60  ;;  %v20086_v58 = vmax.f32 %v19958_v10, 0.0  ;;  %v19976_v19 = vadd.f32 %v29843_v17, %v19808_v26  ;;  %v19806_v9 = vmax.f32 %v31035_v56, %v19257_v61  ;;  %v19374_v36 = vpop.f32.mrb[22].mxu1  ;;  %v31043_v10 = vld [vmem:[#allocation58_spill] sm:$0xff] }
 0x891   : > { %v20103_v41 = vmax.f32 %v19975_v2, 0.0  ;;  %v19973_v32 = vadd.f32 %v29843_v17, %v19805_v62  ;;  %v19823_v48 = vmax.f32 %v31036_v55, %v19374_v36  ;;  %v19376_v16 = vpop.f32.mrb[23].mxu1  ;;  %v31044_v2 = vld [vmem:[#allocation97_spill] sm:$0xff] }
 0x892   : > { %20586 = vst [vmem:[%s29845_s16 + $0x68] sm:$0xff] %v21863_v39  ;;  %v21862_v44 = vpack.c.bf16 %v20086_v58, %v20085_v45  ;;  %v20104_v37 = vmax.f32 %v19976_v19, 0.0  ;;  %v19974_v15 = vadd.f32 %v29843_v17, %v19806_v9  ;;  %v19824_v1 = vmax.f32 %v31037_v27, %v19376_v16  ;;  %v19261_v14 = vpop.f32.mrb[22].mxu0  ;;  %v31045_v19 = vld [vmem:[#allocation62_spill] sm:$0xff] }
 0x893   : > { %v20101_v42 = vmax.f32 %v19973_v32, 0.0  ;;  %v19991_v57 = vadd.f32 %v29857_v24, %v19823_v48  ;;  %v19821_v30 = vmax.f32 %v31038_v59, %v19261_v14  ;;  %v19263_v11 = vpop.f32.mrb[23].mxu0  ;;  %v31046_v32 = vld [vmem:[#allocation100_spill] sm:$0xff] }
 0x894   : > { %20585 = vst [vmem:[%s29845_s16 + $0x60] sm:$0xff] %v21862_v44  ;;  %v21871_v20 = vpack.c.bf16 %v20104_v37, %v20103_v41  ;;  %v20102_v54 = vmax.f32 %v19974_v15, 0.0  ;;  %v19992_v46 = vadd.f32 %v29857_v24, %v19824_v1  ;;  %v19822_v6 = vmax.f32 %v31039_v31, %v19263_v11  ;;  %v19380_v23 = vpop.f32.mrb[24].mxu1  ;;  %v31047_v15 = vld [vmem:[#allocation61_spill] sm:$0xff] }
 0x895   : > { %v20119_v49 = vmax.f32 %v19991_v57, 0.0  ;;  %v19989_v0 = vadd.f32 %v29857_v24, %v19821_v30  ;;  %v19839_v8 = vmax.f32 %v31040_v35, %v19380_v23  ;;  %v19382_v40 = vpop.f32.mrb[25].mxu1  ;;  %v31048_v57 = vld [vmem:[#allocation99_spill] sm:$0xff] }
 0x896   : > { %20594 = vst [vmem:[%s29845_s16 + $0xa8] sm:$0xff] %v21871_v20  ;;  %v21870_v25 = vpack.c.bf16 %v20102_v54, %v20101_v42  ;;  %v20120_v29 = vmax.f32 %v19992_v46, 0.0  ;;  %v19990_v5 = vadd.f32 %v29857_v24, %v19822_v6  ;;  %v19840_v22 = vmax.f32 %v31041_v53, %v19382_v40  ;;  %v19267_v47 = vpop.f32.mrb[24].mxu0  ;;  %v31049_v46 = vld [vmem:[#allocation68_spill] sm:$0xff] }
 0x897   : > { %v20117_v43 = vmax.f32 %v19989_v0, 0.0  ;;  %v20007_v60 = vadd.f32 %v29869_v63, %v19839_v8  ;;  %v19837_v13 = vmax.f32 %v31042_v21, %v19267_v47  ;;  %v19269_v51 = vpop.f32.mrb[25].mxu0  ;;  %v31050_v0 = vld [vmem:[#allocation75_spill] sm:$0xff] }
 0x898   : > { %20593 = vst [vmem:[%s29845_s16 + $0xa0] sm:$0xff] %v21870_v25  ;;  %v21879_v52 = vpack.c.bf16 %v20120_v29, %v20119_v49  ;;  %v20118_v18 = vmax.f32 %v19990_v5, 0.0  ;;  %v20008_v12 = vadd.f32 %v29869_v63, %v19840_v22  ;;  %v19838_v34 = vmax.f32 %v31043_v10, %v19269_v51  ;;  %v19386_v26 = vpop.f32.mrb[26].mxu1  ;;  %v31051_v5 = vld [vmem:[#allocation67_spill] sm:$0xff] }
 0x899   : > { %v20135_v50 = vmax.f32 %v20007_v60, 0.0  ;;  %v20005_v45 = vadd.f32 %v29869_v63, %v19837_v13  ;;  %v19855_v33 = vmax.f32 %v31044_v2, %v19386_v26  ;;  %v19388_v62 = vpop.f32.mrb[27].mxu1  ;;  %v31052_v60 = vld [vmem:[#allocation74_spill] sm:$0xff] }
 0x89a   : > { %20602 = vst [vmem:[%s29845_s16 + $0xe8] sm:$0xff] %v21879_v52  ;;  %v21878_v61 = vpack.c.bf16 %v20118_v18, %v20117_v43  ;;  %v20136_v39 = vmax.f32 %v20008_v12, 0.0  ;;  %v20006_v58 = vadd.f32 %v29869_v63, %v19838_v34  ;;  %v19856_v56 = vmax.f32 %v31045_v19, %v19388_v62  ;;  %v19273_v9 = vpop.f32.mrb[26].mxu0  ;;  %v31053_v12 = vld [vmem:[#allocation73_spill] sm:$0xff] }
 0x89b   : > { %v20133_v36 = vmax.f32 %v20005_v45, 0.0  ;;  %v20023_v41 = vadd.f32 %v29881_v3, %v19855_v33  ;;  %v19853_v55 = vmax.f32 %v31046_v32, %v19273_v9  ;;  %v19275_v48 = vpop.f32.mrb[27].mxu0  ;;  %v31054_v45 = vld [vmem:[#allocation83_spill] sm:$0xff] }
 0x89c   : > { %20601 = vst [vmem:[%s29845_s16 + $0xe0] sm:$0xff] %v21878_v61  ;;  %v21887_v16 = vpack.c.bf16 %v20136_v39, %v20135_v50  ;;  %v20134_v44 = vmax.f32 %v20006_v58, 0.0  ;;  %v20024_v37 = vadd.f32 %v29881_v3, %v19856_v56  ;;  %v19854_v27 = vmax.f32 %v31047_v15, %v19275_v48  ;;  %v19392_v1 = vpop.f32.mrb[28].mxu1  ;;  %v31055_v58 = vld [vmem:[#allocation72_spill] sm:$0xff] }
 0x89d   : > { %v20151_v14 = vmax.f32 %v20023_v41, 0.0  ;;  %v20021_v42 = vadd.f32 %v29881_v3, %v19853_v55  ;;  %v19871_v59 = vmax.f32 %v31048_v57, %v19392_v1  ;;  %v19394_v30 = vpop.f32.mrb[29].mxu1  ;;  %v31056_v41 = vld [vmem:[#allocation82_spill] sm:$0xff] }
 0x89e   : > { %20610 = vst [vmem:[%s29845_s16 + $0x128] sm:$0xff] %v21887_v16  ;;  %v21886_v11 = vpack.c.bf16 %v20134_v44, %v20133_v36  ;;  %v20152_v20 = vmax.f32 %v20024_v37, 0.0  ;;  %v20022_v54 = vadd.f32 %v29881_v3, %v19854_v27  ;;  %v19872_v31 = vmax.f32 %v31049_v46, %v19394_v30  ;;  %v19279_v6 = vpop.f32.mrb[28].mxu0  ;;  %v31057_v37 = vld [vmem:[#allocation107_spill] sm:$0xff] }
 0x89f   : > { %v20149_v23 = vmax.f32 %v20021_v42, 0.0  ;;  %v20039_v49 = vadd.f32 %v29893_v28, %v19871_v59  ;;  %v19869_v35 = vmax.f32 %v31050_v0, %v19279_v6  ;;  %v19281_v8 = vpop.f32.mrb[29].mxu0  ;;  %v31058_v42 = vld [vmem:[#allocation108_spill] sm:$0xff] }
 0x8a0   : > { %20609 = vst [vmem:[%s29845_s16 + $0x120] sm:$0xff] %v21886_v11  ;;  %v21895_v40 = vpack.c.bf16 %v20152_v20, %v20151_v14  ;;  %v20150_v25 = vmax.f32 %v20022_v54, 0.0  ;;  %v20040_v29 = vadd.f32 %v29893_v28, %v19872_v31  ;;  %v19870_v53 = vmax.f32 %v31051_v5, %v19281_v8  ;;  %v19398_v22 = vpop.f32.mrb[30].mxu1  ;;  %v31059_v54 = vld [vmem:[#allocation109_spill] sm:$0xff] }
 0x8a1   : > { %v20167_v47 = vmax.f32 %v20039_v49, 0.0  ;;  %v20037_v43 = vadd.f32 %v29893_v28, %v19869_v35  ;;  %v19887_v21 = vmax.f32 %v31052_v60, %v19398_v22  ;;  %v19400_v13 = vpop.f32.mrb[31].mxu1  ;;  %v31060_v49 = vld [vmem:[#allocation110_spill] sm:$0xff] }
 0x8a2   : > { %20618 = vst [vmem:[%s29845_s16 + $0x168] sm:$0xff] %v21895_v40  ;;  %v21894_v51 = vpack.c.bf16 %v20150_v25, %v20149_v23  ;;  %v20168_v52 = vmax.f32 %v20040_v29, 0.0  ;;  %v20038_v18 = vadd.f32 %v29893_v28, %v19870_v53  ;;  %v19888_v10 = vmax.f32 %v31053_v12, %v19400_v13  ;;  %v19285_v34 = vpop.f32.mrb[30].mxu0  ;;  %v31061_v29 = vld [vmem:[#allocation111_spill] sm:$0xff] }
 0x8a3   : > { %v20165_v26 = vmax.f32 %v20037_v43, 0.0  ;;  %v20055_v50 = vadd.f32 %v29905_v38, %v19887_v21  ;;  %v19885_v2 = vmax.f32 %v31054_v45, %v19285_v34  ;;  %v19287_v33 = vpop.f32.mrb[31].mxu0  ;;  %v31062_v43 = vld [vmem:[#allocation112_spill] sm:$0xff] }
 0x8a4   : > { %20617 = vst [vmem:[%s29845_s16 + $0x160] sm:$0xff] %v21894_v51  ;;  %v21903_v62 = vpack.c.bf16 %v20168_v52, %v20167_v47  ;;  %v20166_v61 = vmax.f32 %v20038_v18, 0.0  ;;  %v20056_v39 = vadd.f32 %v29905_v38, %v19888_v10  ;;  %v19886_v19 = vmax.f32 %v31055_v58, %v19287_v33  ;;  %v19582_v56 = vpop.f32.mrb[32].mxu1  ;;  %v31063_v18 = vld [vmem:[#allocation113_spill] sm:$0xff] }
 0x8a5   : > { %v20183_v9 = vmax.f32 %v20055_v50, 0.0  ;;  %v20053_v36 = vadd.f32 %v29905_v38, %v19885_v2  ;;  %v19779_v32 = vmax.f32 %v31056_v41, %v19582_v56  ;;  %v19584_v55 = vpop.f32.mrb[33].mxu1 }
 0x8a6   : > { %20626 = vst [vmem:[%s29845_s16 + $0x1a8] sm:$0xff] %v21903_v62  ;;  %v21902_v48 = vpack.c.bf16 %v20166_v61, %v20165_v26  ;;  %v20184_v16 = vmax.f32 %v20056_v39, 0.0  ;;  %v20054_v44 = vadd.f32 %v29905_v38, %v19886_v19  ;;  %v19780_v15 = vmax.f32 %v31057_v37, %v19584_v55  ;;  %v19469_v27 = vpop.f32.mrb[32].mxu0  ;;  %v31064_v26 = vld [vmem:[#allocation114_spill] sm:$0xff]  ;;  %v31065_v61 = vld [vmem:[#allocation115_spill] sm:$0xff] }
 0x8a7   : > { %v20181_v1 = vmax.f32 %v20053_v36, 0.0  ;;  %v19947_v14 = vadd.f32 %v29822_v7, %v19779_v32  ;;  %v19777_v57 = vmax.f32 %v31058_v42, %v19469_v27  ;;  %v19471_v59 = vpop.f32.mrb[33].mxu0  ;;  %v31068_v27 = vld [vmem:[#allocation118_spill] sm:$0xff] }
 0x8a8   : > { %20625 = vst [vmem:[%s29845_s16 + $0x1a0] sm:$0xff] %v21902_v48  ;;  %v21911_v30 = vpack.c.bf16 %v20184_v16, %v20183_v9  ;;  %v20182_v11 = vmax.f32 %v20054_v44, 0.0  ;;  %v19948_v20 = vadd.f32 %v29822_v7, %v19780_v15  ;;  %v19778_v46 = vmax.f32 %v31059_v54, %v19471_v59  ;;  %v19588_v31 = vpop.f32.mrb[34].mxu1  ;;  %v31066_v9 = vld [vmem:[#allocation116_spill] sm:$0xff]  ;;  %v31067_v16 = vld [vmem:[#allocation117_spill] sm:$0xff] }
 0x8a9   : > { %v20075_v6 = vmax.f32 %v19947_v14, 0.0  ;;  %v19945_v23 = vadd.f32 %v29822_v7, %v19777_v57  ;;  %v19795_v0 = vmax.f32 %v31060_v49, %v19588_v31  ;;  %v19590_v35 = vpop.f32.mrb[35].mxu1  ;;  %v31070_v31 = vld [vmem:[#allocation81_spill] sm:$0xff] }
 0x8aa   : > { %20634 = vst [vmem:[%s29845_s16 + $0x1e8] sm:$0xff] %v21911_v30  ;;  %v21910_v8 = vpack.c.bf16 %v20182_v11, %v20181_v1  ;;  %v20076_v40 = vmax.f32 %v19948_v20, 0.0  ;;  %v19946_v25 = vadd.f32 %v29822_v7, %v19778_v46  ;;  %v19796_v5 = vmax.f32 %v31061_v29, %v19590_v35  ;;  %v19475_v53 = vpop.f32.mrb[34].mxu0  ;;  %v31069_v30 = vld [vmem:[#allocation119_spill] sm:$0xff] }
 0x8ab   : > { %v20073_v22 = vmax.f32 %v19945_v23, 0.0  ;;  %v19963_v47 = vadd.f32 %v29833_v4, %v19795_v0  ;;  %v19793_v60 = vmax.f32 %v31062_v43, %v19475_v53  ;;  %v19477_v21 = vpop.f32.mrb[35].mxu0 }
 0x8ac   : > { %20633 = vst [vmem:[%s29845_s16 + $0x1e0] sm:$0xff] %v21910_v8  ;;  %v21857_v13 = vpack.c.bf16 %v20076_v40, %v20075_v6  ;;  %v20074_v51 = vmax.f32 %v19946_v25, 0.0  ;;  %v19964_v52 = vadd.f32 %v29833_v4, %v19796_v5  ;;  %v19794_v12 = vmax.f32 %v31063_v18, %v19477_v21  ;;  %v19594_v10 = vpop.f32.mrb[36].mxu1  ;;  %v31071_v8 = vld [vmem:[#allocation105_spill] sm:$0xff]  ;;  %v31072_v5 = vld [vmem:[#allocation120_spill] sm:$0xff] }
 0x8ad   : > { %v20091_v7 = vmax.f32 %v19963_v47, 0.0  ;;  %v19961_v34 = vadd.f32 %v29833_v4, %v19793_v60  ;;  %v19811_v50 = vmax.f32 %v31064_v26, %v19594_v10  ;;  %v19596_v45 = vpop.f32.mrb[37].mxu1  ;;  %v31073_v21 = vld [vmem:[#allocation80_spill] sm:$0xff] }
 0x8ae   : > { %20580 = vst [vmem:[%s29845_s16 + $0x38] sm:$0xff] %v21857_v13  ;;  %v21856_v2 = vpack.c.bf16 %v20074_v51, %v20073_v22  ;;  %v20092_v33 = vmax.f32 %v19964_v52, 0.0  ;;  %v19962_v62 = vadd.f32 %v29833_v4, %v19794_v12  ;;  %v19812_v39 = vmax.f32 %v31065_v61, %v19596_v45  ;;  %v19481_v58 = vpop.f32.mrb[36].mxu0  ;;  %v31074_v12 = vld [vmem:[#allocation102_spill] sm:$0xff]  ;;  %v31075_v45 = vld [vmem:[#allocation101_spill] sm:$0xff] }
 0x8af   : > { %v20089_v19 = vmax.f32 %v19961_v34, 0.0  ;;  %v19979_v56 = vadd.f32 %v29843_v17, %v19811_v50  ;;  %v19809_v36 = vmax.f32 %v31066_v9, %v19481_v58  ;;  %v19483_v41 = vpop.f32.mrb[37].mxu0  ;;  %v31076_v61 = vld [vmem:[#allocation121_spill] sm:$0xff] }
 0x8b0   : > { %20579 = vst [vmem:[%s29845_s16 + $0x30] sm:$0xff] %v21856_v2  ;;  %v21865_v32 = vpack.c.bf16 %v20092_v33, %v20091_v7  ;;  %v20090_v55 = vmax.f32 %v19962_v62, 0.0  ;;  %v19980_v48 = vadd.f32 %v29843_v17, %v19812_v39  ;;  %v19810_v44 = vmax.f32 %v31067_v16, %v19483_v41  ;;  %v19600_v37 = vpop.f32.mrb[38].mxu1  ;;  %v31078_v16 = vld [vmem:[#allocation122_spill] sm:$0xff] }
 0x8b1   : > { %v20107_v4 = vmax.f32 %v19979_v56, 0.0  ;;  %v19977_v15 = vadd.f32 %v29843_v17, %v19809_v36  ;;  %v19827_v1 = vmax.f32 %v31068_v27, %v19600_v37  ;;  %v19602_v14 = vpop.f32.mrb[39].mxu1  ;;  %v31077_v36 = vld [vmem:[#allocation33_spill] sm:$0xff] }
 0x8b2   : > { %20588 = vst [vmem:[%s29845_s16 + $0x78] sm:$0xff] %v21865_v32  ;;  %v21864_v42 = vpack.c.bf16 %v20090_v55, %v20089_v19  ;;  %v20108_v57 = vmax.f32 %v19980_v48, 0.0  ;;  %v19978_v59 = vadd.f32 %v29843_v17, %v19810_v44  ;;  %v19828_v11 = vmax.f32 %v31069_v30, %v19602_v14  ;;  %v19487_v20 = vpop.f32.mrb[38].mxu0 }
 0x8b3   : > { %v20105_v54 = vmax.f32 %v19977_v15, 0.0  ;;  %v19995_v46 = vadd.f32 %v29857_v24, %v19827_v1  ;;  %v19825_v6 = vmax.f32 %v31070_v31, %v19487_v20  ;;  %v19489_v23 = vpop.f32.mrb[39].mxu0  ;;  %v31079_v1 = vld [vmem:[#allocation123_spill] sm:$0xff]  ;;  %v31081_v31 = vld [vmem:[#allocation125_spill] sm:$0xff] }
 0x8b4   : > { %20587 = vst [vmem:[%s29845_s16 + $0x70] sm:$0xff] %v21864_v42  ;;  %v21873_v49 = vpack.c.bf16 %v20108_v57, %v20107_v4  ;;  %v20106_v0 = vmax.f32 %v19978_v59, 0.0  ;;  %v19996_v35 = vadd.f32 %v29857_v24, %v19828_v11  ;;  %v19826_v40 = vmax.f32 %v31071_v8, %v19489_v23  ;;  %v19606_v25 = vpop.f32.mrb[40].mxu1  ;;  %v31080_v59 = vld [vmem:[#allocation124_spill] sm:$0xff] }
 0x8b5   : > { %v20123_v17 = vmax.f32 %v19995_v46, 0.0  ;;  %v19993_v29 = vadd.f32 %v29857_v24, %v19825_v6  ;;  %v19843_v53 = vmax.f32 %v31072_v5, %v19606_v25  ;;  %v19608_v22 = vpop.f32.mrb[41].mxu1  ;;  %v31083_v5 = vld [vmem:[#allocation127_spill] sm:$0xff] }
 0x8b6   : > { %20596 = vst [vmem:[%s29845_s16 + $0xb8] sm:$0xff] %v21873_v49  ;;  %v21872_v47 = vpack.c.bf16 %v20106_v0, %v20105_v54  ;;  %v20124_v43 = vmax.f32 %v19996_v35, 0.0  ;;  %v19994_v60 = vadd.f32 %v29857_v24, %v19826_v40  ;;  %v19844_v13 = vmax.f32 %v31073_v21, %v19608_v22  ;;  %v19493_v51 = vpop.f32.mrb[40].mxu0  ;;  %v31082_v35 = vld [vmem:[#allocation126_spill] sm:$0xff] }
 0x8b7   : > { %v20121_v52 = vmax.f32 %v19993_v29, 0.0  ;;  %v20011_v18 = vadd.f32 %v29869_v63, %v19843_v53  ;;  %v19841_v10 = vmax.f32 %v31074_v12, %v19493_v51  ;;  %v19495_v7 = vpop.f32.mrb[41].mxu0 }
 0x8b8   : > { %20595 = vst [vmem:[%s29845_s16 + $0xb0] sm:$0xff] %v21872_v47  ;;  %v21881_v34 = vpack.c.bf16 %v20124_v43, %v20123_v17  ;;  %v20122_v26 = vmax.f32 %v19994_v60, 0.0  ;;  %v20012_v50 = vadd.f32 %v29869_v63, %v19844_v13  ;;  %v19842_v2 = vmax.f32 %v31075_v45, %v19495_v7  ;;  %v19612_v33 = vpop.f32.mrb[42].mxu1  ;;  %v31084_v43 = vld [vmem:[#allocation128_spill] sm:$0xff] }
 0x8b9   : > { %v20139_v24 = vmax.f32 %v20011_v18, 0.0  ;;  %v20009_v62 = vadd.f32 %v29869_v63, %v19841_v10  ;;  %v19859_v39 = vmax.f32 %v31076_v61, %v19612_v33  ;;  %v19614_v58 = vpop.f32.mrb[43].mxu1  ;;  %v31085_v18 = vld [vmem:[#allocation129_spill] sm:$0xff] }
 0x8ba   : > { %20604 = vst [vmem:[%s29845_s16 + $0xf8] sm:$0xff] %v21881_v34  ;;  %v21880_v19 = vpack.c.bf16 %v20122_v26, %v20121_v52  ;;  %v20140_v56 = vmax.f32 %v20012_v50, 0.0  ;;  %v20010_v9 = vadd.f32 %v29869_v63, %v19842_v2  ;;  %v19860_v41 = vmax.f32 %v31077_v36, %v19614_v58  ;;  %v19499_v32 = vpop.f32.mrb[42].mxu0  ;;  %v31086_v26 = vld [vmem:[#allocation130_spill] sm:$0xff] }
 0x8bb   : > { %v20137_v55 = vmax.f32 %v20009_v62, 0.0  ;;  %v20027_v48 = vadd.f32 %v29881_v3, %v19859_v39  ;;  %v19857_v44 = vmax.f32 %v31078_v16, %v19499_v32  ;;  %v19501_v37 = vpop.f32.mrb[43].mxu0  ;;  %v31087_v62 = vld [vmem:[#allocation131_spill] sm:$0xff] }
 0x8bc   : > { %20603 = vst [vmem:[%s29845_s16 + $0xf0] sm:$0xff] %v21880_v19  ;;  %v21889_v4 = vpack.c.bf16 %v20140_v56, %v20139_v24  ;;  %v20138_v15 = vmax.f32 %v20010_v9, 0.0  ;;  %v20028_v27 = vadd.f32 %v29881_v3, %v19860_v41  ;;  %v19858_v14 = vmax.f32 %v31079_v1, %v19501_v37  ;;  %v19618_v42 = vpop.f32.mrb[44].mxu1 }
 0x8bd   : > { %v20155_v63 = vmax.f32 %v20027_v48, 0.0  ;;  %v20025_v57 = vadd.f32 %v29881_v3, %v19857_v44  ;;  %v19875_v30 = vmax.f32 %v31080_v59, %v19618_v42  ;;  %v19620_v11 = vpop.f32.mrb[45].mxu1 }
 0x8be   : > { %20612 = vst [vmem:[%s29845_s16 + $0x138] sm:$0xff] %v21889_v4  ;;  %v21888_v20 = vpack.c.bf16 %v20138_v15, %v20137_v55  ;;  %v20156_v54 = vmax.f32 %v20028_v27, 0.0  ;;  %v20026_v46 = vadd.f32 %v29881_v3, %v19858_v14  ;;  %v19876_v6 = vmax.f32 %v31081_v31, %v19620_v11  ;;  %v19505_v23 = vpop.f32.mrb[44].mxu0 }
 0x8bf   : > { %v20153_v49 = vmax.f32 %v20025_v57, 0.0  ;;  %v20043_v0 = vadd.f32 %v29893_v28, %v19875_v30  ;;  %v19873_v8 = vmax.f32 %v31082_v35, %v19505_v23  ;;  %v19507_v40 = vpop.f32.mrb[45].mxu0 }
 0x8c0   : > { %20611 = vst [vmem:[%s29845_s16 + $0x130] sm:$0xff] %v21888_v20  ;;  %v21897_v25 = vpack.c.bf16 %v20156_v54, %v20155_v63  ;;  %v20154_v17 = vmax.f32 %v20026_v46, 0.0  ;;  %v20044_v29 = vadd.f32 %v29893_v28, %v19876_v6  ;;  %v19874_v53 = vmax.f32 %v31083_v5, %v19507_v40  ;;  %v19624_v22 = vpop.f32.mrb[46].mxu1 }
 0x8c1   : > { %v20171_v3 = vmax.f32 %v20043_v0, 0.0  ;;  %v20041_v47 = vadd.f32 %v29893_v28, %v19873_v8  ;;  %v19891_v60 = vmax.f32 %v31084_v43, %v19624_v22  ;;  %v19626_v21 = vpop.f32.mrb[47].mxu1 }
 0x8c2   : > { %20620 = vst [vmem:[%s29845_s16 + $0x178] sm:$0xff] %v21897_v25  ;;  %v21896_v13 = vpack.c.bf16 %v20154_v17, %v20153_v49  ;;  %v20172_v51 = vmax.f32 %v20044_v29, 0.0  ;;  %v20042_v52 = vadd.f32 %v29893_v28, %v19874_v53  ;;  %v19892_v12 = vmax.f32 %v31085_v18, %v19626_v21  ;;  %v19511_v10 = vpop.f32.mrb[46].mxu0 }
 0x8c3   : > { %v20169_v7 = vmax.f32 %v20041_v47, 0.0  ;;  %v20059_v34 = vadd.f32 %v29905_v38, %v19891_v60  ;;  %v19889_v50 = vmax.f32 %v31086_v26, %v19511_v10  ;;  %v19513_v45 = vpop.f32.mrb[47].mxu0 }
 0x8c4   : > { %20619 = vst [vmem:[%s29845_s16 + $0x170] sm:$0xff] %v21896_v13  ;;  %v21905_v2 = vpack.c.bf16 %v20172_v51, %v20171_v3  ;;  %v20170_v33 = vmax.f32 %v20042_v52, 0.0  ;;  %v20060_v24 = vadd.f32 %v29905_v38, %v19892_v12  ;;  %v19890_v28 = vmax.f32 %v31087_v62, %v19513_v45 }
 0x8c5   : > { %v20187_v61 = vmax.f32 %v20059_v34, 0.0  ;;  %v20057_v39 = vadd.f32 %v29905_v38, %v19889_v50 }
 0x8c6   : > { %20628 = vst [vmem:[%s29845_s16 + $0x1b8] sm:$0xff] %v21905_v2  ;;  %v21904_v58 = vpack.c.bf16 %v20170_v33, %v20169_v7  ;;  %v20188_v19 = vmax.f32 %v20060_v24, 0.0  ;;  %v20058_v56 = vadd.f32 %v29905_v38, %v19890_v28 }
 0x8c7   : > { %v20185_v9 = vmax.f32 %v20057_v39, 0.0 }
 0x8c8   : > { %20627 = vst [vmem:[%s29845_s16 + $0x1b0] sm:$0xff] %v21904_v58  ;;  %v21913_v36 = vpack.c.bf16 %v20188_v19, %v20187_v61  ;;  %v20186_v41 = vmax.f32 %v20058_v56, 0.0 }
 0x8ca   : > { %20636 = vst [vmem:[%s29845_s16 + $0x1f8] sm:$0xff] %v21913_v36  ;;  %v21912_v32 = vpack.c.bf16 %v20186_v41, %v20185_v9 }
 0x8cc   : > { %20635 = vst [vmem:[%s29845_s16 + $0x1f0] sm:$0xff] %v21912_v32 }
 0x8cd   : > { %23990 = shalt.err (!%p23987_p7)
}
 0x8ce   : > { %s23991_s13 = scalar_lea.hbm %s30164_s26, 8192  ;;  %s23995_s9 = scalar_lea.hbm %s30219_s6, 16384 }
 0x8cf   : > { %p23992_p8 = scmp.ne.s32.totalorder %s30164_s26, %s23991_s13  ;;  %p23996_p1 = scmp.lt.u32.totalorder %s30164_s26, %s30219_s6 }
 0x8d0   : > { %p23997_p0 = scmp.lt.u32.totalorder %s23995_s9, %s23991_s13  ;;  %p23999_p6 = scmp.lt.u32.totalorder %s23991_s13, %s30164_s26 }
 0x8d1   : > { %p23993_p11 = pnand %p23992_p8, %p31088_p9 }
 0x8d2   : > { %p23998_p5 = por %p23997_p0, %p23996_p1 }
 0x8d3   : > { %p23994_p13 = pneg %p23993_p11 }
 0x8d4   : > { %p24000_p10 = por %p23999_p6, %p23998_p5 }
 0x8d6   : > { %p24001_p12 = pnand %p24000_p10, %p23994_p13 }
 0x8d8   : > { %24004 = shalt.err (!%p24001_p12)
}
 0x8d9   : > { %s24053_s17 = smov 1024   ;;  %s24054_s19 = smov 64  }
 0x8da   : > { %23525 = dma.vmem_to_hbm [thread:$0]  (%p31088_p9), %s30166_s18, 8192, %s30164_s26, %s30172_s25, %s24053_s17, %s24053_s17, %s24054_s19  }
 0x8db PF: > { %p23537_p2 = scmp.ge.s32.totalorder %s24043_s24, 2  ;;  %s20666_s20 = sand.u32 1, %s24031_s21  }
 0x8dc   : > { %p31089_p3 = scmp.ne.s32.totalorder %s30362_s8, 0  ;;  %s20667_s28 = scalar_lea.sflag [#allocation4], %s20666_s20 }
 0x8de   : > { %p23532_p4 = pnand %p23537_p2, %p31089_p3 }
 0x8e0   : > { %24026 = dma.done.wait (!%p23532_p4), %s20667_s28, 8192  }
 0x8e1   : > { %24028 = vsyncadd (!%p23532_p4), %s20667_s28, 4294959104  ;;  %p17_p7 = scmp.ge.s32.totalorder %s24115_s27, 4   ;;  %s31090_s21 = smov %s24035_s22 }
 0x8e2   : > { %s31091_s22 = smov %s24039_s23  ;;  %s31092_s23 = smov %s24126_s30 }
 0x8e3   : > { %s31093_s24 = smov %s24115_s27  ;;  %19 = sbr.rel (!%p17_p7) target bundleno = 4 (0x4), region = 88 }
 0x8ea   :  { %20672 = vsyncpa [#allocation3], 1 }
 0x8eb   :  { %20674 = vsyncpa [#allocation3 + $0x1], 1 }
 0x8ec   :  { %20675 = vsyncpa [#allocation4], 1 }
 0x8ed   :  { %20677 = vsyncpa [#allocation4 + $0x1], 1 }

</bundles_post_ra>
